<compile_context>
chip_gen: v5e
topology: v5e:2x2
jax: 0.10.0
libtpu: 0.0.40
codegen_flags: <defaults>
</compile_context>

<pallas_src>
import functools

import jax
import jax.numpy as jnp
from jax import lax
from jax.experimental import pallas as pl
from jax.experimental.pallas import tpu as pltpu

NUM_GROUPS = 32
EPS = 1e-6


# ----------------------------- in-kernel helpers ----------------------------

def _gn_swish_frame(x, gamma, beta, num_groups, eps):
    """GroupNorm(num_groups, C, eps) + x*sigmoid(x) on a single frame.

    x: [C, HW] f32 (per-frame statistics == per-sample GroupNorm of the
       reference, since each sample in the (b t) layout is one frame).
    gamma/beta: [C, 1] f32.
    """
    C, _ = x.shape
    g = C // num_groups

    mean_c = jnp.mean(x, axis=-1, keepdims=True)                     # [C, 1]
    if g > 1:  # sublane-only group combine; unused for C == num_groups (g == 1)
        gm = jnp.mean(mean_c.reshape(num_groups, g, 1), axis=1, keepdims=True)
        mean_c = jnp.broadcast_to(gm, (num_groups, g, 1)).reshape(C, 1)

    xc = x - mean_c
    var_c = jnp.mean(xc * xc, axis=-1, keepdims=True)                # [C, 1]
    if g > 1:
        gv = jnp.mean(var_c.reshape(num_groups, g, 1), axis=1, keepdims=True)
        var_c = jnp.broadcast_to(gv, (num_groups, g, 1)).reshape(C, 1)

    y = xc * lax.rsqrt(var_c + eps)
    y = y * gamma + beta                                             # affine
    # swish via one EUP push: sigmoid(y) = 0.5 * (1 + tanh(0.5*y))
    return y * (0.5 * (jnp.tanh(0.5 * y) + 1.0))


# ----------------------------- fused Pallas kernel ---------------------------

def temporal_resnet_kernel(x_ref, aff_ref, w_ref, o_ref, pad1_ref, pad2_ref, *,
                           num_frames, num_groups, eps, dot_dtype):
    """V videos (V*T frames) per grid step; everything resident in VMEM.

    x_ref / o_ref : [V*T, C, HW]     channel-major, lane-dense HW
    aff_ref       : [C, 6]           cols = g1, b1, conv1_b, g2, b2, conv2_b
    w_ref         : [2, Cout, 3*Cin] tap-major weights (index = k*Cin + ci)
    pad1/pad2_ref : [(T+2)*C, HW]    zero-padded temporal scratch (dot_dtype)
    """
    T = num_frames
    VT, C, HW = x_ref.shape
    V = VT // T
    Cout = w_ref.shape[1]

    aff = aff_ref[...]                                               # [C, 6]
    g1, bn1, c1b = aff[:, 0:1], aff[:, 1:2], aff[:, 2:3]
    g2, bn2, c2b = aff[:, 3:4], aff[:, 4:5], aff[:, 5:6]
    w1 = w_ref[0].astype(dot_dtype)                                  # [Cout, 3C]
    w2 = w_ref[1].astype(dot_dtype)                                  # [Cout, 3Cout]
    prec = jax.lax.Precision.HIGHEST if dot_dtype == jnp.float32 else None

    # Zero the temporal-halo frames once per grid step (never written below).
    pad1_ref[0:C] = jnp.zeros((C, HW), dot_dtype)
    pad1_ref[(T + 1) * C:(T + 2) * C] = jnp.zeros((C, HW), dot_dtype)
    pad2_ref[0:Cout] = jnp.zeros((Cout, HW), dot_dtype)
    pad2_ref[(T + 1) * Cout:(T + 2) * Cout] = jnp.zeros((Cout, HW), dot_dtype)

    for v in range(V):
        base = v * T

        # norm1 + swish, cast ONCE to dot_dtype, into padded scratch rows 1..T
        for t in range(T):
            h = _gn_swish_frame(x_ref[base + t], g1, bn1, num_groups, eps)
            pad1_ref[(t + 1) * C:(t + 2) * C] = h.astype(dot_dtype)

        # conv1: one K=3*Cin matmul per frame on a free slice of the padded
        # scratch, then norm2 + swish fused per frame into the second scratch.
        # (dropout p=0 / eval mode -> identity)
        for t in range(T):
            patch = pad1_ref[t * C:(t + 3) * C]                      # [3C, HW]
            h = jnp.dot(w1, patch, preferred_element_type=jnp.float32,
                        precision=prec) + c1b
            h = _gn_swish_frame(h, g2, bn2, num_groups, eps)
            pad2_ref[(t + 1) * Cout:(t + 2) * Cout] = h.astype(dot_dtype)

        # conv2 + bias + residual, stored straight to the output frame.
        for t in range(T):
            patch = pad2_ref[t * Cout:(t + 3) * Cout]                # [3Cout, HW]
            acc = jnp.dot(w2, patch, preferred_element_type=jnp.float32,
                          precision=prec) + c2b
            o_ref[base + t] = x_ref[base + t] + acc


# ----------------------------- wrapper ---------------------------------------

def temporal_resnet_block_forward(params, x_nchw, num_frames, *,
                                  dot_dtype=jnp.float32, videos_per_block=1):
    """Matches TemporalResnetBlock.forward(x, zq=None, num_frames=num_frames)."""
    BT, C, H, W = x_nchw.shape
    T = num_frames
    assert BT % T == 0
    B = BT // T
    V = videos_per_block
    assert B % V == 0, "videos_per_block must divide the number of videos"
    HW = H * W

    w1 = params["conv1_w"]                       # [Cout, Cin, 3] (torch layout)
    w2 = params["conv2_w"]
    Cout = w1.shape[0]
    assert Cout == C, "residual add requires out_channels == in_channels"

    def tapmajor(w):  # [Cout, Cin, 3] -> [Cout, 3*Cin], flat index = k*Cin + ci
        return jnp.transpose(w, (0, 2, 1)).reshape(w.shape[0], 3 * w.shape[1])

    w_stacked = jnp.stack([tapmajor(w1), tapmajor(w2)], axis=0)      # [2, Cout, 3C]
    aff = jnp.stack(
        [params["norm1_gamma"], params["norm1_beta"], params["conv1_b"],
         params["norm2_gamma"], params["norm2_beta"], params["conv2_b"]],
        axis=1).astype(jnp.float32)                                  # [C, 6]

    x3 = x_nchw.reshape(BT, C, HW)               # free reshape, channel-major

    kern = functools.partial(temporal_resnet_kernel, num_frames=T,
                             num_groups=NUM_GROUPS, eps=EPS, dot_dtype=dot_dtype)

    flops = int(2 * (2 * Cout * 3 * C * HW) * BT + 24 * C * HW * BT)
    transcendentals = int(2 * BT * C * HW)
    bytes_accessed = int(2 * BT * C * HW * 4 + w_stacked.size * 4 + aff.size * 4)

    out = pl.pallas_call(
        kern,
        out_shape=jax.ShapeDtypeStruct((BT, Cout, HW), jnp.float32),
        grid=(B // V,),
        in_specs=[
            pl.BlockSpec((V * T, C, HW), lambda i: (i, 0, 0)),       # V videos
            pl.BlockSpec((C, 6), lambda i: (0, 0)),                  # packed affine/bias
            pl.BlockSpec((2, Cout, 3 * C), lambda i: (0, 0, 0)),     # packed conv weights
        ],
        out_specs=pl.BlockSpec((V * T, Cout, HW), lambda i: (i, 0, 0)),
        scratch_shapes=[
            pltpu.VMEM(((T + 2) * C, HW), dot_dtype),                # padded pre-conv1
            pltpu.VMEM(((T + 2) * Cout, HW), dot_dtype),             # padded pre-conv2
        ],
        compiler_params=pltpu.CompilerParams(
            dimension_semantics=("parallel",)),                      # v7x: 2 TCs
        cost_estimate=pl.CostEstimate(flops=flops,
                                      transcendentals=transcendentals,
                                      bytes_accessed=bytes_accessed),
    )(x3, aff, w_stacked)

    return out.reshape(BT, Cout, H, W)           # free reshape back to NCHW


# ----------------------------- parameters ------------------------------------

def init_params(key, in_ch, out_ch):
    ks = jax.random.split(key, 4)
    return dict(
        norm1_gamma=jnp.ones((in_ch,), jnp.float32),   # GroupNorm affine defaults
        norm1_beta=jnp.zeros((in_ch,), jnp.float32),
        conv1_w=jax.random.normal(ks[0], (out_ch, in_ch, 3), jnp.float32) * 0.05,
        conv1_b=jax.random.normal(ks[1], (out_ch,), jnp.float32) * 0.05,
        norm2_gamma=jnp.ones((out_ch,), jnp.float32),
        norm2_beta=jnp.zeros((out_ch,), jnp.float32),
        conv2_w=jax.random.normal(ks[2], (out_ch, out_ch, 3), jnp.float32) * 0.05,
        conv2_b=jax.random.normal(ks[3], (out_ch,), jnp.float32) * 0.05,
    )


# ----------------------------- pure-JAX reference (sanity check) -------------

def _reference_forward(params, x, num_frames):
    BT, C, H, W = x.shape
    T = num_frames
    B = BT // T
    HW = H * W

    def gn_swish(h, gamma, beta):
        hh = h.reshape(BT, NUM_GROUPS, C // NUM_GROUPS, HW)
        m = hh.mean(axis=(2, 3), keepdims=True)
        v = ((hh - m) ** 2).mean(axis=(2, 3), keepdims=True)
        y = ((hh - m) / jnp.sqrt(v + EPS)).reshape(BT, C, H, W)
        y = y * gamma.reshape(1, C, 1, 1) + beta.reshape(1, C, 1, 1)
        return y * jax.nn.sigmoid(y)

    def tconv(h, w, b):                           # w: [Cout, Cin, 3]
        cout, cin, _ = w.shape
        hv = h.reshape(B, T, cin, HW)
        hp = jnp.pad(hv, ((0, 0), (1, 1), (0, 0), (0, 0)))
        out = sum(
            jnp.einsum('btcs,oc->btos', hp[:, k:k + T], w[:, :, k],
                       precision=jax.lax.Precision.HIGHEST)
            for k in range(3))
        return (out + b.reshape(1, 1, cout, 1)).reshape(BT, cout, H, W)

    h = gn_swish(x, params["norm1_gamma"], params["norm1_beta"])
    h = tconv(h, params["conv1_w"], params["conv1_b"])
    h = gn_swish(h, params["norm2_gamma"], params["norm2_beta"])
    h = tconv(h, params["conv2_w"], params["conv2_b"])
    return x + h


# ----------------------------- demo -------------------------------------------

if __name__ == "__main__":
    key = jax.random.PRNGKey(0)
    B, T, C, H, W = 2, 4, 32, 16, 16          # x is [(b t), c, h, w] like the module
    kp, kx = jax.random.split(key)

    params = init_params(kp, C, C)            # out_channels defaults to in_channels
    x = jax.random.normal(kx, (B * T, C, H, W), jnp.float32)

    fwd = jax.jit(lambda xx: temporal_resnet_block_forward(params, xx, T))
    out = fwd(x)
    jax.block_until_ready(out)
    assert out.shape == (B * T, C, H, W) and out.dtype == jnp.float32

    ref = _reference_forward(params, x, T)
    err = float(jnp.max(jnp.abs(out - ref)))
    assert err < 2e-2, f"f32 kernel mismatch vs reference: max|diff|={err}"

    # bf16 MXU-operand variant (valid on v5e/v6e/v7x; norm/swish math stays f32).
    fwd_bf16 = jax.jit(lambda xx: temporal_resnet_block_forward(
        params, xx, T, dot_dtype=jnp.bfloat16))
    out_bf16 = fwd_bf16(x)
    jax.block_until_ready(out_bf16)
    err_bf16 = float(jnp.max(jnp.abs(out_bf16 - ref)))
    assert err_bf16 < 1.5e-1, f"bf16 kernel mismatch vs reference: max|diff|={err_bf16}"

    # Multi-video-per-block variant (in-kernel loop over V videos per grid step).
    fwd_v2 = jax.jit(lambda xx: temporal_resnet_block_forward(
        params, xx, T, videos_per_block=2))
    out_v2 = fwd_v2(x)
    jax.block_until_ready(out_v2)
    err_v2 = float(jnp.max(jnp.abs(out_v2 - ref)))
    assert err_v2 < 2e-2, f"V=2 kernel mismatch vs reference: max|diff|={err_v2}"

    print("KERNEL_OK")
</pallas_src>

<mosaic_0001>
module attributes {stable_mosaic.version = 11 : i64} {
  func.func @temporal_resnet_kernel(%arg0: i32, %arg1: memref<4x32x256xf32, #tpu.memory_space<vmem>>, %arg2: memref<32x6xf32, #tpu.memory_space<vmem>>, %arg3: memref<2x32x96xf32, #tpu.memory_space<vmem>>, %arg4: memref<4x32x256xf32, #tpu.memory_space<vmem>>, %arg5: memref<192x256xf32, #tpu.memory_space<vmem>>, %arg6: memref<192x256xf32, #tpu.memory_space<vmem>>) attributes {dimension_semantics = [#tpu.dimension_semantics<parallel>], iteration_bounds = array<i64: 2>, scalar_prefetch = 0 : i64, scratch_operands = 2 : i64, tpu.core_type = #tpu.core_type<tc>, window_params = [{transform_indices = @transform_0, window_bounds = array<i64: 4, 32, 256>}, {pipeline_mode = #tpu.pipeline_mode<synchronous>, transform_indices = @transform_1, window_bounds = array<i64: 32, 6>}, {pipeline_mode = #tpu.pipeline_mode<synchronous>, transform_indices = @transform_2, window_bounds = array<i64: 2, 32, 96>}, {transform_indices = @transform_3, window_bounds = array<i64: 4, 32, 256>}]} {
    %c0 = arith.constant 0 : index
    %c0_0 = arith.constant 0 : index
    %0 = vector.load %arg2[%c0, %c0_0] : memref<32x6xf32, #tpu.memory_space<vmem>>, vector<32x6xf32>
    %1 = vector.extract_strided_slice %0 {offsets = [0, 0], sizes = [32, 1], strides = [1, 1]} : vector<32x6xf32> to vector<32x1xf32>
    %2 = vector.extract_strided_slice %0 {offsets = [0, 1], sizes = [32, 1], strides = [1, 1]} : vector<32x6xf32> to vector<32x1xf32>
    %3 = vector.extract_strided_slice %0 {offsets = [0, 2], sizes = [32, 1], strides = [1, 1]} : vector<32x6xf32> to vector<32x1xf32>
    %4 = vector.extract_strided_slice %0 {offsets = [0, 3], sizes = [32, 1], strides = [1, 1]} : vector<32x6xf32> to vector<32x1xf32>
    %5 = vector.extract_strided_slice %0 {offsets = [0, 4], sizes = [32, 1], strides = [1, 1]} : vector<32x6xf32> to vector<32x1xf32>
    %6 = vector.extract_strided_slice %0 {offsets = [0, 5], sizes = [32, 1], strides = [1, 1]} : vector<32x6xf32> to vector<32x1xf32>
    %c0_1 = arith.constant 0 : index
    %c0_2 = arith.constant 0 : index
    %c0_3 = arith.constant 0 : index
    %7 = vector.load %arg3[%c0_1, %c0_2, %c0_3] : memref<2x32x96xf32, #tpu.memory_space<vmem>>, vector<1x32x96xf32>
    %8 = vector.shape_cast %7 : vector<1x32x96xf32> to vector<32x96xf32>
    %c1 = arith.constant 1 : index
    %c0_4 = arith.constant 0 : index
    %c0_5 = arith.constant 0 : index
    %9 = vector.load %arg3[%c1, %c0_4, %c0_5] : memref<2x32x96xf32, #tpu.memory_space<vmem>>, vector<1x32x96xf32>
    %10 = vector.shape_cast %9 : vector<1x32x96xf32> to vector<32x96xf32>
    %cst = arith.constant 0.000000e+00 : f32
    %11 = vector.broadcast %cst : f32 to vector<32x256xf32>
    %c0_6 = arith.constant 0 : index
    %c0_7 = arith.constant 0 : index
    %12 = vector.load %arg5[%c0_6, %c0_7] : memref<192x256xf32, #tpu.memory_space<vmem>>, vector<32x256xf32>
    tpu.vector_store %arg5[%c0_6, %c0_7], %11 {strides = array<i32>} : memref<192x256xf32, #tpu.memory_space<vmem>>, vector<32x256xf32>,
    %cst_8 = arith.constant 0.000000e+00 : f32
    %13 = vector.broadcast %cst_8 : f32 to vector<32x256xf32>
    %c160 = arith.constant 160 : index
    %c0_9 = arith.constant 0 : index
    %14 = vector.load %arg5[%c160, %c0_9] : memref<192x256xf32, #tpu.memory_space<vmem>>, vector<32x256xf32>
    tpu.vector_store %arg5[%c160, %c0_9], %13 {strides = array<i32>} : memref<192x256xf32, #tpu.memory_space<vmem>>, vector<32x256xf32>,
    %cst_10 = arith.constant 0.000000e+00 : f32
    %15 = vector.broadcast %cst_10 : f32 to vector<32x256xf32>
    %c0_11 = arith.constant 0 : index
    %c0_12 = arith.constant 0 : index
    %16 = vector.load %arg6[%c0_11, %c0_12] : memref<192x256xf32, #tpu.memory_space<vmem>>, vector<32x256xf32>
    tpu.vector_store %arg6[%c0_11, %c0_12], %15 {strides = array<i32>} : memref<192x256xf32, #tpu.memory_space<vmem>>, vector<32x256xf32>,
    %cst_13 = arith.constant 0.000000e+00 : f32
    %17 = vector.broadcast %cst_13 : f32 to vector<32x256xf32>
    %c160_14 = arith.constant 160 : index
    %c0_15 = arith.constant 0 : index
    %18 = vector.load %arg6[%c160_14, %c0_15] : memref<192x256xf32, #tpu.memory_space<vmem>>, vector<32x256xf32>
    tpu.vector_store %arg6[%c160_14, %c0_15], %17 {strides = array<i32>} : memref<192x256xf32, #tpu.memory_space<vmem>>, vector<32x256xf32>,
    %c0_16 = arith.constant 0 : index
    %c0_17 = arith.constant 0 : index
    %c0_18 = arith.constant 0 : index
    %19 = vector.load %arg1[%c0_16, %c0_17, %c0_18] : memref<4x32x256xf32, #tpu.memory_space<vmem>>, vector<1x32x256xf32>
    %20 = vector.shape_cast %19 : vector<1x32x256xf32> to vector<32x256xf32>
    %cst_19 = arith.constant dense<0.000000e+00> : vector<32xf32>
    %21 = vector.multi_reduction <add>, %20, %cst_19 [1] : vector<32x256xf32> to vector<32xf32>
    %22 = vector.shape_cast %21 : vector<32xf32> to vector<32x1xf32>
    %cst_20 = arith.constant 2.560000e+02 : f32
    %23 = vector.broadcast %cst_20 : f32 to vector<32x1xf32>
    %24 = arith.divf %22, %23 : vector<32x1xf32>
    %25 = vector.broadcast %24 : vector<32x1xf32> to vector<32x256xf32>
    %26 = arith.subf %20, %25 : vector<32x256xf32>
    %27 = arith.mulf %26, %26 : vector<32x256xf32>
    %cst_21 = arith.constant dense<0.000000e+00> : vector<32xf32>
    %28 = vector.multi_reduction <add>, %27, %cst_21 [1] : vector<32x256xf32> to vector<32xf32>
    %29 = vector.shape_cast %28 : vector<32xf32> to vector<32x1xf32>
    %cst_22 = arith.constant 2.560000e+02 : f32
    %30 = vector.broadcast %cst_22 : f32 to vector<32x1xf32>
    %31 = arith.divf %29, %30 : vector<32x1xf32>
    %cst_23 = arith.constant 9.99999997E-7 : f32
    %32 = vector.broadcast %cst_23 : f32 to vector<32x1xf32>
    %33 = arith.addf %31, %32 : vector<32x1xf32>
    %34 = math.rsqrt %33 : vector<32x1xf32>
    %35 = vector.broadcast %34 : vector<32x1xf32> to vector<32x256xf32>
    %36 = arith.mulf %26, %35 : vector<32x256xf32>
    %37 = vector.broadcast %1 : vector<32x1xf32> to vector<32x256xf32>
    %38 = arith.mulf %36, %37 : vector<32x256xf32>
    %39 = vector.broadcast %2 : vector<32x1xf32> to vector<32x256xf32>
    %40 = arith.addf %38, %39 : vector<32x256xf32>
    %cst_24 = arith.constant 5.000000e-01 : f32
    %41 = vector.broadcast %cst_24 : f32 to vector<32x256xf32>
    %42 = arith.mulf %41, %40 : vector<32x256xf32>
    %43 = math.tanh %42 : vector<32x256xf32>
    %cst_25 = arith.constant 1.000000e+00 : f32
    %44 = vector.broadcast %cst_25 : f32 to vector<32x256xf32>
    %45 = arith.addf %43, %44 : vector<32x256xf32>
    %cst_26 = arith.constant 5.000000e-01 : f32
    %46 = vector.broadcast %cst_26 : f32 to vector<32x256xf32>
    %47 = arith.mulf %46, %45 : vector<32x256xf32>
    %48 = arith.mulf %40, %47 : vector<32x256xf32>
    %c32 = arith.constant 32 : index
    %c0_27 = arith.constant 0 : index
    %49 = vector.load %arg5[%c32, %c0_27] : memref<192x256xf32, #tpu.memory_space<vmem>>, vector<32x256xf32>
    tpu.vector_store %arg5[%c32, %c0_27], %48 {strides = array<i32>} : memref<192x256xf32, #tpu.memory_space<vmem>>, vector<32x256xf32>,
    %c1_28 = arith.constant 1 : index
    %c0_29 = arith.constant 0 : index
    %c0_30 = arith.constant 0 : index
    %50 = vector.load %arg1[%c1_28, %c0_29, %c0_30] : memref<4x32x256xf32, #tpu.memory_space<vmem>>, vector<1x32x256xf32>
    %51 = vector.shape_cast %50 : vector<1x32x256xf32> to vector<32x256xf32>
    %cst_31 = arith.constant dense<0.000000e+00> : vector<32xf32>
    %52 = vector.multi_reduction <add>, %51, %cst_31 [1] : vector<32x256xf32> to vector<32xf32>
    %53 = vector.shape_cast %52 : vector<32xf32> to vector<32x1xf32>
    %cst_32 = arith.constant 2.560000e+02 : f32
    %54 = vector.broadcast %cst_32 : f32 to vector<32x1xf32>
    %55 = arith.divf %53, %54 : vector<32x1xf32>
    %56 = vector.broadcast %55 : vector<32x1xf32> to vector<32x256xf32>
    %57 = arith.subf %51, %56 : vector<32x256xf32>
    %58 = arith.mulf %57, %57 : vector<32x256xf32>
    %cst_33 = arith.constant dense<0.000000e+00> : vector<32xf32>
    %59 = vector.multi_reduction <add>, %58, %cst_33 [1] : vector<32x256xf32> to vector<32xf32>
    %60 = vector.shape_cast %59 : vector<32xf32> to vector<32x1xf32>
    %cst_34 = arith.constant 2.560000e+02 : f32
    %61 = vector.broadcast %cst_34 : f32 to vector<32x1xf32>
    %62 = arith.divf %60, %61 : vector<32x1xf32>
    %cst_35 = arith.constant 9.99999997E-7 : f32
    %63 = vector.broadcast %cst_35 : f32 to vector<32x1xf32>
    %64 = arith.addf %62, %63 : vector<32x1xf32>
    %65 = math.rsqrt %64 : vector<32x1xf32>
    %66 = vector.broadcast %65 : vector<32x1xf32> to vector<32x256xf32>
    %67 = arith.mulf %57, %66 : vector<32x256xf32>
    %68 = vector.broadcast %1 : vector<32x1xf32> to vector<32x256xf32>
    %69 = arith.mulf %67, %68 : vector<32x256xf32>
    %70 = vector.broadcast %2 : vector<32x1xf32> to vector<32x256xf32>
    %71 = arith.addf %69, %70 : vector<32x256xf32>
    %cst_36 = arith.constant 5.000000e-01 : f32
    %72 = vector.broadcast %cst_36 : f32 to vector<32x256xf32>
    %73 = arith.mulf %72, %71 : vector<32x256xf32>
    %74 = math.tanh %73 : vector<32x256xf32>
    %cst_37 = arith.constant 1.000000e+00 : f32
    %75 = vector.broadcast %cst_37 : f32 to vector<32x256xf32>
    %76 = arith.addf %74, %75 : vector<32x256xf32>
    %cst_38 = arith.constant 5.000000e-01 : f32
    %77 = vector.broadcast %cst_38 : f32 to vector<32x256xf32>
    %78 = arith.mulf %77, %76 : vector<32x256xf32>
    %79 = arith.mulf %71, %78 : vector<32x256xf32>
    %c64 = arith.constant 64 : index
    %c0_39 = arith.constant 0 : index
    %80 = vector.load %arg5[%c64, %c0_39] : memref<192x256xf32, #tpu.memory_space<vmem>>, vector<32x256xf32>
    tpu.vector_store %arg5[%c64, %c0_39], %79 {strides = array<i32>} : memref<192x256xf32, #tpu.memory_space<vmem>>, vector<32x256xf32>,
    %c2 = arith.constant 2 : index
    %c0_40 = arith.constant 0 : index
    %c0_41 = arith.constant 0 : index
    %81 = vector.load %arg1[%c2, %c0_40, %c0_41] : memref<4x32x256xf32, #tpu.memory_space<vmem>>, vector<1x32x256xf32>
    %82 = vector.shape_cast %81 : vector<1x32x256xf32> to vector<32x256xf32>
    %cst_42 = arith.constant dense<0.000000e+00> : vector<32xf32>
    %83 = vector.multi_reduction <add>, %82, %cst_42 [1] : vector<32x256xf32> to vector<32xf32>
    %84 = vector.shape_cast %83 : vector<32xf32> to vector<32x1xf32>
    %cst_43 = arith.constant 2.560000e+02 : f32
    %85 = vector.broadcast %cst_43 : f32 to vector<32x1xf32>
    %86 = arith.divf %84, %85 : vector<32x1xf32>
    %87 = vector.broadcast %86 : vector<32x1xf32> to vector<32x256xf32>
    %88 = arith.subf %82, %87 : vector<32x256xf32>
    %89 = arith.mulf %88, %88 : vector<32x256xf32>
    %cst_44 = arith.constant dense<0.000000e+00> : vector<32xf32>
    %90 = vector.multi_reduction <add>, %89, %cst_44 [1] : vector<32x256xf32> to vector<32xf32>
    %91 = vector.shape_cast %90 : vector<32xf32> to vector<32x1xf32>
    %cst_45 = arith.constant 2.560000e+02 : f32
    %92 = vector.broadcast %cst_45 : f32 to vector<32x1xf32>
    %93 = arith.divf %91, %92 : vector<32x1xf32>
    %cst_46 = arith.constant 9.99999997E-7 : f32
    %94 = vector.broadcast %cst_46 : f32 to vector<32x1xf32>
    %95 = arith.addf %93, %94 : vector<32x1xf32>
    %96 = math.rsqrt %95 : vector<32x1xf32>
    %97 = vector.broadcast %96 : vector<32x1xf32> to vector<32x256xf32>
    %98 = arith.mulf %88, %97 : vector<32x256xf32>
    %99 = vector.broadcast %1 : vector<32x1xf32> to vector<32x256xf32>
    %100 = arith.mulf %98, %99 : vector<32x256xf32>
    %101 = vector.broadcast %2 : vector<32x1xf32> to vector<32x256xf32>
    %102 = arith.addf %100, %101 : vector<32x256xf32>
    %cst_47 = arith.constant 5.000000e-01 : f32
    %103 = vector.broadcast %cst_47 : f32 to vector<32x256xf32>
    %104 = arith.mulf %103, %102 : vector<32x256xf32>
    %105 = math.tanh %104 : vector<32x256xf32>
    %cst_48 = arith.constant 1.000000e+00 : f32
    %106 = vector.broadcast %cst_48 : f32 to vector<32x256xf32>
    %107 = arith.addf %105, %106 : vector<32x256xf32>
    %cst_49 = arith.constant 5.000000e-01 : f32
    %108 = vector.broadcast %cst_49 : f32 to vector<32x256xf32>
    %109 = arith.mulf %108, %107 : vector<32x256xf32>
    %110 = arith.mulf %102, %109 : vector<32x256xf32>
    %c96 = arith.constant 96 : index
    %c0_50 = arith.constant 0 : index
    %111 = vector.load %arg5[%c96, %c0_50] : memref<192x256xf32, #tpu.memory_space<vmem>>, vector<32x256xf32>
    tpu.vector_store %arg5[%c96, %c0_50], %110 {strides = array<i32>} : memref<192x256xf32, #tpu.memory_space<vmem>>, vector<32x256xf32>,
    %c3 = arith.constant 3 : index
    %c0_51 = arith.constant 0 : index
    %c0_52 = arith.constant 0 : index
    %112 = vector.load %arg1[%c3, %c0_51, %c0_52] : memref<4x32x256xf32, #tpu.memory_space<vmem>>, vector<1x32x256xf32>
    %113 = vector.shape_cast %112 : vector<1x32x256xf32> to vector<32x256xf32>
    %cst_53 = arith.constant dense<0.000000e+00> : vector<32xf32>
    %114 = vector.multi_reduction <add>, %113, %cst_53 [1] : vector<32x256xf32> to vector<32xf32>
    %115 = vector.shape_cast %114 : vector<32xf32> to vector<32x1xf32>
    %cst_54 = arith.constant 2.560000e+02 : f32
    %116 = vector.broadcast %cst_54 : f32 to vector<32x1xf32>
    %117 = arith.divf %115, %116 : vector<32x1xf32>
    %118 = vector.broadcast %117 : vector<32x1xf32> to vector<32x256xf32>
    %119 = arith.subf %113, %118 : vector<32x256xf32>
    %120 = arith.mulf %119, %119 : vector<32x256xf32>
    %cst_55 = arith.constant dense<0.000000e+00> : vector<32xf32>
    %121 = vector.multi_reduction <add>, %120, %cst_55 [1] : vector<32x256xf32> to vector<32xf32>
    %122 = vector.shape_cast %121 : vector<32xf32> to vector<32x1xf32>
    %cst_56 = arith.constant 2.560000e+02 : f32
    %123 = vector.broadcast %cst_56 : f32 to vector<32x1xf32>
    %124 = arith.divf %122, %123 : vector<32x1xf32>
    %cst_57 = arith.constant 9.99999997E-7 : f32
    %125 = vector.broadcast %cst_57 : f32 to vector<32x1xf32>
    %126 = arith.addf %124, %125 : vector<32x1xf32>
    %127 = math.rsqrt %126 : vector<32x1xf32>
    %128 = vector.broadcast %127 : vector<32x1xf32> to vector<32x256xf32>
    %129 = arith.mulf %119, %128 : vector<32x256xf32>
    %130 = vector.broadcast %1 : vector<32x1xf32> to vector<32x256xf32>
    %131 = arith.mulf %129, %130 : vector<32x256xf32>
    %132 = vector.broadcast %2 : vector<32x1xf32> to vector<32x256xf32>
    %133 = arith.addf %131, %132 : vector<32x256xf32>
    %cst_58 = arith.constant 5.000000e-01 : f32
    %134 = vector.broadcast %cst_58 : f32 to vector<32x256xf32>
    %135 = arith.mulf %134, %133 : vector<32x256xf32>
    %136 = math.tanh %135 : vector<32x256xf32>
    %cst_59 = arith.constant 1.000000e+00 : f32
    %137 = vector.broadcast %cst_59 : f32 to vector<32x256xf32>
    %138 = arith.addf %136, %137 : vector<32x256xf32>
    %cst_60 = arith.constant 5.000000e-01 : f32
    %139 = vector.broadcast %cst_60 : f32 to vector<32x256xf32>
    %140 = arith.mulf %139, %138 : vector<32x256xf32>
    %141 = arith.mulf %133, %140 : vector<32x256xf32>
    %c128 = arith.constant 128 : index
    %c0_61 = arith.constant 0 : index
    %142 = vector.load %arg5[%c128, %c0_61] : memref<192x256xf32, #tpu.memory_space<vmem>>, vector<32x256xf32>
    tpu.vector_store %arg5[%c128, %c0_61], %141 {strides = array<i32>} : memref<192x256xf32, #tpu.memory_space<vmem>>, vector<32x256xf32>,
    %c0_62 = arith.constant 0 : index
    %c0_63 = arith.constant 0 : index
    %143 = vector.load %arg5[%c0_62, %c0_63] : memref<192x256xf32, #tpu.memory_space<vmem>>, vector<96x256xf32>
    %cst_64 = arith.constant dense<0.000000e+00> : vector<32x256xf32>
    %144 = tpu.matmul %8, %143, %cst_64 {dimension_numbers = #tpu.dot_dimension_numbers<[1], [0], [0], [1], [0, 0, 1, 1], [], []>, precision = #tpu.contract_precision<fp32>} : vector<32x96xf32>, vector<96x256xf32>, vector<32x256xf32> -> vector<32x256xf32>
    %145 = vector.broadcast %3 : vector<32x1xf32> to vector<32x256xf32>
    %146 = arith.addf %144, %145 : vector<32x256xf32>
    %cst_65 = arith.constant dense<0.000000e+00> : vector<32xf32>
    %147 = vector.multi_reduction <add>, %146, %cst_65 [1] : vector<32x256xf32> to vector<32xf32>
    %148 = vector.shape_cast %147 : vector<32xf32> to vector<32x1xf32>
    %cst_66 = arith.constant 2.560000e+02 : f32
    %149 = vector.broadcast %cst_66 : f32 to vector<32x1xf32>
    %150 = arith.divf %148, %149 : vector<32x1xf32>
    %151 = vector.broadcast %150 : vector<32x1xf32> to vector<32x256xf32>
    %152 = arith.subf %146, %151 : vector<32x256xf32>
    %153 = arith.mulf %152, %152 : vector<32x256xf32>
    %cst_67 = arith.constant dense<0.000000e+00> : vector<32xf32>
    %154 = vector.multi_reduction <add>, %153, %cst_67 [1] : vector<32x256xf32> to vector<32xf32>
    %155 = vector.shape_cast %154 : vector<32xf32> to vector<32x1xf32>
    %cst_68 = arith.constant 2.560000e+02 : f32
    %156 = vector.broadcast %cst_68 : f32 to vector<32x1xf32>
    %157 = arith.divf %155, %156 : vector<32x1xf32>
    %cst_69 = arith.constant 9.99999997E-7 : f32
    %158 = vector.broadcast %cst_69 : f32 to vector<32x1xf32>
    %159 = arith.addf %157, %158 : vector<32x1xf32>
    %160 = math.rsqrt %159 : vector<32x1xf32>
    %161 = vector.broadcast %160 : vector<32x1xf32> to vector<32x256xf32>
    %162 = arith.mulf %152, %161 : vector<32x256xf32>
    %163 = vector.broadcast %4 : vector<32x1xf32> to vector<32x256xf32>
    %164 = arith.mulf %162, %163 : vector<32x256xf32>
    %165 = vector.broadcast %5 : vector<32x1xf32> to vector<32x256xf32>
    %166 = arith.addf %164, %165 : vector<32x256xf32>
    %cst_70 = arith.constant 5.000000e-01 : f32
    %167 = vector.broadcast %cst_70 : f32 to vector<32x256xf32>
    %168 = arith.mulf %167, %166 : vector<32x256xf32>
    %169 = math.tanh %168 : vector<32x256xf32>
    %cst_71 = arith.constant 1.000000e+00 : f32
    %170 = vector.broadcast %cst_71 : f32 to vector<32x256xf32>
    %171 = arith.addf %169, %170 : vector<32x256xf32>
    %cst_72 = arith.constant 5.000000e-01 : f32
    %172 = vector.broadcast %cst_72 : f32 to vector<32x256xf32>
    %173 = arith.mulf %172, %171 : vector<32x256xf32>
    %174 = arith.mulf %166, %173 : vector<32x256xf32>
    %c32_73 = arith.constant 32 : index
    %c0_74 = arith.constant 0 : index
    %175 = vector.load %arg6[%c32_73, %c0_74] : memref<192x256xf32, #tpu.memory_space<vmem>>, vector<32x256xf32>
    tpu.vector_store %arg6[%c32_73, %c0_74], %174 {strides = array<i32>} : memref<192x256xf32, #tpu.memory_space<vmem>>, vector<32x256xf32>,
    %c32_75 = arith.constant 32 : index
    %c0_76 = arith.constant 0 : index
    %176 = vector.load %arg5[%c32_75, %c0_76] : memref<192x256xf32, #tpu.memory_space<vmem>>, vector<96x256xf32>
    %cst_77 = arith.constant dense<0.000000e+00> : vector<32x256xf32>
    %177 = tpu.matmul %8, %176, %cst_77 {dimension_numbers = #tpu.dot_dimension_numbers<[1], [0], [0], [1], [0, 0, 1, 1], [], []>, precision = #tpu.contract_precision<fp32>} : vector<32x96xf32>, vector<96x256xf32>, vector<32x256xf32> -> vector<32x256xf32>
    %178 = vector.broadcast %3 : vector<32x1xf32> to vector<32x256xf32>
    %179 = arith.addf %177, %178 : vector<32x256xf32>
    %cst_78 = arith.constant dense<0.000000e+00> : vector<32xf32>
    %180 = vector.multi_reduction <add>, %179, %cst_78 [1] : vector<32x256xf32> to vector<32xf32>
    %181 = vector.shape_cast %180 : vector<32xf32> to vector<32x1xf32>
    %cst_79 = arith.constant 2.560000e+02 : f32
    %182 = vector.broadcast %cst_79 : f32 to vector<32x1xf32>
    %183 = arith.divf %181, %182 : vector<32x1xf32>
    %184 = vector.broadcast %183 : vector<32x1xf32> to vector<32x256xf32>
    %185 = arith.subf %179, %184 : vector<32x256xf32>
    %186 = arith.mulf %185, %185 : vector<32x256xf32>
    %cst_80 = arith.constant dense<0.000000e+00> : vector<32xf32>
    %187 = vector.multi_reduction <add>, %186, %cst_80 [1] : vector<32x256xf32> to vector<32xf32>
    %188 = vector.shape_cast %187 : vector<32xf32> to vector<32x1xf32>
    %cst_81 = arith.constant 2.560000e+02 : f32
    %189 = vector.broadcast %cst_81 : f32 to vector<32x1xf32>
    %190 = arith.divf %188, %189 : vector<32x1xf32>
    %cst_82 = arith.constant 9.99999997E-7 : f32
    %191 = vector.broadcast %cst_82 : f32 to vector<32x1xf32>
    %192 = arith.addf %190, %191 : vector<32x1xf32>
    %193 = math.rsqrt %192 : vector<32x1xf32>
    %194 = vector.broadcast %193 : vector<32x1xf32> to vector<32x256xf32>
    %195 = arith.mulf %185, %194 : vector<32x256xf32>
    %196 = vector.broadcast %4 : vector<32x1xf32> to vector<32x256xf32>
    %197 = arith.mulf %195, %196 : vector<32x256xf32>
    %198 = vector.broadcast %5 : vector<32x1xf32> to vector<32x256xf32>
    %199 = arith.addf %197, %198 : vector<32x256xf32>
    %cst_83 = arith.constant 5.000000e-01 : f32
    %200 = vector.broadcast %cst_83 : f32 to vector<32x256xf32>
    %201 = arith.mulf %200, %199 : vector<32x256xf32>
    %202 = math.tanh %201 : vector<32x256xf32>
    %cst_84 = arith.constant 1.000000e+00 : f32
    %203 = vector.broadcast %cst_84 : f32 to vector<32x256xf32>
    %204 = arith.addf %202, %203 : vector<32x256xf32>
    %cst_85 = arith.constant 5.000000e-01 : f32
    %205 = vector.broadcast %cst_85 : f32 to vector<32x256xf32>
    %206 = arith.mulf %205, %204 : vector<32x256xf32>
    %207 = arith.mulf %199, %206 : vector<32x256xf32>
    %c64_86 = arith.constant 64 : index
    %c0_87 = arith.constant 0 : index
    %208 = vector.load %arg6[%c64_86, %c0_87] : memref<192x256xf32, #tpu.memory_space<vmem>>, vector<32x256xf32>
    tpu.vector_store %arg6[%c64_86, %c0_87], %207 {strides = array<i32>} : memref<192x256xf32, #tpu.memory_space<vmem>>, vector<32x256xf32>,
    %c64_88 = arith.constant 64 : index
    %c0_89 = arith.constant 0 : index
    %209 = vector.load %arg5[%c64_88, %c0_89] : memref<192x256xf32, #tpu.memory_space<vmem>>, vector<96x256xf32>
    %cst_90 = arith.constant dense<0.000000e+00> : vector<32x256xf32>
    %210 = tpu.matmul %8, %209, %cst_90 {dimension_numbers = #tpu.dot_dimension_numbers<[1], [0], [0], [1], [0, 0, 1, 1], [], []>, precision = #tpu.contract_precision<fp32>} : vector<32x96xf32>, vector<96x256xf32>, vector<32x256xf32> -> vector<32x256xf32>
    %211 = vector.broadcast %3 : vector<32x1xf32> to vector<32x256xf32>
    %212 = arith.addf %210, %211 : vector<32x256xf32>
    %cst_91 = arith.constant dense<0.000000e+00> : vector<32xf32>
    %213 = vector.multi_reduction <add>, %212, %cst_91 [1] : vector<32x256xf32> to vector<32xf32>
    %214 = vector.shape_cast %213 : vector<32xf32> to vector<32x1xf32>
    %cst_92 = arith.constant 2.560000e+02 : f32
    %215 = vector.broadcast %cst_92 : f32 to vector<32x1xf32>
    %216 = arith.divf %214, %215 : vector<32x1xf32>
    %217 = vector.broadcast %216 : vector<32x1xf32> to vector<32x256xf32>
    %218 = arith.subf %212, %217 : vector<32x256xf32>
    %219 = arith.mulf %218, %218 : vector<32x256xf32>
    %cst_93 = arith.constant dense<0.000000e+00> : vector<32xf32>
    %220 = vector.multi_reduction <add>, %219, %cst_93 [1] : vector<32x256xf32> to vector<32xf32>
    %221 = vector.shape_cast %220 : vector<32xf32> to vector<32x1xf32>
    %cst_94 = arith.constant 2.560000e+02 : f32
    %222 = vector.broadcast %cst_94 : f32 to vector<32x1xf32>
    %223 = arith.divf %221, %222 : vector<32x1xf32>
    %cst_95 = arith.constant 9.99999997E-7 : f32
    %224 = vector.broadcast %cst_95 : f32 to vector<32x1xf32>
    %225 = arith.addf %223, %224 : vector<32x1xf32>
    %226 = math.rsqrt %225 : vector<32x1xf32>
    %227 = vector.broadcast %226 : vector<32x1xf32> to vector<32x256xf32>
    %228 = arith.mulf %218, %227 : vector<32x256xf32>
    %229 = vector.broadcast %4 : vector<32x1xf32> to vector<32x256xf32>
    %230 = arith.mulf %228, %229 : vector<32x256xf32>
    %231 = vector.broadcast %5 : vector<32x1xf32> to vector<32x256xf32>
    %232 = arith.addf %230, %231 : vector<32x256xf32>
    %cst_96 = arith.constant 5.000000e-01 : f32
    %233 = vector.broadcast %cst_96 : f32 to vector<32x256xf32>
    %234 = arith.mulf %233, %232 : vector<32x256xf32>
    %235 = math.tanh %234 : vector<32x256xf32>
    %cst_97 = arith.constant 1.000000e+00 : f32
    %236 = vector.broadcast %cst_97 : f32 to vector<32x256xf32>
    %237 = arith.addf %235, %236 : vector<32x256xf32>
    %cst_98 = arith.constant 5.000000e-01 : f32
    %238 = vector.broadcast %cst_98 : f32 to vector<32x256xf32>
    %239 = arith.mulf %238, %237 : vector<32x256xf32>
    %240 = arith.mulf %232, %239 : vector<32x256xf32>
    %c96_99 = arith.constant 96 : index
    %c0_100 = arith.constant 0 : index
    %241 = vector.load %arg6[%c96_99, %c0_100] : memref<192x256xf32, #tpu.memory_space<vmem>>, vector<32x256xf32>
    tpu.vector_store %arg6[%c96_99, %c0_100], %240 {strides = array<i32>} : memref<192x256xf32, #tpu.memory_space<vmem>>, vector<32x256xf32>,
    %c96_101 = arith.constant 96 : index
    %c0_102 = arith.constant 0 : index
    %242 = vector.load %arg5[%c96_101, %c0_102] : memref<192x256xf32, #tpu.memory_space<vmem>>, vector<96x256xf32>
    %cst_103 = arith.constant dense<0.000000e+00> : vector<32x256xf32>
    %243 = tpu.matmul %8, %242, %cst_103 {dimension_numbers = #tpu.dot_dimension_numbers<[1], [0], [0], [1], [0, 0, 1, 1], [], []>, precision = #tpu.contract_precision<fp32>} : vector<32x96xf32>, vector<96x256xf32>, vector<32x256xf32> -> vector<32x256xf32>
    %244 = vector.broadcast %3 : vector<32x1xf32> to vector<32x256xf32>
    %245 = arith.addf %243, %244 : vector<32x256xf32>
    %cst_104 = arith.constant dense<0.000000e+00> : vector<32xf32>
    %246 = vector.multi_reduction <add>, %245, %cst_104 [1] : vector<32x256xf32> to vector<32xf32>
    %247 = vector.shape_cast %246 : vector<32xf32> to vector<32x1xf32>
    %cst_105 = arith.constant 2.560000e+02 : f32
    %248 = vector.broadcast %cst_105 : f32 to vector<32x1xf32>
    %249 = arith.divf %247, %248 : vector<32x1xf32>
    %250 = vector.broadcast %249 : vector<32x1xf32> to vector<32x256xf32>
    %251 = arith.subf %245, %250 : vector<32x256xf32>
    %252 = arith.mulf %251, %251 : vector<32x256xf32>
    %cst_106 = arith.constant dense<0.000000e+00> : vector<32xf32>
    %253 = vector.multi_reduction <add>, %252, %cst_106 [1] : vector<32x256xf32> to vector<32xf32>
    %254 = vector.shape_cast %253 : vector<32xf32> to vector<32x1xf32>
    %cst_107 = arith.constant 2.560000e+02 : f32
    %255 = vector.broadcast %cst_107 : f32 to vector<32x1xf32>
    %256 = arith.divf %254, %255 : vector<32x1xf32>
    %cst_108 = arith.constant 9.99999997E-7 : f32
    %257 = vector.broadcast %cst_108 : f32 to vector<32x1xf32>
    %258 = arith.addf %256, %257 : vector<32x1xf32>
    %259 = math.rsqrt %258 : vector<32x1xf32>
    %260 = vector.broadcast %259 : vector<32x1xf32> to vector<32x256xf32>
    %261 = arith.mulf %251, %260 : vector<32x256xf32>
    %262 = vector.broadcast %4 : vector<32x1xf32> to vector<32x256xf32>
    %263 = arith.mulf %261, %262 : vector<32x256xf32>
    %264 = vector.broadcast %5 : vector<32x1xf32> to vector<32x256xf32>
    %265 = arith.addf %263, %264 : vector<32x256xf32>
    %cst_109 = arith.constant 5.000000e-01 : f32
    %266 = vector.broadcast %cst_109 : f32 to vector<32x256xf32>
    %267 = arith.mulf %266, %265 : vector<32x256xf32>
    %268 = math.tanh %267 : vector<32x256xf32>
    %cst_110 = arith.constant 1.000000e+00 : f32
    %269 = vector.broadcast %cst_110 : f32 to vector<32x256xf32>
    %270 = arith.addf %268, %269 : vector<32x256xf32>
    %cst_111 = arith.constant 5.000000e-01 : f32
    %271 = vector.broadcast %cst_111 : f32 to vector<32x256xf32>
    %272 = arith.mulf %271, %270 : vector<32x256xf32>
    %273 = arith.mulf %265, %272 : vector<32x256xf32>
    %c128_112 = arith.constant 128 : index
    %c0_113 = arith.constant 0 : index
    %274 = vector.load %arg6[%c128_112, %c0_113] : memref<192x256xf32, #tpu.memory_space<vmem>>, vector<32x256xf32>
    tpu.vector_store %arg6[%c128_112, %c0_113], %273 {strides = array<i32>} : memref<192x256xf32, #tpu.memory_space<vmem>>, vector<32x256xf32>,
    %c0_114 = arith.constant 0 : index
    %c0_115 = arith.constant 0 : index
    %275 = vector.load %arg6[%c0_114, %c0_115] : memref<192x256xf32, #tpu.memory_space<vmem>>, vector<96x256xf32>
    %cst_116 = arith.constant dense<0.000000e+00> : vector<32x256xf32>
    %276 = tpu.matmul %10, %275, %cst_116 {dimension_numbers = #tpu.dot_dimension_numbers<[1], [0], [0], [1], [0, 0, 1, 1], [], []>, precision = #tpu.contract_precision<fp32>} : vector<32x96xf32>, vector<96x256xf32>, vector<32x256xf32> -> vector<32x256xf32>
    %277 = vector.broadcast %6 : vector<32x1xf32> to vector<32x256xf32>
    %278 = arith.addf %276, %277 : vector<32x256xf32>
    %c0_117 = arith.constant 0 : index
    %c0_118 = arith.constant 0 : index
    %c0_119 = arith.constant 0 : index
    %279 = vector.load %arg1[%c0_117, %c0_118, %c0_119] : memref<4x32x256xf32, #tpu.memory_space<vmem>>, vector<1x32x256xf32>
    %280 = vector.shape_cast %279 : vector<1x32x256xf32> to vector<32x256xf32>
    %281 = arith.addf %280, %278 : vector<32x256xf32>
    %c0_120 = arith.constant 0 : index
    %c0_121 = arith.constant 0 : index
    %c0_122 = arith.constant 0 : index
    %282 = vector.load %arg4[%c0_120, %c0_121, %c0_122] : memref<4x32x256xf32, #tpu.memory_space<vmem>>, vector<1x32x256xf32>
    %283 = vector.shape_cast %282 : vector<1x32x256xf32> to vector<32x256xf32>
    %284 = vector.shape_cast %281 : vector<32x256xf32> to vector<1x32x256xf32>
    tpu.vector_store %arg4[%c0_120, %c0_121, %c0_122], %284 {strides = array<i32>} : memref<4x32x256xf32, #tpu.memory_space<vmem>>, vector<1x32x256xf32>,
    %c32_123 = arith.constant 32 : index
    %c0_124 = arith.constant 0 : index
    %285 = vector.load %arg6[%c32_123, %c0_124] : memref<192x256xf32, #tpu.memory_space<vmem>>, vector<96x256xf32>
    %cst_125 = arith.constant dense<0.000000e+00> : vector<32x256xf32>
    %286 = tpu.matmul %10, %285, %cst_125 {dimension_numbers = #tpu.dot_dimension_numbers<[1], [0], [0], [1], [0, 0, 1, 1], [], []>, precision = #tpu.contract_precision<fp32>} : vector<32x96xf32>, vector<96x256xf32>, vector<32x256xf32> -> vector<32x256xf32>
    %287 = vector.broadcast %6 : vector<32x1xf32> to vector<32x256xf32>
    %288 = arith.addf %286, %287 : vector<32x256xf32>
    %c1_126 = arith.constant 1 : index
    %c0_127 = arith.constant 0 : index
    %c0_128 = arith.constant 0 : index
    %289 = vector.load %arg1[%c1_126, %c0_127, %c0_128] : memref<4x32x256xf32, #tpu.memory_space<vmem>>, vector<1x32x256xf32>
    %290 = vector.shape_cast %289 : vector<1x32x256xf32> to vector<32x256xf32>
    %291 = arith.addf %290, %288 : vector<32x256xf32>
    %c1_129 = arith.constant 1 : index
    %c0_130 = arith.constant 0 : index
    %c0_131 = arith.constant 0 : index
    %292 = vector.load %arg4[%c1_129, %c0_130, %c0_131] : memref<4x32x256xf32, #tpu.memory_space<vmem>>, vector<1x32x256xf32>
    %293 = vector.shape_cast %292 : vector<1x32x256xf32> to vector<32x256xf32>
    %294 = vector.shape_cast %291 : vector<32x256xf32> to vector<1x32x256xf32>
    tpu.vector_store %arg4[%c1_129, %c0_130, %c0_131], %294 {strides = array<i32>} : memref<4x32x256xf32, #tpu.memory_space<vmem>>, vector<1x32x256xf32>,
    %c64_132 = arith.constant 64 : index
    %c0_133 = arith.constant 0 : index
    %295 = vector.load %arg6[%c64_132, %c0_133] : memref<192x256xf32, #tpu.memory_space<vmem>>, vector<96x256xf32>
    %cst_134 = arith.constant dense<0.000000e+00> : vector<32x256xf32>
    %296 = tpu.matmul %10, %295, %cst_134 {dimension_numbers = #tpu.dot_dimension_numbers<[1], [0], [0], [1], [0, 0, 1, 1], [], []>, precision = #tpu.contract_precision<fp32>} : vector<32x96xf32>, vector<96x256xf32>, vector<32x256xf32> -> vector<32x256xf32>
    %297 = vector.broadcast %6 : vector<32x1xf32> to vector<32x256xf32>
    %298 = arith.addf %296, %297 : vector<32x256xf32>
    %c2_135 = arith.constant 2 : index
    %c0_136 = arith.constant 0 : index
    %c0_137 = arith.constant 0 : index
    %299 = vector.load %arg1[%c2_135, %c0_136, %c0_137] : memref<4x32x256xf32, #tpu.memory_space<vmem>>, vector<1x32x256xf32>
    %300 = vector.shape_cast %299 : vector<1x32x256xf32> to vector<32x256xf32>
    %301 = arith.addf %300, %298 : vector<32x256xf32>
    %c2_138 = arith.constant 2 : index
    %c0_139 = arith.constant 0 : index
    %c0_140 = arith.constant 0 : index
    %302 = vector.load %arg4[%c2_138, %c0_139, %c0_140] : memref<4x32x256xf32, #tpu.memory_space<vmem>>, vector<1x32x256xf32>
    %303 = vector.shape_cast %302 : vector<1x32x256xf32> to vector<32x256xf32>
    %304 = vector.shape_cast %301 : vector<32x256xf32> to vector<1x32x256xf32>
    tpu.vector_store %arg4[%c2_138, %c0_139, %c0_140], %304 {strides = array<i32>} : memref<4x32x256xf32, #tpu.memory_space<vmem>>, vector<1x32x256xf32>,
    %c96_141 = arith.constant 96 : index
    %c0_142 = arith.constant 0 : index
    %305 = vector.load %arg6[%c96_141, %c0_142] : memref<192x256xf32, #tpu.memory_space<vmem>>, vector<96x256xf32>
    %cst_143 = arith.constant dense<0.000000e+00> : vector<32x256xf32>
    %306 = tpu.matmul %10, %305, %cst_143 {dimension_numbers = #tpu.dot_dimension_numbers<[1], [0], [0], [1], [0, 0, 1, 1], [], []>, precision = #tpu.contract_precision<fp32>} : vector<32x96xf32>, vector<96x256xf32>, vector<32x256xf32> -> vector<32x256xf32>
    %307 = vector.broadcast %6 : vector<32x1xf32> to vector<32x256xf32>
    %308 = arith.addf %306, %307 : vector<32x256xf32>
    %c3_144 = arith.constant 3 : index
    %c0_145 = arith.constant 0 : index
    %c0_146 = arith.constant 0 : index
    %309 = vector.load %arg1[%c3_144, %c0_145, %c0_146] : memref<4x32x256xf32, #tpu.memory_space<vmem>>, vector<1x32x256xf32>
    %310 = vector.shape_cast %309 : vector<1x32x256xf32> to vector<32x256xf32>
    %311 = arith.addf %310, %308 : vector<32x256xf32>
    %c3_147 = arith.constant 3 : index
    %c0_148 = arith.constant 0 : index
    %c0_149 = arith.constant 0 : index
    %312 = vector.load %arg4[%c3_147, %c0_148, %c0_149] : memref<4x32x256xf32, #tpu.memory_space<vmem>>, vector<1x32x256xf32>
    %313 = vector.shape_cast %312 : vector<1x32x256xf32> to vector<32x256xf32>
    %314 = vector.shape_cast %311 : vector<32x256xf32> to vector<1x32x256xf32>
    tpu.vector_store %arg4[%c3_147, %c0_148, %c0_149], %314 {strides = array<i32>} : memref<4x32x256xf32, #tpu.memory_space<vmem>>, vector<1x32x256xf32>,
    return
  }
  func.func @transform_0(%arg0: i32) -> (i32, i32, i32) {
    %c0_i32 = arith.constant 0 : i32
    %c0_i32_0 = arith.constant 0 : i32
    %c0_i32_1 = arith.constant 0 : i32
    return %arg0, %c0_i32, %c0_i32_0 : i32, i32, i32
  }
  func.func @transform_1(%arg0: i32) -> (i32, i32) {
    %c0_i32 = arith.constant 0 : i32
    %c0_i32_0 = arith.constant 0 : i32
    %c0_i32_1 = arith.constant 0 : i32
    return %c0_i32, %c0_i32_0 : i32, i32
  }
  func.func @transform_2(%arg0: i32) -> (i32, i32, i32) {
    %c0_i32 = arith.constant 0 : i32
    %c0_i32_0 = arith.constant 0 : i32
    %c0_i32_1 = arith.constant 0 : i32
    %c0_i32_2 = arith.constant 0 : i32
    return %c0_i32, %c0_i32_0, %c0_i32_1 : i32, i32, i32
  }
  func.func @transform_3(%arg0: i32) -> (i32, i32, i32) {
    %c0_i32 = arith.constant 0 : i32
    %c0_i32_0 = arith.constant 0 : i32
    %c0_i32_1 = arith.constant 0 : i32
    return %arg0, %c0_i32, %c0_i32_0 : i32, i32, i32
  }
}

</mosaic_0001>

<bundles_post_ra>
// kernel: _lambda_.1
= control target key start
LH: loop header
LB: loop body
LE: loop exit
PB: predicated region body
PF: predicated region fallthrough
CT: control target
= control target key end

     0   :  { %s8527_s12 = smov 0   ;;  %s12954_s0 = inlined_call_operand.vmem [shape: f32[8,32,256], index: 0, kind: input, shape index: {}]   ;;  %s12955_s1 = inlined_call_operand.vmem [shape: f32[32,6], index: 1, kind: input, shape index: {}]   ;;  %s12956_s2 = inlined_call_operand.vmem [shape: f32[2,32,96], index: 2, kind: input, shape index: {}]   ;;  %s12957_s3 = inlined_call_operand.vmem [shape: f32[8,32,256], index: 3, kind: output, shape index: {}]  }
   0x1 LB: > { %s8164_s13 = sadd.s32 4294967295, %s8497_s12   ;;  %p8168_p0 = scmp.ge.s32.totalorder %s8497_s12, 1  ;;  %s8497_s12 = sphi %s8527_s12, %s13_s12  }
   0x2   : > { %p139_p1 = scmp.lt.s32.totalorder %s8497_s12, 3 }
   0x4   : > { %p140_p2 = pnand %p8168_p0, %p139_p1 }
   0x6   : > { %143 = sbr.rel (%p140_p2) target bundleno = 1826 (0x722), region = 32 }
   0xb   : > { %s8169_s14 = sshll.u32 %s8164_s13, 2  ;;  %v8499_v0 = vmov 0   ;;  %v8582_v25 = vld [vmem:[%s12955_s1 + $0x10] sm:$0xff]  ;;  %v8588_v26 = vld [vmem:[%s12955_s1 + $0x18] sm:$0xff]  ;;  %v8500_v27 = vmov 256.0   ;;  %v8501_v39 = vmov 1  }
   0xc   : > { %p166_p3 = scmp.lt.s32.totalorder %s8169_s14, 7  ;;  %8271 = vset.pattern.permute.xlu1 %v8499_v0  ;;  %8272 = vset.pattern.permute.xlu2 %v8499_v0  ;;  %8286 = vrcp.f32 %v8500_v27 }
   0xd   : > { %8273 = vset.pattern.permute.xlu0 %v8501_v39 }
   0xe   : > { %s14252_s14 = smov (!%p166_p3, %s8169_s14), 7 }
   0xf   : > { %s8253_s15 = sshll.u32 %s14252_s14, 6 }
  0x10   : > { %s8543_s18 = scalar_lea.vmem %s12954_s0, %s8253_s15  ;;  %s12282_s21 = scalar_lea.vmem %s12957_s3, %s8253_s15 }
  0x11   : > { %v8185_v1 = vld [vmem:[%s8543_s18 + $0x70] sm:$0xff]  ;;  %v8186_v2 = vld [vmem:[%s8543_s18 + $0x78] sm:$0xff]  ;;  %v8183_v10 = vld [vmem:[%s8543_s18 + $0x60] sm:$0xff] }
  0x12   : > { %v8181_v3 = vld [vmem:[%s8543_s18 + $0x50] sm:$0xff]  ;;  %v457_v4 = vadd.f32 %v8186_v2, %v8185_v1  ;;  %v8182_v5 = vld [vmem:[%s8543_s18 + $0x58] sm:$0xff]  ;;  %v8184_v11 = vld [vmem:[%s8543_s18 + $0x68] sm:$0xff]  ;;  %v8287_v28 = vpop.eup %8286 }
  0x13   : > { %v8550_v6 = vld [vmem:[%s8543_s18 + $0x30] sm:$0xff]  ;;  %v8553_v7 = vld [vmem:[%s8543_s18 + $0x38] sm:$0xff]  ;;  %v451_v8 = vadd.f32 %v8182_v5, %v8181_v3  ;;  %v8179_v12 = vld [vmem:[%s8543_s18 + $0x40] sm:$0xff]  ;;  %v454_v16 = vadd.f32 %v8184_v11, %v8183_v10  ;;  %v245_v29 = vmul.f32 256.0, %v8287_v28  ;;  %vm249_vm0 = vweird.f32 %v8287_v28 }
  0x14   : > { %v241_v9 = vadd.f32 %v8553_v7, %v8550_v6  ;;  %458 = vadd.xlane.f32.xlu0 %v457_v4  ;;  %v8180_v13 = vld [vmem:[%s8543_s18 + $0x48] sm:$0xff]  ;;  %v228_v14 = vld [vmem:[%s8543_s18 + $0x20] sm:$0xff]  ;;  %v8564_v19 = vld [vmem:[%s8543_s18 + $0x10] sm:$0xff] }
  0x15   : > { %452 = vadd.xlane.f32.xlu1 %v451_v8  ;;  %v229_v15 = vld [vmem:[%s8543_s18 + $0x28] sm:$0xff]  ;;  %v448_v17 = vadd.f32 %v8180_v13, %v8179_v12  ;;  %v8567_v20 = vld [vmem:[%s8543_s18 + $0x18] sm:$0xff]  ;;  %v8570_v21 = vld [vmem:[%s8543_s18] sm:$0xff]  ;;  %v246_v30 = vsub.f32 1.0, %v245_v29 }
  0x16   : > { %242 = vadd.xlane.f32.xlu2 %v241_v9  ;;  %v238_v18 = vadd.f32 %v229_v15, %v228_v14  ;;  %v8573_v22 = vld [vmem:[%s8543_s18 + $0x8] sm:$0xff]  ;;  %v235_v23 = vadd.f32 %v8567_v20, %v8564_v19 }
  0x17   : > { %v232_v24 = vadd.f32 %v8573_v22, %v8570_v21  ;;  %v247_v31 = vmul.f32 %v8287_v28, %v246_v30  ;;  %v180_v29 = vld [vmem:[%s12955_s1 + $0x8] sm:$0xff]  ;;  %v179_v30 = vld [vmem:[%s12955_s1] sm:$0xff] }
  0x19   : > { %v248_v32 = vadd.f32 %v8287_v28, %v247_v31  ;;  %v8686_v31 = vld [vmem:[%s8543_s18 + $0xb8] sm:$0xff] }
  0x1b   : > { %v8591_v33 = vsel %vm249_vm0, %v8287_v28, %v248_v32  ;;  %v8689_v32 = vld [vmem:[%s8543_s18 + $0xa0] sm:$0xff] }
  0x1c   : > { %455 = vadd.xlane.f32.xlu0 %v454_v16  ;;  %13448 = vst [vmem:[#allocation4_spill] sm:$0xff] %v8591_v33 }
  0x1d   : > { %449 = vadd.xlane.f32.xlu1 %v448_v17 }
  0x1e   : > { %239 = vadd.xlane.f32.xlu2 %v238_v18 }
  0x24   : > { %236 = vadd.xlane.f32.xlu0 %v235_v23 }
  0x25   : > { %233 = vadd.xlane.f32.xlu1 %v232_v24 }
  0x36   : > { %351 = vperm.xlu2 %8272, %v8582_v25  }
  0x3e   : > { %356 = vperm.xlu1 %8271, %v8588_v26  }
  0x46   : > { %8274 = vset.pattern.permute.xlu1 %v8501_v39 }
  0x87   : > { %v459_v34 = vpop.xlane.xlu0 %458 }
  0x88   : > { %v463_v35 = vmul.f32 %v459_v34, %v8591_v33  ;;  %v453_v36 = vpop.xlane.xlu1 %452  ;;  %v8692_v34 = vld [vmem:[%s8543_s18 + $0xa8] sm:$0xff] }
  0x89   : > { %v243_v37 = vpop.xlane.xlu2 %242  ;;  %v461_v38 = vmul.f32 %v453_v36, %v8591_v33  ;;  %v8699_v36 = vld [vmem:[%s8543_s18 + $0x80] sm:$0xff] }
  0x8a   : > { %v8597_v40 = vsub.f32 %v8185_v1, %v463_v35  ;;  %v8599_v41 = vsub.f32 %v8186_v2, %v463_v35  ;;  %v254_v56 = vmul.f32 %v8591_v33, %v243_v37  ;;  %v627_v35 = vadd.f32 %v8692_v34, %v8689_v32  ;;  %v8702_v37 = vld [vmem:[%s8543_s18 + $0x88] sm:$0xff] }
  0x8b   : > { %v8601_v42 = vsub.f32 %v8181_v3, %v461_v38  ;;  %v8603_v43 = vsub.f32 %v8182_v5, %v461_v38  ;;  %v621_v38 = vadd.f32 %v8702_v37, %v8699_v36 }
  0x8c   : > { %v478_v44 = vmul.f32 %v8597_v40, %v8597_v40  ;;  %v479_v45 = vmul.f32 %v8599_v41, %v8599_v41  ;;  %v8642_v5 = vsub.f32 %v8550_v6, %v254_v56  ;;  %v8645_v8 = vsub.f32 %v8553_v7, %v254_v56 }
  0x8d   : > { %v474_v46 = vmul.f32 %v8601_v42, %v8601_v42  ;;  %v475_v47 = vmul.f32 %v8603_v43, %v8603_v43 }
  0x8e   : > { %v489_v48 = vadd.f32 %v479_v45, %v478_v44  ;;  %v269_v7 = vmul.f32 %v8642_v5, %v8642_v5  ;;  %v270_v17 = vmul.f32 %v8645_v8, %v8645_v8  ;;  %v8710_v44 = vld [vmem:[%s8543_s18 + $0x98] sm:$0xff] }
  0x8f   : > { %v456_v49 = vpop.xlane.xlu0 %455  ;;  %v483_v50 = vadd.f32 %v475_v47, %v474_v46 }
  0x90   : > { %v462_v51 = vmul.f32 %v456_v49, %v8591_v33  ;;  %v450_v52 = vpop.xlane.xlu1 %449  ;;  %490 = vadd.xlane.f32.xlu2 %v489_v48 }
  0x91   : > { %v240_v53 = vpop.xlane.xlu2 %239  ;;  %v460_v54 = vmul.f32 %v450_v52, %v8591_v33  ;;  %484 = vadd.xlane.f32.xlu1 %v483_v50 }
  0x92   : > { %v253_v55 = vmul.f32 %v8591_v33, %v240_v53  ;;  %v8617_v57 = vsub.f32 %v8183_v10, %v462_v51  ;;  %v8619_v58 = vsub.f32 %v8184_v11, %v462_v51 }
  0x93   : > { %v8621_v59 = vsub.f32 %v8179_v12, %v460_v54  ;;  %v8623_v60 = vsub.f32 %v8180_v13, %v460_v54 }
  0x94   : > { %v8625_v61 = vsub.f32 %v228_v14, %v253_v55  ;;  %v8627_v62 = vsub.f32 %v229_v15, %v253_v55  ;;  %v476_v63 = vmul.f32 %v8617_v57, %v8617_v57  ;;  %v477_v0 = vmul.f32 %v8619_v58, %v8619_v58 }
  0x95   : > { %v472_v1 = vmul.f32 %v8621_v59, %v8621_v59  ;;  %v473_v2 = vmul.f32 %v8623_v60, %v8623_v60 }
  0x96   : > { %v267_v3 = vmul.f32 %v8625_v61, %v8625_v61  ;;  %v268_v4 = vmul.f32 %v8627_v62, %v8627_v62  ;;  %v486_v9 = vadd.f32 %v477_v0, %v476_v63 }
  0x97   : > { %v237_v10 = vpop.xlane.xlu0 %236  ;;  %v480_v11 = vadd.f32 %v473_v2, %v472_v1 }
  0x98   : > { %v277_v12 = vadd.f32 %v268_v4, %v267_v3  ;;  %v252_v13 = vmul.f32 %v8591_v33, %v237_v10  ;;  %487 = vadd.xlane.f32.xlu0 %v486_v9  ;;  %v234_v14 = vpop.xlane.xlu1 %233 }
  0x99   : > { %481 = vadd.xlane.f32.xlu2 %v480_v11  ;;  %v251_v15 = vmul.f32 %v8591_v33, %v234_v14  ;;  %v8714_v46 = vpop.permute.xlu2 %351 }
  0x9a   : > { %278 = vadd.xlane.f32.xlu1 %v277_v12  ;;  %v8650_v16 = vsub.f32 %v8564_v19, %v252_v13  ;;  %v8653_v6 = vsub.f32 %v8567_v20, %v252_v13  ;;  %v280_v20 = vadd.f32 %v270_v17, %v269_v7  ;;  %13449 = vst [vmem:[#allocation5_spill] sm:$0xff] %v8714_v46 }
  0x9b   : > { %v8660_v18 = vsub.f32 %v8570_v21, %v251_v15  ;;  %v8663_v23 = vsub.f32 %v8573_v22, %v251_v15 }
  0x9c   : > { %v265_v24 = vmul.f32 %v8650_v16, %v8650_v16  ;;  %v266_v19 = vmul.f32 %v8653_v6, %v8653_v6 }
  0x9d   : > { %v263_v28 = vmul.f32 %v8660_v18, %v8660_v18  ;;  %v264_v21 = vmul.f32 %v8663_v23, %v8663_v23 }
  0x9e   : > { %v274_v27 = vadd.f32 %v266_v19, %v265_v24 }
  0x9f   : > { %v271_v22 = vadd.f32 %v264_v21, %v263_v28 }
  0xa0   : > { %281 = vadd.xlane.f32.xlu0 %v280_v20 }
  0xa1   : > { %275 = vadd.xlane.f32.xlu2 %v274_v27 }
  0xa8   : > { %272 = vadd.xlane.f32.xlu0 %v271_v22 }
  0xb0   : > { %v8716_v47 = vpop.permute.xlu1 %356 }
  0xb3   : > { %376 = vperm.xlu1 %8274, %v8582_v25   ;;  %v8683_v25 = vld [vmem:[%s8543_s18 + $0xb0] sm:$0xff] }
  0xb9   : > { %346 = vperm.xlu2 %8272, %v180_v29  }
  0xbb   : > { %372 = vperm.xlu1 %8274, %v180_v29  }
  0xbc   : > { %380 = vperm.xlu0 %8273, %v8588_v26   ;;  %v630_v26 = vadd.f32 %v8686_v31, %v8683_v25 }
  0xc1   : > { %341 = vperm.xlu2 %8272, %v179_v30  }
  0xc9   : > { %8275 = vset.pattern.permute.xlu2 %v8501_v39  ;;  %v8707_v39 = vld [vmem:[%s8543_s18 + $0x90] sm:$0xff] }
  0xca   : > { %368 = vperm.xlu2 %8275, %v179_v30   ;;  %v624_v45 = vadd.f32 %v8710_v44, %v8707_v39 }
  0xe5   : > { %631 = vadd.xlane.f32.xlu1 %v630_v26 }
  0xe6   : > { %628 = vadd.xlane.f32.xlu0 %v627_v35 }
  0xed   : > { %622 = vadd.xlane.f32.xlu1 %v621_v38 }
  0xf3   : > { %625 = vadd.xlane.f32.xlu2 %v624_v45 }
 0x103   : > { %v491_v48 = vpop.xlane.xlu2 %490 }
 0x104   : > { %v495_v49 = vmul.f32 %v491_v48, %v8591_v33  ;;  %v485_v50 = vpop.xlane.xlu1 %484 }
 0x105   : > { %v493_v51 = vmul.f32 %v485_v50, %v8591_v33 }
 0x106   : > { %v8720_v52 = vadd.f32 1e-06, %v495_v49 }
 0x107   : > { %v8722_v53 = vadd.f32 1e-06, %v493_v51 }
 0x108   : > { %8288 = vrsqrt.f32 %v8720_v52  ;;  %vm536_vm1 = vweird.f32 %v8720_v52 }
 0x109   : > { %8290 = vrsqrt.f32 %v8722_v53  ;;  %vm516_vm13 = vweird.f32 %v8722_v53 }
 0x10b   : > { %v488_v54 = vpop.xlane.xlu0 %487 }
 0x10c   : > { %v482_v55 = vpop.xlane.xlu2 %481  ;;  %v494_v56 = vmul.f32 %v488_v54, %v8591_v33 }
 0x10d   : > { %v279_v63 = vpop.xlane.xlu1 %278  ;;  %v492_v0 = vmul.f32 %v482_v55, %v8591_v33 }
 0x10e   : > { %v285_v1 = vmul.f32 %v279_v63, %v8591_v33  ;;  %v8729_v2 = vpop.eup %8288  ;;  %v498_v3 = vadd.f32 1e-06, %v494_v56 }
 0x10f   : > { %v8731_v4 = vpop.eup %8290  ;;  %v531_v9 = vmul.f32 %v8729_v2, %v8720_v52  ;;  %v8735_v10 = vadd.f32 1e-06, %v492_v0  ;;  %vm537_vm2 = vweird.f32 %v8729_v2 }
 0x110   : > { %v289_v11 = vadd.f32 1e-06, %v285_v1  ;;  %8292 = vrsqrt.f32 %v498_v3  ;;  %v511_v12 = vmul.f32 %v8731_v4, %v8722_v53  ;;  %vm526_vm3 = vweird.f32 %v498_v3  ;;  %vm538_vm10 = vmor %vm536_vm1, %vm537_vm2 }
 0x111   : > { %8294 = vrsqrt.f32 %v8735_v10  ;;  %v532_v13 = vmul.f32 %v8729_v2, %v531_v9  ;;  %vm517_vm7 = vweird.f32 %v8731_v4  ;;  %vm506_vm11 = vweird.f32 %v8735_v10 }
 0x112   : > { %8296 = vrsqrt.f32 %v289_v11  ;;  %v512_v17 = vmul.f32 %v8731_v4, %v511_v12  ;;  %vm317_vm5 = vweird.f32 %v289_v11  ;;  %vm518_vm15 = vmor %vm516_vm13, %vm517_vm7 }
 0x113   : > { %v282_v14 = vpop.xlane.xlu0 %281  ;;  %v533_v20 = vmul.f32 0.5, %v532_v13 }
 0x114   : > { %v276_v15 = vpop.xlane.xlu2 %275  ;;  %v286_v7 = vmul.f32 %v282_v14, %v8591_v33  ;;  %v513_v26 = vmul.f32 0.5, %v512_v17 }
 0x115   : > { %v284_v24 = vmul.f32 %v276_v15, %v8591_v33  ;;  %v534_v45 = vsub.f32 1.5, %v533_v20 }
 0x116   : > { %v8293_v19 = vpop.eup %8292  ;;  %v8744_v27 = vadd.f32 1e-06, %v286_v7  ;;  %v514_v56 = vsub.f32 1.5, %v513_v26 }
 0x117   : > { %v8295_v28 = vpop.eup %8294  ;;  %v521_v21 = vmul.f32 %v8293_v19, %v498_v3  ;;  %v8747_v30 = vadd.f32 1e-06, %v284_v24  ;;  %vm527_vm4 = vweird.f32 %v8293_v19  ;;  %v535_v9 = vmul.f32 %v8729_v2, %v534_v45 }
 0x118   : > { %v8297_v22 = vpop.eup %8296  ;;  %v501_v29 = vmul.f32 %v8295_v28, %v8735_v10  ;;  %8298 = vrsqrt.f32 %v8744_v27  ;;  %vm507_vm8 = vweird.f32 %v8295_v28  ;;  %vm528_vm9 = vmor %vm526_vm3, %vm527_vm4  ;;  %v515_v20 = vmul.f32 %v8731_v4, %v514_v56 }
 0x119   : > { %v522_v35 = vmul.f32 %v8293_v19, %v521_v21  ;;  %v312_v38 = vmul.f32 %v8297_v22, %v289_v11  ;;  %8300 = vrsqrt.f32 %v8747_v30  ;;  %vm318_vm6 = vweird.f32 %v8297_v22  ;;  %vm508_vm14 = vmor %vm506_vm11, %vm507_vm8 }
 0x11a   : > { %v502_v48 = vmul.f32 %v8295_v28, %v501_v29  ;;  %vm319_vm12 = vmor %vm317_vm5, %vm318_vm6  ;;  %vm327_vm1 = vweird.f32 %v8744_v27  ;;  %vm307_vm3 = vweird.f32 %v8747_v30 }
 0x11b   : > { %v523_v49 = vmul.f32 0.5, %v522_v35  ;;  %v313_v50 = vmul.f32 %v8297_v22, %v312_v38  ;;  %v273_v51 = vpop.xlane.xlu0 %272  ;;  %v539_v38 = vsel %vm538_vm10, %v8729_v2, %v535_v9 }
 0x11c   : > { %v503_v54 = vmul.f32 0.5, %v502_v48  ;;  %v8753_v55 = vpop.permute.xlu2 %346  ;;  %v283_v13 = vmul.f32 %v273_v51, %v8591_v33  ;;  %v546_v53 = vmul.f32 %v539_v38, %v8597_v40 }
 0x11d   : > { %13450 = vst [vmem:[#allocation6_spill] sm:$0xff] %v8753_v55  ;;  %v524_v63 = vsub.f32 1.5, %v523_v49  ;;  %v314_v0 = vmul.f32 0.5, %v313_v50  ;;  %v547_v50 = vmul.f32 %v539_v38, %v8599_v41 }
 0x11e   : > { %v8755_v1 = vpop.eup %8298  ;;  %v504_v12 = vsub.f32 1.5, %v503_v54  ;;  %v8763_v24 = vadd.f32 1e-06, %v283_v13 }
 0x11f   : > { %v525_v14 = vmul.f32 %v8293_v19, %v524_v63  ;;  %v315_v15 = vsub.f32 1.5, %v314_v0  ;;  %v322_v7 = vmul.f32 %v8755_v1, %v8744_v27  ;;  %v8301_v35 = vpop.eup %8300  ;;  %vm328_vm0 = vweird.f32 %v8755_v1 }
 0x120   : > { %v505_v17 = vmul.f32 %v8295_v28, %v504_v12  ;;  %8302 = vrsqrt.f32 %v8763_v24  ;;  %vm308_vm2 = vweird.f32 %v8301_v35  ;;  %v554_v12 = vmul.f32 %v546_v53, %v8716_v47  ;;  %vm329_vm4 = vmor %vm327_vm1, %vm328_vm0 }
 0x121   : > { %v529_v21 = vsel %vm528_vm9, %v8293_v19, %v525_v14  ;;  %v316_v29 = vmul.f32 %v8297_v22, %v315_v15  ;;  %v323_v26 = vmul.f32 %v8755_v1, %v322_v7  ;;  %v302_v19 = vmul.f32 %v8301_v35, %v8747_v30  ;;  %vm309_vm5 = vmor %vm307_vm3, %vm308_vm2 }
 0x122   : > { %v544_v3 = vmul.f32 %v529_v21, %v8617_v57  ;;  %v509_v2 = vsel %vm508_vm14, %v8295_v28, %v505_v17  ;;  %v545_v51 = vmul.f32 %v529_v21, %v8619_v58  ;;  %v555_v7 = vmul.f32 %v547_v50, %v8716_v47 }
 0x123   : > { %v8779_v52 = vsel %vm319_vm12, %v8297_v22, %v316_v29  ;;  %v519_v22 = vsel %vm518_vm15, %v8731_v4, %v515_v20  ;;  %v303_v48 = vmul.f32 %v8301_v35, %v302_v19  ;;  %v324_v49 = vmul.f32 0.5, %v323_v26 }
 0x124   : > { %v552_v10 = vmul.f32 %v544_v3, %v8714_v46  ;;  %v335_v57 = vmul.f32 %v8779_v52, %v8625_v61  ;;  %v8787_v11 = vpop.permute.xlu2 %341  ;;  %v540_v61 = vmul.f32 %v509_v2, %v8621_v59  ;;  %v542_v4 = vmul.f32 %v519_v22, %v8601_v42 }
 0x125   : > { %13451 = vst [vmem:[#allocation7_spill] sm:$0xff] %v8787_v11  ;;  %v8789_v45 = vpop.permute.xlu1 %376  ;;  %v304_v54 = vmul.f32 0.5, %v303_v48  ;;  %v325_v56 = vsub.f32 1.5, %v324_v49  ;;  %v543_v0 = vmul.f32 %v519_v22, %v8603_v43  ;;  %v553_v13 = vmul.f32 %v545_v51, %v8714_v46 }
 0x126   : > { %13452 = vst [vmem:[#allocation8_spill] sm:$0xff] %v8789_v45  ;;  %v363_v28 = vmul.f32 %v8714_v46, %v335_v57  ;;  %v8799_v63 = vadd.f32 %v552_v10, %v8789_v45  ;;  %v8303_v40 = vpop.eup %8302  ;;  %v548_v15 = vmul.f32 %v540_v61, %v8787_v11  ;;  %v550_v20 = vmul.f32 %v542_v4, %v8753_v55 }
 0x127   : > { %v305_v58 = vsub.f32 1.5, %v304_v54  ;;  %v326_v9 = vmul.f32 %v8755_v1, %v325_v56  ;;  %v292_v59 = vmul.f32 %v8303_v40, %v8763_v24  ;;  %v541_v3 = vmul.f32 %v509_v2, %v8623_v60 }
 0x128   : > { %v8805_v41 = vadd.f32 %v8789_v45, %v363_v28  ;;  %v568_v42 = vmul.f32 0.5, %v8799_v63  ;;  %vm297_vm6 = vweird.f32 %v8763_v24  ;;  %vm298_vm7 = vweird.f32 %v8303_v40 }
 0x129   : > { %v306_v43 = vmul.f32 %v8301_v35, %v305_v58  ;;  %v330_v27 = vsel %vm329_vm4, %v8755_v1, %v326_v9  ;;  %v293_v14 = vmul.f32 %v8303_v40, %v292_v59  ;;  %v8838_v57 = vadd.f32 %v553_v13, %v8789_v45  ;;  %vm299_vm8 = vmor %vm297_vm6, %vm298_vm7 }
 0x12a   : > { %v337_v17 = vmul.f32 %v330_v27, %v8642_v5  ;;  %v395_v30 = vmul.f32 0.5, %v8805_v41  ;;  %8304 = vtanh.f32 %v568_v42  ;;  %v338_v2 = vmul.f32 %v330_v27, %v8645_v8 }
 0x12b   : > { %v8823_v29 = vsel %vm309_vm5, %v8301_v35, %v306_v43  ;;  %v294_v26 = vmul.f32 0.5, %v293_v14  ;;  %v551_v28 = vmul.f32 %v543_v0, %v8753_v55  ;;  %v569_v54 = vmul.f32 0.5, %v8838_v57 }
 0x12c   : > { %v8821_v21 = vpop.permute.xlu2 %368  ;;  %v333_v5 = vmul.f32 %v8823_v29, %v8650_v16  ;;  %v365_v19 = vmul.f32 %v8716_v47, %v337_v17  ;;  %8306 = vtanh.f32 %v395_v30  ;;  %v366_v59 = vmul.f32 %v8716_v47, %v338_v2 }
 0x12d   : > { %13453 = vst [vmem:[#allocation9_spill] sm:$0xff] %v8821_v21  ;;  %v8826_v1 = vadd.f32 %v548_v15, %v8821_v21  ;;  %v8828_v38 = vpop.permute.xlu1 %372  ;;  %v295_v35 = vsub.f32 1.5, %v294_v26  ;;  %vm998_vm9 = vcmask 785408  }
 0x12e   : > { %13454 = vst [vmem:[#allocation10_spill] sm:$0xff] %v8828_v38  ;;  %v8835_v10 = vpop.permute.xlu0 %380  ;;  %v361_v22 = vmul.f32 %v8753_v55, %v333_v5  ;;  %v558_v60 = vadd.f32 %v550_v20, %v8828_v38  ;;  %v8869_v42 = vadd.f32 %v551_v28, %v8828_v38 }
 0x12f   : > { %v564_v53 = vmul.f32 0.5, %v8826_v1  ;;  %v8844_v16 = vadd.f32 %v8835_v10, %v365_v19  ;;  %v296_v24 = vmul.f32 %v8303_v40, %v295_v35  ;;  %v8848_v48 = vadd.f32 %v554_v12, %v8835_v10 }
 0x130   : > { %v8851_v49 = vadd.f32 %v8828_v38, %v361_v22  ;;  %v566_v50 = vmul.f32 0.5, %v558_v60  ;;  %v8305_v51 = vpop.eup %8304  ;;  %v8858_v56 = vadd.f32 %v555_v7, %v8835_v10  ;;  %v549_v12 = vmul.f32 %v541_v3, %v8787_v11 }
 0x131   : > { %8308 = vtanh.f32 %v564_v53  ;;  %v8854_v61 = vsel %vm299_vm8, %v8303_v40, %v296_v24  ;;  %v584_v4 = vadd.f32 1.0, %v8305_v51  ;;  %v397_v9 = vmul.f32 0.5, %v8844_v16 }
 0x132   : > { %v331_v8 = vmul.f32 %v8854_v61, %v8660_v18  ;;  %v393_v58 = vmul.f32 0.5, %v8851_v49  ;;  %8310 = vtanh.f32 %v566_v50  ;;  %v570_v40 = vmul.f32 0.5, %v8848_v48  ;;  %v8307_v0 = vpop.eup %8306 }
 0x133   : > { %v571_v18 = vmul.f32 0.5, %v8858_v56  ;;  %v592_v27 = vmul.f32 0.5, %v584_v4  ;;  %v8876_v15 = vadd.f32 %v549_v12, %v8821_v21  ;;  %v411_v17 = vadd.f32 1.0, %v8307_v0 }
 0x134   : > { %v359_v13 = vmul.f32 %v8787_v11, %v331_v8  ;;  %8312 = vtanh.f32 %v393_v58  ;;  %v567_v30 = vmul.f32 0.5, %v8869_v42  ;;  %v8881_v26 = vadd.f32 %v8835_v10, %v366_v59 }
 0x135   : > { %8314 = vtanh.f32 %v569_v54  ;;  %v600_v5 = vmul.f32 %v592_v27, %v8799_v63  ;;  %v336_v53 = vmul.f32 %v8779_v52, %v8627_v62  ;;  %v565_v22 = vmul.f32 0.5, %v8876_v15 }
 0x136   : > { %v8873_v14 = vadd.f32 %v8821_v21, %v359_v13  ;;  %8316 = vtanh.f32 %v397_v9  ;;  %v419_v50 = vmul.f32 0.5, %v411_v17  ;;  %v398_v8 = vmul.f32 0.5, %v8881_v26 }
 0x137   : > { %v8309_v43 = vpop.eup %8308  ;;  %8318 = vtanh.f32 %v570_v40  ;;  %v8888_v58 = vand.u32 4294901760, %v600_v5  ;;  %v364_v62 = vmul.f32 %v8714_v46, %v336_v53 }
 0x138   : > { %v580_v7 = vadd.f32 1.0, %v8309_v43  ;;  %v391_v20 = vmul.f32 0.5, %v8873_v14  ;;  %8320 = vtanh.f32 %v571_v18  ;;  %v8311_v3 = vpop.eup %8310  ;;  %v427_v40 = vmul.f32 %v419_v50, %v8805_v41 }
 0x139   : > { %v582_v2 = vadd.f32 1.0, %v8311_v3  ;;  %13455 = vst [vmem:[#allocation11_spill] sm:$0xff] %v8888_v58  ;;  %v8899_v3 = vsub.f32 %v600_v5, %v8888_v58 }
 0x13a   : > { %v588_v19 = vmul.f32 0.5, %v580_v7  ;;  %v8313_v35 = vpop.eup %8312  ;;  %8322 = vtanh.f32 %v391_v20  ;;  %v8905_v53 = vand.u32 4294901760, %v427_v40 }
 0x13b   : > { %v8315_v24 = vpop.eup %8314  ;;  %v409_v28 = vadd.f32 1.0, %v8313_v35  ;;  %8324 = vtanh.f32 %v567_v30  ;;  %v590_v54 = vmul.f32 0.5, %v582_v2  ;;  %13458 = vst [vmem:[#allocation14_spill] sm:$0xff] %v8899_v3  ;;  %v8903_v35 = vadd.f32 %v8789_v45, %v364_v62 }
 0x13c   : > { %v8317_v51 = vpop.eup %8316  ;;  %v596_v63 = vmul.f32 %v588_v19, %v8826_v1  ;;  %8326 = vtanh.f32 %v565_v22  ;;  %v585_v18 = vadd.f32 1.0, %v8315_v24  ;;  %v8932_v62 = vsub.f32 %v427_v40, %v8905_v53 }
 0x13d   : > { %v8319_v4 = vpop.eup %8318  ;;  %v413_v9 = vadd.f32 1.0, %v8317_v51  ;;  %v598_v52 = vmul.f32 %v590_v54, %v558_v60  ;;  %v417_v27 = vmul.f32 0.5, %v409_v28  ;;  %8328 = vtanh.f32 %v398_v8 }
 0x13e   : > { %v8321_v59 = vpop.eup %8320  ;;  %v586_v12 = vadd.f32 1.0, %v8319_v4  ;;  %v8895_v1 = vand.u32 4294901760, %v596_v63  ;;  %v593_v2 = vmul.f32 0.5, %v585_v18  ;;  %v8919_v28 = vand.u32 4294901760, %v8899_v3  ;;  %13464 = vst [vmem:[#allocation20_spill] sm:$0xff] %v8932_v62 }
 0x13f   : > { %v421_v0 = vmul.f32 0.5, %v413_v9  ;;  %v587_v13 = vadd.f32 1.0, %v8321_v59  ;;  %v8893_v7 = vand.u32 4294901760, %v598_v52  ;;  %v425_v50 = vmul.f32 %v417_v27, %v8851_v49 }
 0x140   : > { %v8323_v43 = vpop.eup %8322  ;;  %v594_v17 = vmul.f32 0.5, %v586_v12  ;;  %13457 = vst [vmem:[#allocation13_spill] sm:$0xff] %v8895_v1  ;;  %v396_v59 = vmul.f32 0.5, %v8903_v35 }
 0x141   : > { %13456 = vst [vmem:[#allocation12_spill] sm:$0xff] %v8893_v7  ;;  %v407_v20 = vadd.f32 1.0, %v8323_v43  ;;  %v429_v30 = vmul.f32 %v421_v0, %v8844_v16  ;;  %v8325_v60 = vpop.eup %8324  ;;  %v595_v19 = vmul.f32 0.5, %v587_v13  ;;  %v8913_v5 = vsub.f32 %v598_v52, %v8893_v7 }
 0x142   : > { %v602_v41 = vmul.f32 %v594_v17, %v8848_v48  ;;  %v8327_v24 = vpop.eup %8326  ;;  %v8916_v48 = vsub.f32 %v596_v63, %v8895_v1  ;;  %13462 = vst [vmem:[#allocation18_spill] sm:$0xff] %v8919_v28  ;;  %v583_v54 = vadd.f32 1.0, %v8325_v60  ;;  %v334_v63 = vmul.f32 %v8823_v29, %v8653_v6 }
 0x143   : > { %v415_v22 = vmul.f32 0.5, %v407_v20  ;;  %v8910_v16 = vand.u32 4294901760, %v429_v30  ;;  %13460 = vst [vmem:[#allocation16_spill] sm:$0xff] %v8913_v5  ;;  %v8329_v8 = vpop.eup %8328  ;;  %v603_v9 = vmul.f32 %v595_v19, %v8858_v56  ;;  %v601_v52 = vmul.f32 %v593_v2, %v8838_v57 }
 0x144   : > { %v8908_v51 = vand.u32 4294901760, %v602_v41  ;;  %13461 = vst [vmem:[#allocation17_spill] sm:$0xff] %v8916_v48  ;;  %v8935_v12 = vand.u32 4294901760, %v425_v50  ;;  %v8946_v6 = vand.u32 4294901760, %v8913_v5  ;;  %v332_v29 = vmul.f32 %v8854_v61, %v8663_v23 }
 0x145   : > { %v423_v4 = vmul.f32 %v415_v22, %v8873_v14  ;;  %v581_v14 = vadd.f32 1.0, %v8327_v24  ;;  %v8943_v56 = vsub.f32 %v429_v30, %v8910_v16  ;;  %v1085_v57 = vsub.f32 %v8899_v3, %v8919_v28 }
 0x146   : > { %13459 = vst [vmem:[#allocation15_spill] sm:$0xff] %v8908_v51  ;;  %1016 = vmatpush.msra.mxu0 %v8908_v51  ;;  %1231 = vmatpush.msra.mxu3 %v8908_v51  ;;  %v8925_v49 = vsub.f32 %v602_v41, %v8908_v51  ;;  %v8954_v40 = vand.u32 4294901760, %v8916_v48  ;;  %v591_v13 = vmul.f32 0.5, %v583_v54  ;;  %v8962_v27 = vand.u32 4294901760, %v603_v9 }
 0x147   : > { %13466 = vst [vmem:[#allocation22_spill] sm:$0xff] %v8943_v56  ;;  %v8956_v18 = vand.u32 4294901760, %v423_v4  ;;  %v414_v23 = vadd.f32 1.0, %v8329_v8  ;;  %v8966_v61 = vand.u32 4294901760, %v8932_v62  ;;  %v8968_v17 = vand.u32 4294901760, %v601_v52 }
 0x148   : > { %13463 = vst [vmem:[#allocation19_spill] sm:$0xff] %v8925_v49  ;;  %1018 = vmatpush.msra.mxu0 %v8888_v58  ;;  %1171 = vmatpush.msra.mxu2 %v8925_v49  ;;  %v8940_v0 = vand.u32 4294901760, %v8925_v49  ;;  %v589_v20 = vmul.f32 0.5, %v581_v14  ;;  %8330 = vtanh.f32 %v396_v59  ;;  %v1091_v60 = vsub.f32 %v8913_v5, %v8946_v6 }
 0x149   : > { %13467 = vst [vmem:[#allocation23_spill] sm:$0xff] %v8946_v6  ;;  %1233 = vmatpush.msra.mxu3 %v8888_v58  ;;  %v8977_v41 = vsub.f32 %v425_v50, %v8935_v12  ;;  %v8980_v19 = vand.u32 4294901760, %v8943_v56  ;;  %v8983_v22 = vand.u32 4294901760, %v1085_v57  ;;  %v599_v2 = vmul.f32 %v591_v13, %v8869_v42 }
 0x14a   : > { %13465 = vst [vmem:[#allocation21_spill] sm:$0xff] %v8940_v0  ;;  %1020 = vmatpush.msra.mxu0 %v8893_v7  ;;  %1174 = vmatpush.msra.mxu2 %v8899_v3  ;;  %v1079_v43 = vsub.f32 %v8925_v49, %v8940_v0  ;;  %v362_v24 = vmul.f32 %v8753_v55, %v334_v63  ;;  %v422_v14 = vmul.f32 0.5, %v414_v23 }
 0x14b   : > { %13468 = vst [vmem:[#allocation24_spill] sm:$0xff] %v8954_v40  ;;  %1235 = vmatpush.msra.mxu3 %v8893_v7  ;;  %v360_v54 = vmul.f32 %v8787_v11, %v332_v29  ;;  %v1097_v50 = vsub.f32 %v8916_v48, %v8954_v40  ;;  %v8993_v8 = vsub.f32 %v423_v4, %v8956_v18  ;;  %v9009_v4 = vand.u32 4294901760, %v1091_v60 }
 0x14c   : > { %13469 = vst [vmem:[#allocation25_spill] sm:$0xff] %v8962_v27  ;;  %1022 = vmatpush.msra.mxu0 %v8895_v1  ;;  %1177 = vmatpush.msra.mxu2 %v8913_v5  ;;  %v8972_v30 = vand.u32 4294901760, %v1079_v43  ;;  %v8996_v59 = vsub.f32 %v603_v9, %v8962_v27  ;;  %v597_v42 = vmul.f32 %v589_v20, %v8876_v15  ;;  %v9016_v15 = vand.u32 4294901760, %v8977_v41 }
 0x14d   : > { %13470 = vst [vmem:[#allocation26_spill] sm:$0xff] %v8966_v61  ;;  %1237 = vmatpush.msra.mxu3 %v8895_v1  ;;  %v9002_v63 = vadd.f32 %v8828_v38, %v362_v24  ;;  %v9005_v29 = vadd.f32 %v8821_v21, %v360_v54  ;;  %v1103_v9 = vsub.f32 %v8943_v56, %v8980_v19  ;;  %v9023_v23 = vand.u32 4294901760, %v599_v2 }
 0x14e   : > { %13471 = vst [vmem:[#allocation27_spill] sm:$0xff] %v8968_v17  ;;  %1024 = vmatpush.msra.mxu0 %v8910_v16  ;;  %1081 = vmatpush.msra.mxu1 %v8972_v30  ;;  %v1109_v57 = vsub.f32 %v8932_v62, %v8966_v61  ;;  %v8331_v13 = vpop.eup %8330  ;;  %v9021_v43 = vsub.f32 %v601_v52, %v8968_v17  ;;  %v9029_v24 = vand.u32 4294901760, %v1097_v50  ;;  %v9032_v54 = vand.u32 4294901760, %v8993_v8 }
 0x14f   : > { %13472 = vst [vmem:[#allocation28_spill] sm:$0xff] %v8972_v30  ;;  %1180 = vmatpush.msra.mxu2 %v8916_v48  ;;  %1239 = vmatpush.msra.mxu3 %v8910_v16  ;;  %v394_v20 = vmul.f32 0.5, %v9002_v63  ;;  %v392_v60 = vmul.f32 0.5, %v9005_v29  ;;  %v9038_v52 = vand.u32 4294901760, %v8996_v59  ;;  %v9040_v48 = vand.u32 4294901760, %v597_v42 }
 0x150   : > { %13473 = vst [vmem:[#allocation29_spill] sm:$0xff] %v8977_v41  ;;  %1026 = vmatpush.msra.mxu0 %v8905_v53  ;;  %1087 = vmatpush.msra.mxu1 %v8983_v22  ;;  %v9044_v50 = vand.u32 4294901760, %v1103_v9  ;;  %v12986_v9 = vmov 0.0  }
 0x151   : > { %13474 = vst [vmem:[#allocation30_spill] sm:$0xff] %v8980_v19  ;;  %1183 = vmatpush.msra.mxu2 %v8943_v56  ;;  %1241 = vmatpush.msra.mxu3 %v8905_v53  ;;  %v430_v56 = vmul.f32 %v422_v14, %v8881_v26  ;;  %8332 = vtanh.f32 %v394_v20  ;;  %v1115_v26 = vsub.f32 %v8977_v41, %v9016_v15  ;;  %v9053_v20 = vand.u32 4294901760, %v9021_v43 }
 0x152   : > { %13475 = vst [vmem:[#allocation31_spill] sm:$0xff] %v8983_v22  ;;  %1028 = vmatpush.msra.mxu0 %v8935_v12  ;;  %1093 = vmatpush.msra.mxu1 %v9009_v4  ;;  %v412_v22 = vadd.f32 1.0, %v8331_v13  ;;  %8334 = vtanh.f32 %v392_v60  ;;  %v9050_v13 = vand.u32 4294901760, %v1109_v57  ;;  %v1121_v60 = vsub.f32 %v8993_v8, %v9032_v54 }
 0x153   : > { %13476 = vst [vmem:[#allocation32_spill] sm:$0xff] %v8993_v8  ;;  %1186 = vmatpush.msra.mxu2 %v8932_v62  ;;  %1243 = vmatpush.msra.mxu3 %v8935_v12  ;;  %v9071_v30 = vsub.f32 %v597_v42, %v9040_v48 }
 0x154   : > { %13477 = vst [vmem:[#allocation33_spill] sm:$0xff] %v8996_v59  ;;  %1030 = vmatpush.msra.mxu0 %v8956_v18  ;;  %1099 = vmatpush.msra.mxu1 %v9029_v24  ;;  %v420_v14 = vmul.f32 0.5, %v412_v22 }
 0x155   : > { %13478 = vst [vmem:[#allocation34_spill] sm:$0xff] %v9009_v4  ;;  %1189 = vmatpush.msra.mxu2 %v8977_v41  ;;  %1245 = vmatpush.msra.mxu3 %v8956_v18  ;;  %v9056_v4 = vsub.f32 %v599_v2, %v9023_v23  ;;  %v9063_v41 = vand.u32 4294901760, %v430_v56  ;;  %v9105_v3 = vand.u32 4294901760, %v9071_v30 }
 0x156   : > { %13479 = vst [vmem:[#allocation35_spill] sm:$0xff] %v9016_v15  ;;  %1032 = vmatpush.msra.mxu0 %v12986_v9  ;;  %1105 = vmatpush.msra.mxu1 %v9044_v50  ;;  %v428_v57 = vmul.f32 %v420_v14, %v8903_v35 }
 0x157   : > { %13480 = vst [vmem:[#allocation36_spill] sm:$0xff] %v9021_v43  ;;  %1192 = vmatpush.msra.mxu2 %v8993_v8  ;;  %1247 = vmatpush.msra.mxu3 %v12986_v9  ;;  %v8333_v35 = vpop.eup %8332  ;;  %v9087_v42 = vand.u32 4294901760, %v9056_v4 }
 0x158   : > { %13481 = vst [vmem:[#allocation37_spill] sm:$0xff] %v9023_v23  ;;  %v632_v62 = vpop.xlane.xlu1 %631  ;;  %1034 = vmatpush.msra.mxu0 %v12986_v9  ;;  %1111 = vmatpush.msra.mxu1 %v9050_v13  ;;  %v9089_v5 = vand.u32 4294901760, %v428_v57 }
 0x159   : > { %13482 = vst [vmem:[#allocation38_spill] sm:$0xff] %v9029_v24  ;;  %v636_v22 = vmul.f32 %v632_v62, %v8591_v33  ;;  %v629_v2 = vpop.xlane.xlu0 %628  ;;  %v1461_v24 = vsub.f32 %v8996_v59, %v9038_v52  ;;  %v9075_v62 = vand.u32 4294901760, %v1115_v26  ;;  %1195 = vmatpush.msra.mxu2 %v12986_v9  ;;  %1249 = vmatpush.msra.mxu3 %v12986_v9  ;;  %v8335_v26 = vpop.eup %8334 }
 0x15a   : > { %13483 = vst [vmem:[#allocation39_spill] sm:$0xff] %v9032_v54  ;;  %1036 = vmatpush.msra.mxu0 %v12986_v9  ;;  %v408_v49 = vadd.f32 1.0, %v8335_v26 }
 0x15b   : > { %13484 = vst [vmem:[#allocation40_spill] sm:$0xff] %v9038_v52  ;;  %v9081_v14 = vsub.f32 %v8683_v25, %v636_v22  ;;  %v9084_v8 = vsub.f32 %v8686_v31, %v636_v22  ;;  %1117 = vmatpush.msra.mxu1 %v9075_v62  ;;  %v9098_v25 = vsub.f32 %v430_v56, %v9063_v41  ;;  %v410_v31 = vadd.f32 1.0, %v8333_v35 }
 0x15c   : > { %13485 = vst [vmem:[#allocation41_spill] sm:$0xff] %v9040_v48  ;;  %1198 = vmatpush.msra.mxu2 %v12986_v9  ;;  %1251 = vmatpush.msra.mxu3 %v12986_v9  ;;  %v9102_v22 = vand.u32 4294901760, %v1461_v24  ;;  %v9116_v35 = vsub.f32 %v428_v57, %v9089_v5  ;;  %v1473_v24 = vsub.f32 %v9056_v4, %v9087_v42 }
 0x15d   : > { %13486 = vst [vmem:[#allocation42_spill] sm:$0xff] %v9044_v50  ;;  %v635_v50 = vmul.f32 %v629_v2, %v8591_v33  ;;  %v9093_v2 = vand.u32 4294901760, %v1121_v60  ;;  %1038 = vmatpush.msra.mxu0 %v12986_v9  ;;  %v9131_v57 = vand.u32 4294901760, %v9098_v25 }
 0x15e   : > { %13487 = vst [vmem:[#allocation43_spill] sm:$0xff] %v9050_v13  ;;  %v1467_v13 = vsub.f32 %v9021_v43, %v9053_v20  ;;  %1201 = vmatpush.msra.mxu2 %v12986_v9  ;;  %1253 = vmatpush.msra.mxu3 %v12986_v9 }
 0x15f   : > { %13488 = vst [vmem:[#allocation44_spill] sm:$0xff] %v9053_v20  ;;  %1123 = vmatpush.msra.mxu1 %v9093_v2  ;;  %v9110_v60 = vsub.f32 %v8689_v32, %v635_v50  ;;  %v9113_v56 = vsub.f32 %v8692_v34, %v635_v50  ;;  %v652_v32 = vmul.f32 %v9084_v8, %v9084_v8  ;;  %v416_v34 = vmul.f32 0.5, %v408_v49 }
 0x160   : > { %13489 = vst [vmem:[#allocation45_spill] sm:$0xff] %v9056_v4  ;;  %v623_v26 = vpop.xlane.xlu1 %622  ;;  %1286 = vmatpush.msrb.mxu0 %v8940_v0  ;;  %1463 = vmatpush.msrb.mxu3 %v9102_v22  ;;  %v9128_v50 = vand.u32 4294901760, %v1467_v13  ;;  %v1479_v49 = vsub.f32 %v9071_v30, %v9105_v3  ;;  %v183_v13 = vld [vmem:[%s12956_s2] sm:$0xff]  ;;  %v1485_v55 = vsub.f32 %v9098_v25, %v9131_v57 }
 0x161   : > { %13490 = vst [vmem:[#allocation46_spill] sm:$0xff] %v9071_v30  ;;  %1129 = vmatpush.msra.mxu1 %v12986_v9  ;;  %1204 = vmatpush.msra.mxu2 %v12986_v9  ;;  %v633_v38 = vmul.f32 %v623_v26, %v8591_v33  ;;  %v424_v0 = vmul.f32 %v416_v34, %v9005_v29  ;;  %v9150_v26 = vand.u32 4294901760, %v9116_v35  ;;  %v13503_v29 = vmov 0.0  }
 0x162   : > { %13491 = vst [vmem:[#allocation47_spill] sm:$0xff] %v9075_v62  ;;  %v418_v62 = vmul.f32 0.5, %v410_v31  ;;  %1290 = vmatpush.msrb.mxu0 %v8919_v28  ;;  %1469 = vmatpush.msrb.mxu3 %v9128_v50  ;;  %v9156_v34 = vand.u32 4294901760, %v1473_v24  ;;  %v1000_v11 = vsel %vm998_vm9, %v183_v13, 0 }
 0x163   : > { %13492 = vst [vmem:[#allocation48_spill] sm:$0xff] %v9087_v42  ;;  %1398 = vmatpush.msrb.mxu2 %v8962_v27  ;;  %1135 = vmatpush.msra.mxu1 %v13503_v29  ;;  %v9174_v24 = vsub.f32 %v8702_v37, %v633_v38  ;;  %v1491_v13 = vsub.f32 %v9116_v35, %v9150_v26 }
 0x164   : > { %13493 = vst [vmem:[#allocation49_spill] sm:$0xff] %v9089_v5  ;;  %v426_v31 = vmul.f32 %v418_v62, %v9002_v63  ;;  %v649_v63 = vmul.f32 %v9110_v60, %v9110_v60  ;;  %v650_v62 = vmul.f32 %v9113_v56, %v9113_v56  ;;  %1294 = vmatpush.msrb.mxu0 %v8946_v6 }
 0x165   : > { %13494 = vst [vmem:[#allocation50_spill] sm:$0xff] %v9093_v2  ;;  %v651_v2 = vmul.f32 %v9081_v14, %v9081_v14  ;;  %1400 = vmatpush.msrb.mxu2 %v8968_v17  ;;  %1475 = vmatpush.msrb.mxu3 %v9156_v34 }
 0x166   : > { %13495 = vst [vmem:[#allocation51_spill] sm:$0xff] %v9098_v25  ;;  %v9152_v9 = vand.u32 4294901760, %v426_v31  ;;  %1141 = vmatpush.msra.mxu1 %v13503_v29  ;;  %1298 = vmatpush.msrb.mxu0 %v8954_v40 }
 0x167   : > { %13496 = vst [vmem:[#allocation52_spill] sm:$0xff] %v9102_v22  ;;  %v662_v28 = vadd.f32 %v652_v32, %v651_v2  ;;  %v9158_v22 = vand.u32 4294901760, %v424_v0  ;;  %v9171_v2 = vsub.f32 %v8699_v36, %v633_v38  ;;  %v9176_v32 = vand.u32 4294901760, %v1479_v49  ;;  %1402 = vmatpush.msrb.mxu2 %v9023_v23 }
 0x168   : > { %13497 = vst [vmem:[#allocation53_spill] sm:$0xff] %v9105_v3  ;;  %v9165_v21 = vsub.f32 %v426_v31, %v9152_v9  ;;  %v659_v31 = vadd.f32 %v650_v62, %v649_v63  ;;  %v9192_v38 = vand.u32 4294901760, %v1000_v11  ;;  %1147 = vmatpush.msra.mxu1 %v13503_v29  ;;  %1302 = vmatpush.msrb.mxu0 %v8980_v19 }
 0x169   : > { %13498 = vst [vmem:[#allocation54_spill] sm:$0xff] %v9116_v35  ;;  %v9179_v6 = vsub.f32 %v424_v0, %v9158_v22  ;;  %1481 = vmatpush.msrb.mxu3 %v9176_v32  ;;  %663 = vadd.xlane.f32.xlu2 %v662_v28  ;;  %v9196_v0 = vand.u32 4294901760, %v1485_v55  ;;  %v645_v28 = vmul.f32 %v9171_v2, %v9171_v2  ;;  %v9208_v55 = vand.u32 4294901760, %v1491_v13 }
 0x16a   : > { %13499 = vst [vmem:[#allocation55_spill] sm:$0xff] %v9128_v50  ;;  %v9186_v36 = vand.u32 4294901760, %v9165_v21  ;;  %1353 = vmatpush.msrb.mxu1 %v8908_v51  ;;  %1404 = vmatpush.msrb.mxu2 %v9040_v48  ;;  %v646_v62 = vmul.f32 %v9174_v24, %v9174_v24  ;;  %v9215_v19 = vsub.f32 %v1000_v11, %v9192_v38 }
 0x16b   : > { %13500 = vst [vmem:[#allocation56_spill] sm:$0xff] %v9131_v57  ;;  %v9190_v37 = vand.u32 4294901760, %v9179_v6  ;;  %1487 = vmatpush.msrb.mxu3 %v9196_v0  ;;  %660 = vadd.xlane.f32.xlu0 %v659_v31 }
 0x16c   : > { %13501 = vst [vmem:[#allocation57_spill] sm:$0xff] %v9150_v26  ;;  %v1497_v63 = vsub.f32 %v9165_v21, %v9186_v36  ;;  %1306 = vmatpush.msrb.mxu0 %v8966_v61  ;;  %1355 = vmatpush.msrb.mxu1 %v8888_v58  ;;  %v9231_v61 = vld [vmem:[%s8543_s18 + $0xf8] sm:$0xff]  ;;  %v653_v11 = vadd.f32 %v646_v62, %v645_v28  ;;  %v9257_v62 = vld [vmem:[%s8543_s18 + $0xd0] sm:$0xff] }
 0x16d   : > { %13502 = vst [vmem:[#allocation58_spill] sm:$0xff] %v9152_v9  ;;  %1406 = vmatpush.msrb.mxu2 %v9063_v41  ;;  %1493 = vmatpush.msrb.mxu3 %v9208_v55 }
 0x16e   : > { %13504 = vst [vmem:[#allocation59_spill] sm:$0xff] %v9156_v34  ;;  %v626_v34 = vpop.xlane.xlu2 %625  ;;  %v9225_v13 = vand.u32 4294901760, %v1497_v63  ;;  %1310 = vmatpush.msrb.mxu0 %v9016_v15  ;;  %1357 = vmatpush.msrb.mxu1 %v8893_v7 }
 0x16f   : > { %13505 = vst [vmem:[#allocation60_spill] sm:$0xff] %v9158_v22  ;;  %v634_v49 = vmul.f32 %v626_v34, %v8591_v33  ;;  %v1503_v34 = vsub.f32 %v9179_v6, %v9190_v37  ;;  %1408 = vmatpush.msrb.mxu2 %v9089_v5  ;;  %1149 = vmatmul.f32.vlgmr.msra.gmra.mxu1 %v9192_v38 }
 0x170   : > { %13506 = vst [vmem:[#allocation61_spill] sm:$0xff] %v9165_v21  ;;  %1499 = vmatpush.msrb.mxu3 %v9225_v13  ;;  %1314 = vmatpush.msrb.mxu0 %v9032_v54 }
 0x171   : > { %13507 = vst [vmem:[#allocation62_spill] sm:$0xff] %v9176_v32  ;;  %v9220_v32 = vsub.f32 %v8707_v39, %v634_v49  ;;  %v9223_v31 = vsub.f32 %v8710_v44, %v634_v49  ;;  %v9237_v39 = vand.u32 4294901760, %v1503_v34  ;;  %1359 = vmatpush.msrb.mxu1 %v8895_v1  ;;  %v9244_v49 = vand.u32 4294901760, %v9215_v19  ;;  %1410 = vmatpush.msrb.mxu2 %v9152_v9  ;;  %v9260_v34 = vld [vmem:[%s8543_s18 + $0xd8] sm:$0xff] }
 0x172   : > { %13508 = vst [vmem:[#allocation63_spill] sm:$0xff] %v9179_v6  ;;  %654 = vadd.xlane.f32.xlu2 %v653_v11  ;;  %1318 = vmatpush.msrb.mxu0 %v13503_v29  ;;  %v797_v54 = vadd.f32 %v9260_v34, %v9257_v62 }
 0x173   : > { %13509 = vst [vmem:[#allocation64_spill] sm:$0xff] %v9186_v36  ;;  %1505 = vmatpush.msrb.mxu3 %v9237_v39  ;;  %v647_v63 = vmul.f32 %v9220_v32, %v9220_v32  ;;  %v648_v28 = vmul.f32 %v9223_v31, %v9223_v31  ;;  %1361 = vmatpush.msrb.mxu1 %v8910_v16 }
 0x174   : > { %13510 = vst [vmem:[#allocation65_spill] sm:$0xff] %v9190_v37  ;;  %1412 = vmatpush.msrb.mxu2 %v9158_v22  ;;  %1322 = vmatpush.msrb.mxu0 %v13503_v29 }
 0x175   : > { %13511 = vst [vmem:[#allocation66_spill] sm:$0xff] %v9192_v38  ;;  %1511 = vmatpush.msrb.mxu3 %v13503_v29  ;;  %1363 = vmatpush.msrb.mxu1 %v8905_v53  ;;  %v656_v11 = vadd.f32 %v648_v28, %v647_v63  ;;  %v9280_v28 = vld [vmem:[%s8543_s18 + $0xc0] sm:$0xff] }
 0x176   : > { %13512 = vst [vmem:[#allocation67_spill] sm:$0xff] %v9196_v0  ;;  %v9228_v0 = vld [vmem:[%s8543_s18 + $0xf0] sm:$0xff]  ;;  %1414 = vmatpush.msrb.mxu2 %v13503_v29  ;;  %1326 = vmatpush.msrb.mxu0 %v13503_v29 }
 0x177   : > { %13513 = vst [vmem:[#allocation68_spill] sm:$0xff] %v9208_v55  ;;  %v803_v44 = vadd.f32 %v9231_v61, %v9228_v0  ;;  %1517 = vmatpush.msrb.mxu3 %v13503_v29  ;;  %1365 = vmatpush.msrb.mxu1 %v8935_v12 }
 0x178   : > { %13514 = vst [vmem:[#allocation69_spill] sm:$0xff] %v9215_v19  ;;  %1416 = vmatpush.msrb.mxu2 %v13503_v29  ;;  %657 = vadd.xlane.f32.xlu1 %v656_v11  ;;  %v9299_v11 = vld [vmem:[%s8543_s18 + $0xe0] sm:$0xff] }
 0x179   : > { %13515 = vst [vmem:[#allocation70_spill] sm:$0xff] %v9225_v13  ;;  %804 = vadd.xlane.f32.xlu0 %v803_v44  ;;  %v184_v44 = vld [vmem:[%s12956_s2 + $0x8] sm:$0xff]  ;;  %1523 = vmatpush.msrb.mxu3 %v13503_v29 }
 0x17a   : > { %13516 = vst [vmem:[#allocation71_spill] sm:$0xff] %v9237_v39  ;;  %v1042_v39 = vsub.f32 %v9215_v19, %v9244_v49  ;;  %v9283_v13 = vld [vmem:[%s8543_s18 + $0xc8] sm:$0xff]  ;;  %v1003_v15 = vsel %vm998_vm9, %v184_v44, 0  ;;  %1330 = vmatpush.msrb.mxu0 %v13503_v29  ;;  %1367 = vmatpush.msrb.mxu1 %v8956_v18 }
 0x17b   : > { %13517 = vst [vmem:[#allocation72_spill] sm:$0xff] %v9244_v49  ;;  %1418 = vmatpush.msrb.mxu2 %v13503_v29  ;;  %1529 = vmatpush.msrb.mxu3 %v13503_v29  ;;  %v9292_v55 = vand.u32 4294901760, %v1003_v15  ;;  %v9302_v44 = vld [vmem:[%s8543_s18 + $0xe8] sm:$0xff] }
 0x17c   : > { %v9277_v63 = vand.u32 4294901760, %v1042_v39  ;;  %798 = vadd.xlane.f32.xlu2 %v797_v54  ;;  %v794_v39 = vadd.f32 %v9283_v13, %v9280_v28  ;;  %1257 = vmatmul.f32.vlgmr.msra.gmra.mxu3 %v9244_v49  ;;  %v185_v54 = vld [vmem:[%s12956_s2 + $0x10] sm:$0xff] }
 0x17d   : > { %1735 = vmatpush.msra.mxu3 %v8962_v27  ;;  %1369 = vmatpush.msrb.mxu1 %v13503_v29  ;;  %v9311_v40 = vsub.f32 %v1003_v15, %v9292_v55  ;;  %v1006_v50 = vsel %vm998_vm9, %v185_v54, 0  ;;  %v186_v54 = vld [vmem:[%s12956_s2 + $0x18] sm:$0xff] }
 0x17e   : > { %13518 = vst [vmem:[#allocation73_spill] sm:$0xff] %v9277_v63  ;;  %1044 = vmatmul.f32.vlgmr.msra.gmra.mxu0 %v9277_v63  ;;  %1420 = vmatpush.msrb.mxu2 %v13503_v29 }
 0x17f   : > { %1553 = vmatpush.msra.mxu0 %v8996_v59  ;;  %1207 = vmatmul.f32.vlgmr.msra.gmra.mxu2 %v9215_v19  ;;  %13519 = vst [vmem:[#allocation74_spill] sm:$0xff] %v9311_v40  ;;  %v800_v59 = vadd.f32 %v9302_v44, %v9299_v11  ;;  %v9325_v15 = vand.u32 4294901760, %v9311_v40 }
 0x180   : > { %1668 = vmatpush.msra.mxu2 %v9038_v52  ;;  %1737 = vmatpush.msra.mxu3 %v8968_v17 }
 0x181   : > { %795 = vadd.xlane.f32.xlu0 %v794_v39  ;;  %1556 = vmatpush.msra.mxu0 %v9021_v43  ;;  %13520 = vst [vmem:[#allocation75_spill] sm:$0xff] %v9325_v15  ;;  %v9327_v39 = vand.u32 4294901760, %v1006_v50 }
 0x182   : > { %1371 = vmatpush.msrb.mxu1 %v13503_v29  ;;  %1672 = vmatpush.msra.mxu2 %v9053_v20 }
 0x183   : > { %1559 = vmatpush.msra.mxu0 %v9056_v4  ;;  %1739 = vmatpush.msra.mxu3 %v9023_v23  ;;  %13521 = vst [vmem:[#allocation76_spill] sm:$0xff] %v9327_v39 }
 0x184   : > { %1373 = vmatpush.msrb.mxu1 %v13503_v29  ;;  %801 = vadd.xlane.f32.xlu1 %v800_v59  ;;  %v1050_v59 = vsub.f32 %v9311_v40, %v9325_v15 }
 0x185   : > { %1562 = vmatpush.msra.mxu0 %v9071_v30  ;;  %1676 = vmatpush.msra.mxu2 %v9087_v42  ;;  %v9342_v30 = vsub.f32 %v1006_v50, %v9327_v39  ;;  %v1009_v42 = vsel %vm998_vm9, %v186_v54, 0 }
 0x186   : > { %1741 = vmatpush.msra.mxu3 %v9040_v48  ;;  %1375 = vmatpush.msrb.mxu1 %v13503_v29  ;;  %v9353_v50 = vand.u32 4294901760, %v1050_v59 }
 0x187   : > { %1565 = vmatpush.msra.mxu0 %v9098_v25  ;;  %1680 = vmatpush.msra.mxu2 %v9105_v3  ;;  %13522 = vst [vmem:[#allocation77_spill] sm:$0xff] %v9342_v30  ;;  %v9356_v3 = vand.u32 4294901760, %v9342_v30  ;;  %v9358_v25 = vand.u32 4294901760, %v1009_v42 }
 0x188   : > { %1613 = vmatpush.msra.mxu1 %v8962_v27  ;;  %1743 = vmatpush.msra.mxu3 %v9063_v41  ;;  %13523 = vst [vmem:[#allocation78_spill] sm:$0xff] %v9353_v50 }
 0x189   : > { %1568 = vmatpush.msra.mxu0 %v9116_v35  ;;  %1684 = vmatpush.msra.mxu2 %v9131_v57  ;;  %13524 = vst [vmem:[#allocation79_spill] sm:$0xff] %v9356_v3  ;;  %v1058_v54 = vsub.f32 %v9342_v30, %v9356_v3  ;;  %v9371_v59 = vsub.f32 %v1009_v42, %v9358_v25 }
 0x18a   : > { %1615 = vmatpush.msra.mxu1 %v8968_v17  ;;  %1745 = vmatpush.msra.mxu3 %v9089_v5  ;;  %13525 = vst [vmem:[#allocation80_spill] sm:$0xff] %v9358_v25 }
 0x18b   : > { %1571 = vmatpush.msra.mxu0 %v9165_v21  ;;  %1688 = vmatpush.msra.mxu2 %v9150_v26  ;;  %13526 = vst [vmem:[#allocation81_spill] sm:$0xff] %v9371_v59 }
 0x18c   : > { %1617 = vmatpush.msra.mxu1 %v9023_v23  ;;  %1747 = vmatpush.msra.mxu3 %v9152_v9 }
 0x18d   : > { %1574 = vmatpush.msra.mxu0 %v9179_v6  ;;  %1692 = vmatpush.msra.mxu2 %v9186_v36  ;;  %v9382_v36 = vand.u32 4294901760, %v9371_v59 }
 0x18e   : > { %1619 = vmatpush.msra.mxu1 %v9040_v48  ;;  %1749 = vmatpush.msra.mxu3 %v9158_v22 }
 0x18f   : > { %1696 = vmatpush.msra.mxu2 %v9190_v37  ;;  %1052 = vmatmul.f32.gmra.mxu0 %v9353_v50  ;;  %v9379_v37 = vand.u32 4294901760, %v1058_v54  ;;  %13528 = vst [vmem:[#allocation83_spill] sm:$0xff] %v9382_v36  ;;  %v1066_v42 = vsub.f32 %v9371_v59, %v9382_v36 }
 0x190   : > { %1621 = vmatpush.msra.mxu1 %v9063_v41  ;;  %1212 = vmatmul.f32.gmra.mxu2 %v9311_v40 }
 0x191   : > { %1263 = vmatmul.f32.gmra.mxu3 %v9325_v15  ;;  %1153 = vmatmul.f32.gmra.mxu1 %v9292_v55  ;;  %13527 = vst [vmem:[#allocation82_spill] sm:$0xff] %v9379_v37  ;;  %v9402_v54 = vand.u32 4294901760, %v1066_v42 }
 0x192   : > { %1623 = vmatpush.msra.mxu1 %v9089_v5  ;;  %1700 = vmatpush.msra.mxu2 %v13503_v29 }
 0x193   : > { %1577 = vmatpush.msra.mxu0 %v13503_v29  ;;  %1751 = vmatpush.msra.mxu3 %v13503_v29  ;;  %13529 = vst [vmem:[#allocation84_spill] sm:$0xff] %v9402_v54 }
 0x194   : > { %1625 = vmatpush.msra.mxu1 %v9152_v9  ;;  %1704 = vmatpush.msra.mxu2 %v13503_v29 }
 0x195   : > { %1580 = vmatpush.msra.mxu0 %v13503_v29  ;;  %1753 = vmatpush.msra.mxu3 %v13503_v29 }
 0x196   : > { %1627 = vmatpush.msra.mxu1 %v9158_v22  ;;  %1708 = vmatpush.msra.mxu2 %v13503_v29 }
 0x197   : > { %1060 = vmatmul.f32.gmra.mxu0 %v9379_v37  ;;  %1755 = vmatpush.msra.mxu3 %v13503_v29 }
 0x198   : > { %1217 = vmatmul.f32.gmra.mxu2 %v9342_v30  ;;  %1629 = vmatpush.msra.mxu1 %v13503_v29 }
 0x199   : > { %1269 = vmatmul.f32.gmra.mxu3 %v9356_v3  ;;  %1157 = vmatmul.f32.gmra.mxu1 %v9327_v39 }
 0x19a   : > { %1583 = vmatpush.msra.mxu0 %v13503_v29  ;;  %1631 = vmatpush.msra.mxu1 %v13503_v29 }
 0x19b   : > { %1712 = vmatpush.msra.mxu2 %v13503_v29  ;;  %1757 = vmatpush.msra.mxu3 %v13503_v29 }
 0x19c   : > { %1586 = vmatpush.msra.mxu0 %v13503_v29  ;;  %1633 = vmatpush.msra.mxu1 %v13503_v29 }
 0x19e   : > { %1635 = vmatpush.msra.mxu1 %v13503_v29 }
 0x19f   : > { %1068 = vmatmul.f32.gmra.mxu0 %v9402_v54 }
 0x1a0   : > { %1222 = vmatmul.f32.gmra.mxu2 %v9371_v59 }
 0x1a1   : > { %1275 = vmatmul.f32.gmra.mxu3 %v9382_v36  ;;  %1161 = vmatmul.f32.gmra.mxu1 %v9358_v25 }
 0x1a7   : > { %1332 = vmatmul.f32.vlgmr.msrb.gmra.mxu0 %v9192_v38 }
 0x1a8   : > { %1426 = vmatmul.f32.vlgmr.msrb.gmra.mxu2 %v9277_v63 }
 0x1a9   : > { %1531 = vmatmul.f32.vlgmr.msrb.gmra.mxu3 %v9192_v38  ;;  %1377 = vmatmul.f32.vlgmr.msrb.gmra.mxu1 %v9192_v38 }
 0x1af   : > { %1336 = vmatmul.f32.gmra.mxu0 %v9292_v55 }
 0x1b0   : > { %1434 = vmatmul.f32.gmra.mxu2 %v9353_v50 }
 0x1b1   : > { %1535 = vmatmul.f32.gmra.mxu3 %v9292_v55  ;;  %1381 = vmatmul.f32.gmra.mxu1 %v9292_v55 }
 0x1b7   : > { %1340 = vmatmul.f32.gmra.mxu0 %v9327_v39 }
 0x1b8   : > { %1442 = vmatmul.f32.gmra.mxu2 %v9379_v37 }
 0x1b9   : > { %1539 = vmatmul.f32.gmra.mxu3 %v9327_v39  ;;  %1385 = vmatmul.f32.gmra.mxu1 %v9327_v39 }
 0x1bf   : > { %1344 = vmatmul.f32.gmra.mxu0 %v9358_v25 }
 0x1c0   : > { %1450 = vmatmul.f32.gmra.mxu2 %v9402_v54 }
 0x1c1   : > { %1543 = vmatmul.f32.gmra.mxu3 %v9358_v25  ;;  %1389 = vmatmul.f32.gmra.mxu1 %v9358_v25 }
 0x1c7   : > { %1589 = vmatmul.f32.vlgmr.msra.gmra.mxu0 %v9215_v19 }
 0x1c8   : > { %1714 = vmatmul.f32.vlgmr.msra.gmra.mxu2 %v9192_v38 }
 0x1c9   : > { %1759 = vmatmul.f32.vlgmr.msra.gmra.mxu3 %v9192_v38  ;;  %1639 = vmatmul.f32.vlgmr.msra.gmra.mxu1 %v9244_v49 }
 0x1cf   : > { %1594 = vmatmul.f32.gmra.mxu0 %v9311_v40 }
 0x1d0   : > { %1718 = vmatmul.f32.gmra.mxu2 %v9292_v55 }
 0x1d1   : > { %1763 = vmatmul.f32.gmra.mxu3 %v9292_v55  ;;  %1645 = vmatmul.f32.gmra.mxu1 %v9325_v15 }
 0x1d7   : > { %1599 = vmatmul.f32.gmra.mxu0 %v9342_v30 }
 0x1d8   : > { %1722 = vmatmul.f32.gmra.mxu2 %v9327_v39 }
 0x1d9   : > { %1767 = vmatmul.f32.gmra.mxu3 %v9327_v39  ;;  %1651 = vmatmul.f32.gmra.mxu1 %v9356_v3 }
 0x1dc   : > { %v664_v42 = vpop.xlane.xlu2 %663 }
 0x1dd   : > { %v668_v29 = vmul.f32 %v664_v42, %v8591_v33 }
 0x1de   : > { %v661_v26 = vpop.xlane.xlu0 %660 }
 0x1df   : > { %v672_v6 = vadd.f32 1e-06, %v668_v29  ;;  %v667_v21 = vmul.f32 %v661_v26, %v8591_v33  ;;  %1604 = vmatmul.f32.gmra.mxu0 %v9371_v59 }
 0x1e0   : > { %1726 = vmatmul.f32.gmra.mxu2 %v9358_v25 }
 0x1e1   : > { %8336 = vrsqrt.f32 %v672_v6  ;;  %v671_v57 = vadd.f32 1e-06, %v667_v21  ;;  %1771 = vmatmul.f32.gmra.mxu3 %v9358_v25  ;;  %1657 = vmatmul.f32.gmra.mxu1 %v9382_v36  ;;  %vm709_vm10 = vweird.f32 %v672_v6 }
 0x1e3   : > { %8338 = vrsqrt.f32 %v671_v57  ;;  %vm699_vm13 = vweird.f32 %v671_v57 }
 0x1e5   : > { %v655_v35 = vpop.xlane.xlu2 %654 }
 0x1e6   : > { %v665_v4 = vmul.f32 %v655_v35, %v8591_v33 }
 0x1e7   : > { %v8337_v20 = vpop.eup %8336 }
 0x1e8   : > { %v704_v42 = vmul.f32 %v8337_v20, %v672_v6  ;;  %v9448_v52 = vadd.f32 1e-06, %v665_v4  ;;  %vm710_vm11 = vweird.f32 %v8337_v20 }
 0x1e9   : > { %v8339_v43 = vpop.eup %8338  ;;  %vm711_vm12 = vmor %vm709_vm10, %vm710_vm11 }
 0x1ea   : > { %v705_v59 = vmul.f32 %v8337_v20, %v704_v42  ;;  %v694_v22 = vmul.f32 %v8339_v43, %v671_v57  ;;  %8340 = vrsqrt.f32 %v9448_v52  ;;  %vm700_vm14 = vweird.f32 %v8339_v43 }
 0x1eb   : > { %v658_v39 = vpop.xlane.xlu1 %657  ;;  %vm701_vm15 = vmor %vm699_vm13, %vm700_vm14  ;;  %vm679_vm0 = vweird.f32 %v9448_v52 }
 0x1ec   : > { %v805_v29 = vpop.xlane.xlu0 %804  ;;  %v706_v25 = vmul.f32 0.5, %v705_v59  ;;  %v695_v35 = vmul.f32 %v8339_v43, %v694_v22  ;;  %v666_v42 = vmul.f32 %v658_v39, %v8591_v33 }
 0x1ed   : > { %v809_v26 = vmul.f32 %v805_v29, %v8591_v33 }
 0x1ee   : > { %v707_v54 = vsub.f32 1.5, %v706_v25  ;;  %v696_v9 = vmul.f32 0.5, %v695_v35  ;;  %v9463_v59 = vadd.f32 1e-06, %v666_v42 }
 0x1ef   : > { %v9453_v21 = vsub.f32 %v9228_v0, %v809_v26  ;;  %v9456_v36 = vsub.f32 %v9231_v61, %v809_v26  ;;  %v799_v0 = vpop.xlane.xlu2 %798 }
 0x1f0   : > { %v708_v3 = vmul.f32 %v8337_v20, %v707_v54  ;;  %v807_v61 = vmul.f32 %v799_v0, %v8591_v33  ;;  %v8341_v22 = vpop.eup %8340  ;;  %v697_v5 = vsub.f32 1.5, %v696_v9  ;;  %8342 = vrsqrt.f32 %v9463_v59 }
 0x1f1   : > { %13530 = vst [vmem:[#allocation85_spill] sm:$0xff] %v9456_v36  ;;  %v824_v4 = vmul.f32 %v9453_v21, %v9453_v21  ;;  %v825_v29 = vmul.f32 %v9456_v36, %v9456_v36  ;;  %v674_v39 = vmul.f32 %v8341_v22, %v9448_v52  ;;  %vm680_vm1 = vweird.f32 %v8341_v22 }
 0x1f2   : > { %v712_v25 = vsel %vm711_vm12, %v8337_v20, %v708_v3  ;;  %v698_v54 = vmul.f32 %v8339_v43, %v697_v5  ;;  %v9474_v6 = vsub.f32 %v9260_v34, %v807_v61  ;;  %vm681_vm2 = vmor %vm679_vm0, %vm680_vm1  ;;  %vm689_vm4 = vweird.f32 %v9463_v59 }
 0x1f3   : > { %v835_v26 = vadd.f32 %v825_v29, %v824_v4  ;;  %v719_v35 = vmul.f32 %v712_v25, %v9081_v14  ;;  %v675_v36 = vmul.f32 %v8341_v22, %v674_v39  ;;  %v9471_v4 = vsub.f32 %v9257_v62, %v807_v61 }
 0x1f4   : > { %v796_v42 = vpop.xlane.xlu0 %795  ;;  %v702_v20 = vsel %vm701_vm15, %v8339_v43, %v698_v54 }
 0x1f5   : > { %836 = vadd.xlane.f32.xlu1 %v835_v26  ;;  %v806_v9 = vmul.f32 %v796_v42, %v8591_v33  ;;  %v727_v3 = vmul.f32 %v719_v35, %v8716_v47  ;;  %v717_v57 = vmul.f32 %v702_v20, %v9110_v60  ;;  %v676_v29 = vmul.f32 0.5, %v675_v36 }
 0x1f6   : > { %v820_v5 = vmul.f32 %v9471_v4, %v9471_v4  ;;  %v8343_v62 = vpop.eup %8342  ;;  %v821_v60 = vmul.f32 %v9474_v6, %v9474_v6  ;;  %v720_v36 = vmul.f32 %v712_v25, %v9084_v8 }
 0x1f7   : > { %v9480_v14 = vadd.f32 %v727_v3, %v8835_v10  ;;  %v725_v34 = vmul.f32 %v717_v57, %v8714_v46  ;;  %v677_v0 = vsub.f32 1.5, %v676_v29  ;;  %v9487_v61 = vsub.f32 %v9280_v28, %v806_v9  ;;  %v802_v43 = vpop.xlane.xlu1 %801 }
 0x1f8   : > { %v684_v39 = vmul.f32 %v8343_v62, %v9463_v59  ;;  %v9496_v42 = vsub.f32 %v9283_v13, %v806_v9  ;;  %v808_v3 = vmul.f32 %v802_v43, %v8591_v33  ;;  %v718_v28 = vmul.f32 %v702_v20, %v9113_v56  ;;  %v13534_v20 = vld [vmem:[#allocation7_spill] sm:$0xff] }
 0x1f9   : > { %v743_v26 = vmul.f32 0.5, %v9480_v14  ;;  %v733_v35 = vadd.f32 %v725_v34, %v8789_v45  ;;  %v678_v54 = vmul.f32 %v8341_v22, %v677_v0  ;;  %v829_v25 = vadd.f32 %v821_v60, %v820_v5 }
 0x1fa   : > { %13531 = vst [vmem:[#allocation86_spill] sm:$0xff] %v9496_v42  ;;  %v685_v8 = vmul.f32 %v8343_v62, %v684_v39  ;;  %v818_v34 = vmul.f32 %v9487_v61, %v9487_v61  ;;  %v728_v0 = vmul.f32 %v720_v36, %v8716_v47  ;;  %v9508_v43 = vsub.f32 %v9299_v11, %v808_v3 }
 0x1fb   : > { %8344 = vtanh.f32 %v743_v26  ;;  %v741_v57 = vmul.f32 0.5, %v733_v35  ;;  %v682_v29 = vsel %vm681_vm2, %v8341_v22, %v678_v54  ;;  %830 = vadd.xlane.f32.xlu0 %v829_v25  ;;  %v9511_v52 = vsub.f32 %v9302_v44, %v808_v3  ;;  %v13535_v3 = vld [vmem:[#allocation9_spill] sm:$0xff] }
 0x1fc   : > { %v713_v13 = vmul.f32 %v682_v29, %v9171_v2  ;;  %v686_v9 = vmul.f32 0.5, %v685_v8  ;;  %13532 = vst [vmem:[#allocation87_spill] sm:$0xff] %v9508_v43  ;;  %v819_v56 = vmul.f32 %v9496_v42, %v9496_v42  ;;  %v726_v22 = vmul.f32 %v718_v28, %v8714_v46 }
 0x1fd   : > { %8346 = vtanh.f32 %v741_v57  ;;  %13533 = vst [vmem:[#allocation88_spill] sm:$0xff] %v9511_v52  ;;  %vm690_vm3 = vweird.f32 %v8343_v62  ;;  %v8503_v36 = vmov 2   ;;  %v822_v11 = vmul.f32 %v9508_v43, %v9508_v43  ;;  %v13577_v43 = vld [vmem:[#allocation29_spill] sm:$0xff] }
 0x1fe   : > { %v721_v5 = vmul.f32 %v713_v13, %v13534_v20  ;;  %v687_v60 = vsub.f32 1.5, %v686_v9  ;;  %8277 = vset.pattern.permute.xlu0 %v8503_v36  ;;  %8278 = vset.pattern.permute.xlu1 %v8503_v36  ;;  %v826_v2 = vadd.f32 %v819_v56, %v818_v34  ;;  %v823_v44 = vmul.f32 %v9511_v52, %v9511_v52  ;;  %vm691_vm5 = vmor %vm689_vm4, %vm690_vm3 }
 0x1ff   : > { %8276 = vset.pattern.permute.xlu2 %v8503_v36  ;;  %v9523_v39 = vadd.f32 %v728_v0, %v8835_v10  ;;  %v714_v54 = vmul.f32 %v682_v29, %v9174_v24  ;;  %v9529_v57 = vadd.f32 %v726_v22, %v8789_v45 }
 0x200   : > { %v729_v28 = vadd.f32 %v721_v5, %v13535_v3  ;;  %v688_v8 = vmul.f32 %v8343_v62, %v687_v60  ;;  %827 = vadd.xlane.f32.xlu1 %v826_v2  ;;  %v832_v59 = vadd.f32 %v823_v44, %v822_v11  ;;  %v13536_v2 = vld [vmem:[#allocation6_spill] sm:$0xff] }
 0x201   : > { %v8345_v26 = vpop.eup %8344  ;;  %v744_v24 = vmul.f32 0.5, %v9523_v39  ;;  %v722_v5 = vmul.f32 %v714_v54, %v13534_v20  ;;  %v742_v11 = vmul.f32 0.5, %v9529_v57 }
 0x202   : > { %v759_v25 = vadd.f32 1.0, %v8345_v26  ;;  %v737_v34 = vmul.f32 0.5, %v729_v28  ;;  %v692_v13 = vsel %vm691_vm5, %v8343_v62, %v688_v8  ;;  %833 = vadd.xlane.f32.xlu2 %v832_v59 }
 0x203   : > { %v8347_v9 = vpop.eup %8346  ;;  %v715_v0 = vmul.f32 %v692_v13, %v9220_v32  ;;  %v716_v36 = vmul.f32 %v692_v13, %v9223_v31  ;;  %v13538_v32 = vld [vmem:[#allocation10_spill] sm:$0xff] }
 0x204   : > { %v767_v56 = vmul.f32 0.5, %v759_v25  ;;  %v757_v29 = vadd.f32 1.0, %v8347_v9  ;;  %8348 = vtanh.f32 %v737_v34  ;;  %v9543_v25 = vadd.f32 %v722_v5, %v13535_v3 }
 0x205   : > { %v723_v22 = vmul.f32 %v715_v0, %v13536_v2  ;;  %v724_v44 = vmul.f32 %v716_v36, %v13536_v2  ;;  %8350 = vtanh.f32 %v744_v24 }
 0x206   : > { %v775_v60 = vmul.f32 %v767_v56, %v9480_v14  ;;  %v765_v62 = vmul.f32 0.5, %v757_v29  ;;  %8352 = vtanh.f32 %v742_v11  ;;  %v738_v0 = vmul.f32 0.5, %v9543_v25 }
 0x207   : > { %v731_v31 = vadd.f32 %v723_v22, %v13538_v32  ;;  %v9546_v54 = vadd.f32 %v724_v44, %v13538_v32  ;;  %v9577_v44 = vld [vmem:[%s12955_s1 + $0x10] sm:$0xff] }
 0x208   : > { %v9539_v26 = vand.u32 4294901760, %v775_v60  ;;  %v773_v8 = vmul.f32 %v765_v62, %v733_v35 }
 0x209   : > { %v739_v14 = vmul.f32 0.5, %v731_v31  ;;  %v740_v35 = vmul.f32 0.5, %v9546_v54 }
 0x20a   : > { %13537 = vst [vmem:[#allocation6_spill] sm:$0xff] %v9539_v26  ;;  %2000 = vmatpush.msrb.mxu0 %v9539_v26  ;;  %2215 = vmatpush.msrb.mxu3 %v9539_v26  ;;  %v9551_v59 = vsub.f32 %v775_v60, %v9539_v26  ;;  %v8349_v34 = vpop.eup %8348  ;;  %v9553_v13 = vand.u32 4294901760, %v773_v8 }
 0x20b   : > { %v753_v9 = vadd.f32 1.0, %v8349_v34  ;;  %8354 = vtanh.f32 %v739_v14  ;;  %v8351_v5 = vpop.eup %8350 }
 0x20c   : > { %13539 = vst [vmem:[#allocation10_spill] sm:$0xff] %v9551_v59  ;;  %2155 = vmatpush.msrb.mxu2 %v9551_v59  ;;  %v9558_v56 = vand.u32 4294901760, %v9551_v59  ;;  %2002 = vmatpush.msrb.mxu0 %v9553_v13  ;;  %v9564_v36 = vsub.f32 %v773_v8, %v9553_v13  ;;  %8356 = vtanh.f32 %v740_v35  ;;  %v8353_v62 = vpop.eup %8352  ;;  %v760_v34 = vadd.f32 1.0, %v8351_v5 }
 0x20d   : > { %13540 = vst [vmem:[#allocation89_spill] sm:$0xff] %v9553_v13  ;;  %2217 = vmatpush.msrb.mxu3 %v9553_v13  ;;  %v761_v24 = vmul.f32 0.5, %v753_v9  ;;  %8358 = vtanh.f32 %v738_v0 }
 0x20e   : > { %13541 = vst [vmem:[#allocation90_spill] sm:$0xff] %v9558_v56  ;;  %v2063_v29 = vsub.f32 %v9551_v59, %v9558_v56  ;;  %2158 = vmatpush.msrb.mxu2 %v9564_v36  ;;  %v9570_v60 = vand.u32 4294901760, %v9564_v36  ;;  %v768_v59 = vmul.f32 0.5, %v760_v34 }
 0x20f   : > { %13542 = vst [vmem:[#allocation91_spill] sm:$0xff] %v9564_v36  ;;  %v769_v22 = vmul.f32 %v761_v24, %v729_v28  ;;  %991 = vperm.xlu0 %8277, %v9577_v44   ;;  %v758_v24 = vadd.f32 1.0, %v8353_v62  ;;  %v8481_v62 = vld [vmem:[%s12955_s1 + $0x8] sm:$0xff] }
 0x210   : > { %13543 = vst [vmem:[#allocation92_spill] sm:$0xff] %v9570_v60  ;;  %v9572_v11 = vand.u32 4294901760, %v2063_v29  ;;  %v2069_v8 = vsub.f32 %v9564_v36, %v9570_v60 }
 0x211   : > { %v8355_v14 = vpop.eup %8354  ;;  %v9583_v35 = vand.u32 4294901760, %v769_v22  ;;  %v766_v5 = vmul.f32 0.5, %v758_v24  ;;  %v13554_v24 = vld [vmem:[#allocation19_spill] sm:$0xff] }
 0x212   : > { %13544 = vst [vmem:[#allocation93_spill] sm:$0xff] %v9572_v11  ;;  %2065 = vmatpush.msrb.mxu1 %v9572_v11  ;;  %v755_v28 = vadd.f32 1.0, %v8355_v14  ;;  %v9585_v9 = vand.u32 4294901760, %v2069_v8  ;;  %v8357_v0 = vpop.eup %8356  ;;  %v776_v11 = vmul.f32 %v768_v59, %v9523_v39 }
 0x213   : > { %13545 = vst [vmem:[#allocation94_spill] sm:$0xff] %v9583_v35  ;;  %v8359_v45 = vpop.eup %8358  ;;  %v756_v46 = vadd.f32 1.0, %v8357_v0  ;;  %v9589_v36 = vsub.f32 %v769_v22, %v9583_v35 }
 0x214   : > { %13546 = vst [vmem:[#allocation95_spill] sm:$0xff] %v9585_v9  ;;  %v763_v29 = vmul.f32 0.5, %v755_v28  ;;  %2071 = vmatpush.msrb.mxu1 %v9585_v9  ;;  %v754_v14 = vadd.f32 1.0, %v8359_v45  ;;  %v9608_v45 = vld [vmem:[%s12955_s1 + $0x18] sm:$0xff] }
 0x215   : > { %13547 = vst [vmem:[#allocation96_spill] sm:$0xff] %v9589_v36  ;;  %v764_v8 = vmul.f32 0.5, %v756_v46  ;;  %v774_v46 = vmul.f32 %v766_v5, %v9529_v57 }
 0x216   : > { %v771_v3 = vmul.f32 %v763_v29, %v731_v31  ;;  %v9602_v31 = vand.u32 4294901760, %v9589_v36  ;;  %v762_v59 = vmul.f32 0.5, %v754_v14 }
 0x217   : > { %v772_v22 = vmul.f32 %v764_v8, %v9546_v54  ;;  %v9628_v0 = vand.u32 4294901760, %v774_v46  ;;  %v9634_v54 = vpop.f32.mrf.mxu0 }
 0x218   : > { %v9591_v52 = vand.u32 4294901760, %v771_v3  ;;  %13550 = vst [vmem:[#allocation99_spill] sm:$0xff] %v9602_v31  ;;  %v2081_v28 = vsub.f32 %v9589_v36, %v9602_v31  ;;  %v770_v14 = vmul.f32 %v762_v59, %v9543_v25  ;;  %v13562_v59 = vld [vmem:[#allocation16_spill] sm:$0xff] }
 0x219   : > { %987 = vperm.xlu1 %8278, %v8481_v62   ;;  %13553 = vst [vmem:[#allocation102_spill] sm:$0xff] %v9628_v0  ;;  %v9641_v8 = vand.u32 4294901760, %v772_v22  ;;  %v9652_v25 = vsub.f32 %v774_v46, %v9628_v0  ;;  %v9668_v46 = vpop.f32.mrf.mxu1 }
 0x21a   : > { %13548 = vst [vmem:[#allocation97_spill] sm:$0xff] %v9591_v52  ;;  %2004 = vmatpush.msrb.mxu0 %v9591_v52  ;;  %v9599_v34 = vsub.f32 %v771_v3, %v9591_v52  ;;  %2219 = vmatpush.msrb.mxu3 %v9591_v52  ;;  %v9617_v3 = vand.u32 4294901760, %v776_v11  ;;  %v9645_v62 = vand.u32 4294901760, %v2081_v28  ;;  %v13564_v28 = vld [vmem:[#allocation28_spill] sm:$0xff] }
 0x21b   : > { %995 = vperm.xlu2 %8276, %v9608_v45   ;;  %13557 = vst [vmem:[#allocation105_spill] sm:$0xff] %v9641_v8 }
 0x21c   : > { %13549 = vst [vmem:[#allocation98_spill] sm:$0xff] %v9599_v34  ;;  %2006 = vmatpush.msrb.mxu0 %v9583_v35  ;;  %2161 = vmatpush.msrb.mxu2 %v9599_v34  ;;  %v9615_v39 = vand.u32 4294901760, %v9599_v34  ;;  %v9637_v5 = vsub.f32 %v776_v11, %v9617_v3  ;;  %v9654_v11 = vand.u32 4294901760, %v770_v14 }
 0x21d   : > { %13552 = vst [vmem:[#allocation101_spill] sm:$0xff] %v9617_v3  ;;  %2221 = vmatpush.msrb.mxu3 %v9583_v35 }
 0x21e   : > { %13551 = vst [vmem:[#allocation100_spill] sm:$0xff] %v9615_v39  ;;  %2008 = vmatpush.msrb.mxu0 %v8908_v51  ;;  %2164 = vmatpush.msrb.mxu2 %v9589_v36  ;;  %v2075_v57 = vsub.f32 %v9599_v34, %v9615_v39  ;;  %v9682_v9 = vsub.f32 %v770_v14, %v9654_v11  ;;  %v13574_v34 = vld [vmem:[#allocation34_spill] sm:$0xff] }
 0x21f   : > { %2223 = vmatpush.msrb.mxu3 %v8908_v51  ;;  %13556 = vst [vmem:[#allocation104_spill] sm:$0xff] %v9637_v5 }
 0x220   : > { %2010 = vmatpush.msrb.mxu0 %v8888_v58  ;;  %2167 = vmatpush.msrb.mxu2 %v13554_v24  ;;  %v9632_v29 = vand.u32 4294901760, %v2075_v57  ;;  %13558 = vst [vmem:[#allocation106_spill] sm:$0xff] %v9645_v62  ;;  %v13559_v24 = vld [vmem:[#allocation14_spill] sm:$0xff]  ;;  %v9659_v57 = vand.u32 4294901760, %v9637_v5 }
 0x221   : > { %2225 = vmatpush.msrb.mxu3 %v8888_v58  ;;  %13560 = vst [vmem:[#allocation107_spill] sm:$0xff] %v9652_v25  ;;  %v9722_v42 = vpop.f32.mrf.mxu1 }
 0x222   : > { %13555 = vst [vmem:[#allocation103_spill] sm:$0xff] %v9632_v29  ;;  %2012 = vmatpush.msrb.mxu0 %v8893_v7  ;;  %2077 = vmatpush.msrb.mxu1 %v9632_v29  ;;  %v9675_v29 = vand.u32 4294901760, %v9652_v25 }
 0x223   : > { %2170 = vmatpush.msrb.mxu2 %v13559_v24  ;;  %2227 = vmatpush.msrb.mxu3 %v8893_v7  ;;  %13561 = vst [vmem:[#allocation108_spill] sm:$0xff] %v9654_v11  ;;  %v9664_v24 = vsub.f32 %v772_v22, %v9641_v8  ;;  %v13570_v22 = vld [vmem:[#allocation22_spill] sm:$0xff] }
 0x224   : > { %2014 = vmatpush.msrb.mxu0 %v8895_v1  ;;  %2083 = vmatpush.msrb.mxu1 %v9645_v62  ;;  %13563 = vst [vmem:[#allocation109_spill] sm:$0xff] %v9659_v57  ;;  %v13566_v62 = vld [vmem:[#allocation17_spill] sm:$0xff]  ;;  %v2451_v14 = vsub.f32 %v9652_v25, %v9675_v29 }
 0x225   : > { %2173 = vmatpush.msrb.mxu2 %v13562_v59  ;;  %2229 = vmatpush.msrb.mxu3 %v8895_v1  ;;  %13565 = vst [vmem:[#allocation110_spill] sm:$0xff] %v9664_v24  ;;  %v8483_v59 = vld [vmem:[%s12955_s1] sm:$0xff]  ;;  %v9689_v36 = vand.u32 4294901760, %v9664_v24 }
 0x226   : > { %2016 = vmatpush.msrb.mxu0 %v8910_v16  ;;  %2089 = vmatpush.msrb.mxu1 %v13564_v28  ;;  %13567 = vst [vmem:[#allocation111_spill] sm:$0xff] %v9668_v46  ;;  %v13569_v28 = vld [vmem:[#allocation31_spill] sm:$0xff]  ;;  %v9704_v46 = vpop.f32.mrf.mxu2 }
 0x227   : > { %2176 = vmatpush.msrb.mxu2 %v13566_v62  ;;  %2231 = vmatpush.msrb.mxu3 %v8910_v16  ;;  %13568 = vst [vmem:[#allocation112_spill] sm:$0xff] %v9675_v29  ;;  %v2445_v62 = vsub.f32 %v9637_v5, %v9659_v57 }
 0x228   : > { %983 = vperm.xlu2 %8276, %v8483_v59   ;;  %2018 = vmatpush.msrb.mxu0 %v8905_v53  ;;  %13571 = vst [vmem:[#allocation22_spill] sm:$0xff] %v9682_v9  ;;  %v9686_v59 = vpop.f32.mrf.mxu0 }
 0x229   : > { %2095 = vmatpush.msrb.mxu1 %v13569_v28  ;;  %2179 = vmatpush.msrb.mxu2 %v13570_v22  ;;  %13572 = vst [vmem:[#allocation113_spill] sm:$0xff] %v9686_v59  ;;  %v13575_v28 = vld [vmem:[#allocation20_spill] sm:$0xff]  ;;  %v13576_v22 = vld [vmem:[#allocation38_spill] sm:$0xff]  ;;  %v9699_v20 = vand.u32 4294901760, %v2445_v62  ;;  %v9702_v59 = vand.u32 4294901760, %v9682_v9 }
 0x22a   : > { %2233 = vmatpush.msrb.mxu3 %v8905_v53  ;;  %2020 = vmatpush.msrb.mxu0 %v8935_v12  ;;  %13573 = vst [vmem:[#allocation114_spill] sm:$0xff] %v9689_v36  ;;  %v13582_v62 = vld [vmem:[#allocation32_spill] sm:$0xff] }
 0x22b   : > { %2101 = vmatpush.msrb.mxu1 %v13574_v34  ;;  %2182 = vmatpush.msrb.mxu2 %v13575_v28  ;;  %13578 = vst [vmem:[#allocation20_spill] sm:$0xff] %v9699_v20  ;;  %v2457_v28 = vsub.f32 %v9664_v24, %v9689_v36  ;;  %v9716_v34 = vand.u32 4294901760, %v2451_v14 }
 0x22c   : > { %2235 = vmatpush.msrb.mxu3 %v8935_v12  ;;  %2022 = vmatpush.msrb.mxu0 %v8956_v18  ;;  %13579 = vst [vmem:[#allocation29_spill] sm:$0xff] %v9702_v59 }
 0x22d   : > { %2107 = vmatpush.msrb.mxu1 %v13576_v22  ;;  %2185 = vmatpush.msrb.mxu2 %v13577_v43  ;;  %13580 = vst [vmem:[#allocation115_spill] sm:$0xff] %v9704_v46  ;;  %v9712_v22 = vpop.f32.mrf.mxu3  ;;  %v13581_v43 = vld [vmem:[#allocation42_spill] sm:$0xff]  ;;  %v2463_v46 = vsub.f32 %v9682_v9, %v9702_v59 }
 0x22e   : > { %2237 = vmatpush.msrb.mxu3 %v8956_v18  ;;  %2028 = vmatmul.f32.vlgmr.msrb.gmra.mxu0 %v9277_v63  ;;  %13583 = vst [vmem:[#allocation42_spill] sm:$0xff] %v9716_v34 }
 0x22f   : > { %2270 = vmatpush.msra.mxu0 %v9558_v56  ;;  %2113 = vmatpush.msrb.mxu1 %v13581_v43  ;;  %v9726_v56 = vand.u32 4294901760, %v2457_v28  ;;  %v13586_v43 = vld [vmem:[#allocation47_spill] sm:$0xff]  ;;  %v9742_v28 = vpop.f32.mrf.mxu2 }
 0x230   : > { %2447 = vmatpush.msra.mxu3 %v9699_v20  ;;  %2188 = vmatpush.msrb.mxu2 %v13582_v62  ;;  %v13584_v20 = vld [vmem:[#allocation43_spill] sm:$0xff]  ;;  %v9732_v14 = vpop.f32.mrf.mxu0  ;;  %v9736_v62 = vand.u32 4294901760, %v2463_v46 }
 0x231   : > { %2274 = vmatpush.msra.mxu0 %v9570_v60  ;;  %2119 = vmatpush.msrb.mxu1 %v13584_v20  ;;  %13585 = vst [vmem:[#allocation32_spill] sm:$0xff] %v9726_v56  ;;  %v13588_v20 = vld [vmem:[#allocation50_spill] sm:$0xff] }
 0x232   : > { %2382 = vmatpush.msra.mxu2 %v9617_v3  ;;  %2453 = vmatpush.msra.mxu3 %v9716_v34  ;;  %13587 = vst [vmem:[#allocation43_spill] sm:$0xff] %v9736_v62  ;;  %v13599_v60 = vld [vmem:[#allocation26_spill] sm:$0xff] }
 0x233   : > { %2191 = vmatmul.f32.vlgmr.msrb.gmra.mxu2 %v9215_v19  ;;  %2278 = vmatpush.msra.mxu0 %v9615_v39 }
 0x234   : > { %2384 = vmatpush.msra.mxu2 %v9628_v0  ;;  %2459 = vmatpush.msra.mxu3 %v9726_v56  ;;  %v13589_v56 = vld [vmem:[#allocation21_spill] sm:$0xff] }
 0x235   : > { %2125 = vmatpush.msrb.mxu1 %v13586_v43  ;;  %2241 = vmatmul.f32.vlgmr.msrb.gmra.mxu3 %v9244_v49  ;;  %v9748_v46 = vpop.f32.mrf.mxu3  ;;  %v13590_v43 = vld [vmem:[#allocation52_spill] sm:$0xff] }
 0x236   : > { %2282 = vmatpush.msra.mxu0 %v9602_v31  ;;  %2386 = vmatpush.msra.mxu2 %v9641_v8  ;;  %v13591_v31 = vld [vmem:[#allocation18_spill] sm:$0xff] }
 0x237   : > { %2465 = vmatpush.msra.mxu3 %v9736_v62  ;;  %2131 = vmatpush.msrb.mxu1 %v13588_v20  ;;  %v9754_v20 = vpop.f32.mrf.mxu1  ;;  %v13592_v62 = vld [vmem:[#allocation55_spill] sm:$0xff]  ;;  %v9770_v34 = vpop.f32.mrf.mxu2 }
 0x238   : > { %2036 = vmatmul.f32.gmra.mxu0 %v9353_v50  ;;  %2133 = vmatmul.f32.vlgmr.msrb.gmra.mxu1 %v9192_v38  ;;  %v9762_v39 = vpop.f32.mrf.mxu0 }
 0x239   : > { %2286 = vmatpush.msra.mxu0 %v13589_v56  ;;  %2337 = vmatpush.msra.mxu1 %v9539_v26  ;;  %v13593_v56 = vld [vmem:[#allocation23_spill] sm:$0xff] }
 0x23a   : > { %2388 = vmatpush.msra.mxu2 %v9654_v11  ;;  %2471 = vmatpush.msra.mxu3 %v13590_v43  ;;  %v13594_v43 = vld [vmem:[#allocation59_spill] sm:$0xff] }
 0x23b   : > { %2290 = vmatpush.msra.mxu0 %v13591_v31  ;;  %2339 = vmatpush.msra.mxu1 %v9553_v13  ;;  %v13595_v31 = vld [vmem:[#allocation24_spill] sm:$0xff]  ;;  %v13606_v13 = vld [vmem:[#allocation58_spill] sm:$0xff] }
 0x23c   : > { %2390 = vmatpush.msra.mxu2 %v8962_v27  ;;  %2477 = vmatpush.msra.mxu3 %v13592_v62  ;;  %v13596_v62 = vld [vmem:[#allocation62_spill] sm:$0xff] }
 0x23d   : > { %2196 = vmatmul.f32.gmra.mxu2 %v9311_v40  ;;  %2294 = vmatpush.msra.mxu0 %v13593_v56  ;;  %v13597_v56 = vld [vmem:[#allocation30_spill] sm:$0xff] }
 0x23e   : > { %2341 = vmatpush.msra.mxu1 %v9591_v52  ;;  %2392 = vmatpush.msra.mxu2 %v8968_v17 }
 0x23f   : > { %2483 = vmatpush.msra.mxu3 %v13594_v43  ;;  %2298 = vmatpush.msra.mxu0 %v13595_v31  ;;  %v9776_v43 = vpop.f32.mrf.mxu3  ;;  %v13598_v31 = vld [vmem:[#allocation67_spill] sm:$0xff]  ;;  %v9798_v26 = vpop.f32.mrf.mxu2 }
 0x240   : > { %2247 = vmatmul.f32.gmra.mxu3 %v9325_v15  ;;  %2343 = vmatpush.msra.mxu1 %v9583_v35  ;;  %v13600_v35 = vld [vmem:[#allocation68_spill] sm:$0xff]  ;;  %v9790_v52 = vpop.f32.mrf.mxu0 }
 0x241   : > { %2394 = vmatpush.msra.mxu2 %v9023_v23  ;;  %2489 = vmatpush.msra.mxu3 %v13596_v62  ;;  %v9782_v62 = vpop.f32.mrf.mxu1 }
 0x242   : > { %2044 = vmatmul.f32.gmra.mxu0 %v9379_v37  ;;  %2137 = vmatmul.f32.gmra.mxu1 %v9292_v55 }
 0x243   : > { %2302 = vmatpush.msra.mxu0 %v13597_v56  ;;  %2345 = vmatpush.msra.mxu1 %v8908_v51  ;;  %v13601_v56 = vld [vmem:[#allocation35_spill] sm:$0xff]  ;;  %v13602_v51 = vld [vmem:[#allocation49_spill] sm:$0xff] }
 0x244   : > { %2396 = vmatpush.msra.mxu2 %v9040_v48  ;;  %2495 = vmatpush.msra.mxu3 %v13598_v31  ;;  %v13603_v31 = vld [vmem:[#allocation70_spill] sm:$0xff] }
 0x245   : > { %2306 = vmatpush.msra.mxu0 %v13599_v60  ;;  %2347 = vmatpush.msra.mxu1 %v8888_v58  ;;  %v13604_v60 = vld [vmem:[#allocation39_spill] sm:$0xff] }
 0x246   : > { %2398 = vmatpush.msra.mxu2 %v9063_v41  ;;  %2501 = vmatpush.msra.mxu3 %v13600_v35  ;;  %v13605_v58 = vld [vmem:[#allocation79_spill] sm:$0xff] }
 0x247   : > { %2201 = vmatmul.f32.gmra.mxu2 %v9342_v30  ;;  %2310 = vmatpush.msra.mxu0 %v13601_v56  ;;  %v13607_v35 = vld [vmem:[#allocation71_spill] sm:$0xff]  ;;  %v13608_v56 = vld [vmem:[#allocation84_spill] sm:$0xff] }
 0x248   : > { %2349 = vmatpush.msra.mxu1 %v8893_v7  ;;  %2400 = vmatpush.msra.mxu2 %v13602_v51  ;;  %v13609_v7 = vld [vmem:[#allocation76_spill] sm:$0xff] }
 0x249   : > { %2507 = vmatpush.msra.mxu3 %v13603_v31  ;;  %2314 = vmatpush.msra.mxu0 %v13604_v60  ;;  %v9804_v31 = vpop.f32.mrf.mxu3  ;;  %v13611_v60 = vld [vmem:[#allocation60_spill] sm:$0xff] }
 0x24a   : > { %2253 = vmatmul.f32.gmra.mxu3 %v13605_v58  ;;  %2351 = vmatpush.msra.mxu1 %v8895_v1  ;;  %13610 = vst [vmem:[#allocation47_spill] sm:$0xff] %v9804_v31 }
 0x24b   : > { %2402 = vmatpush.msra.mxu2 %v13606_v13  ;;  %2513 = vmatpush.msra.mxu3 %v13607_v35  ;;  %v9810_v35 = vpop.f32.mrf.mxu1 }
 0x24c   : > { %2537 = vmatpush.msrb.mxu0 %v9637_v5  ;;  %2141 = vmatmul.f32.gmra.mxu1 %v13609_v7  ;;  %v13612_v5 = vld [vmem:[#allocation81_spill] sm:$0xff] }
 0x24d   : > { %2719 = vmatpush.msrb.mxu3 %v9617_v3  ;;  %2052 = vmatmul.f32.gmra.mxu0 %v13608_v56 }
 0x24e   : > { %2353 = vmatpush.msra.mxu1 %v8910_v16  ;;  %2404 = vmatpush.msra.mxu2 %v13611_v60  ;;  %v9818_v16 = vpop.f32.mrf.mxu0 }
 0x24f   : > { %2540 = vmatpush.msrb.mxu0 %v9652_v25  ;;  %2721 = vmatpush.msrb.mxu3 %v9628_v0  ;;  %13613 = vst [vmem:[#allocation50_spill] sm:$0xff] %v9818_v16 }
 0x250   : > { %2652 = vmatpush.msrb.mxu2 %v9659_v57  ;;  %2355 = vmatpush.msra.mxu1 %v8905_v53  ;;  %v13614_v57 = vld [vmem:[#allocation83_spill] sm:$0xff]  ;;  %v9826_v53 = vpop.f32.mrf.mxu2 }
 0x251   : > { %2543 = vmatpush.msrb.mxu0 %v9664_v24  ;;  %2723 = vmatpush.msrb.mxu3 %v9641_v8  ;;  %v13619_v24 = vld [vmem:[#allocation40_spill] sm:$0xff] }
 0x252   : > { %2656 = vmatpush.msrb.mxu2 %v9675_v29  ;;  %2357 = vmatpush.msra.mxu1 %v8935_v12  ;;  %v13615_v29 = vld [vmem:[#allocation33_spill] sm:$0xff]  ;;  %v9832_v12 = vpop.f32.mrf.mxu3 }
 0x253   : > { %2206 = vmatmul.f32.gmra.mxu2 %v13612_v5  ;;  %2546 = vmatpush.msrb.mxu0 %v9682_v9  ;;  %v13616_v9 = vld [vmem:[#allocation80_spill] sm:$0xff] }
 0x254   : > { %2660 = vmatpush.msrb.mxu2 %v9689_v36  ;;  %2725 = vmatpush.msrb.mxu3 %v9654_v11  ;;  %v13617_v36 = vld [vmem:[#allocation36_spill] sm:$0xff] }
 0x255   : > { %2259 = vmatmul.f32.gmra.mxu3 %v13614_v57  ;;  %2359 = vmatpush.msra.mxu1 %v8956_v18  ;;  %v9838_v18 = vpop.f32.mrf.mxu1 }
 0x256   : > { %2549 = vmatpush.msrb.mxu0 %v13615_v29  ;;  %2664 = vmatpush.msrb.mxu2 %v9702_v59  ;;  %13618 = vst [vmem:[#allocation30_spill] sm:$0xff] %v9838_v18  ;;  %v13620_v29 = vld [vmem:[#allocation45_spill] sm:$0xff]  ;;  %v13621_v59 = vld [vmem:[#allocation44_spill] sm:$0xff]  ;;  %v9846_v25 = vpop.f32.mrf.mxu0 }
 0x257   : > { %2597 = vmatpush.msrb.mxu1 %v9617_v3  ;;  %2727 = vmatpush.msrb.mxu3 %v8962_v27  ;;  %v13629_v3 = vld [vmem:[#allocation57_spill] sm:$0xff] }
 0x258   : > { %2145 = vmatmul.f32.gmra.mxu1 %v13616_v9  ;;  %2316 = vmatmul.f32.vlgmr.msra.gmra.mxu0 %v9192_v38 }
 0x259   : > { %2552 = vmatpush.msrb.mxu0 %v13617_v36  ;;  %2599 = vmatpush.msrb.mxu1 %v9628_v0  ;;  %v13622_v36 = vld [vmem:[#allocation46_spill] sm:$0xff]  ;;  %v13623_v0 = vld [vmem:[#allocation48_spill] sm:$0xff] }
 0x25a   : > { %2668 = vmatpush.msrb.mxu2 %v13619_v24  ;;  %2729 = vmatpush.msrb.mxu3 %v8968_v17  ;;  %v13624_v24 = vld [vmem:[#allocation51_spill] sm:$0xff] }
 0x25b   : > { %2555 = vmatpush.msrb.mxu0 %v13620_v29  ;;  %2601 = vmatpush.msrb.mxu1 %v9641_v8  ;;  %v9854_v29 = vpop.f32.mrf.mxu2  ;;  %v9860_v8 = vpop.f32.mrf.mxu3 }
 0x25c   : > { %2672 = vmatpush.msrb.mxu2 %v13621_v59  ;;  %2731 = vmatpush.msrb.mxu3 %v9023_v23  ;;  %v13625_v59 = vld [vmem:[#allocation53_spill] sm:$0xff] }
 0x25d   : > { %2410 = vmatmul.f32.vlgmr.msra.gmra.mxu2 %v9277_v63  ;;  %2558 = vmatpush.msrb.mxu0 %v13622_v36  ;;  %v13627_v36 = vld [vmem:[#allocation56_spill] sm:$0xff] }
 0x25e   : > { %2603 = vmatpush.msrb.mxu1 %v9654_v11  ;;  %2676 = vmatpush.msrb.mxu2 %v13623_v0  ;;  %v13626_v0 = vld [vmem:[#allocation54_spill] sm:$0xff]  ;;  %v13632_v63 = vld [vmem:[#allocation64_spill] sm:$0xff] }
 0x25f   : > { %2733 = vmatpush.msrb.mxu3 %v9040_v48  ;;  %2561 = vmatpush.msrb.mxu0 %v13624_v24  ;;  %v9866_v24 = vpop.f32.mrf.mxu1 }
 0x260   : > { %2515 = vmatmul.f32.vlgmr.msra.gmra.mxu3 %v9192_v38  ;;  %2605 = vmatpush.msrb.mxu1 %v8962_v27 }
 0x261   : > { %2680 = vmatpush.msrb.mxu2 %v13625_v59  ;;  %2735 = vmatpush.msrb.mxu3 %v9063_v41  ;;  %v13628_v59 = vld [vmem:[#allocation61_spill] sm:$0xff] }
 0x262   : > { %2320 = vmatmul.f32.gmra.mxu0 %v9292_v55  ;;  %2361 = vmatmul.f32.vlgmr.msra.gmra.mxu1 %v9192_v38 }
 0x263   : > { %2564 = vmatpush.msrb.mxu0 %v13626_v0  ;;  %2607 = vmatpush.msrb.mxu1 %v8968_v17  ;;  %v9875_v0 = vpop.f32.mrf.mxu0  ;;  %v13631_v17 = vld [vmem:[#allocation63_spill] sm:$0xff] }
 0x264   : > { %2684 = vmatpush.msrb.mxu2 %v13627_v36  ;;  %2737 = vmatpush.msrb.mxu3 %v13602_v51  ;;  %13630 = vst [vmem:[#allocation67_spill] sm:$0xff] %v9875_v0 }
 0x265   : > { %2567 = vmatpush.msrb.mxu0 %v13628_v59  ;;  %2609 = vmatpush.msrb.mxu1 %v9023_v23  ;;  %v8504_v59 = vmov 3  }
 0x266   : > { %2688 = vmatpush.msrb.mxu2 %v13629_v3  ;;  %2739 = vmatpush.msrb.mxu3 %v13606_v13  ;;  %v13633_v3 = vld [vmem:[#allocation65_spill] sm:$0xff] }
 0x267   : > { %2418 = vmatmul.f32.gmra.mxu2 %v9353_v50  ;;  %2570 = vmatpush.msrb.mxu0 %v13631_v17  ;;  %v9888_v17 = vpop.f32.mrf.mxu3 }
 0x268   : > { %v837_v27 = vpop.xlane.xlu1 %836  ;;  %2611 = vmatpush.msrb.mxu1 %v9040_v48  ;;  %2692 = vmatpush.msrb.mxu2 %v13632_v63  ;;  %v9893_v63 = vpop.f32.mrf.mxu1 }
 0x269   : > { %v841_v11 = vmul.f32 %v837_v27, %v8591_v33  ;;  %2741 = vmatpush.msrb.mxu3 %v13611_v60  ;;  %8280 = vset.pattern.permute.xlu1 %v8504_v59  ;;  %v9882_v27 = vpop.f32.mrf.mxu2  ;;  %13634 = vst [vmem:[#allocation26_spill] sm:$0xff] %v9893_v63 }
 0x26a   : > { %2519 = vmatmul.f32.gmra.mxu3 %v9292_v55  ;;  %2613 = vmatpush.msrb.mxu1 %v9063_v41 }
 0x26b   : > { %v845_v36 = vadd.f32 1e-06, %v841_v11  ;;  %2696 = vmatpush.msrb.mxu2 %v13633_v3  ;;  %2324 = vmatmul.f32.gmra.mxu0 %v13609_v7  ;;  %v8505_v11 = vmov 4   ;;  %v9898_v48 = vpop.f32.mrf.mxu0 }
 0x26c   : > { %2365 = vmatmul.f32.gmra.mxu1 %v9292_v55  ;;  %1884 = vperm.xlu1 %8280, %v9577_v44  }
 0x26d   : > { %8360 = vrsqrt.f32 %v845_v36  ;;  %2615 = vmatpush.msrb.mxu1 %v13602_v51  ;;  %8279 = vset.pattern.permute.xlu0 %v8504_v59  ;;  %vm882_vm6 = vweird.f32 %v845_v36 }
 0x26e   : > { %1888 = vperm.xlu0 %8279, %v9608_v45   ;;  %8281 = vset.pattern.permute.xlu2 %v8505_v11  ;;  %v831_v3 = vpop.xlane.xlu0 %830 }
 0x26f   : > { %2617 = vmatpush.msrb.mxu1 %v13606_v13  ;;  %2426 = vmatmul.f32.gmra.mxu2 %v9379_v37  ;;  %v839_v44 = vmul.f32 %v831_v3, %v8591_v33 }
 0x270   : > { %1912 = vperm.xlu2 %8281, %v9608_v45   ;;  %v9909_v45 = vpop.f32.mrf.mxu3 }
 0x271   : > { %2619 = vmatpush.msrb.mxu1 %v13611_v60  ;;  %v843_v59 = vadd.f32 1e-06, %v839_v44  ;;  %v9905_v50 = vpop.f32.mrf.mxu2 }
 0x272   : > { %2523 = vmatmul.f32.gmra.mxu3 %v13609_v7 }
 0x273   : > { %v8361_v41 = vpop.eup %8360  ;;  %2328 = vmatmul.f32.gmra.mxu0 %v13616_v9  ;;  %8362 = vrsqrt.f32 %v843_v59  ;;  %v828_v37 = vpop.xlane.xlu1 %827  ;;  %vm862_vm10 = vweird.f32 %v843_v59 }
 0x274   : > { %v877_v23 = vmul.f32 %v8361_v41, %v845_v36  ;;  %vm883_vm7 = vweird.f32 %v8361_v41  ;;  %2369 = vmatmul.f32.gmra.mxu1 %v13609_v7  ;;  %v838_v3 = vmul.f32 %v828_v37, %v8591_v33  ;;  %v9913_v36 = vpop.f32.mrf.mxu1  ;;  %v9918_v37 = vpop.f32.mrf.mxu0 }
 0x275   : > { %v834_v1 = vpop.xlane.xlu2 %833  ;;  %vm884_vm8 = vmor %vm882_vm6, %vm883_vm7 }
 0x276   : > { %v878_v51 = vmul.f32 %v8361_v41, %v877_v23  ;;  %8282 = vset.pattern.permute.xlu0 %v8505_v11  ;;  %v842_v23 = vadd.f32 1e-06, %v838_v3  ;;  %v840_v44 = vmul.f32 %v834_v1, %v8591_v33  ;;  %v13635_v1 = vld [vmem:[#allocation85_spill] sm:$0xff] }
 0x277   : > { %2434 = vmatmul.f32.gmra.mxu2 %v13608_v56 }
 0x278   : > { %v879_v13 = vmul.f32 0.5, %v878_v51  ;;  %8364 = vrsqrt.f32 %v842_v23  ;;  %v9915_v63 = vadd.f32 1e-06, %v840_v44  ;;  %vm852_vm13 = vweird.f32 %v842_v23 }
 0x279   : > { %v8363_v0 = vpop.eup %8362  ;;  %v9926_v33 = vpop.f32.mrf.mxu2 }
 0x27a   : > { %v880_v60 = vsub.f32 1.5, %v879_v13  ;;  %2527 = vmatmul.f32.gmra.mxu3 %v13616_v9  ;;  %v857_v13 = vmul.f32 %v8363_v0, %v843_v59  ;;  %8366 = vrsqrt.f32 %v9915_v63  ;;  %vm863_vm11 = vweird.f32 %v8363_v0 }
 0x27b   : > { %2573 = vmatmul.f32.vlgmr.msrb.gmra.mxu0 %v9215_v19  ;;  %v9934_v19 = vpop.f32.mrf.mxu3  ;;  %vm9940_vm12 = vmor %vm862_vm10, %vm863_vm11  ;;  %vm872_vm0 = vweird.f32 %v9915_v63 }
 0x27c   : > { %v881_v51 = vmul.f32 %v8361_v41, %v880_v60  ;;  %2373 = vmatmul.f32.gmra.mxu1 %v13616_v9  ;;  %v858_v44 = vmul.f32 %v8363_v0, %v857_v13  ;;  %13637 = vst [vmem:[#allocation35_spill] sm:$0xff] %v9934_v19 }
 0x27e   : > { %v885_v18 = vsel %vm884_vm8, %v8361_v41, %v881_v51  ;;  %v9928_v41 = vpop.permute.xlu2 %995  ;;  %v8365_v51 = vpop.eup %8364 }
 0x27f   : > { %v892_v11 = vmul.f32 %v885_v18, %v9453_v21  ;;  %v893_v3 = vmul.f32 %v885_v18, %v13635_v1  ;;  %13636 = vst [vmem:[#allocation68_spill] sm:$0xff] %v9928_v41  ;;  %v859_v21 = vmul.f32 0.5, %v858_v44  ;;  %2698 = vmatmul.f32.vlgmr.msrb.gmra.mxu2 %v9192_v38  ;;  %v847_v31 = vmul.f32 %v8365_v51, %v842_v23  ;;  %v9944_v44 = vpop.f32.mrf.mxu1 }
 0x280   : > { %v9938_v1 = vpop.eup %8366  ;;  %13640 = vst [vmem:[#allocation49_spill] sm:$0xff] %v9944_v44  ;;  %vm853_vm14 = vweird.f32 %v8365_v51 }
 0x281   : > { %v900_v60 = vmul.f32 %v892_v11, %v8716_v47  ;;  %v901_v18 = vmul.f32 %v893_v3, %v8716_v47  ;;  %v860_v13 = vsub.f32 1.5, %v859_v21  ;;  %v9947_v59 = vpop.permute.xlu0 %991  ;;  %v867_v47 = vmul.f32 %v9938_v1, %v9915_v63  ;;  %v1600_v21 = vpop.f32.mrf.mxu0  ;;  %vm9969_vm15 = vmor %vm852_vm13, %vm853_vm14 }
 0x282   : > { %2743 = vmatmul.f32.vlgmr.msrb.gmra.mxu3 %v9192_v38  ;;  %13641 = vst [vmem:[#allocation70_spill] sm:$0xff] %v9947_v59  ;;  %vm873_vm1 = vweird.f32 %v9938_v1 }
 0x283   : > { %v9931_v56 = vadd.f32 %v900_v60, %v8835_v10  ;;  %v848_v60 = vmul.f32 %v8365_v51, %v847_v31  ;;  %v861_v19 = vmul.f32 %v8363_v0, %v860_v13  ;;  %2578 = vmatmul.f32.gmra.mxu0 %v9311_v40  ;;  %v1062_v31 = vadd.f32 %v9732_v14, %v9947_v59  ;;  %vm9996_vm2 = vmor %vm872_vm0, %vm873_vm1 }
 0x284   : > { %2623 = vmatmul.f32.vlgmr.msrb.gmra.mxu1 %v9244_v49  ;;  %v9956_v38 = vadd.f32 %v901_v18, %v8835_v10  ;;  %v868_v13 = vmul.f32 %v9938_v1, %v867_v47  ;;  %v1444_v40 = vadd.f32 %v9882_v27, %v9947_v59  ;;  %v1452_v49 = vadd.f32 %v9905_v50, %v9928_v41  ;;  %v13709_v59 = vld [vmem:[#allocation69_spill] sm:$0xff] }
 0x285   : > { %v916_v11 = vmul.f32 0.5, %v9931_v56  ;;  %v849_v3 = vmul.f32 0.5, %v848_v60 }
 0x286   : > { %v9967_v14 = vpop.permute.xlu2 %983  ;;  %v1541_v50 = vadd.f32 %v9888_v17, %v1444_v40  ;;  %v917_v47 = vmul.f32 0.5, %v9956_v38  ;;  %v13646_v17 = vld [vmem:[#allocation86_spill] sm:$0xff] }
 0x287   : > { %8368 = vtanh.f32 %v916_v11  ;;  %v865_v11 = vsel %vm9940_vm12, %v8363_v0, %v861_v19  ;;  %v850_v44 = vsub.f32 1.5, %v849_v3  ;;  %v869_v19 = vmul.f32 0.5, %v868_v13  ;;  %2702 = vmatmul.f32.gmra.mxu2 %v9292_v55  ;;  %v9978_v0 = vpop.f32.mrf.mxu2 }
 0x288   : > { %v888_v23 = vmul.f32 %v865_v11, %v9471_v4  ;;  %v889_v60 = vmul.f32 %v865_v11, %v9474_v6  ;;  %v1159_v4 = vadd.f32 %v9754_v20, %v1062_v31  ;;  %v1046_v27 = vadd.f32 %v9634_v54, %v9967_v14 }
 0x289   : > { %v851_v16 = vmul.f32 %v8365_v51, %v850_v44  ;;  %v870_v11 = vsub.f32 1.5, %v869_v19  ;;  %v1070_v13 = vadd.f32 %v9762_v39, %v9928_v41  ;;  %v1545_v39 = vadd.f32 %v9909_v45, %v1452_v49  ;;  %v1652_v19 = vpop.f32.mrf.mxu1  ;;  %v13705_v41 = vld [vmem:[#allocation72_spill] sm:$0xff] }
 0x28a   : > { %v896_v6 = vmul.f32 %v888_v23, %v13536_v2  ;;  %v897_v3 = vmul.f32 %v889_v60, %v13536_v2  ;;  %v10000_v2 = vpop.f32.mrf.mxu3  ;;  %2747 = vmatmul.f32.gmra.mxu3 %v9292_v55  ;;  %v1219_v63 = vadd.f32 %v9770_v34, %v1159_v4 }
 0x28b   : > { %v855_v44 = vsel %vm9969_vm15, %v8365_v51, %v851_v16  ;;  %v871_v51 = vmul.f32 %v9938_v1, %v870_v11  ;;  %2583 = vmatmul.f32.gmra.mxu0 %v9342_v30  ;;  %v13647_v16 = vld [vmem:[#allocation111_spill] sm:$0xff]  ;;  %v1163_v40 = vadd.f32 %v9782_v62, %v1070_v13 }
 0x28c   : > { %v9988_v31 = vadd.f32 %v896_v6, %v13538_v32  ;;  %v886_v54 = vmul.f32 %v855_v44, %v9487_v61  ;;  %v887_v23 = vmul.f32 %v855_v44, %v13646_v17  ;;  %2629 = vmatmul.f32.gmra.mxu1 %v9325_v15  ;;  %v1601_v6 = vadd.f32 %v1600_v21, %v1541_v50  ;;  %v13648_v61 = vld [vmem:[#allocation7_spill] sm:$0xff]  ;;  %v13650_v17 = vld [vmem:[#allocation88_spill] sm:$0xff]  ;;  %v1605_v50 = vpop.f32.mrf.mxu0 }
 0x28d   : > { %v8369_v18 = vpop.eup %8368  ;;  %v10013_v49 = vadd.f32 %v897_v3, %v13538_v32  ;;  %v875_v34 = vsel %vm9996_vm2, %v9938_v1, %v871_v51  ;;  %v10035_v51 = vpop.permute.xlu1 %987 }
 0x28e   : > { %v932_v20 = vadd.f32 1.0, %v8369_v18  ;;  %v912_v10 = vmul.f32 0.5, %v9988_v31  ;;  %v1151_v18 = vadd.f32 %v13647_v16, %v1046_v27  ;;  %v894_v45 = vmul.f32 %v886_v54, %v13648_v61  ;;  %v13651_v27 = vld [vmem:[#allocation9_spill] sm:$0xff] }
 0x28f   : > { %v895_v11 = vmul.f32 %v887_v23, %v13648_v61  ;;  %v891_v21 = vmul.f32 %v875_v34, %v13650_v17  ;;  %2706 = vmatmul.f32.gmra.mxu2 %v13609_v7  ;;  %v1606_v16 = vadd.f32 %v1605_v50, %v1545_v39  ;;  %v1653_v61 = vadd.f32 %v1652_v19, %v1601_v6  ;;  %v1723_v13 = vpop.f32.mrf.mxu2 }
 0x290   : > { %v940_v60 = vmul.f32 0.5, %v932_v20  ;;  %8370 = vtanh.f32 %v912_v10  ;;  %v13649_v20 = vld [vmem:[#allocation87_spill] sm:$0xff]  ;;  %v10024_v32 = vadd.f32 %v894_v45, %v13651_v27  ;;  %v13653_v45 = vld [vmem:[#allocation8_spill] sm:$0xff]  ;;  %v1428_v39 = vadd.f32 %v9826_v53, %v9967_v14 }
 0x291   : > { %v890_v44 = vmul.f32 %v875_v34, %v13649_v20  ;;  %8372 = vtanh.f32 %v917_v47  ;;  %v10027_v3 = vadd.f32 %v895_v11, %v13651_v27  ;;  %v1271_v47 = vadd.f32 %v9776_v43, %v1219_v63  ;;  %v13654_v20 = vld [vmem:[#allocation115_spill] sm:$0xff]  ;;  %v13655_v63 = vld [vmem:[#allocation113_spill] sm:$0xff] }
 0x292   : > { %v948_v4 = vmul.f32 %v940_v60, %v9931_v56  ;;  %v13652_v56 = vld [vmem:[#allocation5_spill] sm:$0xff]  ;;  %v913_v60 = vmul.f32 0.5, %v10013_v49  ;;  %v910_v10 = vmul.f32 0.5, %v10024_v32  ;;  %2751 = vmatmul.f32.gmra.mxu3 %v13609_v7  ;;  %v1724_v43 = vadd.f32 %v1723_v13, %v1653_v61 }
 0x293   : > { %v898_v54 = vmul.f32 %v890_v44, %v13652_v56  ;;  %v899_v23 = vmul.f32 %v891_v21, %v13652_v56  ;;  %v1342_v34 = vadd.f32 %v9846_v25, %v1271_v47  ;;  %v1209_v44 = vadd.f32 %v13654_v20, %v1151_v18  ;;  %2588 = vmatmul.f32.gmra.mxu0 %v13612_v5  ;;  %v1768_v18 = vpop.f32.mrf.mxu3  ;;  %v1658_v47 = vpop.f32.mrf.mxu1 }
 0x294   : > { %v10031_v1 = vand.u32 4294901760, %v948_v4  ;;  %8374 = vtanh.f32 %v910_v10  ;;  %v1054_v19 = vadd.f32 %v13655_v63, %v10035_v51  ;;  %v911_v17 = vmul.f32 0.5, %v10027_v3  ;;  %2635 = vmatmul.f32.gmra.mxu1 %v13605_v58 }
 0x295   : > { %v10041_v11 = vadd.f32 %v898_v54, %v13653_v45  ;;  %v10044_v62 = vadd.f32 %v899_v23, %v13653_v45  ;;  %v10060_v50 = vadd.f32 %v9866_v24, %v1342_v34  ;;  %v10063_v56 = vadd.f32 %v1768_v18, %v1724_v43 }
 0x296   : > { %3167 = vmatpush.msra.mxu3 %v10031_v1  ;;  %v8371_v6 = vpop.eup %8370  ;;  %2952 = vmatpush.msra.mxu0 %v10031_v1  ;;  %v1259_v54 = vadd.f32 %v9712_v22, %v1209_v44  ;;  %v1533_v23 = vadd.f32 %v9832_v12, %v1428_v39  ;;  %v1155_v10 = vadd.f32 %v9722_v42, %v1054_v19  ;;  %v13661_v19 = vld [vmem:[#allocation49_spill] sm:$0xff] }
 0x297   : > { %v914_v21 = vmul.f32 0.5, %v10041_v11  ;;  %v915_v25 = vmul.f32 0.5, %v10044_v62  ;;  %13656 = vst [vmem:[#allocation39_spill] sm:$0xff] %v10060_v50  ;;  %v8373_v53 = vpop.eup %8372  ;;  %v928_v27 = vadd.f32 1.0, %v8371_v6  ;;  %v1436_v61 = vadd.f32 %v9854_v29, %v10035_v51  ;;  %2710 = vmatmul.f32.gmra.mxu2 %v13616_v9 }
 0x298   : > { %13657 = vst [vmem:[#allocation58_spill] sm:$0xff] %v10063_v56  ;;  %v10071_v24 = vsub.f32 %v948_v4, %v10031_v1  ;;  %v1781_v13 = vadd.f32 %v10063_v56, %v10060_v50  ;;  %v1334_v22 = vadd.f32 %v9790_v52, %v1259_v54  ;;  %v1591_v12 = vadd.f32 %v9898_v48, %v1533_v23  ;;  %v13665_v54 = vld [vmem:[#allocation30_spill] sm:$0xff]  ;;  %v13702_v50 = vld [vmem:[#allocation16_spill] sm:$0xff] }
 0x299   : > { %8376 = vtanh.f32 %v914_v21  ;;  %v936_v45 = vmul.f32 0.5, %v928_v27  ;;  %v1214_v34 = vadd.f32 %v9742_v28, %v1155_v10  ;;  %v1537_v42 = vadd.f32 %v9860_v8, %v1436_v61  ;;  %v1727_v61 = vpop.f32.mrf.mxu2 }
 0x29a   : > { %8378 = vtanh.f32 %v915_v25  ;;  %3107 = vmatpush.msra.mxu2 %v10071_v24  ;;  %v10082_v29 = vand.u32 4294901760, %v10071_v24  ;;  %v8375_v4 = vpop.eup %8374  ;;  %v1659_v44 = vadd.f32 %v1658_v47, %v1606_v16  ;;  %1782 = vadd.xlane.f32.xlu1 %v1781_v13  ;;  %v1224_v43 = vadd.f32 %v9798_v26, %v1163_v40  ;;  %v13660_v40 = vld [vmem:[#allocation50_spill] sm:$0xff] }
 0x29b   : > { %8380 = vtanh.f32 %v913_v60  ;;  %v944_v20 = vmul.f32 %v936_v45, %v9988_v31  ;;  %v926_v52 = vadd.f32 1.0, %v8375_v4  ;;  %2755 = vmatmul.f32.gmra.mxu3 %v13616_v9  ;;  %v1641_v48 = vadd.f32 %v9913_v36, %v1591_v12 }
 0x29c   : > { %13658 = vst [vmem:[#allocation71_spill] sm:$0xff] %v10082_v29  ;;  %v1265_v8 = vadd.f32 %v9748_v46, %v1214_v34  ;;  %v1596_v28 = vadd.f32 %v9918_v37, %v1537_v42  ;;  %v933_v39 = vadd.f32 1.0, %v8373_v53  ;;  %8382 = vtanh.f32 %v911_v17  ;;  %2641 = vmatmul.f32.gmra.mxu1 %v13614_v57  ;;  %v13663_v53 = vld [vmem:[#allocation35_spill] sm:$0xff] }
 0x29d   : > { %v10091_v63 = vadd.f32 %v9810_v35, %v1334_v22  ;;  %v3015_v31 = vsub.f32 %v10071_v24, %v10082_v29  ;;  %v934_v16 = vmul.f32 0.5, %v926_v52  ;;  %v1716_v26 = vadd.f32 %v9926_v33, %v1641_v48  ;;  %v13662_v35 = vld [vmem:[#allocation47_spill] sm:$0xff] }
 0x29e   : > { %v1338_v36 = vadd.f32 %v13660_v40, %v1265_v8  ;;  %v1647_v46 = vadd.f32 %v13661_v19, %v1596_v28  ;;  %v10099_v37 = vand.u32 4294901760, %v944_v20  ;;  %v1277_v25 = vadd.f32 %v13662_v35, %v1224_v43  ;;  %v13668_v52 = vld [vmem:[#allocation67_spill] sm:$0xff]  ;;  %v1772_v28 = vpop.f32.mrf.mxu3 }
 0x29f   : > { %13659 = vst [vmem:[#allocation76_spill] sm:$0xff] %v10091_v63  ;;  %v8377_v60 = vpop.eup %8376  ;;  %v10101_v21 = vand.u32 4294901760, %v3015_v31  ;;  %v942_v18 = vmul.f32 %v934_v16, %v10024_v32  ;;  %v10106_v27 = vadd.f32 %v13663_v53, %v1716_v26  ;;  %v941_v42 = vmul.f32 0.5, %v933_v39  ;;  %v13671_v26 = vld [vmem:[#allocation26_spill] sm:$0xff] }
 0x2a0   : > { %v8379_v6 = vpop.eup %8378  ;;  %v930_v17 = vadd.f32 1.0, %v8377_v60  ;;  %v10109_v23 = vadd.f32 %v13665_v54, %v1338_v36  ;;  %v1720_v33 = vadd.f32 %v9978_v0, %v1647_v46  ;;  %v10122_v34 = vsub.f32 %v944_v20, %v10099_v37  ;;  %v13675_v53 = vld [vmem:[#allocation6_spill] sm:$0xff] }
 0x2a1   : > { %13664 = vst [vmem:[#allocation60_spill] sm:$0xff] %v10106_v27  ;;  %v8381_v47 = vpop.eup %8380  ;;  %3017 = vmatpush.msra.mxu1 %v10101_v21  ;;  %v10113_v45 = vand.u32 4294901760, %v942_v18  ;;  %v1775_v13 = vadd.f32 %v10106_v27, %v10091_v63  ;;  %v931_v0 = vadd.f32 1.0, %v8379_v6  ;;  %v1728_v4 = vadd.f32 %v1727_v61, %v1659_v44  ;;  %v13700_v27 = vld [vmem:[#allocation106_spill] sm:$0xff] }
 0x2a2   : > { %13666 = vst [vmem:[#allocation81_spill] sm:$0xff] %v10109_v23  ;;  %v938_v10 = vmul.f32 0.5, %v930_v17  ;;  %v10118_v32 = vadd.f32 %v10000_v2, %v1720_v33  ;;  %v8383_v22 = vpop.eup %8382  ;;  %v1346_v48 = vadd.f32 %v13668_v52, %v1277_v25  ;;  %v929_v31 = vadd.f32 1.0, %v8381_v47 }
 0x2a3   : > { %1776 = vadd.xlane.f32.xlu0 %v1775_v13  ;;  %v10130_v2 = vsub.f32 %v942_v18, %v10113_v45  ;;  %v10138_v20 = vand.u32 4294901760, %v10122_v34  ;;  %v939_v44 = vmul.f32 0.5, %v931_v0  ;;  %v927_v39 = vadd.f32 1.0, %v8383_v22  ;;  %v13679_v0 = vld [vmem:[#allocation97_spill] sm:$0xff] }
 0x2a4   : > { %13667 = vst [vmem:[#allocation80_spill] sm:$0xff] %v10118_v32  ;;  %v946_v12 = vmul.f32 %v938_v10, %v10041_v11  ;;  %v1778_v43 = vadd.f32 %v10118_v32, %v10109_v23  ;;  %v949_v60 = vmul.f32 %v941_v42, %v9956_v38  ;;  %v10141_v16 = vadd.f32 %v1772_v28, %v1728_v4  ;;  %v13683_v28 = vld [vmem:[#allocation98_spill] sm:$0xff]  ;;  %v13699_v23 = vld [vmem:[#allocation13_spill] sm:$0xff] }
 0x2a5   : > { %13669 = vst [vmem:[#allocation51_spill] sm:$0xff] %v10138_v20  ;;  %v10144_v40 = vadd.f32 %v13671_v26, %v1346_v48  ;;  %v10152_v19 = vand.u32 4294901760, %v10130_v2  ;;  %v937_v46 = vmul.f32 0.5, %v929_v31  ;;  %v3027_v6 = vsub.f32 %v10122_v34, %v10138_v20  ;;  %v13688_v26 = vld [vmem:[#allocation96_spill] sm:$0xff] }
 0x2a6   : > { %v10127_v8 = vand.u32 4294901760, %v946_v12  ;;  %1779 = vadd.xlane.f32.xlu2 %v1778_v43  ;;  %13670 = vst [vmem:[#allocation54_spill] sm:$0xff] %v10141_v16  ;;  %v947_v17 = vmul.f32 %v939_v44, %v10044_v62  ;;  %v935_v35 = vmul.f32 0.5, %v927_v39  ;;  %v10162_v25 = vand.u32 4294901760, %v949_v60  ;;  %v13676_v62 = vld [vmem:[#allocation89_spill] sm:$0xff]  ;;  %v13680_v43 = vld [vmem:[#allocation91_spill] sm:$0xff] }
 0x2a7   : > { %13672 = vst [vmem:[#allocation56_spill] sm:$0xff] %v10144_v40  ;;  %v1784_v18 = vadd.f32 %v10141_v16, %v10144_v40  ;;  %v3033_v33 = vsub.f32 %v10130_v2, %v10152_v19  ;;  %v945_v47 = vmul.f32 %v937_v46, %v10013_v49  ;;  %v10177_v10 = vand.u32 4294901760, %v3027_v6  ;;  %v13685_v44 = vld [vmem:[#allocation15_spill] sm:$0xff]  ;;  %v13686_v39 = vld [vmem:[#allocation93_spill] sm:$0xff] }
 0x2a8   : > { %2954 = vmatpush.msra.mxu0 %v10127_v8  ;;  %3169 = vmatpush.msra.mxu3 %v10127_v8  ;;  %v10135_v11 = vsub.f32 %v946_v12, %v10127_v8  ;;  %13674 = vst [vmem:[#allocation57_spill] sm:$0xff] %v10152_v19  ;;  %v10181_v13 = vand.u32 4294901760, %v947_v17  ;;  %v943_v22 = vmul.f32 %v935_v35, %v10027_v3  ;;  %v13677_v12 = vld [vmem:[#allocation10_spill] sm:$0xff]  ;;  %v13689_v46 = vld [vmem:[#allocation11_spill] sm:$0xff] }
 0x2a9   : > { %v10187_v49 = vsub.f32 %v949_v60, %v10162_v25  ;;  %v10191_v42 = vand.u32 4294901760, %v3033_v33  ;;  %v10193_v4 = vand.u32 4294901760, %v945_v47  ;;  %v13681_v3 = vld [vmem:[#allocation94_spill] sm:$0xff]  ;;  %v13693_v35 = vld [vmem:[#allocation19_spill] sm:$0xff]  ;;  %v13694_v33 = vld [vmem:[#allocation12_spill] sm:$0xff] }
 0x2aa   : > { %2956 = vmatpush.msra.mxu0 %v10099_v37  ;;  %3110 = vmatpush.msra.mxu2 %v10135_v11  ;;  %v10149_v36 = vand.u32 4294901760, %v10135_v11  ;;  %v10200_v52 = vsub.f32 %v947_v17, %v10181_v13  ;;  %v10202_v48 = vand.u32 4294901760, %v943_v22 }
 0x2ab   : > { %3171 = vmatpush.msra.mxu3 %v10099_v37  ;;  %v10179_v61 = vpop.f32.mrf.mxu0  ;;  %13678 = vst [vmem:[#allocation63_spill] sm:$0xff] %v10187_v49  ;;  %v10207_v31 = vand.u32 4294901760, %v10187_v49  ;;  %v10212_v60 = vsub.f32 %v945_v47, %v10193_v4  ;;  %v13695_v47 = vld [vmem:[#allocation103_spill] sm:$0xff] }
 0x2ac   : > { %13673 = vst [vmem:[#allocation61_spill] sm:$0xff] %v10149_v36  ;;  %2958 = vmatpush.msra.mxu0 %v10113_v45  ;;  %3113 = vmatpush.msra.mxu2 %v10122_v34  ;;  %v3021_v38 = vsub.f32 %v10135_v11, %v10149_v36  ;;  %v10219_v6 = vand.u32 4294901760, %v10200_v52  ;;  %v10222_v17 = vsub.f32 %v943_v22, %v10202_v48  ;;  %v13698_v22 = vld [vmem:[#allocation14_spill] sm:$0xff] }
 0x2ad   : > { %3173 = vmatpush.msra.mxu3 %v10113_v45  ;;  %13682 = vst [vmem:[#allocation64_spill] sm:$0xff] %v10200_v52  ;;  %v10235_v32 = vand.u32 4294901760, %v10212_v60 }
 0x2ae   : > { %2960 = vmatpush.msra.mxu0 %v13675_v53  ;;  %3116 = vmatpush.msra.mxu2 %v10130_v2  ;;  %v10169_v54 = vand.u32 4294901760, %v3021_v38  ;;  %13684 = vst [vmem:[#allocation65_spill] sm:$0xff] %v10207_v31  ;;  %v13690_v38 = vld [vmem:[#allocation95_spill] sm:$0xff]  ;;  %v3403_v63 = vsub.f32 %v10200_v52, %v10219_v6  ;;  %v10246_v56 = vand.u32 4294901760, %v10222_v17 }
 0x2af   : > { %1785 = vadd.xlane.f32.xlu2 %v1784_v18  ;;  %3175 = vmatpush.msra.mxu3 %v13675_v53  ;;  %13687 = vst [vmem:[#allocation85_spill] sm:$0xff] %v10212_v60  ;;  %v3397_v18 = vsub.f32 %v10187_v49, %v10207_v31 }
 0x2b0   : > { %2962 = vmatpush.msra.mxu0 %v13676_v62  ;;  %3023 = vmatpush.msra.mxu1 %v10169_v54  ;;  %13691 = vst [vmem:[#allocation86_spill] sm:$0xff] %v10219_v6 }
 0x2b1   : > { %3119 = vmatpush.msra.mxu2 %v13677_v12  ;;  %3177 = vmatpush.msra.mxu3 %v13676_v62  ;;  %13692 = vst [vmem:[#allocation111_spill] sm:$0xff] %v10222_v17 }
 0x2b2   : > { %2964 = vmatpush.msra.mxu0 %v13679_v0  ;;  %3029 = vmatpush.msra.mxu1 %v10177_v10  ;;  %13697 = vst [vmem:[#allocation87_spill] sm:$0xff] %v10235_v32 }
 0x2b3   : > { %3122 = vmatpush.msra.mxu2 %v13680_v43  ;;  %3179 = vmatpush.msra.mxu3 %v13679_v0  ;;  %13701 = vst [vmem:[#allocation88_spill] sm:$0xff] %v10246_v56 }
 0x2b4   : > { %2966 = vmatpush.msra.mxu0 %v13681_v3  ;;  %3035 = vmatpush.msra.mxu1 %v10191_v42 }
 0x2b5   : > { %3125 = vmatpush.msra.mxu2 %v13683_v28  ;;  %3181 = vmatpush.msra.mxu3 %v13681_v3  ;;  %v10230_v16 = vpop.f32.mrf.mxu0  ;;  %v10232_v40 = vpop.f32.mrf.mxu1 }
 0x2b6   : > { %2968 = vmatpush.msra.mxu0 %v13685_v44  ;;  %3041 = vmatpush.msra.mxu1 %v13686_v39  ;;  %13696 = vst [vmem:[#allocation7_spill] sm:$0xff] %v10230_v16  ;;  %v10262_v39 = vand.u32 4294901760, %v3403_v63  ;;  %v13749_v16 = vld [vmem:[#allocation37_spill] sm:$0xff] }
 0x2b7   : > { %3128 = vmatpush.msra.mxu2 %v13688_v26  ;;  %3183 = vmatpush.msra.mxu3 %v13685_v44  ;;  %v13706_v26 = vld [vmem:[#allocation28_spill] sm:$0xff] }
 0x2b8   : > { %2970 = vmatpush.msra.mxu0 %v13689_v46  ;;  %3047 = vmatpush.msra.mxu1 %v13690_v38  ;;  %v10254_v38 = vpop.f32.mrf.mxu3  ;;  %13708 = vst [vmem:[#allocation5_spill] sm:$0xff] %v10262_v39 }
 0x2b9   : > { %3131 = vmatpush.msra.mxu2 %v13693_v35  ;;  %3185 = vmatpush.msra.mxu3 %v13689_v46  ;;  %v10239_v35 = vpop.f32.mrf.mxu2 }
 0x2ba   : > { %2972 = vmatpush.msra.mxu0 %v13694_v33  ;;  %3053 = vmatpush.msra.mxu1 %v13695_v47  ;;  %v10250_v47 = vand.u32 4294901760, %v3397_v18  ;;  %v3415_v18 = vsub.f32 %v10222_v17, %v10246_v56 }
 0x2bb   : > { %3134 = vmatpush.msra.mxu2 %v13698_v22  ;;  %3187 = vmatpush.msra.mxu3 %v13694_v33  ;;  %v13704_v22 = vld [vmem:[#allocation73_spill] sm:$0xff] }
 0x2bc   : > { %2974 = vmatpush.msra.mxu0 %v13699_v23  ;;  %3059 = vmatpush.msra.mxu1 %v13700_v27  ;;  %13703 = vst [vmem:[#allocation9_spill] sm:$0xff] %v10250_v47  ;;  %v3409_v27 = vsub.f32 %v10212_v60, %v10235_v32  ;;  %v10276_v63 = vand.u32 4294901760, %v3415_v18  ;;  %v13719_v18 = vld [vmem:[#allocation66_spill] sm:$0xff] }
 0x2bd   : > { %3137 = vmatpush.msra.mxu2 %v13702_v50  ;;  %3189 = vmatpush.msra.mxu3 %v13699_v23  ;;  %v13707_v50 = vld [vmem:[#allocation17_spill] sm:$0xff] }
 0x2be   : > { %2980 = vmatmul.f32.vlgmr.msra.gmra.mxu0 %v13704_v22  ;;  %3193 = vmatmul.f32.vlgmr.msra.gmra.mxu3 %v13705_v41  ;;  %v10270_v41 = vand.u32 4294901760, %v3409_v27  ;;  %13712 = vst [vmem:[#allocation115_spill] sm:$0xff] %v10276_v63 }
 0x2bf   : > { %3222 = vmatpush.msrb.mxu0 %v10082_v29  ;;  %3399 = vmatpush.msrb.mxu3 %v10250_v47  ;;  %v13711_v47 = vld [vmem:[#allocation31_spill] sm:$0xff]  ;;  %v13734_v29 = vld [vmem:[#allocation105_spill] sm:$0xff] }
 0x2c0   : > { %3065 = vmatpush.msra.mxu1 %v13706_v26  ;;  %3140 = vmatpush.msra.mxu2 %v13707_v50  ;;  %13710 = vst [vmem:[#allocation8_spill] sm:$0xff] %v10270_v41  ;;  %v10278_v26 = vpop.f32.mrf.mxu0  ;;  %v10280_v50 = vpop.f32.mrf.mxu1 }
 0x2c1   : > { %3143 = vmatmul.f32.vlgmr.msra.gmra.mxu2 %v13709_v59  ;;  %3226 = vmatpush.msrb.mxu0 %v10149_v36  ;;  %13713 = vst [vmem:[#allocation113_spill] sm:$0xff] %v10278_v26  ;;  %v13715_v36 = vld [vmem:[#allocation34_spill] sm:$0xff]  ;;  %v10284_v27 = vpop.f32.mrf.mxu2  ;;  %v13743_v26 = vld [vmem:[#allocation55_spill] sm:$0xff] }
 0x2c2   : > { %3334 = vmatpush.msrb.mxu2 %v10162_v25  ;;  %3405 = vmatpush.msrb.mxu3 %v10262_v39  ;;  %13714 = vst [vmem:[#allocation50_spill] sm:$0xff] %v10280_v50  ;;  %v13721_v39 = vld [vmem:[#allocation90_spill] sm:$0xff] }
 0x2c3   : > { %3071 = vmatpush.msra.mxu1 %v13711_v47  ;;  %3230 = vmatpush.msrb.mxu0 %v10138_v20  ;;  %13716 = vst [vmem:[#allocation49_spill] sm:$0xff] %v10284_v27  ;;  %v13717_v47 = vld [vmem:[#allocation38_spill] sm:$0xff] }
 0x2c4   : > { %3336 = vmatpush.msrb.mxu2 %v10181_v13  ;;  %3411 = vmatpush.msrb.mxu3 %v10270_v41  ;;  %v13718_v20 = vld [vmem:[#allocation78_spill] sm:$0xff]  ;;  %v10292_v41 = vpop.f32.mrf.mxu3 }
 0x2c5   : > { %3077 = vmatpush.msra.mxu1 %v13715_v36  ;;  %3234 = vmatpush.msrb.mxu0 %v10152_v19  ;;  %13720 = vst [vmem:[#allocation47_spill] sm:$0xff] %v10292_v41  ;;  %v13722_v36 = vld [vmem:[#allocation20_spill] sm:$0xff]  ;;  %v13723_v19 = vld [vmem:[#allocation74_spill] sm:$0xff] }
 0x2c6   : > { %3338 = vmatpush.msrb.mxu2 %v10193_v4  ;;  %3417 = vmatpush.msrb.mxu3 %v10276_v63  ;;  %v13724_v63 = vld [vmem:[#allocation92_spill] sm:$0xff]  ;;  %v13726_v27 = vld [vmem:[#allocation42_spill] sm:$0xff] }
 0x2c7   : > { %3083 = vmatpush.msra.mxu1 %v13717_v47  ;;  %2988 = vmatmul.f32.gmra.mxu0 %v13718_v20  ;;  %v13725_v47 = vld [vmem:[#allocation101_spill] sm:$0xff]  ;;  %v13728_v41 = vld [vmem:[#allocation102_spill] sm:$0xff] }
 0x2c8   : > { %3085 = vmatmul.f32.vlgmr.msra.gmra.mxu1 %v13719_v18  ;;  %3199 = vmatmul.f32.gmra.mxu3 %v9325_v15  ;;  %v13727_v15 = vld [vmem:[#allocation100_spill] sm:$0xff] }
 0x2c9   : > { %3238 = vmatpush.msrb.mxu0 %v13721_v39  ;;  %3289 = vmatpush.msrb.mxu1 %v10031_v1  ;;  %v10308_v50 = vpop.f32.mrf.mxu1 }
 0x2ca   : > { %3340 = vmatpush.msrb.mxu2 %v10202_v48  ;;  %3423 = vmatpush.msrb.mxu3 %v13722_v36  ;;  %v10306_v39 = vpop.f32.mrf.mxu0  ;;  %13730 = vst [vmem:[#allocation30_spill] sm:$0xff] %v10308_v50  ;;  %v13731_v36 = vld [vmem:[#allocation32_spill] sm:$0xff]  ;;  %v13738_v50 = vld [vmem:[#allocation21_spill] sm:$0xff] }
 0x2cb   : > { %3148 = vmatmul.f32.gmra.mxu2 %v13723_v19  ;;  %3242 = vmatpush.msrb.mxu0 %v13724_v63  ;;  %13729 = vst [vmem:[#allocation35_spill] sm:$0xff] %v10306_v39  ;;  %v13732_v19 = vld [vmem:[#allocation99_spill] sm:$0xff]  ;;  %v10312_v63 = vpop.f32.mrf.mxu2 }
 0x2cc   : > { %3291 = vmatpush.msrb.mxu1 %v10127_v8  ;;  %3342 = vmatpush.msrb.mxu2 %v13725_v47  ;;  %13733 = vst [vmem:[#allocation67_spill] sm:$0xff] %v10312_v63  ;;  %v13741_v63 = vld [vmem:[#allocation18_spill] sm:$0xff] }
 0x2cd   : > { %3429 = vmatpush.msrb.mxu3 %v13726_v27  ;;  %3246 = vmatpush.msrb.mxu0 %v13727_v15  ;;  %v13735_v27 = vld [vmem:[#allocation43_spill] sm:$0xff]  ;;  %v13736_v15 = vld [vmem:[#allocation82_spill] sm:$0xff]  ;;  %v10320_v39 = vpop.f32.mrf.mxu3 }
 0x2ce   : > { %3293 = vmatpush.msrb.mxu1 %v10099_v37  ;;  %3344 = vmatpush.msrb.mxu2 %v13728_v41  ;;  %13737 = vst [vmem:[#allocation26_spill] sm:$0xff] %v10320_v39 }
 0x2cf   : > { %3435 = vmatpush.msrb.mxu3 %v13731_v36  ;;  %3250 = vmatpush.msrb.mxu0 %v13732_v19  ;;  %v13739_v19 = vld [vmem:[#allocation108_spill] sm:$0xff] }
 0x2d0   : > { %3295 = vmatpush.msrb.mxu1 %v10113_v45  ;;  %3346 = vmatpush.msrb.mxu2 %v13734_v29  ;;  %v13740_v36 = vld [vmem:[#allocation52_spill] sm:$0xff] }
 0x2d1   : > { %3441 = vmatpush.msrb.mxu3 %v13735_v27  ;;  %2996 = vmatmul.f32.gmra.mxu0 %v13736_v15  ;;  %v13742_v27 = vld [vmem:[#allocation25_spill] sm:$0xff] }
 0x2d2   : > { %3089 = vmatmul.f32.gmra.mxu1 %v9292_v55  ;;  %3205 = vmatmul.f32.gmra.mxu3 %v13605_v58  ;;  %v13744_v58 = vld [vmem:[#allocation23_spill] sm:$0xff] }
 0x2d3   : > { %3254 = vmatpush.msrb.mxu0 %v13738_v50  ;;  %3297 = vmatpush.msrb.mxu1 %v13675_v53  ;;  %v13745_v50 = vld [vmem:[#allocation27_spill] sm:$0xff] }
 0x2d4   : > { %3348 = vmatpush.msrb.mxu2 %v13739_v19  ;;  %3447 = vmatpush.msrb.mxu3 %v13740_v36  ;;  %v13747_v36 = vld [vmem:[#allocation59_spill] sm:$0xff] }
 0x2d5   : > { %3153 = vmatmul.f32.gmra.mxu2 %v9342_v30  ;;  %3258 = vmatpush.msrb.mxu0 %v13741_v63  ;;  %v10334_v39 = vpop.f32.mrf.mxu1  ;;  %v10336_v59 = vpop.f32.mrf.mxu0  ;;  %v13748_v30 = vld [vmem:[#allocation24_spill] sm:$0xff] }
 0x2d6   : > { %3299 = vmatpush.msrb.mxu1 %v13676_v62  ;;  %3350 = vmatpush.msrb.mxu2 %v13742_v27  ;;  %13746 = vst [vmem:[#allocation6_spill] sm:$0xff] %v10334_v39  ;;  %v10340_v63 = vpop.f32.mrf.mxu2 }
 0x2d7   : > { %3453 = vmatpush.msrb.mxu3 %v13743_v26  ;;  %3262 = vmatpush.msrb.mxu0 %v13744_v58  ;;  %v13750_v26 = vld [vmem:[#allocation62_spill] sm:$0xff]  ;;  %v13751_v58 = vld [vmem:[#allocation84_spill] sm:$0xff] }
 0x2d8   : > { %3301 = vmatpush.msrb.mxu1 %v13679_v0  ;;  %3352 = vmatpush.msrb.mxu2 %v13745_v50  ;;  %v10348_v39 = vpop.f32.mrf.mxu3 }
 0x2d9   : > { %3459 = vmatpush.msrb.mxu3 %v13747_v36  ;;  %3266 = vmatpush.msrb.mxu0 %v13748_v30  ;;  %v13752_v30 = vld [vmem:[#allocation41_spill] sm:$0xff] }
 0x2da   : > { %3303 = vmatpush.msrb.mxu1 %v13681_v3  ;;  %3354 = vmatpush.msrb.mxu2 %v13749_v16 }
 0x2db   : > { %3465 = vmatpush.msrb.mxu3 %v13750_v26  ;;  %3489 = vmatpush.msra.mxu0 %v10187_v49 }
 0x2dc   : > { %3004 = vmatmul.f32.gmra.mxu0 %v13751_v58  ;;  %3093 = vmatmul.f32.gmra.mxu1 %v13609_v7 }
 0x2dd   : > { %3671 = vmatpush.msra.mxu3 %v10162_v25  ;;  %3305 = vmatpush.msrb.mxu1 %v13685_v44 }
 0x2de   : > { %3211 = vmatmul.f32.gmra.mxu3 %v13614_v57  ;;  %3356 = vmatpush.msrb.mxu2 %v13752_v30 }
 0x2df   : > { %3492 = vmatpush.msra.mxu0 %v10200_v52  ;;  %3673 = vmatpush.msra.mxu3 %v10181_v13  ;;  %v10362_v36 = vpop.f32.mrf.mxu0  ;;  %v10364_v44 = vpop.f32.mrf.mxu1  ;;  %v13764_v52 = vld [vmem:[#allocation45_spill] sm:$0xff] }
 0x2e0   : > { %3604 = vmatpush.msra.mxu2 %v10207_v31  ;;  %3307 = vmatpush.msrb.mxu1 %v13689_v46  ;;  %v10368_v26 = vpop.f32.mrf.mxu2  ;;  %v13753_v46 = vld [vmem:[#allocation104_spill] sm:$0xff]  ;;  %v13761_v31 = vld [vmem:[#allocation29_spill] sm:$0xff] }
 0x2e1   : > { %3158 = vmatmul.f32.gmra.mxu2 %v13612_v5  ;;  %3495 = vmatpush.msra.mxu0 %v10212_v60 }
 0x2e2   : > { %3608 = vmatpush.msra.mxu2 %v10219_v6  ;;  %3675 = vmatpush.msra.mxu3 %v10193_v4 }
 0x2e3   : > { %3309 = vmatpush.msrb.mxu1 %v13694_v33  ;;  %3498 = vmatpush.msra.mxu0 %v10222_v17  ;;  %v10376_v6 = vpop.f32.mrf.mxu3  ;;  %v13754_v33 = vld [vmem:[#allocation107_spill] sm:$0xff] }
 0x2e4   : > { %3612 = vmatpush.msra.mxu2 %v10235_v32  ;;  %3677 = vmatpush.msra.mxu3 %v10202_v48  ;;  %v13757_v32 = vld [vmem:[#allocation112_spill] sm:$0xff] }
 0x2e5   : > { %3311 = vmatpush.msrb.mxu1 %v13699_v23  ;;  %3501 = vmatpush.msra.mxu0 %v13753_v46  ;;  %v13755_v23 = vld [vmem:[#allocation109_spill] sm:$0xff] }
 0x2e6   : > { %3616 = vmatpush.msra.mxu2 %v10246_v56  ;;  %3679 = vmatpush.msra.mxu3 %v13725_v47  ;;  %v13756_v56 = vld [vmem:[#allocation110_spill] sm:$0xff] }
 0x2e7   : > { %3549 = vmatpush.msra.mxu1 %v10162_v25  ;;  %3268 = vmatmul.f32.vlgmr.msrb.gmra.mxu0 %v13719_v18 }
 0x2e8   : > { %3097 = vmatmul.f32.gmra.mxu1 %v13616_v9  ;;  %3467 = vmatmul.f32.vlgmr.msrb.gmra.mxu3 %v13719_v18  ;;  %v10388_v46 = vpop.f32.mrf.mxu0 }
 0x2e9   : > { %3504 = vmatpush.msra.mxu0 %v13754_v33  ;;  %3551 = vmatpush.msra.mxu1 %v10181_v13  ;;  %v10392_v17 = vpop.f32.mrf.mxu1  ;;  %v13758_v33 = vld [vmem:[#allocation22_spill] sm:$0xff] }
 0x2ea   : > { %3620 = vmatpush.msra.mxu2 %v13755_v23  ;;  %3681 = vmatpush.msra.mxu3 %v13728_v41  ;;  %v10396_v60 = vpop.f32.mrf.mxu2  ;;  %v13759_v23 = vld [vmem:[#allocation114_spill] sm:$0xff] }
 0x2eb   : > { %3362 = vmatmul.f32.vlgmr.msrb.gmra.mxu2 %v13704_v22  ;;  %3507 = vmatpush.msra.mxu0 %v13756_v56  ;;  %v13760_v56 = vld [vmem:[#allocation33_spill] sm:$0xff]  ;;  %v13765_v22 = vld [vmem:[#allocation44_spill] sm:$0xff] }
 0x2ec   : > { %3553 = vmatpush.msra.mxu1 %v10193_v4  ;;  %3624 = vmatpush.msra.mxu2 %v13757_v32 }
 0x2ed   : > { %3683 = vmatpush.msra.mxu3 %v13734_v29  ;;  %3510 = vmatpush.msra.mxu0 %v13758_v33  ;;  %v10404_v32 = vpop.f32.mrf.mxu3  ;;  %v13762_v33 = vld [vmem:[#allocation36_spill] sm:$0xff] }
 0x2ee   : > { %3555 = vmatpush.msra.mxu1 %v10202_v48  ;;  %3628 = vmatpush.msra.mxu2 %v13759_v23 }
 0x2ef   : > { %3685 = vmatpush.msra.mxu3 %v13739_v19  ;;  %3513 = vmatpush.msra.mxu0 %v13760_v56  ;;  %v13763_v56 = vld [vmem:[#allocation40_spill] sm:$0xff] }
 0x2f0   : > { %3557 = vmatpush.msra.mxu1 %v13725_v47  ;;  %3632 = vmatpush.msra.mxu2 %v13761_v31  ;;  %v10412_v23 = vpop.f32.mrf.mxu0 }
 0x2f1   : > { %3687 = vmatpush.msra.mxu3 %v13742_v27  ;;  %3272 = vmatmul.f32.gmra.mxu0 %v9292_v55  ;;  %v10416_v31 = vpop.f32.mrf.mxu1 }
 0x2f2   : > { %3313 = vmatmul.f32.vlgmr.msrb.gmra.mxu1 %v13719_v18  ;;  %3471 = vmatmul.f32.gmra.mxu3 %v9292_v55  ;;  %v10420_v49 = vpop.f32.mrf.mxu2 }
 0x2f3   : > { %3516 = vmatpush.msra.mxu0 %v13762_v33  ;;  %3559 = vmatpush.msra.mxu1 %v13728_v41  ;;  %v13766_v33 = vld [vmem:[#allocation46_spill] sm:$0xff] }
 0x2f4   : > { %3636 = vmatpush.msra.mxu2 %v13763_v56  ;;  %3689 = vmatpush.msra.mxu3 %v13745_v50  ;;  %v13767_v56 = vld [vmem:[#allocation48_spill] sm:$0xff] }
 0x2f5   : > { %3370 = vmatmul.f32.gmra.mxu2 %v13718_v20  ;;  %3519 = vmatpush.msra.mxu0 %v13764_v52  ;;  %v10428_v57 = vpop.f32.mrf.mxu3  ;;  %v13768_v52 = vld [vmem:[#allocation53_spill] sm:$0xff] }
 0x2f6   : > { %3561 = vmatpush.msra.mxu1 %v13734_v29  ;;  %3640 = vmatpush.msra.mxu2 %v13765_v22 }
 0x2f7   : > { %3691 = vmatpush.msra.mxu3 %v13749_v16  ;;  %3522 = vmatpush.msra.mxu0 %v13766_v33 }
 0x2f8   : > { %3563 = vmatpush.msra.mxu1 %v13739_v19  ;;  %3644 = vmatpush.msra.mxu2 %v13767_v56  ;;  %v2574_v22 = vpop.f32.mrf.mxu0 }
 0x2f9   : > { %3693 = vmatpush.msra.mxu3 %v13752_v30  ;;  %3912 = vmatpush.msrb.mxu0 %v10031_v1  ;;  %v10438_v33 = vpop.f32.mrf.mxu1 }
 0x2fa   : > { %3565 = vmatpush.msra.mxu1 %v13742_v27  ;;  %3648 = vmatpush.msra.mxu2 %v13768_v52  ;;  %v10442_v56 = vpop.f32.mrf.mxu2  ;;  %v2412_v27 = vadd.f32 %v10368_v26, %v9967_v14  ;;  %v2030_v52 = vadd.f32 %v10179_v61, %v9967_v14 }
 0x2fb   : > { %4127 = vmatpush.msrb.mxu3 %v10031_v1  ;;  %3276 = vmatmul.f32.gmra.mxu0 %v13609_v7 }
 0x2fc   : > { %3317 = vmatmul.f32.gmra.mxu1 %v9292_v55  ;;  %3475 = vmatmul.f32.gmra.mxu3 %v13609_v7  ;;  %v2517_v26 = vadd.f32 %v10376_v6, %v2412_v27 }
 0x2fd   : > { %3914 = vmatpush.msrb.mxu0 %v10127_v8  ;;  %4071 = vmatpush.msrb.mxu2 %v10071_v24  ;;  %v10454_v24 = vpop.f32.mrf.mxu3 }
 0x2fe   : > { %4129 = vmatpush.msrb.mxu3 %v10127_v8  ;;  %3567 = vmatpush.msra.mxu1 %v13745_v50  ;;  %v2575_v61 = vadd.f32 %v2574_v22, %v2517_v26  ;;  %v13772_v26 = vld [vmem:[#allocation93_spill] sm:$0xff] }
 0x2ff   : > { %3378 = vmatmul.f32.gmra.mxu2 %v13736_v15  ;;  %3916 = vmatpush.msrb.mxu0 %v10099_v37 }
 0x300   : > { %4074 = vmatpush.msrb.mxu2 %v10135_v11  ;;  %4131 = vmatpush.msrb.mxu3 %v10099_v37  ;;  %v2135_v11 = vadd.f32 %v10232_v40, %v2030_v52  ;;  %v13771_v52 = vld [vmem:[#allocation70_spill] sm:$0xff] }
 0x301   : > { %3569 = vmatpush.msra.mxu1 %v13749_v16  ;;  %3918 = vmatpush.msrb.mxu0 %v10113_v45  ;;  %v2579_v16 = vpop.f32.mrf.mxu0  ;;  %v2624_v50 = vpop.f32.mrf.mxu1 }
 0x302   : > { %4077 = vmatpush.msrb.mxu2 %v10122_v34  ;;  %4133 = vmatpush.msrb.mxu3 %v10113_v45  ;;  %v2699_v34 = vpop.f32.mrf.mxu2  ;;  %v2625_v6 = vadd.f32 %v2624_v50, %v2575_v61 }
 0x303   : > { %3571 = vmatpush.msra.mxu1 %v13752_v30  ;;  %3920 = vmatpush.msrb.mxu0 %v13675_v53  ;;  %v13769_v30 = vld [vmem:[#allocation7_spill] sm:$0xff] }
 0x304   : > { %4080 = vmatpush.msrb.mxu2 %v10130_v2  ;;  %4135 = vmatpush.msrb.mxu3 %v13675_v53  ;;  %v2700_v40 = vadd.f32 %v2699_v34, %v2625_v6  ;;  %v13776_v34 = vld [vmem:[#allocation71_spill] sm:$0xff] }
 0x305   : > { %3993 = vmatpush.msrb.mxu1 %v10101_v21  ;;  %3280 = vmatmul.f32.gmra.mxu0 %v13616_v9  ;;  %v2193_v21 = vadd.f32 %v10239_v35, %v2135_v11  ;;  %v2744_v2 = vpop.f32.mrf.mxu3  ;;  %v13774_v11 = vld [vmem:[#allocation113_spill] sm:$0xff] }
 0x306   : > { %3321 = vmatmul.f32.gmra.mxu1 %v13609_v7  ;;  %3479 = vmatmul.f32.gmra.mxu3 %v13616_v9  ;;  %v2046_v61 = vadd.f32 %v13774_v11, %v13771_v52 }
 0x307   : > { %3922 = vmatpush.msrb.mxu0 %v13676_v62  ;;  %3999 = vmatpush.msrb.mxu1 %v10169_v54  ;;  %v2243_v54 = vadd.f32 %v10254_v38, %v2193_v21  ;;  %v2428_v38 = vadd.f32 %v10420_v49, %v13771_v52  ;;  %v13775_v49 = vld [vmem:[#allocation95_spill] sm:$0xff]  ;;  %v13777_v21 = vld [vmem:[#allocation50_spill] sm:$0xff] }
 0x308   : > { %4083 = vmatpush.msrb.mxu2 %v13677_v12  ;;  %4137 = vmatpush.msrb.mxu3 %v13676_v62  ;;  %v2420_v12 = vadd.f32 %v10396_v60, %v10035_v51  ;;  %v13773_v60 = vld [vmem:[#allocation96_spill] sm:$0xff] }
 0x309   : > { %3386 = vmatmul.f32.gmra.mxu2 %v13751_v58  ;;  %3924 = vmatpush.msrb.mxu0 %v13679_v0  ;;  %v2630_v35 = vpop.f32.mrf.mxu1  ;;  %v2318_v27 = vadd.f32 %v10336_v59, %v2243_v54  ;;  %v13779_v54 = vld [vmem:[#allocation35_spill] sm:$0xff] }
 0x30a   : > { %4005 = vmatpush.msrb.mxu1 %v10177_v10  ;;  %4086 = vmatpush.msrb.mxu2 %v13680_v43  ;;  %v2038_v10 = vadd.f32 %v13769_v30, %v10035_v51  ;;  %v13770_v43 = vld [vmem:[#allocation69_spill] sm:$0xff]  ;;  %v2703_v22 = vpop.f32.mrf.mxu2  ;;  %v2521_v59 = vadd.f32 %v10404_v32, %v2420_v12  ;;  %v13782_v32 = vld [vmem:[#allocation103_spill] sm:$0xff] }
 0x30b   : > { %4139 = vmatpush.msrb.mxu3 %v13679_v0  ;;  %3926 = vmatpush.msrb.mxu0 %v13681_v3  ;;  %v10502_v50 = vadd.f32 %v10364_v44, %v2318_v27  ;;  %v2525_v44 = vadd.f32 %v10428_v57, %v2428_v38  ;;  %v13783_v12 = vld [vmem:[#allocation61_spill] sm:$0xff]  ;;  %v13788_v38 = vld [vmem:[#allocation6_spill] sm:$0xff] }
 0x30c   : > { %4011 = vmatpush.msrb.mxu1 %v10191_v42  ;;  %4089 = vmatpush.msrb.mxu2 %v13683_v28  ;;  %v10495_v42 = vadd.f32 %v2744_v2, %v2700_v40  ;;  %v2584_v28 = vpop.f32.mrf.mxu0  ;;  %v2139_v2 = vadd.f32 %v13777_v21, %v2038_v10  ;;  %v13778_v40 = vld [vmem:[#allocation68_spill] sm:$0xff]  ;;  %v2580_v27 = vadd.f32 %v2579_v16, %v2521_v59  ;;  %v13784_v10 = vld [vmem:[#allocation30_spill] sm:$0xff] }
 0x30d   : > { %4141 = vmatpush.msrb.mxu3 %v13681_v3  ;;  %3525 = vmatmul.f32.vlgmr.msra.gmra.mxu0 %v13770_v43  ;;  %v2748_v6 = vpop.f32.mrf.mxu3  ;;  %v2054_v30 = vadd.f32 %v13779_v54, %v13778_v40  ;;  %v13786_v21 = vld [vmem:[#allocation106_spill] sm:$0xff]  ;;  %v13787_v54 = vld [vmem:[#allocation51_spill] sm:$0xff] }
 0x30e   : > { %4017 = vmatpush.msrb.mxu1 %v13772_v26  ;;  %4092 = vmatpush.msrb.mxu2 %v13773_v60  ;;  %v13780_v26 = vld [vmem:[#allocation9_spill] sm:$0xff]  ;;  %v10512_v60 = vpop.permute.xlu1 %1884  ;;  %v2759_v11 = vadd.f32 %v10495_v42, %v10502_v50  ;;  %v2631_v57 = vadd.f32 %v2630_v35, %v2580_v27  ;;  %v13793_v35 = vld [vmem:[#allocation115_spill] sm:$0xff] }
 0x30f   : > { %3325 = vmatmul.f32.gmra.mxu1 %v13616_v9  ;;  %3695 = vmatmul.f32.vlgmr.msra.gmra.mxu3 %v13719_v18  ;;  %13781 = vst [vmem:[#allocation89_spill] sm:$0xff] %v10512_v60  ;;  %v2147_v59 = vadd.f32 %v13788_v38, %v2054_v30  ;;  %v13794_v30 = vld [vmem:[#allocation74_spill] sm:$0xff] }
 0x310   : > { %4023 = vmatpush.msrb.mxu1 %v13775_v49  ;;  %4190 = vmatpush.msra.mxu0 %v13776_v34  ;;  %v2143_v49 = vadd.f32 %v13784_v10, %v2046_v61  ;;  %v13785_v34 = vld [vmem:[#allocation5_spill] sm:$0xff] }
 0x311   : > { %4375 = vmatpush.msra.mxu3 %v13780_v26  ;;  %3650 = vmatmul.f32.vlgmr.msra.gmra.mxu2 %v13719_v18  ;;  %v2585_v26 = vadd.f32 %v2584_v28, %v2525_v44  ;;  %v2636_v16 = vpop.f32.mrf.mxu1  ;;  %v13790_v10 = vld [vmem:[#allocation49_spill] sm:$0xff]  ;;  %v2704_v44 = vadd.f32 %v2703_v22, %v2631_v57  ;;  %v13799_v22 = vld [vmem:[#allocation20_spill] sm:$0xff] }
 0x312   : > { %4029 = vmatpush.msrb.mxu1 %v13782_v32  ;;  %4194 = vmatpush.msra.mxu0 %v13783_v12  ;;  %v2436_v32 = vadd.f32 %v10442_v56, %v13778_v40  ;;  %v13789_v12 = vld [vmem:[#allocation8_spill] sm:$0xff]  ;;  %v2707_v61 = vpop.f32.mrf.mxu2  ;;  %v2198_v60 = vadd.f32 %v13790_v10, %v2139_v2  ;;  %v13798_v10 = vld [vmem:[#allocation26_spill] sm:$0xff] }
 0x313   : > { %4294 = vmatpush.msra.mxu2 %v10162_v25  ;;  %4381 = vmatpush.msra.mxu3 %v13785_v34  ;;  %v13791_v34 = vld [vmem:[#allocation57_spill] sm:$0xff]  ;;  %v13795_v56 = vld [vmem:[#allocation72_spill] sm:$0xff] }
 0x314   : > { %4035 = vmatpush.msrb.mxu1 %v13786_v21  ;;  %4198 = vmatpush.msra.mxu0 %v13787_v54  ;;  %v2637_v21 = vadd.f32 %v2636_v16, %v2585_v26  ;;  %v13792_v54 = vld [vmem:[#allocation67_spill] sm:$0xff]  ;;  %v2589_v27 = vpop.f32.mrf.mxu0  ;;  %v2529_v2 = vadd.f32 %v10454_v24, %v2436_v32 }
 0x315   : > { %4296 = vmatpush.msra.mxu2 %v10181_v13  ;;  %4387 = vmatpush.msra.mxu3 %v13789_v12  ;;  %v2203_v28 = vadd.f32 %v13792_v54, %v2143_v49  ;;  %v2752_v38 = vpop.f32.mrf.mxu3  ;;  %v2208_v12 = vadd.f32 %v10340_v63, %v2147_v59  ;;  %v13797_v49 = vld [vmem:[#allocation47_spill] sm:$0xff]  ;;  %v13800_v59 = vld [vmem:[#allocation92_spill] sm:$0xff] }
 0x316   : > { %4202 = vmatpush.msra.mxu0 %v13791_v34  ;;  %2760 = vadd.xlane.f32.xlu1 %v2759_v11  ;;  %v13796_v11 = vld [vmem:[#allocation90_spill] sm:$0xff]  ;;  %v2249_v26 = vadd.f32 %v13797_v49, %v2198_v60  ;;  %v2708_v16 = vadd.f32 %v2707_v61, %v2637_v21  ;;  %v1783_v63 = vpop.xlane.xlu1 %1782  ;;  %v2590_v57 = vadd.f32 %v2589_v27, %v2529_v2  ;;  %v13803_v2 = vld [vmem:[#allocation100_spill] sm:$0xff]  ;;  %v13807_v49 = vld [vmem:[#allocation39_spill] sm:$0xff] }
 0x317   : > { %4298 = vmatpush.msra.mxu2 %v10193_v4  ;;  %4393 = vmatpush.msra.mxu3 %v13793_v35  ;;  %v2255_v34 = vadd.f32 %v13798_v10, %v2203_v28  ;;  %v10549_v60 = vadd.f32 %v2748_v6, %v2704_v44  ;;  %v2261_v32 = vadd.f32 %v10348_v39, %v2208_v12  ;;  %v13801_v21 = vld [vmem:[#allocation42_spill] sm:$0xff]  ;;  %v13810_v10 = vld [vmem:[#allocation75_spill] sm:$0xff] }
 0x318   : > { %3530 = vmatmul.f32.gmra.mxu0 %v13794_v30  ;;  %3575 = vmatmul.f32.vlgmr.msra.gmra.mxu1 %v13795_v56  ;;  %v2322_v24 = vadd.f32 %v10362_v36, %v2249_v26  ;;  %v13802_v36 = vld [vmem:[#allocation4_spill] sm:$0xff]  ;;  %v13808_v26 = vld [vmem:[#allocation58_spill] sm:$0xff] }
 0x319   : > { %3699 = vmatmul.f32.gmra.mxu3 %v9292_v55  ;;  %4206 = vmatpush.msra.mxu0 %v13796_v11  ;;  %v2326_v61 = vadd.f32 %v10388_v46, %v2255_v34  ;;  %v1789_v27 = vmul.f32 %v1783_v63, %v13802_v36  ;;  %v2330_v39 = vadd.f32 %v10412_v23, %v2261_v32  ;;  %v13804_v46 = vld [vmem:[#allocation32_spill] sm:$0xff]  ;;  %v13806_v23 = vld [vmem:[#allocation43_spill] sm:$0xff]  ;;  %v13818_v32 = vld [vmem:[#allocation86_spill] sm:$0xff] }
 0x31a   : > { %4249 = vmatpush.msra.mxu1 %v10031_v1  ;;  %4300 = vmatpush.msra.mxu2 %v10202_v48  ;;  %v2642_v1 = vpop.f32.mrf.mxu1  ;;  %v2711_v28 = vpop.f32.mrf.mxu2  ;;  %v10556_v35 = vadd.f32 %v10392_v17, %v2322_v24  ;;  %v13805_v17 = vld [vmem:[#allocation99_spill] sm:$0xff]  ;;  %v13813_v24 = vld [vmem:[#allocation73_spill] sm:$0xff] }
 0x31b   : > { %4399 = vmatpush.msra.mxu3 %v13799_v22  ;;  %3654 = vmatmul.f32.gmra.mxu2 %v9292_v55  ;;  %v2643_v54 = vadd.f32 %v2642_v1, %v2590_v57  ;;  %v10567_v44 = vadd.f32 %v10416_v31, %v2326_v61  ;;  %v10581_v31 = vsub.f32 %v13807_v49, %v1789_v27  ;;  %v13817_v1 = vld [vmem:[#allocation85_spill] sm:$0xff]  ;;  %v13819_v61 = vld [vmem:[#allocation111_spill] sm:$0xff] }
 0x31c   : > { %4210 = vmatpush.msra.mxu0 %v13800_v59  ;;  %4251 = vmatpush.msra.mxu1 %v10127_v8  ;;  %v10561_v8 = vadd.f32 %v2752_v38, %v2708_v16  ;;  %v2762_v12 = vadd.f32 %v10549_v60, %v10556_v35  ;;  %v10574_v38 = vadd.f32 %v10438_v33, %v2330_v39  ;;  %v13814_v59 = vld [vmem:[#allocation63_spill] sm:$0xff]  ;;  %v13825_v39 = vld [vmem:[#allocation110_spill] sm:$0xff] }
 0x31d   : > { %4302 = vmatpush.msra.mxu2 %v13725_v47  ;;  %4405 = vmatpush.msra.mxu3 %v13801_v21  ;;  %v2712_v6 = vadd.f32 %v2711_v28, %v2643_v54  ;;  %v10584_v16 = vsub.f32 %v13808_v26, %v1789_v27  ;;  %v1803_v22 = vmul.f32 %v10581_v31, %v10581_v31  ;;  %v13820_v21 = vld [vmem:[#allocation87_spill] sm:$0xff]  ;;  %v13821_v54 = vld [vmem:[#allocation104_spill] sm:$0xff] }
 0x31e   : > { %4214 = vmatpush.msra.mxu0 %v13803_v2  ;;  %4253 = vmatpush.msra.mxu1 %v10099_v37  ;;  %v2756_v37 = vpop.f32.mrf.mxu3  ;;  %v2765_v33 = vadd.f32 %v10561_v8, %v10567_v44  ;;  %v13822_v28 = vld [vmem:[#allocation88_spill] sm:$0xff]  ;;  %v13823_v27 = vld [vmem:[#allocation107_spill] sm:$0xff]  ;;  %v13824_v2 = vld [vmem:[#allocation109_spill] sm:$0xff] }
 0x31f   : > { %4304 = vmatpush.msra.mxu2 %v13728_v41  ;;  %4411 = vmatpush.msra.mxu3 %v13804_v46  ;;  %v10578_v11 = vadd.f32 %v2756_v37, %v2712_v6  ;;  %v1804_v63 = vmul.f32 %v10584_v16, %v10584_v16  ;;  %v13827_v46 = vld [vmem:[#allocation22_spill] sm:$0xff]  ;;  %v13834_v26 = vld [vmem:[#allocation60_spill] sm:$0xff] }
 0x320   : > { %4218 = vmatpush.msra.mxu0 %v13805_v17  ;;  %4255 = vmatpush.msra.mxu1 %v10113_v45  ;;  %v13809_v45 = vld [vmem:[#allocation77_spill] sm:$0xff]  ;;  %v13828_v6 = vld [vmem:[#allocation114_spill] sm:$0xff] }
 0x321   : > { %4306 = vmatpush.msra.mxu2 %v13734_v29  ;;  %4417 = vmatpush.msra.mxu3 %v13806_v23  ;;  %v2768_v34 = vadd.f32 %v10578_v11, %v10574_v38  ;;  %v1813_v57 = vadd.f32 %v1804_v63, %v1803_v22  ;;  %v13832_v23 = vld [vmem:[#allocation76_spill] sm:$0xff]  ;;  %v13836_v22 = vld [vmem:[#allocation81_spill] sm:$0xff] }
 0x322   : > { %3535 = vmatmul.f32.gmra.mxu0 %v13809_v45  ;;  %3581 = vmatmul.f32.gmra.mxu1 %v13810_v10 }
 0x323   : > { %3703 = vmatmul.f32.gmra.mxu3 %v13609_v7  ;;  %4257 = vmatpush.msra.mxu1 %v13675_v53  ;;  %v13811_v53 = vld [vmem:[#allocation79_spill] sm:$0xff] }
 0x324   : > { %4308 = vmatpush.msra.mxu2 %v13739_v19  ;;  %2763 = vadd.xlane.f32.xlu0 %v2762_v12 }
 0x325   : > { %3658 = vmatmul.f32.gmra.mxu2 %v13609_v7  ;;  %4259 = vmatpush.msra.mxu1 %v13676_v62  ;;  %v13812_v62 = vld [vmem:[#allocation83_spill] sm:$0xff] }
 0x326   : > { %2766 = vadd.xlane.f32.xlu2 %v2765_v33  ;;  %2769 = vadd.xlane.f32.xlu1 %v2768_v34 }
 0x327   : > { %4261 = vmatpush.msra.mxu1 %v13679_v0  ;;  %v13815_v0 = vld [vmem:[#allocation64_spill] sm:$0xff] }
 0x329   : > { %4263 = vmatpush.msra.mxu1 %v13681_v3  ;;  %v13816_v3 = vld [vmem:[#allocation65_spill] sm:$0xff] }
 0x32a   : > { %3540 = vmatmul.f32.gmra.mxu0 %v13612_v5  ;;  %3587 = vmatmul.f32.gmra.mxu1 %v13811_v53 }
 0x32b   : > { %3707 = vmatmul.f32.gmra.mxu3 %v13616_v9 }
 0x32c   : > { %1814 = vadd.xlane.f32.xlu0 %v1813_v57  ;;  %v13838_v57 = vld [vmem:[#allocation80_spill] sm:$0xff] }
 0x32d   : > { %3662 = vmatmul.f32.gmra.mxu2 %v13616_v9 }
 0x332   : > { %3593 = vmatmul.f32.gmra.mxu1 %v13812_v62  ;;  %3932 = vmatmul.f32.vlgmr.msrb.gmra.mxu0 %v13813_v24 }
 0x333   : > { %4145 = vmatmul.f32.vlgmr.msrb.gmra.mxu3 %v13795_v56  ;;  %4453 = vmatpush.msrb.mxu0 %v13814_v59 }
 0x334   : > { %4631 = vmatpush.msrb.mxu3 %v10162_v25 }
 0x335   : > { %4095 = vmatmul.f32.vlgmr.msrb.gmra.mxu2 %v13770_v43  ;;  %4456 = vmatpush.msrb.mxu0 %v13815_v0 }
 0x336   : > { %4572 = vmatpush.msrb.mxu2 %v13816_v3  ;;  %4633 = vmatpush.msrb.mxu3 %v10181_v13 }
 0x337   : > { %4459 = vmatpush.msrb.mxu0 %v13817_v1 }
 0x338   : > { %4576 = vmatpush.msrb.mxu2 %v13818_v32  ;;  %4635 = vmatpush.msrb.mxu3 %v10193_v4 }
 0x339   : > { %4462 = vmatpush.msrb.mxu0 %v13819_v61  ;;  %v13840_v61 = vld [vmem:[#allocation56_spill] sm:$0xff] }
 0x33a   : > { %4580 = vmatpush.msrb.mxu2 %v13820_v21  ;;  %4637 = vmatpush.msrb.mxu3 %v10202_v48 }
 0x33b   : > { %3940 = vmatmul.f32.gmra.mxu0 %v13718_v20  ;;  %4037 = vmatmul.f32.vlgmr.msrb.gmra.mxu1 %v13719_v18  ;;  %v10678_v37 = vpop.f32.mrf.mxu0 }
 0x33c   : > { %4465 = vmatpush.msrb.mxu0 %v13821_v54  ;;  %4509 = vmatpush.msrb.mxu1 %v10162_v25  ;;  %v13826_v25 = vld [vmem:[#allocation112_spill] sm:$0xff]  ;;  %v13841_v54 = vld [vmem:[#allocation54_spill] sm:$0xff] }
 0x33d   : > { %4584 = vmatpush.msrb.mxu2 %v13822_v28  ;;  %4639 = vmatpush.msrb.mxu3 %v13725_v47 }
 0x33e   : > { %4100 = vmatmul.f32.gmra.mxu2 %v13794_v30  ;;  %4468 = vmatpush.msrb.mxu0 %v13823_v27 }
 0x33f   : > { %4511 = vmatpush.msrb.mxu1 %v10181_v13  ;;  %4588 = vmatpush.msrb.mxu2 %v13824_v2  ;;  %v13829_v13 = vld [vmem:[#allocation29_spill] sm:$0xff] }
 0x340   : > { %4641 = vmatpush.msrb.mxu3 %v13728_v41  ;;  %4471 = vmatpush.msrb.mxu0 %v13825_v39 }
 0x341   : > { %4151 = vmatmul.f32.gmra.mxu3 %v13810_v10  ;;  %4513 = vmatpush.msrb.mxu1 %v10193_v4  ;;  %v8484_v4 = vld [vmem:[%s12955_s1 + $0x10] sm:$0xff]  ;;  %v10720_v39 = vpop.f32.mrf.mxu3 }
 0x342   : > { %4592 = vmatpush.msrb.mxu2 %v13826_v25  ;;  %4643 = vmatpush.msrb.mxu3 %v13734_v29 }
 0x343   : > { %4474 = vmatpush.msrb.mxu0 %v13827_v46  ;;  %4515 = vmatpush.msrb.mxu1 %v10202_v48  ;;  %v10654_v48 = vld [vmem:[%s12955_s1 + $0x8] sm:$0xff] }
 0x344   : > { %4596 = vmatpush.msrb.mxu2 %v13828_v6  ;;  %4645 = vmatpush.msrb.mxu3 %v13739_v19  ;;  %v10707_v32 = vpop.f32.mrf.mxu2  ;;  %v10717_v2 = vpop.f32.mrf.mxu0 }
 0x345   : > { %3948 = vmatmul.f32.gmra.mxu0 %v13736_v15  ;;  %4041 = vmatmul.f32.gmra.mxu1 %v9292_v55  ;;  %v10688_v34 = vpop.f32.mrf.mxu1 }
 0x346   : > { %4517 = vmatpush.msrb.mxu1 %v13725_v47  ;;  %4600 = vmatpush.msrb.mxu2 %v13829_v13  ;;  %v10666_v47 = vpop.permute.xlu0 %1888 }
 0x347   : > { %1908 = vperm.xlu2 %8281, %v8484_v4   ;;  %4105 = vmatmul.f32.gmra.mxu2 %v13809_v45  ;;  %13831 = vst [vmem:[#allocation97_spill] sm:$0xff] %v10666_v47 }
 0x348   : > { %4519 = vmatpush.msrb.mxu1 %v13728_v41  ;;  %1880 = vperm.xlu1 %8280, %v10654_v48   ;;  %v10664_v41 = vpop.permute.xlu2 %1912 }
 0x349   : > { %4157 = vmatmul.f32.gmra.mxu3 %v13811_v53  ;;  %13830 = vst [vmem:[#allocation10_spill] sm:$0xff] %v10664_v41 }
 0x34a   : > { %4521 = vmatpush.msrb.mxu1 %v13734_v29 }
 0x34c   : > { %4523 = vmatpush.msrb.mxu1 %v13739_v19 }
 0x34d   : > { %3956 = vmatmul.f32.gmra.mxu0 %v13751_v58  ;;  %4045 = vmatmul.f32.gmra.mxu1 %v13609_v7 }
 0x34e   : > { %v1777_v19 = vpop.xlane.xlu0 %1776  ;;  %v10731_v4 = vpop.f32.mrf.mxu2 }
 0x34f   : > { %4110 = vmatmul.f32.gmra.mxu2 %v13612_v5  ;;  %v1787_v17 = vmul.f32 %v1777_v19, %v13802_v36  ;;  %v10722_v25 = vpop.f32.mrf.mxu1  ;;  %v10737_v19 = vpop.f32.mrf.mxu3 }
 0x350   : > { %v1780_v29 = vpop.xlane.xlu2 %1779 }
 0x351   : > { %4163 = vmatmul.f32.gmra.mxu3 %v13812_v62  ;;  %v1788_v12 = vmul.f32 %v1780_v29, %v13802_v36  ;;  %v10683_v49 = vsub.f32 %v13832_v23, %v1787_v17  ;;  %v10686_v33 = vsub.f32 %v13834_v26, %v1787_v17  ;;  %v10734_v29 = vpop.f32.mrf.mxu0 }
 0x353   : > { %13833 = vst [vmem:[#allocation91_spill] sm:$0xff] %v10683_v49  ;;  %v10692_v63 = vsub.f32 %v13836_v22, %v1788_v12  ;;  %v1799_v0 = vmul.f32 %v10683_v49, %v10683_v49  ;;  %v1800_v3 = vmul.f32 %v10686_v33, %v10686_v33 }
 0x354   : > { %13835 = vst [vmem:[#allocation94_spill] sm:$0xff] %v10686_v33 }
 0x355   : > { %4049 = vmatmul.f32.gmra.mxu1 %v13616_v9  ;;  %4220 = vmatmul.f32.vlgmr.msra.gmra.mxu0 %v13719_v18  ;;  %13837 = vst [vmem:[#allocation98_spill] sm:$0xff] %v10692_v63  ;;  %v1801_v1 = vmul.f32 %v10692_v63, %v10692_v63  ;;  %v1807_v27 = vadd.f32 %v1800_v3, %v1799_v0 }
 0x357   : > { %4314 = vmatmul.f32.vlgmr.msra.gmra.mxu2 %v13813_v24  ;;  %v10695_v24 = vsub.f32 %v13838_v57, %v1788_v12  ;;  %v10749_v23 = vpop.f32.mrf.mxu3 }
 0x359   : > { %4419 = vmatmul.f32.vlgmr.msra.gmra.mxu3 %v13719_v18  ;;  %13839 = vst [vmem:[#allocation15_spill] sm:$0xff] %v10695_v24  ;;  %v10739_v17 = vpop.f32.mrf.mxu1  ;;  %v10747_v12 = vpop.f32.mrf.mxu0 }
 0x35d   : > { %4224 = vmatmul.f32.gmra.mxu0 %v9292_v55  ;;  %4265 = vmatmul.f32.vlgmr.msra.gmra.mxu1 %v13719_v18 }
 0x35f   : > { %4322 = vmatmul.f32.gmra.mxu2 %v13718_v20  ;;  %v1786_v20 = vpop.xlane.xlu2 %1785 }
 0x360   : > { %v1790_v59 = vmul.f32 %v1786_v20, %v13802_v36 }
 0x361   : > { %4423 = vmatmul.f32.gmra.mxu3 %v9292_v55 }
 0x362   : > { %v10712_v21 = vsub.f32 %v13840_v61, %v1790_v59  ;;  %v10715_v28 = vsub.f32 %v13841_v54, %v1790_v59 }
 0x364   : > { %13842 = vst [vmem:[#allocation11_spill] sm:$0xff] %v10715_v28  ;;  %v1805_v6 = vmul.f32 %v10712_v21, %v10712_v21  ;;  %v1806_v13 = vmul.f32 %v10715_v28, %v10715_v28  ;;  %v10766_v22 = vpop.f32.mrf.mxu0 }
 0x365   : > { %4228 = vmatmul.f32.gmra.mxu0 %v13609_v7  ;;  %4269 = vmatmul.f32.gmra.mxu1 %v9292_v55  ;;  %v10751_v26 = vpop.f32.mrf.mxu1 }
 0x367   : > { %4330 = vmatmul.f32.gmra.mxu2 %v13736_v15  ;;  %v1802_v15 = vmul.f32 %v10695_v24, %v10695_v24 }
 0x369   : > { %4427 = vmatmul.f32.gmra.mxu3 %v13609_v7  ;;  %v1810_v46 = vadd.f32 %v1802_v15, %v1801_v1 }
 0x36d   : > { %4232 = vmatmul.f32.gmra.mxu0 %v13616_v9  ;;  %4273 = vmatmul.f32.gmra.mxu1 %v13609_v7 }
 0x36f   : > { %4338 = vmatmul.f32.gmra.mxu2 %v13751_v58  ;;  %v1816_v58 = vadd.f32 %v1806_v13, %v1805_v6 }
 0x370   : > { %1808 = vadd.xlane.f32.xlu2 %v1807_v27 }
 0x371   : > { %4431 = vmatmul.f32.gmra.mxu3 %v13616_v9 }
 0x372   : > { %1811 = vadd.xlane.f32.xlu1 %v1810_v46 }
 0x375   : > { %4277 = vmatmul.f32.gmra.mxu1 %v13616_v9  ;;  %4477 = vmatmul.f32.vlgmr.msrb.gmra.mxu0 %v13770_v43  ;;  %v10744_v43 = vpop.f32.mrf.mxu2 }
 0x377   : > { %4602 = vmatmul.f32.vlgmr.msrb.gmra.mxu2 %v13719_v18 }
 0x378   : > { %1817 = vadd.xlane.f32.xlu2 %v1816_v58 }
 0x379   : > { %4647 = vmatmul.f32.vlgmr.msrb.gmra.mxu3 %v13719_v18 }
 0x37d   : > { %4482 = vmatmul.f32.gmra.mxu0 %v13794_v30  ;;  %4527 = vmatmul.f32.vlgmr.msrb.gmra.mxu1 %v13795_v56  ;;  %v10758_v56 = vpop.f32.mrf.mxu2 }
 0x37f   : > { %4606 = vmatmul.f32.gmra.mxu2 %v9292_v55 }
 0x381   : > { %4651 = vmatmul.f32.gmra.mxu3 %v9292_v55 }
 0x385   : > { %4487 = vmatmul.f32.gmra.mxu0 %v13809_v45  ;;  %4533 = vmatmul.f32.gmra.mxu1 %v13810_v10  ;;  %v10770_v45 = vpop.f32.mrf.mxu3  ;;  %v10780_v57 = vpop.f32.mrf.mxu2 }
 0x387   : > { %4610 = vmatmul.f32.gmra.mxu2 %v13609_v7 }
 0x389   : > { %4655 = vmatmul.f32.gmra.mxu3 %v13609_v7  ;;  %v2761_v18 = vpop.xlane.xlu1 %2760  ;;  %v10772_v7 = vpop.f32.mrf.mxu1 }
 0x38a   : > { %v2771_v30 = vmul.f32 %v2761_v18, %v13802_v36 }
 0x38c   : > { %v10761_v55 = vsub.f32 %v10502_v50, %v2771_v30  ;;  %v10764_v20 = vsub.f32 %v10495_v42, %v2771_v30 }
 0x38d   : > { %4492 = vmatmul.f32.gmra.mxu0 %v13612_v5  ;;  %4539 = vmatmul.f32.gmra.mxu1 %v13811_v53  ;;  %v10783_v5 = vpop.f32.mrf.mxu0  ;;  %v10785_v59 = vpop.f32.mrf.mxu3 }
 0x38e   : > { %13843 = vst [vmem:[#allocation19_spill] sm:$0xff] %v10761_v55  ;;  %v2783_v10 = vmul.f32 %v10761_v55, %v10761_v55  ;;  %v2784_v50 = vmul.f32 %v10764_v20, %v10764_v20  ;;  %v3371_v18 = vpop.f32.mrf.mxu2 }
 0x38f   : > { %13844 = vst [vmem:[#allocation12_spill] sm:$0xff] %v10764_v20  ;;  %4614 = vmatmul.f32.gmra.mxu2 %v13616_v9  ;;  %v3372_v33 = vadd.f32 %v3371_v18, %v10035_v51 }
 0x390   : > { %v2791_v42 = vadd.f32 %v2784_v50, %v2783_v10 }
 0x391   : > { %4659 = vmatmul.f32.gmra.mxu3 %v13616_v9  ;;  %v10787_v0 = vpop.f32.mrf.mxu1 }
 0x392   : > { %2792 = vadd.xlane.f32.xlu1 %v2791_v42 }
 0x395   : > { %4545 = vmatmul.f32.gmra.mxu1 %v13812_v62  ;;  %v10822_v50 = vpop.f32.mrf.mxu0  ;;  %v3472_v42 = vpop.f32.mrf.mxu3 }
 0x396   : > { %v3473_v55 = vadd.f32 %v3472_v42, %v3372_v33  ;;  %v3006_v33 = vadd.f32 %v10747_v12, %v13778_v40 }
 0x397   : > { %v2764_v53 = vpop.xlane.xlu0 %2763 }
 0x398   : > { %v2772_v3 = vmul.f32 %v2764_v53, %v13802_v36 }
 0x399   : > { %v2767_v1 = vpop.xlane.xlu2 %2766  ;;  %v2770_v15 = vpop.xlane.xlu1 %2769 }
 0x39a   : > { %v10791_v61 = vsub.f32 %v10556_v35, %v2772_v3  ;;  %v10794_v9 = vsub.f32 %v10549_v60, %v2772_v3  ;;  %v2773_v54 = vmul.f32 %v2767_v1, %v13802_v36  ;;  %v2774_v62 = vmul.f32 %v2770_v15, %v13802_v36  ;;  %v10824_v53 = vpop.f32.mrf.mxu1  ;;  %v3379_v3 = vpop.f32.mrf.mxu2 }
 0x39b   : > { %v3380_v49 = vadd.f32 %v3379_v3, %v13771_v52 }
 0x39c   : > { %13845 = vst [vmem:[#allocation14_spill] sm:$0xff] %v10791_v61  ;;  %v10799_v27 = vsub.f32 %v10567_v44, %v2773_v54  ;;  %v10802_v46 = vsub.f32 %v10561_v8, %v2773_v54  ;;  %v2785_v6 = vmul.f32 %v10791_v61, %v10791_v61  ;;  %v2786_v35 = vmul.f32 %v10794_v9, %v10794_v9 }
 0x39d   : > { %13846 = vst [vmem:[#allocation13_spill] sm:$0xff] %v10794_v9  ;;  %v10809_v13 = vsub.f32 %v10574_v38, %v2774_v62  ;;  %v10812_v60 = vsub.f32 %v10578_v11, %v2774_v62  ;;  %v10826_v1 = vpop.f32.mrf.mxu0  ;;  %v3476_v15 = vpop.f32.mrf.mxu3  ;;  %v2998_v9 = vadd.f32 %v10734_v29, %v13771_v52  ;;  %v3099_v29 = vadd.f32 %v10751_v26, %v3006_v33 }
 0x39e   : > { %13847 = vst [vmem:[#allocation16_spill] sm:$0xff] %v10799_v27  ;;  %v2794_v58 = vadd.f32 %v2786_v35, %v2785_v6  ;;  %v2787_v44 = vmul.f32 %v10799_v27, %v10799_v27  ;;  %v2788_v8 = vmul.f32 %v10802_v46, %v10802_v46  ;;  %v8486_v6 = vld [vmem:[%s12955_s1] sm:$0xff]  ;;  %v3477_v61 = vadd.f32 %v3476_v15, %v3380_v49 }
 0x39f   : > { %13848 = vst [vmem:[#allocation28_spill] sm:$0xff] %v10802_v46  ;;  %v2789_v30 = vmul.f32 %v10809_v13, %v10809_v13  ;;  %v2790_v10 = vmul.f32 %v10812_v60, %v10812_v60  ;;  %v3095_v41 = vadd.f32 %v10739_v17, %v2998_v9 }
 0x3a0   : > { %13849 = vst [vmem:[#allocation17_spill] sm:$0xff] %v10809_v13  ;;  %2795 = vadd.xlane.f32.xlu0 %v2794_v58  ;;  %v2797_v38 = vadd.f32 %v2788_v8, %v2787_v44  ;;  %v2990_v13 = vadd.f32 %v10717_v2, %v10035_v51 }
 0x3a1   : > { %13850 = vst [vmem:[#allocation31_spill] sm:$0xff] %v10812_v60  ;;  %v2800_v11 = vadd.f32 %v2790_v10, %v2789_v30  ;;  %v3155_v15 = vadd.f32 %v10744_v43, %v3095_v41  ;;  %v2982_v41 = vadd.f32 %v10678_v37, %v9967_v14  ;;  %v10874_v37 = vpop.permute.xlu2 %1908 }
 0x3a2   : > { %2798 = vadd.xlane.f32.xlu2 %v2797_v38  ;;  %v10828_v54 = vpop.f32.mrf.mxu1  ;;  %v3387_v62 = vpop.f32.mrf.mxu2  ;;  %13853 = vst [vmem:[#allocation78_spill] sm:$0xff] %v10874_v37 }
 0x3a3   : > { %2801 = vadd.xlane.f32.xlu1 %v2800_v11  ;;  %v3388_v46 = vadd.f32 %v3387_v62, %v13778_v40 }
 0x3a5   : > { %v3526_v35 = vpop.f32.mrf.mxu0  ;;  %v3480_v58 = vpop.f32.mrf.mxu3 }
 0x3a6   : > { %v3481_v42 = vadd.f32 %v3480_v58, %v3388_v46 }
 0x3aa   : > { %v3576_v44 = vpop.f32.mrf.mxu1  ;;  %v3651_v8 = vpop.f32.mrf.mxu2 }
 0x3ad   : > { %v3531_v30 = vpop.f32.mrf.mxu0  ;;  %v10834_v10 = vpop.f32.mrf.mxu3 }
 0x3b2   : > { %v3582_v38 = vpop.f32.mrf.mxu1  ;;  %v3655_v11 = vpop.f32.mrf.mxu2 }
 0x3b4   : > { %1900 = vperm.xlu0 %8282, %v8486_v6  }
 0x3b5   : > { %v3536_v24 = vpop.f32.mrf.mxu0  ;;  %v3700_v20 = vpop.f32.mrf.mxu3 }
 0x3b6   : > { %v3537_v63 = vadd.f32 %v3536_v24, %v3477_v61  ;;  %v3364_v24 = vadd.f32 %v10780_v57, %v9967_v14 }
 0x3b8   : > { %v3469_v43 = vadd.f32 %v10785_v59, %v3364_v24 }
 0x3ba   : > { %1904 = vperm.xlu2 %8281, %v10654_v48   ;;  %v3588_v60 = vpop.f32.mrf.mxu1  ;;  %v3091_v48 = vadd.f32 %v10722_v25, %v2990_v13  ;;  %v3659_v18 = vpop.f32.mrf.mxu2 }
 0x3bb   : > { %v10906_v33 = vpop.permute.xlu1 %1880 }
 0x3bc   : > { %1876 = vperm.xlu1 %8280, %v8486_v6   ;;  %v3532_v6 = vadd.f32 %v3531_v30, %v3473_v55  ;;  %v3150_v28 = vadd.f32 %v10731_v4, %v3091_v48  ;;  %v3589_v55 = vadd.f32 %v3588_v60, %v3537_v63  ;;  %v3160_v63 = vadd.f32 %v10758_v56, %v3099_v29 }
 0x3bd   : > { %v3541_v2 = vpop.f32.mrf.mxu0  ;;  %v3704_v13 = vpop.f32.mrf.mxu3  ;;  %v3087_v56 = vadd.f32 %v10688_v34, %v2982_v41  ;;  %13856 = vst [vmem:[#allocation102_spill] sm:$0xff] %v10906_v33 }
 0x3be   : > { %v3583_v27 = vadd.f32 %v3582_v38, %v3532_v6  ;;  %v3201_v62 = vadd.f32 %v10737_v19, %v3150_v28  ;;  %v3542_v49 = vadd.f32 %v3541_v2, %v3481_v42  ;;  %v3660_v61 = vadd.f32 %v3659_v18, %v3589_v55 }
 0x3bf   : > { %v3207_v28 = vadd.f32 %v10749_v23, %v3155_v15  ;;  %v3145_v34 = vadd.f32 %v10707_v32, %v3087_v56 }
 0x3c0   : > { %v3656_v25 = vadd.f32 %v3655_v11, %v3583_v27  ;;  %v3274_v4 = vadd.f32 %v10783_v5, %v3201_v62  ;;  %v10867_v5 = vadd.f32 %v3704_v13, %v3660_v61  ;;  %v3527_v27 = vadd.f32 %v3526_v35, %v3469_v43 }
 0x3c1   : > { %v3278_v57 = vadd.f32 %v10822_v50, %v3207_v28 }
 0x3c2   : > { %v3594_v3 = vpop.f32.mrf.mxu1  ;;  %v10854_v17 = vadd.f32 %v3700_v20, %v3656_v25  ;;  %v10858_v9 = vadd.f32 %v10787_v0, %v3274_v4  ;;  %v3663_v19 = vpop.f32.mrf.mxu2  ;;  %v3213_v0 = vadd.f32 %v10770_v45, %v3160_v63  ;;  %v3577_v60 = vadd.f32 %v3576_v44, %v3527_v27 }
 0x3c3   : > { %v3595_v12 = vadd.f32 %v3594_v3, %v3542_v49  ;;  %v10872_v23 = vadd.f32 %v10824_v53, %v3278_v57  ;;  %v1815_v44 = vpop.xlane.xlu0 %1814 }
 0x3c4   : > { %13851 = vst [vmem:[#allocation34_spill] sm:$0xff] %v10854_v17  ;;  %v3714_v20 = vadd.f32 %v10854_v17, %v10858_v9  ;;  %v3282_v46 = vadd.f32 %v10826_v1, %v3213_v0  ;;  %v3652_v35 = vadd.f32 %v3651_v8, %v3577_v60  ;;  %v3195_v1 = vadd.f32 %v10720_v39, %v3145_v34 }
 0x3c5   : > { %13852 = vst [vmem:[#allocation38_spill] sm:$0xff] %v10858_v9  ;;  %v3664_v26 = vadd.f32 %v3663_v19, %v3595_v12  ;;  %v3708_v59 = vpop.f32.mrf.mxu3  ;;  %v3717_v50 = vadd.f32 %v10867_v5, %v10872_v23  ;;  %v10887_v30 = vpop.f32.mrf.mxu0  ;;  %v1821_v8 = vmul.f32 %v1815_v44, %v13802_v36 }
 0x3c6   : > { %v10883_v45 = vadd.f32 %v10828_v54, %v3282_v46  ;;  %v3270_v48 = vadd.f32 %v10766_v22, %v3195_v1  ;;  %v10894_v32 = vadd.f32 %v10834_v10, %v3652_v35 }
 0x3c7   : > { %v10877_v58 = vadd.f32 %v3708_v59, %v3664_v26  ;;  %v1825_v18 = vadd.f32 1e-06, %v1821_v8 }
 0x3c8   : > { %13854 = vst [vmem:[#allocation66_spill] sm:$0xff] %v10894_v32  ;;  %v10897_v54 = vadd.f32 %v10772_v7, %v3270_v48 }
 0x3c9   : > { %v3720_v53 = vadd.f32 %v10877_v58, %v10883_v45  ;;  %8384 = vrsqrt.f32 %v1825_v18  ;;  %vm1853_vm4 = vweird.f32 %v1825_v18 }
 0x3ca   : > { %v10890_v38 = vpop.f32.mrf.mxu1  ;;  %13855 = vst [vmem:[#allocation101_spill] sm:$0xff] %v10897_v54  ;;  %v3711_v6 = vadd.f32 %v10894_v32, %v10897_v54  ;;  %v10902_v39 = vpop.f32.mrf.mxu2 }
 0x3cd   : > { %v10904_v2 = vpop.f32.mrf.mxu0  ;;  %v10910_v42 = vpop.f32.mrf.mxu3 }
 0x3cf   : > { %v8385_v55 = vpop.eup %8384 }
 0x3d0   : > { %v1848_v49 = vmul.f32 %v8385_v55, %v1825_v18  ;;  %vm1854_vm3 = vweird.f32 %v8385_v55 }
 0x3d1   : > { %vm1855_vm5 = vmor %vm1853_vm4, %vm1854_vm3 }
 0x3d2   : > { %v10908_v22 = vpop.f32.mrf.mxu1  ;;  %v10913_v13 = vpop.f32.mrf.mxu2  ;;  %v1849_v12 = vmul.f32 %v8385_v55, %v1848_v49 }
 0x3d3   : > { %13857 = vst [vmem:[#allocation105_spill] sm:$0xff] %v10908_v22 }
 0x3d4   : > { %13858 = vst [vmem:[#allocation82_spill] sm:$0xff] %v10913_v13  ;;  %v1850_v28 = vmul.f32 0.5, %v1849_v12  ;;  %v13872_v13 = vld [vmem:[#allocation10_spill] sm:$0xff] }
 0x3d5   : > { %v10915_v62 = vpop.f32.mrf.mxu0  ;;  %v10920_v4 = vpop.f32.mrf.mxu3 }
 0x3d6   : > { %13860 = vst [vmem:[#allocation108_spill] sm:$0xff] %v10920_v4  ;;  %v1851_v0 = vsub.f32 1.5, %v1850_v28 }
 0x3da   : > { %v10918_v15 = vpop.f32.mrf.mxu1  ;;  %v10924_v63 = vpop.f32.mrf.mxu2 }
 0x3db   : > { %13859 = vst [vmem:[#allocation21_spill] sm:$0xff] %v10918_v15 }
 0x3dc   : > { %13861 = vst [vmem:[#allocation52_spill] sm:$0xff] %v10924_v63 }
 0x3dd   : > { %v10927_v19 = vpop.f32.mrf.mxu0  ;;  %v10932_v57 = vpop.f32.mrf.mxu3 }
 0x3de   : > { %3715 = vadd.xlane.f32.xlu0 %v3714_v20  ;;  %13862 = vst [vmem:[#allocation18_spill] sm:$0xff] %v10932_v57 }
 0x3e2   : > { %v10930_v43 = vpop.f32.mrf.mxu1  ;;  %v10943_v35 = vpop.f32.mrf.mxu2 }
 0x3e3   : > { %3718 = vadd.xlane.f32.xlu2 %v3717_v50  ;;  %v1809_v11 = vpop.xlane.xlu2 %1808  ;;  %v1852_v50 = vmul.f32 %v8385_v55, %v1851_v0 }
 0x3e4   : > { %v1819_v41 = vmul.f32 %v1809_v11, %v13802_v36 }
 0x3e5   : > { %v1812_v25 = vpop.xlane.xlu1 %1811  ;;  %v1856_v44 = vsel %vm1855_vm5, %v8385_v55, %v1852_v50  ;;  %v10952_v8 = vpop.f32.mrf.mxu3 }
 0x3e6   : > { %3721 = vadd.xlane.f32.xlu1 %v3720_v53  ;;  %v1820_v29 = vmul.f32 %v1812_v25, %v13802_v36  ;;  %v10937_v59 = vadd.f32 1e-06, %v1819_v41  ;;  %v10946_v53 = vpop.f32.mrf.mxu0  ;;  %v1872_v41 = vmul.f32 %v1856_v44, %v10584_v16 }
 0x3e7   : > { %13863 = vst [vmem:[#allocation25_spill] sm:$0xff] %v10946_v53 }
 0x3e8   : > { %v10922_v24 = vadd.f32 1e-06, %v1820_v29  ;;  %vm1833_vm13 = vweird.f32 %v10937_v59 }
 0x3ea   : > { %v10949_v11 = vpop.f32.mrf.mxu1  ;;  %vm1843_vm11 = vweird.f32 %v10922_v24 }
 0x3eb   : > { %v1818_v10 = vpop.xlane.xlu2 %1817  ;;  %13864 = vst [vmem:[#allocation55_spill] sm:$0xff] %v10949_v11 }
 0x3ec   : > { %v1822_v7 = vmul.f32 %v1818_v10, %v13802_v36 }
 0x3ee   : > { %3712 = vadd.xlane.f32.xlu1 %v3711_v6  ;;  %v1826_v3 = vadd.f32 1e-06, %v1822_v7  ;;  %v1871_v7 = vmul.f32 %v1856_v44, %v10581_v31  ;;  %v10969_v50 = vpop.f32.mrf.mxu0 }
 0x3ef   : > { %13866 = vst [vmem:[#allocation23_spill] sm:$0xff] %v10969_v50 }
 0x3f0   : > { %8386 = vrsqrt.f32 %v1826_v3  ;;  %vm1863_vm7 = vweird.f32 %v1826_v3 }
 0x3f1   : > { %8388 = vrsqrt.f32 %v10922_v24 }
 0x3f2   : > { %8390 = vrsqrt.f32 %v10937_v59 }
 0x3f6   : > { %v8387_v61 = vpop.eup %8386  ;;  %v11011_v50 = vpop.f32.mrf.mxu0 }
 0x3f7   : > { %v1858_v26 = vmul.f32 %v8387_v61, %v1826_v3  ;;  %v10935_v27 = vpop.eup %8388  ;;  %vm1864_vm6 = vweird.f32 %v8387_v61  ;;  %13868 = vst [vmem:[#allocation59_spill] sm:$0xff] %v11011_v50 }
 0x3f8   : > { %v1838_v34 = vmul.f32 %v10935_v27, %v10922_v24  ;;  %v10954_v10 = vpop.eup %8390  ;;  %vm1865_vm8 = vmor %vm1863_vm7, %vm1864_vm6  ;;  %vm1844_vm10 = vweird.f32 %v10935_v27 }
 0x3f9   : > { %v1859_v46 = vmul.f32 %v8387_v61, %v1858_v26  ;;  %v1828_v55 = vmul.f32 %v10954_v10, %v10937_v59  ;;  %v13865_v26 = vld [vmem:[#allocation89_spill] sm:$0xff]  ;;  %vm1845_vm12 = vmor %vm1843_vm11, %vm1844_vm10  ;;  %vm1834_vm14 = vweird.f32 %v10954_v10 }
 0x3fa   : > { %v1839_v48 = vmul.f32 %v10935_v27, %v1838_v34  ;;  %v1896_v3 = vmul.f32 %v13865_v26, %v1872_v41  ;;  %vm11039_vm2 = vmor %vm1833_vm13, %vm1834_vm14 }
 0x3fb   : > { %v1860_v1 = vmul.f32 0.5, %v1859_v46  ;;  %v1829_v44 = vmul.f32 %v10954_v10, %v1828_v55 }
 0x3fc   : > { %v1840_v25 = vmul.f32 0.5, %v1839_v48 }
 0x3fd   : > { %v1861_v6 = vsub.f32 1.5, %v1860_v1 }
 0x3fe   : > { %v1841_v34 = vsub.f32 1.5, %v1840_v25 }
 0x3ff   : > { %v1862_v12 = vmul.f32 %v8387_v61, %v1861_v6  ;;  %v10978_v6 = vpop.f32.mrf.mxu1 }
 0x400   : > { %13867 = vst [vmem:[#allocation27_spill] sm:$0xff] %v10978_v6 }
 0x405   : > { %v2793_v20 = vpop.xlane.xlu1 %2792 }
 0x406   : > { %v2803_v56 = vmul.f32 %v2793_v20, %v13802_v36  ;;  %v1895_v20 = vmul.f32 %v13865_v26, %v1871_v7  ;;  %v10980_v7 = vsel %vm1865_vm8, %v8387_v61, %v1862_v12  ;;  %v1830_v12 = vmul.f32 0.5, %v1829_v44 }
 0x407   : > { %v1873_v61 = vmul.f32 %v10980_v7, %v10712_v21  ;;  %v11023_v63 = vpop.f32.mrf.mxu1 }
 0x408   : > { %v10939_v60 = vadd.f32 1e-06, %v2803_v56  ;;  %v10964_v56 = vpop.f32.mrf.mxu2  ;;  %v10986_v25 = vadd.f32 %v10874_v37, %v1895_v20  ;;  %v10999_v20 = vadd.f32 %v10874_v37, %v1896_v3  ;;  %v1831_v24 = vsub.f32 1.5, %v1830_v12  ;;  %13870 = vst [vmem:[#allocation24_spill] sm:$0xff] %v11023_v63 }
 0x409   : > { %v1897_v21 = vmul.f32 %v10666_v47, %v1873_v61 }
 0x40a   : > { %8392 = vrsqrt.f32 %v10939_v60  ;;  %v1928_v61 = vmul.f32 0.5, %v10999_v20  ;;  %v1832_v11 = vmul.f32 %v10954_v10, %v1831_v24  ;;  %vm2817_vm4 = vweird.f32 %v10939_v60 }
 0x40b   : > { %v11030_v15 = vadd.f32 %v13872_v13, %v1897_v21 }
 0x410   : > { %v10957_v29 = vpop.eup %8392  ;;  %v11006_v6 = vpop.f32.mrf.mxu2 }
 0x411   : > { %v2812_v1 = vmul.f32 %v10957_v29, %v10939_v60  ;;  %vm2818_vm0 = vweird.f32 %v10957_v29  ;;  %v11058_v60 = vsel %vm11039_vm2, %v10954_v10, %v1832_v11  ;;  %v13880_v11 = vld [vmem:[#allocation13_spill] sm:$0xff] }
 0x412   : > { %vm2819_vm7 = vmor %vm2817_vm4, %vm2818_vm0 }
 0x413   : > { %v2796_v18 = vpop.xlane.xlu0 %2795  ;;  %v2813_v55 = vmul.f32 %v10957_v29, %v2812_v1 }
 0x414   : > { %v2804_v49 = vmul.f32 %v2796_v18, %v13802_v36 }
 0x415   : > { %v2799_v28 = vpop.xlane.xlu2 %2798 }
 0x416   : > { %v10966_v0 = vadd.f32 1e-06, %v2804_v49  ;;  %v2805_v31 = vmul.f32 %v2799_v28, %v13802_v36  ;;  %v2802_v46 = vpop.xlane.xlu1 %2801  ;;  %v10988_v49 = vpop.f32.mrf.mxu3  ;;  %v1842_v28 = vmul.f32 %v10935_v27, %v1841_v34  ;;  %v2814_v34 = vmul.f32 0.5, %v2813_v55 }
 0x417   : > { %v2806_v48 = vmul.f32 %v2802_v46, %v13802_v36 }
 0x418   : > { %8394 = vrsqrt.f32 %v10966_v0  ;;  %v10975_v16 = vadd.f32 1e-06, %v2805_v31  ;;  %v1927_v31 = vmul.f32 0.5, %v10986_v25  ;;  %v11003_v46 = vsel %vm1845_vm12, %v10935_v27, %v1842_v28  ;;  %v13869_v28 = vld [vmem:[#allocation98_spill] sm:$0xff] }
 0x419   : > { %v10982_v18 = vadd.f32 1e-06, %v2806_v48  ;;  %v11016_v27 = vadd.f32 %v10887_v30, %v9967_v14  ;;  %v1869_v55 = vmul.f32 %v11003_v46, %v13869_v28  ;;  %v2815_v12 = vsub.f32 1.5, %v2814_v34 }
 0x41a   : > { %8396 = vrsqrt.f32 %v10975_v16  ;;  %vm2827_vm1 = vweird.f32 %v10966_v0  ;;  %vm2837_vm6 = vweird.f32 %v10975_v16 }
 0x41b   : > { %8398 = vrsqrt.f32 %v10982_v18  ;;  %v1893_v34 = vmul.f32 %v10906_v33, %v1869_v55  ;;  %vm2847_vm11 = vweird.f32 %v10982_v18 }
 0x41c   : > { %8400 = vtanh.f32 %v1927_v31 }
 0x41d   : > { %8402 = vtanh.f32 %v1928_v61 }
 0x41e   : > { %v8395_v41 = vpop.eup %8394  ;;  %v11027_v30 = vpop.f32.mrf.mxu3 }
 0x41f   : > { %v2822_v1 = vmul.f32 %v8395_v41, %v10966_v0  ;;  %13871 = vst [vmem:[#allocation37_spill] sm:$0xff] %v11027_v30  ;;  %vm2828_vm15 = vweird.f32 %v8395_v41  ;;  %v13882_v30 = vld [vmem:[#allocation28_spill] sm:$0xff] }
 0x420   : > { %v8397_v48 = vpop.eup %8396  ;;  %vm2829_vm5 = vmor %vm2827_vm1, %vm2828_vm15 }
 0x421   : > { %v11009_v44 = vpop.eup %8398  ;;  %v2823_v3 = vmul.f32 %v8395_v41, %v2822_v1  ;;  %v2832_v57 = vmul.f32 %v8397_v48, %v10975_v16  ;;  %vm2838_vm3 = vweird.f32 %v8397_v48 }
 0x422   : > { %v2842_v4 = vmul.f32 %v11009_v44, %v10982_v18  ;;  %v11047_v55 = vpop.eup %8400  ;;  %vm2848_vm8 = vweird.f32 %v11009_v44  ;;  %vm2839_vm10 = vmor %vm2837_vm6, %vm2838_vm3 }
 0x423   : > { %v2824_v50 = vmul.f32 0.5, %v2823_v3  ;;  %v2833_v1 = vmul.f32 %v8397_v48, %v2832_v57  ;;  %v11037_v57 = vpop.permute.xlu2 %1904  ;;  %v13881_v3 = vld [vmem:[#allocation16_spill] sm:$0xff]  ;;  %vm2849_vm12 = vmor %vm2847_vm11, %vm2848_vm8  ;;  %v1943_v22 = vadd.f32 1.0, %v11047_v55 }
 0x424   : > { %v2843_v28 = vmul.f32 %v11009_v44, %v2842_v4  ;;  %13873 = vst [vmem:[#allocation62_spill] sm:$0xff] %v11037_v57  ;;  %v2816_v4 = vmul.f32 %v10957_v29, %v2815_v12  ;;  %v11052_v12 = vadd.f32 %v11037_v57, %v1893_v34  ;;  %v11067_v34 = vpop.f32.mrf.mxu0 }
 0x425   : > { %v2825_v53 = vsub.f32 1.5, %v2824_v50  ;;  %v2834_v31 = vmul.f32 0.5, %v2833_v1  ;;  %v1929_v50 = vmul.f32 0.5, %v11030_v15  ;;  %13879 = vst [vmem:[#allocation41_spill] sm:$0xff] %v11067_v34 }
 0x426   : > { %v2844_v59 = vmul.f32 0.5, %v2843_v28  ;;  %v1925_v18 = vmul.f32 0.5, %v11052_v12 }
 0x427   : > { %v2826_v21 = vmul.f32 %v8395_v41, %v2825_v53  ;;  %v2835_v24 = vsub.f32 1.5, %v2834_v31  ;;  %v13876_v53 = vld [vmem:[#allocation11_spill] sm:$0xff]  ;;  %v11062_v31 = vpop.f32.mrf.mxu2  ;;  %8404 = vtanh.f32 %v1929_v50 }
 0x428   : > { %v2845_v0 = vsub.f32 1.5, %v2844_v59  ;;  %v1874_v16 = vmul.f32 %v10980_v7, %v13876_v53  ;;  %13877 = vst [vmem:[#allocation84_spill] sm:$0xff] %v11062_v31  ;;  %v13878_v59 = vld [vmem:[#allocation14_spill] sm:$0xff]  ;;  %v13887_v50 = vld [vmem:[#allocation19_spill] sm:$0xff]  ;;  %8406 = vtanh.f32 %v1925_v18 }
 0x429   : > { %v2830_v1 = vsel %vm2829_vm5, %v8395_v41, %v2826_v21  ;;  %v2836_v28 = vmul.f32 %v8397_v48, %v2835_v24  ;;  %v2820_v21 = vsel %vm2819_vm7, %v10957_v29, %v2816_v4  ;;  %v11079_v29 = vpop.f32.mrf.mxu1 }
 0x42a   : > { %v2853_v63 = vmul.f32 %v2830_v1, %v13878_v59  ;;  %v2846_v41 = vmul.f32 %v11009_v44, %v2845_v0  ;;  %v2854_v10 = vmul.f32 %v2830_v1, %v13880_v11  ;;  %v13883_v0 = vld [vmem:[#allocation91_spill] sm:$0xff]  ;;  %13884 = vst [vmem:[#allocation33_spill] sm:$0xff] %v11079_v29  ;;  %v1898_v61 = vmul.f32 %v10666_v47, %v1874_v16  ;;  %v13888_v11 = vld [vmem:[#allocation17_spill] sm:$0xff]  ;;  %v11097_v16 = vpop.permute.xlu0 %1900 }
 0x42b   : > { %v2840_v24 = vsel %vm2839_vm10, %v8397_v48, %v2836_v28  ;;  %v1867_v17 = vmul.f32 %v11058_v60, %v13883_v0  ;;  %v13889_v0 = vld [vmem:[#allocation31_spill] sm:$0xff]  ;;  %13890 = vst [vmem:[#allocation45_spill] sm:$0xff] %v11097_v16 }
 0x42c   : > { %v2861_v7 = vmul.f32 %v2853_v63, %v10906_v33  ;;  %v2855_v53 = vmul.f32 %v2840_v24, %v13881_v3  ;;  %v2856_v59 = vmul.f32 %v2840_v24, %v13882_v30  ;;  %v2850_v48 = vsel %vm2849_vm12, %v11009_v44, %v2846_v41  ;;  %v11084_v63 = vpop.f32.mrf.mxu3  ;;  %v13891_v41 = vld [vmem:[#allocation12_spill] sm:$0xff] }
 0x42d   : > { %13885 = vst [vmem:[#allocation36_spill] sm:$0xff] %v11084_v63  ;;  %v2851_v24 = vmul.f32 %v2820_v21, %v13887_v50  ;;  %v2857_v3 = vmul.f32 %v2850_v48, %v13888_v11  ;;  %v2858_v9 = vmul.f32 %v2850_v48, %v13889_v0  ;;  %v2852_v63 = vmul.f32 %v2820_v21, %v13891_v41 }
 0x42e   : > { %v2863_v4 = vmul.f32 %v2855_v53, %v13865_v26  ;;  %v2864_v30 = vmul.f32 %v2856_v59, %v13865_v26  ;;  %v11089_v1 = vadd.f32 %v2861_v7, %v11037_v57  ;;  %v11091_v28 = vpop.permute.xlu1 %1876  ;;  %v2862_v53 = vmul.f32 %v2854_v10, %v10906_v33  ;;  %v8403_v26 = vpop.eup %8402 }
 0x42f   : > { %13886 = vst [vmem:[#allocation40_spill] sm:$0xff] %v11091_v28  ;;  %v1891_v44 = vmul.f32 %v11091_v28, %v1867_v17  ;;  %v2865_v50 = vmul.f32 %v2857_v3, %v10666_v47  ;;  %v2866_v11 = vmul.f32 %v2858_v9, %v10666_v47  ;;  %v2859_v48 = vmul.f32 %v2851_v24, %v11091_v28  ;;  %v11127_v3 = vpop.f32.mrf.mxu2 }
 0x430   : > { %v11102_v59 = vadd.f32 %v2863_v4, %v10874_v37  ;;  %v2877_v7 = vmul.f32 0.5, %v11089_v1  ;;  %v11109_v17 = vadd.f32 %v2864_v30, %v10874_v37  ;;  %v8405_v4 = vpop.eup %8404  ;;  %v2860_v9 = vmul.f32 %v2852_v63, %v11091_v28 }
 0x431   : > { %v11113_v10 = vadd.f32 %v11097_v16, %v1891_v44  ;;  %v11116_v0 = vadd.f32 %v2865_v50, %v13872_v13  ;;  %v11119_v18 = vadd.f32 %v2866_v11, %v13872_v13  ;;  %v11123_v24 = vadd.f32 %v2859_v48, %v11097_v16  ;;  %v11135_v11 = vpop.f32.mrf.mxu0  ;;  %v11144_v37 = vpop.f32.mrf.mxu1 }
 0x432   : > { %v2879_v21 = vmul.f32 0.5, %v11102_v59  ;;  %8408 = vtanh.f32 %v2877_v7  ;;  %v4039_v30 = vadd.f32 %v10890_v38, %v11016_v27  ;;  %v11130_v44 = vadd.f32 %v2862_v53, %v11037_v57  ;;  %v13892_v7 = vld [vmem:[#allocation15_spill] sm:$0xff]  ;;  %13893 = vst [vmem:[#allocation44_spill] sm:$0xff] %v11144_v37 }
 0x433   : > { %v1923_v41 = vmul.f32 0.5, %v11113_v10  ;;  %v1870_v50 = vmul.f32 %v11003_v46, %v13892_v7  ;;  %v2881_v63 = vmul.f32 0.5, %v11116_v0  ;;  %v2882_v48 = vmul.f32 0.5, %v11119_v18 }
 0x434   : > { %8410 = vtanh.f32 %v2879_v21  ;;  %v2875_v47 = vmul.f32 0.5, %v11123_v24  ;;  %v11141_v38 = vadd.f32 %v13872_v13, %v1898_v61  ;;  %v1945_v27 = vadd.f32 1.0, %v8405_v4  ;;  %v8407_v21 = vpop.eup %8406  ;;  %v11151_v32 = vpop.f32.mrf.mxu3  ;;  %v13894_v4 = vld [vmem:[#allocation94_spill] sm:$0xff] }
 0x435   : > { %v2880_v53 = vmul.f32 0.5, %v11109_v17  ;;  %8412 = vtanh.f32 %v1923_v41  ;;  %v11147_v46 = vadd.f32 %v2860_v9, %v11097_v16  ;;  %v4097_v31 = vadd.f32 %v10902_v39, %v4039_v30 }
 0x436   : > { %8414 = vtanh.f32 %v2881_v63  ;;  %v2878_v61 = vmul.f32 0.5, %v11130_v44  ;;  %v1868_v41 = vmul.f32 %v11058_v60, %v13894_v4  ;;  %v1894_v13 = vmul.f32 %v10906_v33, %v1870_v50 }
 0x437   : > { %8416 = vtanh.f32 %v2882_v48  ;;  %v1930_v9 = vmul.f32 0.5, %v11141_v38  ;;  %v1953_v29 = vmul.f32 0.5, %v1945_v27  ;;  %v1941_v55 = vadd.f32 1.0, %v8407_v21 }
 0x438   : > { %v8409_v7 = vpop.eup %8408  ;;  %8418 = vtanh.f32 %v2875_v47  ;;  %v2876_v30 = vmul.f32 0.5, %v11147_v46  ;;  %v1892_v37 = vmul.f32 %v11091_v28, %v1868_v41  ;;  %v11162_v60 = vadd.f32 %v10904_v2, %v10035_v51  ;;  %v11167_v47 = vpop.f32.mrf.mxu2 }
 0x439   : > { %v2893_v54 = vadd.f32 1.0, %v8409_v7  ;;  %8420 = vtanh.f32 %v2880_v53  ;;  %v11165_v50 = vadd.f32 %v10910_v42, %v4097_v31  ;;  %v1944_v27 = vadd.f32 1.0, %v8403_v26  ;;  %v11174_v31 = vpop.f32.mrf.mxu0 }
 0x43a   : > { %v8411_v63 = vpop.eup %8410  ;;  %8422 = vtanh.f32 %v2878_v61  ;;  %v1951_v21 = vmul.f32 0.5, %v1943_v22  ;;  %v11171_v4 = vadd.f32 %v11037_v57, %v1894_v13  ;;  %v1961_v2 = vmul.f32 %v1953_v29, %v11030_v15  ;;  %13895 = vst [vmem:[#allocation46_spill] sm:$0xff] %v11174_v31 }
 0x43b   : > { %v2895_v34 = vadd.f32 1.0, %v8411_v63  ;;  %v2901_v39 = vmul.f32 0.5, %v2893_v54  ;;  %v8413_v48 = vpop.eup %8412  ;;  %8424 = vtanh.f32 %v1930_v9  ;;  %v1949_v26 = vmul.f32 0.5, %v1941_v55 }
 0x43c   : > { %v8415_v53 = vpop.eup %8414  ;;  %v1939_v28 = vadd.f32 1.0, %v8413_v48  ;;  %8426 = vtanh.f32 %v2876_v30  ;;  %v11178_v22 = vadd.f32 %v11097_v16, %v1892_v37  ;;  %v1959_v29 = vmul.f32 %v1951_v21, %v10986_v25  ;;  %v11185_v48 = vpop.f32.mrf.mxu1 }
 0x43d   : > { %v2903_v7 = vmul.f32 0.5, %v2895_v34  ;;  %v2909_v54 = vmul.f32 %v2901_v39, %v11089_v1  ;;  %v8417_v41 = vpop.eup %8416  ;;  %v2897_v63 = vadd.f32 1.0, %v8415_v53  ;;  %v11180_v1 = vpop.f32.mrf.mxu3  ;;  %13897 = vst [vmem:[#allocation53_spill] sm:$0xff] %v11185_v48  ;;  %v1926_v55 = vmul.f32 0.5, %v11171_v4 }
 0x43e   : > { %v8419_v42 = vpop.eup %8418  ;;  %v2898_v9 = vadd.f32 1.0, %v8417_v41  ;;  %v11190_v37 = vand.u32 4294901760, %v1961_v2  ;;  %v1947_v16 = vmul.f32 0.5, %v1939_v28  ;;  %v1957_v41 = vmul.f32 %v1949_v26, %v11052_v12 }
 0x43f   : > { %v2911_v61 = vmul.f32 %v2903_v7, %v11102_v59  ;;  %v8421_v34 = vpop.eup %8420  ;;  %v11182_v13 = vand.u32 4294901760, %v2909_v54  ;;  %v2905_v39 = vmul.f32 0.5, %v2897_v63  ;;  %v2891_v15 = vadd.f32 1.0, %v8419_v42 }
 0x440   : > { %v1952_v59 = vmul.f32 0.5, %v1944_v27  ;;  %v8423_v30 = vpop.eup %8422  ;;  %v2896_v33 = vadd.f32 1.0, %v8421_v34  ;;  %v1924_v25 = vmul.f32 0.5, %v11178_v22  ;;  %v2906_v42 = vmul.f32 0.5, %v2898_v9 }
 0x441   : > { %13896 = vst [vmem:[#allocation48_spill] sm:$0xff] %v11182_v13  ;;  %v11187_v53 = vand.u32 4294901760, %v2911_v61  ;;  %v2913_v7 = vmul.f32 %v2905_v39, %v11116_v0  ;;  %v2899_v57 = vmul.f32 0.5, %v2891_v15  ;;  %v8425_v21 = vpop.eup %8424  ;;  %v11202_v31 = vsub.f32 %v2909_v54, %v11182_v13 }
 0x442   : > { %v8427_v0 = vpop.eup %8426  ;;  %v11204_v28 = vand.u32 4294901760, %v1959_v29  ;;  %v2894_v34 = vadd.f32 1.0, %v8423_v30  ;;  %v11207_v12 = vmul.f32 %v1952_v59, %v10999_v20  ;;  %8428 = vtanh.f32 %v1926_v55  ;;  %v11239_v59 = vpop.f32.mrf.mxu0 }
 0x443   : > { %13898 = vst [vmem:[#allocation7_spill] sm:$0xff] %v11187_v53  ;;  %v11195_v63 = vsub.f32 %v2911_v61, %v11187_v53  ;;  %v11198_v27 = vand.u32 4294901760, %v2913_v7  ;;  %v2907_v48 = vmul.f32 %v2899_v57, %v11123_v24  ;;  %v11209_v61 = vpop.f32.mrf.mxu2  ;;  %v1955_v26 = vmul.f32 %v1947_v16, %v11113_v10 }
 0x444   : > { %13901 = vst [vmem:[#allocation93_spill] sm:$0xff] %v11202_v31  ;;  %v2904_v54 = vmul.f32 0.5, %v2896_v33  ;;  %v11222_v20 = vand.u32 4294901760, %v1957_v41  ;;  %v11225_v39 = vsub.f32 %v1961_v2, %v11190_v37  ;;  %8430 = vtanh.f32 %v1924_v25 }
 0x445   : > { %13899 = vst [vmem:[#allocation69_spill] sm:$0xff] %v11195_v63  ;;  %v11212_v9 = vand.u32 4294901760, %v2907_v48  ;;  %4884 = vmatpush.msra.mxu0 %v11198_v27  ;;  %5099 = vmatpush.msra.mxu3 %v11198_v27  ;;  %v11217_v57 = vsub.f32 %v2913_v7, %v11198_v27  ;;  %v11220_v24 = vand.u32 4294901760, %v11195_v63  ;;  %v2914_v16 = vmul.f32 %v2906_v42, %v11119_v18  ;;  %v11245_v7 = vpop.f32.mrf.mxu3 }
 0x446   : > { %13900 = vst [vmem:[#allocation70_spill] sm:$0xff] %v11198_v27  ;;  %v11237_v33 = vand.u32 4294901760, %v11202_v31  ;;  %v11243_v2 = vsub.f32 %v1959_v29, %v11204_v28  ;;  %v2902_v18 = vmul.f32 0.5, %v2894_v34  ;;  %v2892_v55 = vadd.f32 1.0, %v8427_v0  ;;  %v11260_v0 = vpop.f32.mrf.mxu1 }
 0x447   : > { %13902 = vst [vmem:[#allocation96_spill] sm:$0xff] %v11209_v61  ;;  %4886 = vmatpush.msra.mxu0 %v11187_v53  ;;  %5039 = vmatpush.msra.mxu2 %v11217_v57  ;;  %v11231_v10 = vand.u32 4294901760, %v11217_v57  ;;  %v11234_v15 = vsub.f32 %v2907_v48, %v11212_v9  ;;  %v1946_v30 = vadd.f32 1.0, %v8425_v21  ;;  %v11247_v25 = vand.u32 4294901760, %v1955_v26 }
 0x448   : > { %13903 = vst [vmem:[#allocation113_spill] sm:$0xff] %v11212_v9  ;;  %5101 = vmatpush.msra.mxu3 %v11187_v53  ;;  %v4953_v42 = vsub.f32 %v11195_v63, %v11220_v24  ;;  %v8429_v34 = vpop.eup %8428  ;;  %v3958_v21 = vadd.f32 %v10927_v19, %v13778_v40  ;;  %v11265_v61 = vand.u32 4294901760, %v11225_v39  ;;  %v4959_v19 = vsub.f32 %v11202_v31, %v11237_v33 }
 0x449   : > { %13904 = vst [vmem:[#allocation95_spill] sm:$0xff] %v11217_v57  ;;  %4888 = vmatpush.msra.mxu0 %v11182_v13  ;;  %5042 = vmatpush.msra.mxu2 %v11195_v63  ;;  %v4947_v48 = vsub.f32 %v11217_v57, %v11231_v10  ;;  %v11256_v29 = vand.u32 4294901760, %v11234_v15  ;;  %v2900_v57 = vmul.f32 0.5, %v2892_v55  ;;  %v2910_v55 = vmul.f32 %v2902_v18, %v11130_v44 }
 0x44a   : > { %13905 = vst [vmem:[#allocation71_spill] sm:$0xff] %v11220_v24  ;;  %5103 = vmatpush.msra.mxu3 %v11182_v13  ;;  %v1954_v13 = vmul.f32 0.5, %v1946_v30  ;;  %v11284_v53 = vand.u32 4294901760, %v11207_v12  ;;  %v4051_v27 = vadd.f32 %v10930_v43, %v3958_v21  ;;  %v4340_v44 = vadd.f32 %v11127_v3, %v13778_v40 }
 0x44b   : > { %13906 = vst [vmem:[#allocation50_spill] sm:$0xff] %v11222_v20  ;;  %4890 = vmatpush.msra.mxu0 %v11212_v9  ;;  %5045 = vmatpush.msra.mxu2 %v11202_v31  ;;  %v11271_v63 = vand.u32 4294901760, %v4947_v48  ;;  %v11288_v48 = vand.u32 4294901760, %v4953_v42  ;;  %v11293_v31 = vsub.f32 %v1955_v26, %v11247_v25  ;;  %v2908_v30 = vmul.f32 %v2900_v57, %v11147_v46  ;;  %v11303_v42 = vpop.f32.mrf.mxu2 }
 0x44c   : > { %13907 = vst [vmem:[#allocation68_spill] sm:$0xff] %v11225_v39  ;;  %5105 = vmatpush.msra.mxu3 %v11212_v9  ;;  %v1942_v9 = vadd.f32 1.0, %v8429_v34  ;;  %v11310_v43 = vand.u32 4294901760, %v4959_v19  ;;  %v4971_v40 = vsub.f32 %v11225_v39, %v11265_v61  ;;  %v11321_v26 = vand.u32 4294901760, %v2910_v55 }
 0x44d   : > { %13908 = vst [vmem:[#allocation35_spill] sm:$0xff] %v11231_v10  ;;  %4892 = vmatpush.msra.mxu0 %v11190_v37  ;;  %4949 = vmatpush.msra.mxu1 %v11271_v63  ;;  %v11325_v57 = vsub.f32 %v11207_v12, %v11284_v53  ;;  %v11332_v21 = vand.u32 4294901760, %v11293_v31  ;;  %v1962_v19 = vmul.f32 %v1954_v13, %v11141_v38  ;;  %v11348_v38 = vpop.f32.mrf.mxu3 }
 0x44e   : > { %13909 = vst [vmem:[#allocation9_spill] sm:$0xff] %v11234_v15  ;;  %5048 = vmatpush.msra.mxu2 %v11234_v15  ;;  %5107 = vmatpush.msra.mxu3 %v11190_v37  ;;  %v4112_v12 = vadd.f32 %v10943_v35, %v4051_v27  ;;  %v4546_v27 = vpop.f32.mrf.mxu1 }
 0x44f   : > { %13910 = vst [vmem:[#allocation103_spill] sm:$0xff] %v11237_v33  ;;  %4894 = vmatpush.msra.mxu0 %v11204_v28  ;;  %4955 = vmatpush.msra.mxu1 %v11288_v48 }
 0x450   : > { %13911 = vst [vmem:[#allocation61_spill] sm:$0xff] %v11239_v59  ;;  %v11267_v59 = vand.u32 4294901760, %v2914_v16  ;;  %5051 = vmatpush.msra.mxu2 %v11225_v39  ;;  %5109 = vmatpush.msra.mxu3 %v11204_v28  ;;  %v1950_v39 = vmul.f32 0.5, %v1942_v9  ;;  %v11364_v9 = vsub.f32 %v2910_v55, %v11321_v26  ;;  %v11377_v55 = vadd.f32 %v10952_v8, %v4112_v12 }
 0x451   : > { %13912 = vst [vmem:[#allocation30_spill] sm:$0xff] %v11243_v2  ;;  %4896 = vmatpush.msra.mxu0 %v11222_v20  ;;  %4961 = vmatpush.msra.mxu1 %v11310_v43 }
 0x452   : > { %13913 = vst [vmem:[#allocation5_spill] sm:$0xff] %v11245_v7  ;;  %v2912_v7 = vmul.f32 %v2904_v54, %v11109_v17  ;;  %v8431_v17 = vpop.eup %8430  ;;  %v11280_v54 = vand.u32 4294901760, %v11243_v2  ;;  %5054 = vmatpush.msra.mxu2 %v11243_v2  ;;  %5111 = vmatpush.msra.mxu3 %v11222_v20 }
 0x453   : > { %13914 = vst [vmem:[#allocation106_spill] sm:$0xff] %v11247_v25  ;;  %4898 = vmatpush.msra.mxu0 %v11247_v25  ;;  %v4615_v12 = vpop.f32.mrf.mxu2 }
 0x454   : > { %13915 = vst [vmem:[#allocation51_spill] sm:$0xff] %v11256_v29  ;;  %v11298_v18 = vand.u32 4294901760, %v2912_v7  ;;  %v4977_v46 = vsub.f32 %v11243_v2, %v11280_v54  ;;  %5113 = vmatpush.msra.mxu3 %v11247_v25  ;;  %v13938_v2 = vmov 0.0  }
 0x455   : > { %13916 = vst [vmem:[#allocation6_spill] sm:$0xff] %v11260_v0  ;;  %v11276_v0 = vsub.f32 %v1957_v41, %v11222_v20  ;;  %v4965_v41 = vsub.f32 %v11234_v15, %v11256_v29  ;;  %v4493_v15 = vpop.f32.mrf.mxu0  ;;  %4900 = vmatpush.msra.mxu0 %v13938_v2  ;;  %v11373_v20 = vand.u32 4294901760, %v1962_v19 }
 0x456   : > { %13917 = vst [vmem:[#allocation8_spill] sm:$0xff] %v11265_v61  ;;  %5115 = vmatpush.msra.mxu3 %v13938_v2 }
 0x457   : > { %13918 = vst [vmem:[#allocation49_spill] sm:$0xff] %v11267_v59  ;;  %v11315_v3 = vand.u32 4294901760, %v11276_v0  ;;  %v11329_v34 = vand.u32 4294901760, %v4965_v41  ;;  %v11345_v41 = vand.u32 4294901760, %v2908_v30  ;;  %5057 = vmatpush.msra.mxu2 %v11276_v0  ;;  %4902 = vmatpush.msra.mxu0 %v13938_v2 }
 0x458   : > { %13919 = vst [vmem:[#allocation57_spill] sm:$0xff] %v11271_v63  ;;  %v11306_v63 = vsub.f32 %v2914_v16, %v11267_v59  ;;  %v1940_v16 = vadd.f32 1.0, %v8431_v17  ;;  %v11343_v17 = vsub.f32 %v2912_v7, %v11298_v18  ;;  %v11367_v7 = vand.u32 4294901760, %v11325_v57  ;;  %5117 = vmatpush.msra.mxu3 %v13938_v2 }
 0x459   : > { %13920 = vst [vmem:[#allocation67_spill] sm:$0xff] %v11276_v0  ;;  %4967 = vmatpush.msra.mxu1 %v11329_v34  ;;  %v4983_v35 = vsub.f32 %v11276_v0, %v11315_v3  ;;  %v4989_v0 = vsub.f32 %v11293_v31, %v11332_v21  ;;  %5060 = vmatpush.msra.mxu2 %v11293_v31 }
 0x45a   : > { %13921 = vst [vmem:[#allocation115_spill] sm:$0xff] %v11280_v54  ;;  %v11357_v13 = vand.u32 4294901760, %v11306_v63  ;;  %4904 = vmatpush.msra.mxu0 %v13938_v2  ;;  %5119 = vmatpush.msra.mxu3 %v13938_v2 }
 0x45b   : > { %13922 = vst [vmem:[#allocation74_spill] sm:$0xff] %v11288_v48  ;;  %v11337_v48 = vadd.f32 %v10915_v62, %v13771_v52  ;;  %v11352_v62 = vand.u32 4294901760, %v4971_v40  ;;  %v11392_v8 = vand.u32 4294901760, %v4983_v35  ;;  %5063 = vmatpush.msra.mxu2 %v13938_v2  ;;  %v11411_v35 = vand.u32 4294901760, %v4989_v0 }
 0x45c   : > { %13923 = vst [vmem:[#allocation72_spill] sm:$0xff] %v11293_v31  ;;  %4906 = vmatpush.msra.mxu0 %v13938_v2  ;;  %5121 = vmatpush.msra.mxu3 %v13938_v2 }
 0x45d   : > { %13924 = vst [vmem:[#allocation90_spill] sm:$0xff] %v11298_v18  ;;  %4973 = vmatpush.msra.mxu1 %v11352_v62  ;;  %5066 = vmatpush.msra.mxu2 %v13938_v2 }
 0x45e   : > { %13925 = vst [vmem:[#allocation47_spill] sm:$0xff] %v11306_v63  ;;  %5154 = vmatpush.msrb.mxu0 %v11231_v10 }
 0x45f   : > { %13926 = vst [vmem:[#allocation26_spill] sm:$0xff] %v11310_v43  ;;  %v4433_v43 = vadd.f32 %v11151_v32, %v4340_v44  ;;  %v11361_v32 = vand.u32 4294901760, %v4977_v46  ;;  %v1948_v44 = vmul.f32 0.5, %v1940_v16  ;;  %v1958_v46 = vmul.f32 %v1950_v39, %v11171_v4  ;;  %5069 = vmatpush.msra.mxu2 %v13938_v2 }
 0x460   : > { %13927 = vst [vmem:[#allocation20_spill] sm:$0xff] %v11315_v3  ;;  %v4316_v16 = vadd.f32 %v10964_v56, %v9967_v14  ;;  %v5329_v4 = vsub.f32 %v11306_v63, %v11357_v13  ;;  %v3722_v14 = vpop.xlane.xlu1 %3721  ;;  %v11405_v56 = vand.u32 4294901760, %v11364_v9  ;;  %5158 = vmatpush.msrb.mxu0 %v11220_v24 }
 0x461   : > { %13928 = vst [vmem:[#allocation92_spill] sm:$0xff] %v11321_v26  ;;  %v4494_v40 = vadd.f32 %v4493_v15, %v4433_v43  ;;  %v11383_v15 = vand.u32 4294901760, %v11343_v17  ;;  %v11386_v43 = vsub.f32 %v2908_v30, %v11345_v41  ;;  %4979 = vmatpush.msra.mxu1 %v11361_v32  ;;  %v1956_v30 = vmul.f32 %v1948_v44, %v11178_v22 }
 0x462   : > { %13929 = vst [vmem:[#allocation42_spill] sm:$0xff] %v11325_v57  ;;  %5072 = vmatpush.msra.mxu2 %v13938_v2  ;;  %5162 = vmatpush.msrb.mxu0 %v11237_v33  ;;  %v13968_v33 = vld [vmem:[#allocation34_spill] sm:$0xff] }
 0x463   : > { %13930 = vst [vmem:[#allocation4_spill] sm:$0xff] %v11329_v34  ;;  %v3719_v34 = vpop.xlane.xlu2 %3718  ;;  %4985 = vmatpush.msra.mxu1 %v11392_v8  ;;  %v5335_v44 = vsub.f32 %v11343_v17, %v11383_v15  ;;  %v11427_v0 = vand.u32 4294901760, %v11386_v43 }
 0x464   : > { %13931 = vst [vmem:[#allocation100_spill] sm:$0xff] %v11343_v17  ;;  %v3725_v25 = vmul.f32 %v3719_v34, %v13802_v36  ;;  %5266 = vmatpush.msrb.mxu2 %v11267_v59  ;;  %5166 = vmatpush.msrb.mxu0 %v11256_v29 }
 0x465   : > { %13932 = vst [vmem:[#allocation32_spill] sm:$0xff] %v11345_v41  ;;  %4991 = vmatpush.msra.mxu1 %v11411_v35 }
 0x466   : > { %13933 = vst [vmem:[#allocation99_spill] sm:$0xff] %v11352_v62  ;;  %v4547_v62 = vadd.f32 %v4546_v27, %v4494_v40  ;;  %v11397_v39 = vsub.f32 %v10872_v23, %v3725_v25  ;;  %v11400_v34 = vsub.f32 %v10867_v5, %v3725_v25  ;;  %v3726_v23 = vmul.f32 %v3722_v14, %v13802_v36 }
 0x467   : > { %13934 = vst [vmem:[#allocation43_spill] sm:$0xff] %v11357_v13  ;;  %v11414_v5 = vsub.f32 %v1962_v19, %v11373_v20  ;;  %v11416_v25 = vand.u32 4294901760, %v1958_v46  ;;  %v4421_v19 = vadd.f32 %v10988_v49, %v4316_v16  ;;  %v5341_v49 = vsub.f32 %v11364_v9, %v11405_v56  ;;  %v4660_v16 = vpop.f32.mrf.mxu3  ;;  %4997 = vmatpush.msra.mxu1 %v13938_v2 }
 0x468   : > { %13935 = vst [vmem:[#allocation39_spill] sm:$0xff] %v11361_v32  ;;  %v3739_v27 = vmul.f32 %v11397_v39, %v11397_v39  ;;  %v3740_v22 = vmul.f32 %v11400_v34, %v11400_v34  ;;  %v11431_v40 = vsub.f32 %v10883_v45, %v3726_v23  ;;  %v11434_v14 = vsub.f32 %v10877_v58, %v3726_v23 }
 0x469   : > { %13936 = vst [vmem:[#allocation58_spill] sm:$0xff] %v11364_v9  ;;  %v4616_v32 = vadd.f32 %v4615_v12, %v4547_v62  ;;  %v11444_v45 = vand.u32 4294901760, %v1956_v30  ;;  %v4479_v58 = vadd.f32 %v11135_v11, %v4421_v19  ;;  %v3716_v12 = vpop.xlane.xlu0 %3715  ;;  %v11454_v23 = vand.u32 4294901760, %v5335_v44  ;;  %v8175_v19 = vld [vmem:[%s12956_s2 + $0x20] sm:$0xff]  ;;  %5003 = vmatpush.msra.mxu1 %v13938_v2  ;;  %5268 = vmatpush.msrb.mxu2 %v11298_v18 }
 0x46a   : > { %13937 = vst [vmem:[#allocation77_spill] sm:$0xff] %v11367_v7  ;;  %v3749_v31 = vadd.f32 %v3740_v22, %v3739_v27  ;;  %v3741_v62 = vmul.f32 %v11431_v40, %v11431_v40  ;;  %v5347_v11 = vsub.f32 %v11386_v43, %v11427_v0  ;;  %v11459_v27 = vand.u32 4294901760, %v11414_v5  ;;  %5170 = vmatpush.msrb.mxu0 %v11265_v61 }
 0x46b   : > { %13939 = vst [vmem:[#allocation75_spill] sm:$0xff] %v11383_v15  ;;  %v11462_v22 = vsub.f32 %v1958_v46, %v11416_v25  ;;  %v5359_v44 = vsub.f32 %v11325_v57, %v11367_v7  ;;  %5009 = vmatpush.msra.mxu1 %v13938_v2  ;;  %5270 = vmatpush.msrb.mxu2 %v11321_v26 }
 0x46c   : > { %13940 = vst [vmem:[#allocation79_spill] sm:$0xff] %v11386_v43  ;;  %3750 = vadd.xlane.f32.xlu1 %v3749_v31  ;;  %v4324_v31 = vadd.f32 %v11006_v6, %v10035_v51  ;;  %v3713_v51 = vpop.xlane.xlu1 %3712  ;;  %v11483_v6 = vsub.f32 %v1956_v30, %v11444_v45  ;;  %v11495_v30 = vand.u32 4294901760, %v5347_v11  ;;  %v13964_v11 = vld [vmem:[#allocation84_spill] sm:$0xff]  ;;  %5174 = vmatpush.msrb.mxu0 %v11280_v54  ;;  %v13977_v54 = vld [vmem:[#allocation46_spill] sm:$0xff] }
 0x46d   : > { %13941 = vst [vmem:[#allocation83_spill] sm:$0xff] %v11392_v8  ;;  %v11438_v8 = vand.u32 4294901760, %v5329_v4  ;;  %v3742_v4 = vmul.f32 %v11434_v14, %v11434_v14  ;;  %5015 = vmatpush.msra.mxu1 %v13938_v2  ;;  %5272 = vmatpush.msrb.mxu2 %v11345_v41 }
 0x46e   : > { %13942 = vst [vmem:[#allocation73_spill] sm:$0xff] %v11400_v34  ;;  %5178 = vmatpush.msrb.mxu0 %v11315_v3  ;;  %v13985_v3 = vld [vmem:[#allocation113_spill] sm:$0xff] }
 0x46f   : > { %13943 = vst [vmem:[#allocation63_spill] sm:$0xff] %v11405_v56  ;;  %5331 = vmatpush.msrb.mxu3 %v11438_v8  ;;  %5274 = vmatpush.msrb.mxu2 %v11373_v20 }
 0x470   : > { %13944 = vst [vmem:[#allocation64_spill] sm:$0xff] %v11411_v35  ;;  %v13955_v35 = vld [vmem:[#allocation41_spill] sm:$0xff]  ;;  %5182 = vmatpush.msrb.mxu0 %v11332_v21 }
 0x471   : > { %13945 = vst [vmem:[#allocation65_spill] sm:$0xff] %v11414_v5  ;;  %v4234_v46 = vadd.f32 %v13955_v35, %v11377_v55  ;;  %5337 = vmatpush.msrb.mxu3 %v11454_v23  ;;  %v3723_v55 = vmul.f32 %v3713_v51, %v13802_v36  ;;  %v4868_v35 = vsel %vm998_vm9, %v8175_v19, 0  ;;  %v13962_v19 = vld [vmem:[#allocation66_spill] sm:$0xff]  ;;  %5276 = vmatpush.msrb.mxu2 %v11284_v53 }
 0x472   : > { %13946 = vst [vmem:[#allocation85_spill] sm:$0xff] %v11427_v0  ;;  %5186 = vmatpush.msrb.mxu0 %v13938_v2 }
 0x473   : > { %13947 = vst [vmem:[#allocation86_spill] sm:$0xff] %v11431_v40  ;;  %v11480_v40 = vand.u32 4294901760, %v5341_v49  ;;  %v5353_v49 = vsub.f32 %v11414_v5, %v11459_v27  ;;  %5278 = vmatpush.msrb.mxu2 %v11416_v25 }
 0x474   : > { %13948 = vst [vmem:[#allocation111_spill] sm:$0xff] %v11434_v14  ;;  %v11476_v14 = vadd.f32 %v4660_v16, %v4616_v32  ;;  %v3752_v32 = vadd.f32 %v3742_v4, %v3741_v62  ;;  %v13961_v62 = vld [vmem:[#allocation101_spill] sm:$0xff]  ;;  %5190 = vmatpush.msrb.mxu0 %v13938_v2 }
 0x475   : > { %13949 = vst [vmem:[#allocation87_spill] sm:$0xff] %v11438_v8  ;;  %v13954_v8 = vld [vmem:[#allocation44_spill] sm:$0xff]  ;;  %5343 = vmatpush.msrb.mxu3 %v11480_v40  ;;  %v11506_v4 = vsub.f32 %v13961_v62, %v3723_v55  ;;  %v13966_v62 = vld [vmem:[#allocation105_spill] sm:$0xff]  ;;  %v11535_v34 = vand.u32 4294901760, %v5353_v49  ;;  %v13974_v49 = vld [vmem:[#allocation55_spill] sm:$0xff]  ;;  %5280 = vmatpush.msrb.mxu2 %v11444_v45 }
 0x476   : > { %13950 = vst [vmem:[#allocation104_spill] sm:$0xff] %v11444_v45  ;;  %v4529_v10 = vadd.f32 %v13954_v8, %v4479_v58  ;;  %v3724_v8 = vmul.f32 %v3716_v12, %v13802_v36  ;;  %v13958_v58 = vld [vmem:[#allocation33_spill] sm:$0xff]  ;;  %v11500_v12 = vand.u32 4294901760, %v11462_v22  ;;  %v4043_v29 = vadd.f32 %v13966_v62, %v11162_v60  ;;  %3753 = vadd.xlane.f32.xlu2 %v3752_v32 }
 0x477   : > { %13951 = vst [vmem:[#allocation88_spill] sm:$0xff] %v11454_v23  ;;  %v11491_v16 = vadd.f32 %v13958_v58, %v4234_v46  ;;  %v11509_v46 = vsub.f32 %v13962_v19, %v3723_v55  ;;  %v4332_v58 = vadd.f32 %v13964_v11, %v13771_v52  ;;  %5349 = vmatpush.msrb.mxu3 %v11495_v30  ;;  %v13967_v55 = vld [vmem:[#allocation38_spill] sm:$0xff]  ;;  %v13969_v11 = vld [vmem:[#allocation25_spill] sm:$0xff] }
 0x478   : > { %13952 = vst [vmem:[#allocation107_spill] sm:$0xff] %v11459_v27  ;;  %v4604_v51 = vadd.f32 %v11167_v47, %v4529_v10  ;;  %v11518_v47 = vand.u32 4294901760, %v11483_v6  ;;  %v11520_v10 = vand.u32 4294901760, %v4868_v35  ;;  %v11525_v19 = vsub.f32 %v13967_v55, %v3724_v8  ;;  %v13970_v23 = vld [vmem:[#allocation37_spill] sm:$0xff]  ;;  %v13975_v55 = vld [vmem:[#allocation7_spill] sm:$0xff]  ;;  %5282 = vmatpush.msrb.mxu2 %v13938_v2  ;;  %5194 = vmatpush.msrb.mxu0 %v13938_v2 }
 0x479   : > { %13953 = vst [vmem:[#allocation109_spill] sm:$0xff] %v11462_v22  ;;  %v11528_v52 = vsub.f32 %v13968_v33, %v3724_v8  ;;  %v4425_v24 = vadd.f32 %v13970_v23, %v4324_v31  ;;  %v5365_v60 = vsub.f32 %v11462_v22, %v11500_v12  ;;  %v13972_v33 = vld [vmem:[#allocation70_spill] sm:$0xff]  ;;  %v13973_v23 = vld [vmem:[#allocation36_spill] sm:$0xff]  ;;  %5355 = vmatpush.msrb.mxu3 %v11535_v34  ;;  %v11551_v8 = vand.u32 4294901760, %v5359_v44 }
 0x47a   : > { %13956 = vst [vmem:[#allocation110_spill] sm:$0xff] %v11480_v40  ;;  %v4672_v40 = vadd.f32 %v11476_v14, %v11491_v16  ;;  %v11540_v62 = vadd.f32 %v11180_v1, %v4604_v51  ;;  %5221 = vmatpush.msrb.mxu1 %v13972_v33  ;;  %v4429_v31 = vadd.f32 %v13973_v23, %v4332_v58 }
 0x47b   : > { %13957 = vst [vmem:[#allocation112_spill] sm:$0xff] %v11483_v6  ;;  %v5371_v1 = vsub.f32 %v11483_v6, %v11518_v47  ;;  %v11556_v32 = vsub.f32 %v4868_v35, %v11520_v10  ;;  %v3737_v58 = vmul.f32 %v11525_v19, %v11525_v19  ;;  %v3738_v44 = vmul.f32 %v11528_v52, %v11528_v52  ;;  %v13978_v35 = vld [vmem:[#allocation61_spill] sm:$0xff] }
 0x47c   : > { %13959 = vst [vmem:[#allocation22_spill] sm:$0xff] %v11495_v30  ;;  %v4222_v30 = vadd.f32 %v13969_v11, %v11165_v50  ;;  %4673 = vadd.xlane.f32.xlu1 %v4672_v40  ;;  %v3735_v50 = vmul.f32 %v11506_v4, %v11506_v4  ;;  %v3736_v40 = vmul.f32 %v11509_v46, %v11509_v46  ;;  %v13976_v11 = vld [vmem:[#allocation21_spill] sm:$0xff] }
 0x47d   : > { %13960 = vst [vmem:[#allocation114_spill] sm:$0xff] %v11500_v12  ;;  %5223 = vmatpush.msrb.mxu1 %v13975_v55  ;;  %v4047_v23 = vadd.f32 %v13976_v11, %v11337_v48  ;;  %v4489_v61 = vadd.f32 %v13978_v35, %v4429_v31  ;;  %5361 = vmatpush.msrb.mxu3 %v11551_v8  ;;  %v13981_v11 = vld [vmem:[#allocation6_spill] sm:$0xff] }
 0x47e   : > { %13963 = vst [vmem:[#allocation29_spill] sm:$0xff] %v11509_v46  ;;  %v11559_v51 = vadd.f32 %v13974_v49, %v4222_v30  ;;  %v11573_v30 = vand.u32 4294901760, %v5365_v60  ;;  %v13979_v49 = vld [vmem:[#allocation48_spill] sm:$0xff]  ;;  %v3743_v33 = vadd.f32 %v3736_v40, %v3735_v50  ;;  %v13980_v46 = vld [vmem:[#allocation53_spill] sm:$0xff]  ;;  %v11586_v60 = vand.u32 4294901760, %v11556_v32  ;;  %v13984_v31 = vld [vmem:[#allocation82_spill] sm:$0xff]  ;;  %5284 = vmatpush.msrb.mxu2 %v13938_v2  ;;  %5198 = vmatpush.msrb.mxu0 %v13938_v2 }
 0x47f   : > { %13965 = vst [vmem:[#allocation76_spill] sm:$0xff] %v11518_v47  ;;  %5225 = vmatpush.msrb.mxu1 %v13979_v49  ;;  %v4102_v35 = vadd.f32 %v13984_v31, %v4043_v29  ;;  %v3746_v50 = vadd.f32 %v3738_v44, %v3737_v58  ;;  %v13986_v40 = vld [vmem:[#allocation52_spill] sm:$0xff]  ;;  %5075 = vmatmul.f32.vlgmr.msra.gmra.mxu2 %v11556_v32 }
 0x480   : > { %13971 = vst [vmem:[#allocation60_spill] sm:$0xff] %v11535_v34  ;;  %v4484_v34 = vadd.f32 %v13977_v54, %v4425_v24  ;;  %v4663_v55 = vadd.f32 %v11540_v62, %v11559_v51  ;;  %v4541_v24 = vadd.f32 %v13981_v11, %v4489_v61  ;;  %5367 = vmatpush.msrb.mxu3 %v11573_v30  ;;  %v11583_v54 = vand.u32 4294901760, %v5371_v1  ;;  %v13987_v61 = vld [vmem:[#allocation96_spill] sm:$0xff] }
 0x481   : > { %13983 = vst [vmem:[#allocation80_spill] sm:$0xff] %v11586_v60  ;;  %5227 = vmatpush.msrb.mxu1 %v13985_v3  ;;  %3747 = vadd.xlane.f32.xlu2 %v3746_v50  ;;  %v4910_v29 = vsub.f32 %v11556_v32, %v11586_v60  ;;  %v13988_v11 = vld [vmem:[#allocation108_spill] sm:$0xff]  ;;  %v13993_v50 = vld [vmem:[#allocation50_spill] sm:$0xff] }
 0x482   : > { %v4535_v48 = vadd.f32 %v13980_v46, %v4484_v34  ;;  %13982 = vst [vmem:[#allocation81_spill] sm:$0xff] %v11583_v54  ;;  %v4107_v34 = vadd.f32 %v13986_v40, %v4047_v23  ;;  %5373 = vmatpush.msrb.mxu3 %v11583_v54  ;;  %3744 = vadd.xlane.f32.xlu0 %v3743_v33  ;;  %v13991_v23 = vld [vmem:[#allocation59_spill] sm:$0xff] }
 0x483   : > { %v4612_v1 = vadd.f32 %v11303_v42, %v4541_v24  ;;  %5229 = vmatpush.msrb.mxu1 %v11190_v37  ;;  %v4153_v58 = vadd.f32 %v13988_v11, %v4102_v35  ;;  %v13990_v42 = vld [vmem:[#allocation23_spill] sm:$0xff]  ;;  %v13992_v24 = vld [vmem:[#allocation5_spill] sm:$0xff]  ;;  %v11617_v40 = vand.u32 4294901760, %v4910_v29  ;;  %v13996_v11 = vld [vmem:[#allocation24_spill] sm:$0xff]  ;;  %5286 = vmatpush.msrb.mxu2 %v13938_v2 }
 0x484   : > { %4664 = vadd.xlane.f32.xlu1 %v4663_v55  ;;  %v4608_v46 = vadd.f32 %v13987_v61, %v4535_v48  ;;  %5379 = vmatpush.msrb.mxu3 %v13938_v2  ;;  %v13989_v55 = vld [vmem:[#allocation18_spill] sm:$0xff]  ;;  %v8176_v29 = vld [vmem:[%s12956_s2 + $0x28] sm:$0xff] }
 0x485   : > { %v4159_v44 = vadd.f32 %v13989_v55, %v4107_v34  ;;  %5231 = vmatpush.msrb.mxu1 %v11204_v28  ;;  %v4226_v33 = vadd.f32 %v13990_v42, %v4153_v58  ;;  %v11613_v35 = vadd.f32 %v11348_v38, %v4612_v1  ;;  %13994 = vst [vmem:[#allocation56_spill] sm:$0xff] %v11617_v40  ;;  %v13995_v34 = vld [vmem:[#allocation27_spill] sm:$0xff]  ;;  %v13997_v38 = vld [vmem:[#allocation106_spill] sm:$0xff]  ;;  %v4871_v55 = vsel %vm998_vm9, %v8176_v29, 0 }
 0x486   : > { %5385 = vmatpush.msrb.mxu3 %v13938_v2  ;;  %v11610_v31 = vadd.f32 %v13992_v24, %v4608_v46  ;;  %4912 = vmatmul.f32.vlgmr.msra.gmra.mxu0 %v11617_v40 }
 0x487   : > { %v4230_v48 = vadd.f32 %v13991_v23, %v4159_v44  ;;  %5233 = vmatpush.msrb.mxu1 %v13993_v50  ;;  %v11622_v61 = vadd.f32 %v13995_v34, %v4226_v33  ;;  %5125 = vmatmul.f32.vlgmr.msra.gmra.mxu3 %v11586_v60  ;;  %v11696_v44 = vand.u32 4294901760, %v4871_v55  ;;  %v8177_v23 = vld [vmem:[%s12956_s2 + $0x30] sm:$0xff] }
 0x488   : > { %5391 = vmatpush.msrb.mxu3 %v13938_v2  ;;  %5421 = vmatpush.msra.mxu0 %v11306_v63 }
 0x489   : > { %v11625_v58 = vadd.f32 %v13996_v11, %v4230_v48  ;;  %5235 = vmatpush.msrb.mxu1 %v13997_v38  ;;  %v4666_v1 = vadd.f32 %v11610_v31, %v11622_v61  ;;  %5288 = vmatpush.msrb.mxu2 %v13938_v2  ;;  %v11699_v42 = vsub.f32 %v4871_v55, %v11696_v44  ;;  %v4874_v48 = vsel %vm998_vm9, %v8177_v23, 0  ;;  %v8178_v23 = vld [vmem:[%s12956_s2 + $0x38] sm:$0xff] }
 0x48a   : > { %5397 = vmatpush.msrb.mxu3 %v13938_v2  ;;  %5424 = vmatpush.msra.mxu0 %v11343_v17  ;;  %v11715_v11 = vand.u32 4294901760, %v4874_v48  ;;  %v14014_v17 = vld [vmem:[#allocation111_spill] sm:$0xff] }
 0x48b   : > { %v4669_v46 = vadd.f32 %v11613_v35, %v11625_v58  ;;  %4667 = vadd.xlane.f32.xlu0 %v4666_v1  ;;  %5237 = vmatpush.msrb.mxu1 %v13938_v2  ;;  %13998 = vst [vmem:[#allocation54_spill] sm:$0xff] %v11699_v42  ;;  %v11703_v33 = vand.u32 4294901760, %v11699_v42 }
 0x48c   : > { %5603 = vmatpush.msra.mxu3 %v11267_v59  ;;  %5536 = vmatpush.msra.mxu2 %v11357_v13  ;;  %v11720_v1 = vsub.f32 %v4874_v48, %v11715_v11 }
 0x48d   : > { %4670 = vadd.xlane.f32.xlu2 %v4669_v46  ;;  %5239 = vmatpush.msrb.mxu1 %v13938_v2  ;;  %13999 = vst [vmem:[#allocation98_spill] sm:$0xff] %v11703_v33 }
 0x48e   : > { %5605 = vmatpush.msra.mxu3 %v11298_v18  ;;  %5427 = vmatpush.msra.mxu0 %v11364_v9  ;;  %14001 = vst [vmem:[#allocation14_spill] sm:$0xff] %v11720_v1  ;;  %v11724_v55 = vand.u32 4294901760, %v11720_v1 }
 0x48f   : > { %5540 = vmatpush.msra.mxu2 %v11383_v15  ;;  %5241 = vmatpush.msrb.mxu1 %v13938_v2 }
 0x490   : > { %5607 = vmatpush.msra.mxu3 %v11321_v26  ;;  %5430 = vmatpush.msra.mxu0 %v11386_v43  ;;  %14002 = vst [vmem:[#allocation13_spill] sm:$0xff] %v11724_v55 }
 0x491   : > { %5544 = vmatpush.msra.mxu2 %v11405_v56  ;;  %5243 = vmatpush.msrb.mxu1 %v13938_v2 }
 0x492   : > { %5609 = vmatpush.msra.mxu3 %v11345_v41  ;;  %5433 = vmatpush.msra.mxu0 %v11414_v5 }
 0x493   : > { %5017 = vmatmul.f32.vlgmr.msra.gmra.mxu1 %v11520_v10  ;;  %5548 = vmatpush.msra.mxu2 %v11427_v0 }
 0x494   : > { %5481 = vmatpush.msra.mxu1 %v11267_v59  ;;  %5611 = vmatpush.msra.mxu3 %v11373_v20 }
 0x495   : > { %5436 = vmatpush.msra.mxu0 %v11325_v57  ;;  %5552 = vmatpush.msra.mxu2 %v11459_v27 }
 0x496   : > { %5483 = vmatpush.msra.mxu1 %v11298_v18  ;;  %5613 = vmatpush.msra.mxu3 %v11284_v53 }
 0x497   : > { %5439 = vmatpush.msra.mxu0 %v11462_v22  ;;  %5556 = vmatpush.msra.mxu2 %v11367_v7 }
 0x498   : > { %5485 = vmatpush.msra.mxu1 %v11321_v26  ;;  %5615 = vmatpush.msra.mxu3 %v11416_v25 }
 0x499   : > { %5442 = vmatpush.msra.mxu0 %v11483_v6  ;;  %5560 = vmatpush.msra.mxu2 %v11500_v12 }
 0x49a   : > { %5487 = vmatpush.msra.mxu1 %v11345_v41  ;;  %5617 = vmatpush.msra.mxu3 %v11444_v45 }
 0x49b   : > { %5564 = vmatpush.msra.mxu2 %v11518_v47  ;;  %5445 = vmatpush.msra.mxu0 %v13938_v2 }
 0x49c   : > { %5489 = vmatpush.msra.mxu1 %v11373_v20  ;;  %5619 = vmatpush.msra.mxu3 %v13938_v2 }
 0x49d   : > { %5448 = vmatpush.msra.mxu0 %v13938_v2  ;;  %5568 = vmatpush.msra.mxu2 %v13938_v2 }
 0x49e   : > { %5491 = vmatpush.msra.mxu1 %v11284_v53  ;;  %5621 = vmatpush.msra.mxu3 %v13938_v2 }
 0x49f   : > { %5451 = vmatpush.msra.mxu0 %v13938_v2  ;;  %5572 = vmatpush.msra.mxu2 %v13938_v2 }
 0x4a0   : > { %5493 = vmatpush.msra.mxu1 %v11416_v25  ;;  %5623 = vmatpush.msra.mxu3 %v13938_v2 }
 0x4a1   : > { %5454 = vmatpush.msra.mxu0 %v13938_v2  ;;  %5576 = vmatpush.msra.mxu2 %v13938_v2 }
 0x4a2   : > { %5495 = vmatpush.msra.mxu1 %v11444_v45  ;;  %5625 = vmatpush.msra.mxu3 %v13938_v2 }
 0x4a3   : > { %5580 = vmatpush.msra.mxu2 %v13938_v2  ;;  %5021 = vmatmul.f32.gmra.mxu1 %v11696_v44 }
 0x4a4   : > { %5497 = vmatpush.msra.mxu1 %v13938_v2  ;;  %5080 = vmatmul.f32.gmra.mxu2 %v11699_v42 }
 0x4a5   : > { %5131 = vmatmul.f32.gmra.mxu3 %v11703_v33 }
 0x4a6   : > { %5499 = vmatpush.msra.mxu1 %v13938_v2 }
 0x4a8   : > { %5501 = vmatpush.msra.mxu1 %v13938_v2 }
 0x4aa   : > { %5503 = vmatpush.msra.mxu1 %v13938_v2  ;;  %v4918_v2 = vsub.f32 %v11699_v42, %v11703_v33 }
 0x4ab   : > { %5025 = vmatmul.f32.gmra.mxu1 %v11715_v11 }
 0x4ac   : > { %v11713_v34 = vand.u32 4294901760, %v4918_v2  ;;  %5085 = vmatmul.f32.gmra.mxu2 %v11720_v1  ;;  %v4926_v2 = vsub.f32 %v11720_v1, %v11724_v55 }
 0x4ad   : > { %5137 = vmatmul.f32.gmra.mxu3 %v11724_v55 }
 0x4ae   : > { %14000 = vst [vmem:[#allocation11_spill] sm:$0xff] %v11713_v34  ;;  %4920 = vmatmul.f32.gmra.mxu0 %v11713_v34  ;;  %v11735_v12 = vand.u32 4294901760, %v4926_v2 }
 0x4b0   : > { %14003 = vst [vmem:[#allocation16_spill] sm:$0xff] %v11735_v12 }
 0x4b6   : > { %4928 = vmatmul.f32.gmra.mxu0 %v11735_v12 }
 0x4df   : > { %v3751_v24 = vpop.xlane.xlu1 %3750 }
 0x4e0   : > { %v3757_v46 = vmul.f32 %v3751_v24, %v13802_v36  ;;  %v4877_v24 = vsel %vm998_vm9, %v8178_v23, 0 }
 0x4e1   : > { %v11737_v6 = vand.u32 4294901760, %v4877_v24 }
 0x4e2   : > { %v3761_v29 = vadd.f32 1e-06, %v3757_v46 }
 0x4e3   : > { %v11742_v27 = vsub.f32 %v4877_v24, %v11737_v6  ;;  %5029 = vmatmul.f32.gmra.mxu1 %v11737_v6 }
 0x4e4   : > { %8432 = vrsqrt.f32 %v3761_v29  ;;  %vm3789_vm13 = vweird.f32 %v3761_v29 }
 0x4e5   : > { %14004 = vst [vmem:[#allocation28_spill] sm:$0xff] %v11742_v27  ;;  %5090 = vmatmul.f32.gmra.mxu2 %v11742_v27 }
 0x4e9   : > { %v3754_v48 = vpop.xlane.xlu2 %3753 }
 0x4ea   : > { %v3758_v46 = vmul.f32 %v3754_v48, %v13802_v36  ;;  %v8433_v57 = vpop.eup %8432 }
 0x4eb   : > { %v3784_v2 = vmul.f32 %v8433_v57, %v3761_v29  ;;  %vm3790_vm9 = vweird.f32 %v8433_v57  ;;  %5245 = vmatmul.f32.vlgmr.msrb.gmra.mxu1 %v11520_v10 }
 0x4ec   : > { %v3762_v22 = vadd.f32 1e-06, %v3758_v46  ;;  %v11757_v46 = vand.u32 4294901760, %v11742_v27  ;;  %vm3791_vm14 = vmor %vm3789_vm13, %vm3790_vm9 }
 0x4ed   : > { %v3785_v0 = vmul.f32 %v8433_v57, %v3784_v2  ;;  %5294 = vmatmul.f32.vlgmr.msrb.gmra.mxu2 %v11617_v40  ;;  %v14018_v40 = vld [vmem:[#allocation10_spill] sm:$0xff] }
 0x4ee   : > { %8434 = vrsqrt.f32 %v3762_v22  ;;  %14007 = vst [vmem:[#allocation17_spill] sm:$0xff] %v11757_v46  ;;  %5143 = vmatmul.f32.gmra.mxu3 %v11757_v46  ;;  %vm3799_vm0 = vweird.f32 %v3762_v22 }
 0x4ef   : > { %v4674_v47 = vpop.xlane.xlu1 %4673 }
 0x4f0   : > { %v4678_v7 = vmul.f32 %v4674_v47, %v13802_v36 }
 0x4f2   : > { %v11746_v23 = vsub.f32 %v11491_v16, %v4678_v7  ;;  %v11749_v48 = vsub.f32 %v11476_v14, %v4678_v7  ;;  %v4934_v16 = vsub.f32 %v11742_v27, %v11757_v46  ;;  %v3786_v7 = vmul.f32 0.5, %v3785_v0 }
 0x4f3   : > { %5249 = vmatmul.f32.gmra.mxu1 %v11696_v44 }
 0x4f4   : > { %14005 = vst [vmem:[#allocation91_spill] sm:$0xff] %v11746_v23  ;;  %v4693_v47 = vmul.f32 %v11746_v23, %v11746_v23  ;;  %v4694_v24 = vmul.f32 %v11749_v48, %v11749_v48  ;;  %v3748_v43 = vpop.xlane.xlu2 %3747  ;;  %v11763_v15 = vand.u32 4294901760, %v4934_v16  ;;  %v3787_v9 = vsub.f32 1.5, %v3786_v7 }
 0x4f5   : > { %14006 = vst [vmem:[#allocation19_spill] sm:$0xff] %v11749_v48  ;;  %v3745_v23 = vpop.xlane.xlu0 %3744  ;;  %v8435_v48 = vpop.eup %8434  ;;  %v3756_v2 = vmul.f32 %v3748_v43, %v13802_v36  ;;  %5302 = vmatmul.f32.gmra.mxu2 %v11713_v34 }
 0x4f6   : > { %v4704_v5 = vadd.f32 %v4694_v24, %v4693_v47  ;;  %v3755_v47 = vmul.f32 %v3745_v23, %v13802_v36  ;;  %v3794_v24 = vmul.f32 %v8435_v48, %v3762_v22  ;;  %4936 = vmatmul.f32.gmra.mxu0 %v11763_v15  ;;  %5399 = vmatmul.f32.vlgmr.msrb.gmra.mxu3 %v11520_v10  ;;  %vm3800_vm15 = vweird.f32 %v8435_v48 }
 0x4f7   : > { %v4665_v14 = vpop.xlane.xlu1 %4664  ;;  %v11775_v16 = vadd.f32 1e-06, %v3756_v2  ;;  %v14010_v2 = vld [vmem:[#allocation89_spill] sm:$0xff]  ;;  %vm3801_vm1 = vmor %vm3799_vm0, %vm3800_vm15 }
 0x4f8   : > { %v4675_v56 = vmul.f32 %v4665_v14, %v13802_v36  ;;  %4705 = vadd.xlane.f32.xlu2 %v4704_v5  ;;  %v3788_v5 = vmul.f32 %v8433_v57, %v3787_v9  ;;  %v11777_v7 = vadd.f32 1e-06, %v3755_v47  ;;  %v3795_v43 = vmul.f32 %v8435_v48, %v3794_v24 }
 0x4f9   : > { %8436 = vrsqrt.f32 %v11775_v16  ;;  %vm3779_vm2 = vweird.f32 %v11775_v16 }
 0x4fa   : > { %v11769_v0 = vsub.f32 %v11559_v51, %v4675_v56  ;;  %v11772_v14 = vsub.f32 %v11540_v62, %v4675_v56  ;;  %v3792_v56 = vsel %vm3791_vm14, %v8433_v57, %v3788_v5  ;;  %v3796_v62 = vmul.f32 0.5, %v3795_v43  ;;  %v14012_v5 = vld [vmem:[#allocation73_spill] sm:$0xff] }
 0x4fb   : > { %v3807_v9 = vmul.f32 %v3792_v56, %v11397_v39  ;;  %8438 = vrsqrt.f32 %v11777_v7  ;;  %v3808_v43 = vmul.f32 %v3792_v56, %v14012_v5  ;;  %vm3769_vm3 = vweird.f32 %v11777_v7  ;;  %5253 = vmatmul.f32.gmra.mxu1 %v11715_v11 }
 0x4fc   : > { %14008 = vst [vmem:[#allocation31_spill] sm:$0xff] %v11769_v0  ;;  %v4687_v23 = vmul.f32 %v11769_v0, %v11769_v0  ;;  %v4688_v51 = vmul.f32 %v11772_v14, %v11772_v14  ;;  %v3797_v24 = vsub.f32 1.5, %v3796_v62  ;;  %v14011_v0 = vld [vmem:[#allocation78_spill] sm:$0xff] }
 0x4fd   : > { %14009 = vst [vmem:[#allocation12_spill] sm:$0xff] %v11772_v14  ;;  %v3815_v47 = vmul.f32 %v3807_v9, %v14010_v2  ;;  %5310 = vmatmul.f32.gmra.mxu2 %v11735_v12 }
 0x4fe   : > { %v4695_v29 = vadd.f32 %v4688_v51, %v4687_v23  ;;  %v3798_v57 = vmul.f32 %v8435_v48, %v3797_v24  ;;  %5200 = vmatmul.f32.vlgmr.msrb.gmra.mxu0 %v11520_v10  ;;  %v4668_v63 = vpop.xlane.xlu0 %4667  ;;  %5403 = vmatmul.f32.gmra.mxu3 %v11696_v44 }
 0x4ff   : > { %v11791_v14 = vadd.f32 %v3815_v47, %v14011_v0  ;;  %v8437_v39 = vpop.eup %8436 }
 0x500   : > { %4696 = vadd.xlane.f32.xlu2 %v4695_v29  ;;  %v4671_v13 = vpop.xlane.xlu2 %4670  ;;  %v3802_v9 = vsel %vm3801_vm1, %v8435_v48, %v3798_v57  ;;  %v3774_v62 = vmul.f32 %v8437_v39, %v11775_v16  ;;  %v14013_v29 = vld [vmem:[#allocation86_spill] sm:$0xff]  ;;  %v3816_v48 = vmul.f32 %v3808_v43, %v14010_v2  ;;  %v14015_v57 = vld [vmem:[#allocation97_spill] sm:$0xff]  ;;  %vm3780_vm4 = vweird.f32 %v8437_v39 }
 0x501   : > { %v8439_v23 = vpop.eup %8438  ;;  %v3831_v51 = vmul.f32 0.5, %v11791_v14  ;;  %v3809_v47 = vmul.f32 %v3802_v9, %v14013_v29  ;;  %v3810_v24 = vmul.f32 %v3802_v9, %v14014_v17  ;;  %v4677_v5 = vmul.f32 %v4671_v13, %v13802_v36  ;;  %vm3781_vm6 = vmor %vm3779_vm2, %vm3780_vm4 }
 0x502   : > { %v3764_v22 = vmul.f32 %v8439_v23, %v11777_v7  ;;  %v3775_v56 = vmul.f32 %v8437_v39, %v3774_v62  ;;  %v4676_v62 = vmul.f32 %v4668_v63, %v13802_v36  ;;  %v8506_v63 = vmov 5  }
 0x503   : > { %8440 = vtanh.f32 %v3831_v51  ;;  %v3817_v34 = vmul.f32 %v3809_v47, %v14015_v57  ;;  %v3818_v29 = vmul.f32 %v3810_v24, %v14015_v57  ;;  %v11809_v45 = vsub.f32 %v11625_v58, %v4677_v5  ;;  %8283 = vset.pattern.permute.xlu0 %v8506_v63  ;;  %8284 = vset.pattern.permute.xlu1 %v8506_v63 }
 0x504   : > { %v3765_v17 = vmul.f32 %v8439_v23, %v3764_v22  ;;  %v3776_v9 = vmul.f32 0.5, %v3775_v56  ;;  %v11812_v51 = vsub.f32 %v11613_v35, %v4677_v5  ;;  %v11820_v47 = vsub.f32 %v11622_v61, %v4676_v62  ;;  %8285 = vset.pattern.permute.xlu2 %v8506_v63  ;;  %5257 = vmatmul.f32.gmra.mxu1 %v11737_v6 }
 0x505   : > { %14016 = vst [vmem:[#allocation15_spill] sm:$0xff] %v11809_v45  ;;  %v11816_v13 = vadd.f32 %v3817_v34, %v14018_v40  ;;  %v11823_v24 = vsub.f32 %v11610_v31, %v4676_v62  ;;  %v4691_v35 = vmul.f32 %v11809_v45, %v11809_v45  ;;  %vm3770_vm5 = vweird.f32 %v8439_v23  ;;  %5318 = vmatmul.f32.gmra.mxu2 %v11763_v15  ;;  %v14065_v45 = vld [vmem:[#allocation67_spill] sm:$0xff] }
 0x506   : > { %14017 = vst [vmem:[#allocation94_spill] sm:$0xff] %v11812_v51  ;;  %v3766_v54 = vmul.f32 0.5, %v3765_v17  ;;  %v3777_v43 = vsub.f32 1.5, %v3776_v9  ;;  %5204 = vmatmul.f32.gmra.mxu0 %v11696_v44  ;;  %v4692_v22 = vmul.f32 %v11812_v51, %v11812_v51  ;;  %v11833_v31 = vadd.f32 %v3818_v29, %v14018_v40  ;;  %vm3771_vm7 = vmor %vm3769_vm3, %vm3770_vm5  ;;  %5407 = vmatmul.f32.gmra.mxu3 %v11715_v11 }
 0x507   : > { %14019 = vst [vmem:[#allocation44_spill] sm:$0xff] %v11820_v47  ;;  %v3833_v58 = vmul.f32 0.5, %v11816_v13  ;;  %v4689_v5 = vmul.f32 %v11820_v47, %v11820_v47  ;;  %v4690_v17 = vmul.f32 %v11823_v24, %v11823_v24  ;;  %v11843_v2 = vadd.f32 %v3816_v48, %v14011_v0 }
 0x508   : > { %14020 = vst [vmem:[#allocation41_spill] sm:$0xff] %v11823_v24  ;;  %v3767_v34 = vsub.f32 1.5, %v3766_v54  ;;  %v3778_v56 = vmul.f32 %v8437_v39, %v3777_v43  ;;  %v4701_v62 = vadd.f32 %v4692_v22, %v4691_v35  ;;  %v3834_v35 = vmul.f32 0.5, %v11833_v31  ;;  %v14022_v22 = vld [vmem:[#allocation102_spill] sm:$0xff] }
 0x509   : > { %v8441_v61 = vpop.eup %8440  ;;  %8442 = vtanh.f32 %v3833_v58  ;;  %v4698_v43 = vadd.f32 %v4690_v17, %v4689_v5 }
 0x50a   : > { %v3847_v54 = vadd.f32 1.0, %v8441_v61  ;;  %v3768_v9 = vmul.f32 %v8439_v23, %v3767_v34  ;;  %v3782_v29 = vsel %vm3781_vm6, %v8437_v39, %v3778_v56  ;;  %4702 = vadd.xlane.f32.xlu0 %v4701_v62  ;;  %v14021_v34 = vld [vmem:[#allocation29_spill] sm:$0xff]  ;;  %8444 = vtanh.f32 %v3834_v35 }
 0x50b   : > { %v3805_v58 = vmul.f32 %v3782_v29, %v11525_v19  ;;  %v3806_v61 = vmul.f32 %v3782_v29, %v11528_v52  ;;  %4699 = vadd.xlane.f32.xlu1 %v4698_v43  ;;  %v3832_v19 = vmul.f32 0.5, %v11843_v2  ;;  %v14023_v52 = vld [vmem:[#allocation40_spill] sm:$0xff]  ;;  %v14025_v29 = vld [vmem:[#allocation45_spill] sm:$0xff] }
 0x50c   : > { %v3855_v63 = vmul.f32 0.5, %v3847_v54  ;;  %v3772_v16 = vsel %vm3771_vm7, %v8439_v23, %v3768_v9  ;;  %v14024_v54 = vld [vmem:[#allocation62_spill] sm:$0xff]  ;;  %5507 = vmatmul.f32.vlgmr.msra.gmra.mxu1 %v11586_v60 }
 0x50d   : > { %v3803_v48 = vmul.f32 %v3772_v16, %v11506_v4  ;;  %v3804_v39 = vmul.f32 %v3772_v16, %v14021_v34  ;;  %v3813_v56 = vmul.f32 %v3805_v58, %v14022_v22  ;;  %v3814_v5 = vmul.f32 %v3806_v61, %v14022_v22  ;;  %5582 = vmatmul.f32.vlgmr.msra.gmra.mxu2 %v11520_v10 }
 0x50e   : > { %v3863_v7 = vmul.f32 %v3855_v63, %v11791_v14  ;;  %5208 = vmatmul.f32.gmra.mxu0 %v11715_v11  ;;  %8446 = vtanh.f32 %v3832_v19  ;;  %5411 = vmatmul.f32.gmra.mxu3 %v11737_v6 }
 0x50f   : > { %v3811_v23 = vmul.f32 %v3803_v48, %v14023_v52  ;;  %v3812_v17 = vmul.f32 %v3804_v39, %v14023_v52  ;;  %v8443_v4 = vpop.eup %8442  ;;  %v3821_v9 = vadd.f32 %v3813_v56, %v14024_v54  ;;  %v11864_v62 = vadd.f32 %v3814_v5, %v14024_v54  ;;  %v8487_v5 = vld [vmem:[%s12955_s1 + $0x10] sm:$0xff] }
 0x510   : > { %v3849_v14 = vadd.f32 1.0, %v8443_v4  ;;  %v11871_v58 = vand.u32 4294901760, %v3863_v7  ;;  %v8445_v19 = vpop.eup %8444 }
 0x511   : > { %v3819_v43 = vadd.f32 %v3811_v23, %v14025_v29  ;;  %v11869_v63 = vadd.f32 %v3812_v17, %v14025_v29  ;;  %v3829_v61 = vmul.f32 0.5, %v3821_v9  ;;  %v3830_v16 = vmul.f32 0.5, %v11864_v62  ;;  %v14067_v29 = vld [vmem:[#allocation72_spill] sm:$0xff] }
 0x512   : > { %v3857_v48 = vmul.f32 0.5, %v3849_v14  ;;  %v11878_v56 = vsub.f32 %v3863_v7, %v11871_v58  ;;  %v3850_v4 = vadd.f32 1.0, %v8445_v19 }
 0x513   : > { %v3827_v34 = vmul.f32 0.5, %v3819_v43  ;;  %8448 = vtanh.f32 %v3829_v61  ;;  %v3828_v39 = vmul.f32 0.5, %v11869_v63 }
 0x514   : > { %v3865_v35 = vmul.f32 %v3857_v48, %v11816_v13  ;;  %8450 = vtanh.f32 %v3830_v16  ;;  %14026 = vst [vmem:[#allocation33_spill] sm:$0xff] %v11878_v56  ;;  %v8447_v13 = vpop.eup %8446  ;;  %v11894_v14 = vand.u32 4294901760, %v11878_v56  ;;  %v3858_v54 = vmul.f32 0.5, %v3850_v4  ;;  %5513 = vmatmul.f32.gmra.mxu1 %v11703_v33 }
 0x515   : > { %8452 = vtanh.f32 %v3827_v34  ;;  %5586 = vmatmul.f32.gmra.mxu2 %v11696_v44 }
 0x516   : > { %v11884_v23 = vand.u32 4294901760, %v3865_v35  ;;  %5212 = vmatmul.f32.gmra.mxu0 %v11737_v6  ;;  %8454 = vtanh.f32 %v3828_v39  ;;  %14028 = vst [vmem:[#allocation66_spill] sm:$0xff] %v11894_v14  ;;  %v3848_v39 = vadd.f32 1.0, %v8447_v13  ;;  %5627 = vmatmul.f32.vlgmr.msra.gmra.mxu3 %v11520_v10  ;;  %v5765_v0 = vsub.f32 %v11878_v56, %v11894_v14 }
 0x518   : > { %4860 = vperm.xlu2 %8285, %v8487_v5   ;;  %5696 = vmatpush.msrb.mxu0 %v11884_v23  ;;  %v11891_v7 = vsub.f32 %v3865_v35, %v11884_v23  ;;  %v3856_v4 = vmul.f32 0.5, %v3848_v39 }
 0x519   : > { %5911 = vmatpush.msrb.mxu3 %v11884_v23  ;;  %v8449_v17 = vpop.eup %8448 }
 0x51a   : > { %14027 = vst [vmem:[#allocation101_spill] sm:$0xff] %v11891_v7  ;;  %v8451_v61 = vpop.eup %8450  ;;  %v3845_v16 = vadd.f32 1.0, %v8449_v17  ;;  %5698 = vmatpush.msrb.mxu0 %v11871_v58  ;;  %5851 = vmatpush.msrb.mxu2 %v11891_v7  ;;  %v11899_v48 = vand.u32 4294901760, %v11891_v7 }
 0x51b   : > { %v8453_v34 = vpop.eup %8452  ;;  %5913 = vmatpush.msrb.mxu3 %v11871_v58  ;;  %v3846_v22 = vadd.f32 1.0, %v8451_v61  ;;  %v11920_v61 = vand.u32 4294901760, %v5765_v0 }
 0x51c   : > { %14029 = vst [vmem:[#allocation84_spill] sm:$0xff] %v11899_v48  ;;  %v3853_v35 = vmul.f32 0.5, %v3845_v16  ;;  %v3843_v5 = vadd.f32 1.0, %v8453_v34  ;;  %5854 = vmatpush.msrb.mxu2 %v11878_v56  ;;  %v5759_v19 = vsub.f32 %v11891_v7, %v11899_v48  ;;  %v8455_v17 = vpop.eup %8454  ;;  %v8488_v16 = vld [vmem:[%s12955_s1] sm:$0xff]  ;;  %5519 = vmatmul.f32.gmra.mxu1 %v11724_v55 }
 0x51d   : > { %v3844_v56 = vadd.f32 1.0, %v8455_v17  ;;  %14032 = vst [vmem:[#allocation34_spill] sm:$0xff] %v11920_v61  ;;  %5590 = vmatmul.f32.gmra.mxu2 %v11715_v11 }
 0x51e   : > { %v3861_v24 = vmul.f32 %v3853_v35, %v3821_v9  ;;  %v3851_v47 = vmul.f32 0.5, %v3843_v5  ;;  %v11909_v13 = vand.u32 4294901760, %v5759_v19  ;;  %5457 = vmatmul.f32.vlgmr.msra.gmra.mxu0 %v11556_v32  ;;  %4852 = vperm.xlu0 %8283, %v8488_v16   ;;  %v3866_v9 = vmul.f32 %v3858_v54, %v11833_v31  ;;  %v14038_v54 = vld [vmem:[#allocation70_spill] sm:$0xff]  ;;  %v14041_v16 = vld [vmem:[#allocation7_spill] sm:$0xff] }
 0x51f   : > { %v3854_v35 = vmul.f32 0.5, %v3846_v22  ;;  %5631 = vmatmul.f32.gmra.mxu3 %v11696_v44 }
 0x520   : > { %14030 = vst [vmem:[#allocation105_spill] sm:$0xff] %v11909_v13  ;;  %v11916_v34 = vand.u32 4294901760, %v3861_v24  ;;  %v3859_v7 = vmul.f32 %v3851_v47, %v3819_v43  ;;  %5761 = vmatpush.msrb.mxu1 %v11909_v13  ;;  %v3864_v47 = vmul.f32 %v3856_v4, %v11843_v2  ;;  %v3852_v43 = vmul.f32 0.5, %v3844_v56  ;;  %v14058_v13 = vld [vmem:[#allocation68_spill] sm:$0xff] }
 0x521   : > { %v11939_v22 = vand.u32 4294901760, %v3866_v9  ;;  %v3862_v2 = vmul.f32 %v3854_v35, %v11864_v62  ;;  %v14042_v62 = vld [vmem:[#allocation95_spill] sm:$0xff] }
 0x522   : > { %14031 = vst [vmem:[#allocation38_spill] sm:$0xff] %v11916_v34  ;;  %v11922_v5 = vand.u32 4294901760, %v3859_v7  ;;  %5700 = vmatpush.msrb.mxu0 %v11916_v34  ;;  %5915 = vmatpush.msrb.mxu3 %v11916_v34  ;;  %v11927_v19 = vsub.f32 %v3861_v24, %v11916_v34  ;;  %v8489_v24 = vld [vmem:[%s12955_s1 + $0x8] sm:$0xff]  ;;  %v11955_v39 = vand.u32 4294901760, %v3864_v47  ;;  %v3860_v17 = vmul.f32 %v3852_v43, %v11869_v63 }
 0x523   : > { %5767 = vmatpush.msrb.mxu1 %v11920_v61  ;;  %14037 = vst [vmem:[#allocation21_spill] sm:$0xff] %v11939_v22  ;;  %v11969_v61 = vand.u32 4294901760, %v3862_v2  ;;  %v14047_v43 = vld [vmem:[#allocation69_spill] sm:$0xff] }
 0x524   : > { %14033 = vst [vmem:[#allocation25_spill] sm:$0xff] %v11922_v5  ;;  %5702 = vmatpush.msrb.mxu0 %v11922_v5  ;;  %5857 = vmatpush.msrb.mxu2 %v11927_v19  ;;  %v11934_v0 = vsub.f32 %v3859_v7, %v11922_v5  ;;  %v11937_v31 = vand.u32 4294901760, %v11927_v19 }
 0x525   : > { %14034 = vst [vmem:[#allocation37_spill] sm:$0xff] %v11927_v19  ;;  %4856 = vperm.xlu1 %8284, %v8489_v24   ;;  %5917 = vmatpush.msrb.mxu3 %v11922_v5  ;;  %v11965_v24 = vsub.f32 %v3866_v9, %v11939_v22  ;;  %v11982_v9 = vsub.f32 %v3864_v47, %v11955_v39  ;;  %v14054_v47 = vld [vmem:[#allocation9_spill] sm:$0xff] }
 0x526   : > { %14035 = vst [vmem:[#allocation36_spill] sm:$0xff] %v11934_v0  ;;  %5704 = vmatpush.msrb.mxu0 %v14038_v54  ;;  %5860 = vmatpush.msrb.mxu2 %v11934_v0  ;;  %v5771_v56 = vsub.f32 %v11927_v19, %v11937_v31  ;;  %v11951_v7 = vand.u32 4294901760, %v11934_v0  ;;  %v14061_v19 = vld [vmem:[#allocation30_spill] sm:$0xff] }
 0x527   : > { %14036 = vst [vmem:[#allocation55_spill] sm:$0xff] %v11937_v31  ;;  %5919 = vmatpush.msrb.mxu3 %v14038_v54  ;;  %5462 = vmatmul.f32.gmra.mxu0 %v11699_v42 }
 0x528   : > { %14039 = vst [vmem:[#allocation46_spill] sm:$0xff] %v11951_v7  ;;  %5706 = vmatpush.msrb.mxu0 %v14041_v16  ;;  %5863 = vmatpush.msrb.mxu2 %v14042_v62  ;;  %v11960_v4 = vand.u32 4294901760, %v5771_v56  ;;  %v5777_v35 = vsub.f32 %v11934_v0, %v11951_v7  ;;  %v11977_v56 = vand.u32 4294901760, %v3860_v17  ;;  %v8490_v62 = vld [vmem:[%s12955_s1 + $0x18] sm:$0xff]  ;;  %v14057_v0 = vld [vmem:[#allocation74_spill] sm:$0xff] }
 0x529   : > { %14040 = vst [vmem:[#allocation61_spill] sm:$0xff] %v11955_v39  ;;  %5921 = vmatpush.msrb.mxu3 %v14041_v16  ;;  %5594 = vmatmul.f32.gmra.mxu2 %v11737_v6 }
 0x52a   : > { %14043 = vst [vmem:[#allocation53_spill] sm:$0xff] %v11960_v4  ;;  %5708 = vmatpush.msrb.mxu0 %v13979_v49  ;;  %5773 = vmatpush.msrb.mxu1 %v11960_v4  ;;  %v11973_v63 = vand.u32 4294901760, %v5777_v35  ;;  %v14050_v35 = vld [vmem:[#allocation93_spill] sm:$0xff]  ;;  %v11994_v4 = vsub.f32 %v3862_v2, %v11969_v61 }
 0x52b   : > { %14044 = vst [vmem:[#allocation6_spill] sm:$0xff] %v11965_v24  ;;  %5866 = vmatpush.msrb.mxu2 %v14047_v43  ;;  %5923 = vmatpush.msrb.mxu3 %v13979_v49  ;;  %v11989_v43 = vand.u32 4294901760, %v11965_v24 }
 0x52c   : > { %14045 = vst [vmem:[#allocation82_spill] sm:$0xff] %v11969_v61  ;;  %5710 = vmatpush.msrb.mxu0 %v13985_v3  ;;  %5779 = vmatpush.msrb.mxu1 %v11973_v63 }
 0x52d   : > { %14046 = vst [vmem:[#allocation52_spill] sm:$0xff] %v11973_v63  ;;  %4864 = vperm.xlu1 %8284, %v8490_v62   ;;  %5869 = vmatpush.msrb.mxu2 %v14050_v35  ;;  %v14053_v63 = vld [vmem:[#allocation57_spill] sm:$0xff]  ;;  %v12001_v62 = vand.u32 4294901760, %v11982_v9  ;;  %v12004_v35 = vsub.f32 %v3860_v17, %v11977_v56  ;;  %v6141_v2 = vsub.f32 %v11965_v24, %v11989_v43 }
 0x52e   : > { %14048 = vst [vmem:[#allocation96_spill] sm:$0xff] %v11977_v56  ;;  %5925 = vmatpush.msrb.mxu3 %v13985_v3  ;;  %5712 = vmatpush.msrb.mxu0 %v11190_v37 }
 0x52f   : > { %14049 = vst [vmem:[#allocation108_spill] sm:$0xff] %v11982_v9  ;;  %5785 = vmatpush.msrb.mxu1 %v14053_v63  ;;  %5872 = vmatpush.msrb.mxu2 %v14054_v47  ;;  %v12013_v47 = vand.u32 4294901760, %v11994_v4  ;;  %v14060_v63 = vld [vmem:[#allocation26_spill] sm:$0xff]  ;;  %v12022_v17 = vand.u32 4294901760, %v12004_v35  ;;  %v12026_v51 = vand.u32 4294901760, %v6141_v2 }
 0x530   : > { %14051 = vst [vmem:[#allocation18_spill] sm:$0xff] %v11989_v43  ;;  %5927 = vmatpush.msrb.mxu3 %v11190_v37  ;;  %5714 = vmatpush.msrb.mxu0 %v11204_v28 }
 0x531   : > { %14052 = vst [vmem:[#allocation23_spill] sm:$0xff] %v11994_v4  ;;  %5791 = vmatpush.msrb.mxu1 %v14057_v0  ;;  %5875 = vmatpush.msrb.mxu2 %v14058_v13  ;;  %v6147_v13 = vsub.f32 %v11982_v9, %v12001_v62  ;;  %v14063_v0 = vld [vmem:[#allocation4_spill] sm:$0xff]  ;;  %v6159_v2 = vsub.f32 %v12004_v35, %v12022_v17 }
 0x532   : > { %14055 = vst [vmem:[#allocation59_spill] sm:$0xff] %v12001_v62  ;;  %5929 = vmatpush.msrb.mxu3 %v11204_v28  ;;  %5716 = vmatpush.msrb.mxu0 %v13993_v50 }
 0x533   : > { %14056 = vst [vmem:[#allocation5_spill] sm:$0xff] %v12004_v35  ;;  %5797 = vmatpush.msrb.mxu1 %v14060_v63  ;;  %5878 = vmatpush.msrb.mxu2 %v14061_v19  ;;  %v6153_v19 = vsub.f32 %v11994_v4, %v12013_v47  ;;  %v14066_v63 = vld [vmem:[#allocation99_spill] sm:$0xff]  ;;  %v12036_v52 = vand.u32 4294901760, %v6147_v13  ;;  %v14073_v13 = vld [vmem:[#allocation64_spill] sm:$0xff] }
 0x534   : > { %14059 = vst [vmem:[#allocation50_spill] sm:$0xff] %v12013_v47  ;;  %5931 = vmatpush.msrb.mxu3 %v13993_v50  ;;  %5718 = vmatpush.msrb.mxu0 %v13997_v38 }
 0x535   : > { %14062 = vst [vmem:[#allocation27_spill] sm:$0xff] %v12022_v17  ;;  %5803 = vmatpush.msrb.mxu1 %v14063_v0  ;;  %5881 = vmatpush.msrb.mxu2 %v14065_v45  ;;  %v14069_v45 = vld [vmem:[#allocation39_spill] sm:$0xff] }
 0x536   : > { %14064 = vst [vmem:[#allocation24_spill] sm:$0xff] %v12026_v51  ;;  %5933 = vmatpush.msrb.mxu3 %v13997_v38  ;;  %5966 = vmatpush.msra.mxu0 %v11899_v48  ;;  %v12044_v48 = vand.u32 4294901760, %v6153_v19  ;;  %v14074_v19 = vld [vmem:[#allocation35_spill] sm:$0xff] }
 0x537   : > { %5809 = vmatpush.msrb.mxu1 %v14066_v63  ;;  %5884 = vmatpush.msrb.mxu2 %v14067_v29  ;;  %14068 = vst [vmem:[#allocation106_spill] sm:$0xff] %v12036_v52  ;;  %v14071_v29 = vld [vmem:[#allocation83_spill] sm:$0xff]  ;;  %v12050_v63 = vand.u32 4294901760, %v6159_v2 }
 0x538   : > { %6143 = vmatpush.msra.mxu3 %v12026_v51  ;;  %5970 = vmatpush.msra.mxu0 %v11894_v14  ;;  %14070 = vst [vmem:[#allocation73_spill] sm:$0xff] %v12044_v48  ;;  %v14075_v2 = vld [vmem:[#allocation87_spill] sm:$0xff] }
 0x539   : > { %6078 = vmatpush.msra.mxu2 %v11939_v22  ;;  %5815 = vmatpush.msrb.mxu1 %v14069_v45  ;;  %14072 = vst [vmem:[#allocation86_spill] sm:$0xff] %v12050_v63  ;;  %v14076_v45 = vld [vmem:[#allocation71_spill] sm:$0xff] }
 0x53a   : > { %6149 = vmatpush.msra.mxu3 %v12036_v52  ;;  %5974 = vmatpush.msra.mxu0 %v11937_v31 }
 0x53b   : > { %6080 = vmatpush.msra.mxu2 %v11955_v39  ;;  %5821 = vmatpush.msrb.mxu1 %v14071_v29  ;;  %v14077_v29 = vld [vmem:[#allocation88_spill] sm:$0xff] }
 0x53c   : > { %6155 = vmatpush.msra.mxu3 %v12044_v48  ;;  %5978 = vmatpush.msra.mxu0 %v11951_v7 }
 0x53d   : > { %6082 = vmatpush.msra.mxu2 %v11969_v61  ;;  %5467 = vmatmul.f32.gmra.mxu0 %v11720_v1 }
 0x53e   : > { %6161 = vmatpush.msra.mxu3 %v12050_v63  ;;  %5827 = vmatpush.msrb.mxu1 %v14073_v13  ;;  %v14078_v63 = vld [vmem:[#allocation103_spill] sm:$0xff]  ;;  %v14079_v13 = vld [vmem:[#allocation110_spill] sm:$0xff] }
 0x53f   : > { %5635 = vmatmul.f32.gmra.mxu3 %v11715_v11  ;;  %5982 = vmatpush.msra.mxu0 %v14074_v19  ;;  %v14080_v19 = vld [vmem:[#allocation51_spill] sm:$0xff] }
 0x540   : > { %6033 = vmatpush.msra.mxu1 %v11884_v23  ;;  %6084 = vmatpush.msra.mxu2 %v11977_v56 }
 0x541   : > { %6167 = vmatpush.msra.mxu3 %v14075_v2  ;;  %5986 = vmatpush.msra.mxu0 %v14076_v45  ;;  %v14081_v45 = vld [vmem:[#allocation22_spill] sm:$0xff] }
 0x542   : > { %6035 = vmatpush.msra.mxu1 %v11871_v58  ;;  %6086 = vmatpush.msra.mxu2 %v11267_v59 }
 0x543   : > { %6173 = vmatpush.msra.mxu3 %v14077_v29  ;;  %5990 = vmatpush.msra.mxu0 %v14078_v63  ;;  %v14082_v63 = vld [vmem:[#allocation8_spill] sm:$0xff] }
 0x544   : > { %6037 = vmatpush.msra.mxu1 %v11916_v34  ;;  %6088 = vmatpush.msra.mxu2 %v11298_v18 }
 0x545   : > { %6179 = vmatpush.msra.mxu3 %v14079_v13  ;;  %5994 = vmatpush.msra.mxu0 %v14080_v19  ;;  %v14083_v13 = vld [vmem:[#allocation60_spill] sm:$0xff]  ;;  %v14084_v19 = vld [vmem:[#allocation115_spill] sm:$0xff] }
 0x546   : > { %6039 = vmatpush.msra.mxu1 %v11922_v5  ;;  %6090 = vmatpush.msra.mxu2 %v11321_v26 }
 0x547   : > { %6185 = vmatpush.msra.mxu3 %v14081_v45  ;;  %5472 = vmatmul.f32.gmra.mxu0 %v11742_v27  ;;  %v14085_v45 = vld [vmem:[#allocation20_spill] sm:$0xff] }
 0x548   : > { %5639 = vmatmul.f32.gmra.mxu3 %v11737_v6  ;;  %5998 = vmatpush.msra.mxu0 %v14082_v63  ;;  %v14086_v63 = vld [vmem:[#allocation81_spill] sm:$0xff] }
 0x549   : > { %6041 = vmatpush.msra.mxu1 %v14038_v54  ;;  %6092 = vmatpush.msra.mxu2 %v11345_v41 }
 0x54a   : > { %6191 = vmatpush.msra.mxu3 %v14083_v13  ;;  %6002 = vmatpush.msra.mxu0 %v14084_v19  ;;  %v14087_v19 = vld [vmem:[#allocation56_spill] sm:$0xff]  ;;  %v12132_v13 = vpop.f32.mrf.mxu3 }
 0x54b   : > { %6043 = vmatpush.msra.mxu1 %v14041_v16  ;;  %6094 = vmatpush.msra.mxu2 %v11373_v20 }
 0x54c   : > { %6197 = vmatpush.msra.mxu3 %v11551_v8  ;;  %6006 = vmatpush.msra.mxu0 %v14085_v45  ;;  %v14088_v8 = vld [vmem:[#allocation104_spill] sm:$0xff]  ;;  %v12126_v45 = vpop.f32.mrf.mxu2 }
 0x54d   : > { %6045 = vmatpush.msra.mxu1 %v13979_v49  ;;  %6096 = vmatpush.msra.mxu2 %v11284_v53  ;;  %v14111_v49 = vld [vmem:[#allocation19_spill] sm:$0xff] }
 0x54e   : > { %6203 = vmatpush.msra.mxu3 %v11573_v30  ;;  %5525 = vmatmul.f32.gmra.mxu1 %v11757_v46  ;;  %v14090_v30 = vld [vmem:[#allocation100_spill] sm:$0xff] }
 0x54f   : > { %6010 = vmatpush.msra.mxu0 %v11332_v21  ;;  %6047 = vmatpush.msra.mxu1 %v13985_v3  ;;  %v12120_v21 = vpop.f32.mrf.mxu1 }
 0x550   : > { %6098 = vmatpush.msra.mxu2 %v11416_v25  ;;  %6209 = vmatpush.msra.mxu3 %v14086_v63  ;;  %v14093_v63 = vld [vmem:[#allocation75_spill] sm:$0xff] }
 0x551   : > { %5724 = vmatmul.f32.vlgmr.msrb.gmra.mxu0 %v14087_v19  ;;  %5937 = vmatmul.f32.vlgmr.msrb.gmra.mxu3 %v11586_v60 }
 0x552   : > { %6233 = vmatpush.msrb.mxu0 %v11965_v24  ;;  %6415 = vmatpush.msrb.mxu3 %v11939_v22  ;;  %v14105_v24 = vld [vmem:[#allocation76_spill] sm:$0xff] }
 0x553   : > { %6049 = vmatpush.msra.mxu1 %v11190_v37  ;;  %6100 = vmatpush.msra.mxu2 %v14088_v8  ;;  %v12114_v37 = vpop.f32.mrf.mxu0 }
 0x554   : > { %6236 = vmatpush.msrb.mxu0 %v11982_v9  ;;  %5887 = vmatmul.f32.vlgmr.msrb.gmra.mxu2 %v11556_v32 }
 0x555   : > { %6417 = vmatpush.msrb.mxu3 %v11955_v39  ;;  %6348 = vmatpush.msrb.mxu2 %v11989_v43  ;;  %v12157_v43 = vpop.f32.mrf.mxu3 }
 0x556   : > { %6051 = vmatpush.msra.mxu1 %v11204_v28  ;;  %6239 = vmatpush.msrb.mxu0 %v11994_v4  ;;  %v14089_v28 = vld [vmem:[#allocation47_spill] sm:$0xff] }
 0x557   : > { %6419 = vmatpush.msrb.mxu3 %v11969_v61  ;;  %6352 = vmatpush.msrb.mxu2 %v12001_v62  ;;  %v12150_v62 = vpop.f32.mrf.mxu2  ;;  %v14100_v4 = vld [vmem:[#allocation107_spill] sm:$0xff] }
 0x558   : > { %6053 = vmatpush.msra.mxu1 %v13993_v50  ;;  %6242 = vmatpush.msrb.mxu0 %v12004_v35  ;;  %v14091_v50 = vld [vmem:[#allocation43_spill] sm:$0xff] }
 0x559   : > { %6421 = vmatpush.msrb.mxu3 %v11977_v56  ;;  %6356 = vmatpush.msrb.mxu2 %v12013_v47  ;;  %v14098_v47 = vld [vmem:[#allocation85_spill] sm:$0xff] }
 0x55a   : > { %5829 = vmatmul.f32.vlgmr.msrb.gmra.mxu1 %v11520_v10  ;;  %6245 = vmatpush.msrb.mxu0 %v14089_v28  ;;  %v14096_v28 = vld [vmem:[#allocation63_spill] sm:$0xff] }
 0x55b   : > { %6055 = vmatpush.msra.mxu1 %v13997_v38  ;;  %6360 = vmatpush.msrb.mxu2 %v12022_v17  ;;  %v14092_v38 = vld [vmem:[#allocation58_spill] sm:$0xff]  ;;  %v14095_v17 = vld [vmem:[#allocation79_spill] sm:$0xff] }
 0x55c   : > { %6423 = vmatpush.msrb.mxu3 %v11267_v59  ;;  %6248 = vmatpush.msrb.mxu0 %v14090_v30  ;;  %v14094_v30 = vld [vmem:[#allocation11_spill] sm:$0xff] }
 0x55d   : > { %6293 = vmatpush.msrb.mxu1 %v11939_v22  ;;  %6364 = vmatpush.msrb.mxu2 %v14091_v50  ;;  %v12138_v50 = vpop.f32.mrf.mxu0 }
 0x55e   : > { %6425 = vmatpush.msrb.mxu3 %v11298_v18  ;;  %5892 = vmatmul.f32.gmra.mxu2 %v11699_v42 }
 0x55f   : > { %6295 = vmatpush.msrb.mxu1 %v11955_v39  ;;  %6251 = vmatpush.msrb.mxu0 %v14092_v38  ;;  %v12144_v38 = vpop.f32.mrf.mxu1 }
 0x560   : > { %6368 = vmatpush.msrb.mxu2 %v14093_v63  ;;  %6427 = vmatpush.msrb.mxu3 %v11321_v26  ;;  %v14097_v63 = vld [vmem:[#allocation65_spill] sm:$0xff] }
 0x561   : > { %6297 = vmatpush.msrb.mxu1 %v11969_v61  ;;  %5732 = vmatmul.f32.gmra.mxu0 %v14094_v30  ;;  %v14106_v61 = vld [vmem:[#allocation91_spill] sm:$0xff] }
 0x562   : > { %5943 = vmatmul.f32.gmra.mxu3 %v11703_v33  ;;  %6254 = vmatpush.msrb.mxu0 %v14095_v17  ;;  %v14099_v17 = vld [vmem:[#allocation42_spill] sm:$0xff] }
 0x563   : > { %6299 = vmatpush.msrb.mxu1 %v11977_v56  ;;  %6372 = vmatpush.msrb.mxu2 %v14096_v28 }
 0x564   : > { %6429 = vmatpush.msrb.mxu3 %v11345_v41  ;;  %5833 = vmatmul.f32.gmra.mxu1 %v11696_v44 }
 0x565   : > { %6257 = vmatpush.msrb.mxu0 %v14097_v63  ;;  %6301 = vmatpush.msrb.mxu1 %v11267_v59  ;;  %v12163_v9 = vpop.f32.mrf.mxu0 }
 0x566   : > { %6376 = vmatpush.msrb.mxu2 %v14098_v47  ;;  %6431 = vmatpush.msrb.mxu3 %v11373_v20  ;;  %v14101_v47 = vld [vmem:[#allocation109_spill] sm:$0xff] }
 0x567   : > { %6260 = vmatpush.msrb.mxu0 %v14099_v17  ;;  %6303 = vmatpush.msrb.mxu1 %v11298_v18  ;;  %v14102_v17 = vld [vmem:[#allocation77_spill] sm:$0xff]  ;;  %v12181_v18 = vpop.f32.mrf.mxu3 }
 0x568   : > { %6380 = vmatpush.msrb.mxu2 %v14100_v4  ;;  %6433 = vmatpush.msrb.mxu3 %v11284_v53  ;;  %v12169_v4 = vpop.f32.mrf.mxu1 }
 0x569   : > { %5897 = vmatmul.f32.gmra.mxu2 %v11720_v1  ;;  %6263 = vmatpush.msrb.mxu0 %v14101_v47  ;;  %v14104_v47 = vld [vmem:[#allocation114_spill] sm:$0xff] }
 0x56a   : > { %6305 = vmatpush.msrb.mxu1 %v11321_v26  ;;  %6384 = vmatpush.msrb.mxu2 %v14102_v17 }
 0x56b   : > { %v4706_v35 = vpop.xlane.xlu2 %4705  ;;  %6435 = vmatpush.msrb.mxu3 %v11416_v25  ;;  %5740 = vmatmul.f32.gmra.mxu0 %v11735_v12 }
 0x56c   : > { %v4710_v28 = vmul.f32 %v4706_v35, %v13802_v36  ;;  %5949 = vmatmul.f32.gmra.mxu3 %v11724_v55  ;;  %v14103_v35 = vld [vmem:[#allocation112_spill] sm:$0xff]  ;;  %6307 = vmatpush.msrb.mxu1 %v11345_v41 }
 0x56d   : > { %6266 = vmatpush.msrb.mxu0 %v14103_v35  ;;  %6388 = vmatpush.msrb.mxu2 %v14104_v47 }
 0x56e   : > { %v4714_v63 = vadd.f32 1e-06, %v4710_v28  ;;  %6437 = vmatpush.msrb.mxu3 %v14088_v8  ;;  %v12175_v28 = vpop.f32.mrf.mxu2  ;;  %5837 = vmatmul.f32.gmra.mxu1 %v11715_v11 }
 0x56f   : > { %6309 = vmatpush.msrb.mxu1 %v11373_v20  ;;  %6392 = vmatpush.msrb.mxu2 %v14105_v24 }
 0x570   : > { %8456 = vrsqrt.f32 %v4714_v63  ;;  %v12189_v20 = vpop.f32.mrf.mxu1  ;;  %vm4751_vm10 = vweird.f32 %v4714_v63 }
 0x571   : > { %5902 = vmatmul.f32.gmra.mxu2 %v11742_v27  ;;  %6311 = vmatpush.msrb.mxu1 %v11284_v53 }
 0x573   : > { %v4697_v17 = vpop.xlane.xlu2 %4696  ;;  %v12185_v29 = vpop.f32.mrf.mxu0  ;;  %6313 = vmatpush.msrb.mxu1 %v11416_v25  ;;  %5748 = vmatmul.f32.gmra.mxu0 %v11763_v15 }
 0x574   : > { %v4707_v26 = vmul.f32 %v4697_v17, %v13802_v36  ;;  %5955 = vmatmul.f32.gmra.mxu3 %v11757_v46 }
 0x575   : > { %6315 = vmatpush.msrb.mxu1 %v14088_v8 }
 0x576   : > { %v8457_v35 = vpop.eup %8456  ;;  %v4711_v41 = vadd.f32 1e-06, %v4707_v26  ;;  %v12193_v17 = vpop.f32.mrf.mxu2  ;;  %5841 = vmatmul.f32.gmra.mxu1 %v11737_v6 }
 0x577   : > { %v4746_v47 = vmul.f32 %v8457_v35, %v4714_v63  ;;  %vm4752_vm8 = vweird.f32 %v8457_v35  ;;  %v12196_v26 = vpop.f32.mrf.mxu3 }
 0x578   : > { %8458 = vrsqrt.f32 %v4711_v41  ;;  %vm4753_vm11 = vmor %vm4751_vm10, %vm4752_vm8  ;;  %v12202_v8 = vpop.f32.mrf.mxu1  ;;  %vm4721_vm9 = vweird.f32 %v4711_v41 }
 0x579   : > { %v4747_v59 = vmul.f32 %v8457_v35, %v4746_v47  ;;  %6106 = vmatmul.f32.vlgmr.msra.gmra.mxu2 %v14087_v19 }
 0x57b   : > { %v4748_v24 = vmul.f32 0.5, %v4747_v59  ;;  %v12199_v2 = vpop.f32.mrf.mxu0  ;;  %6012 = vmatmul.f32.vlgmr.msra.gmra.mxu0 %v11520_v10 }
 0x57c   : > { %6211 = vmatmul.f32.vlgmr.msra.gmra.mxu3 %v11520_v10 }
 0x57d   : > { %v4749_v53 = vsub.f32 1.5, %v4748_v24  ;;  %v4703_v48 = vpop.xlane.xlu0 %4702 }
 0x57e   : > { %v8459_v25 = vpop.eup %8458  ;;  %v4709_v39 = vmul.f32 %v4703_v48, %v13802_v36  ;;  %v4700_v31 = vpop.xlane.xlu1 %4699  ;;  %6057 = vmatmul.f32.vlgmr.msra.gmra.mxu1 %v11520_v10 }
 0x57f   : > { %v4750_v47 = vmul.f32 %v8457_v35, %v4749_v53  ;;  %v4716_v56 = vmul.f32 %v8459_v25, %v4711_v41  ;;  %v12207_v53 = vpop.f32.mrf.mxu2  ;;  %v12214_v22 = vpop.f32.mrf.mxu3  ;;  %vm4722_vm12 = vweird.f32 %v8459_v25 }
 0x580   : > { %vm4723_vm13 = vmor %vm4721_vm9, %vm4722_vm12 }
 0x581   : > { %v4754_v59 = vsel %vm4753_vm11, %v8457_v35, %v4750_v47  ;;  %v4717_v24 = vmul.f32 %v8459_v25, %v4716_v56  ;;  %v4708_v35 = vmul.f32 %v4700_v31, %v13802_v36  ;;  %v12212_v47 = vadd.f32 1e-06, %v4709_v39  ;;  %6114 = vmatmul.f32.gmra.mxu2 %v14094_v30  ;;  %v14109_v30 = vld [vmem:[#allocation40_spill] sm:$0xff] }
 0x582   : > { %v4761_v7 = vmul.f32 %v4754_v59, %v14106_v61  ;;  %v4762_v16 = vmul.f32 %v4754_v59, %v14111_v49 }
 0x583   : > { %v4718_v52 = vmul.f32 0.5, %v4717_v24  ;;  %v12218_v48 = vadd.f32 1e-06, %v4708_v35  ;;  %8460 = vrsqrt.f32 %v12212_v47  ;;  %v12223_v24 = vpop.permute.xlu2 %4860  ;;  %6016 = vmatmul.f32.gmra.mxu0 %v11696_v44  ;;  %vm4741_vm15 = vweird.f32 %v12212_v47 }
 0x584   : > { %v4769_v63 = vmul.f32 %v4761_v7, %v14015_v57  ;;  %v12221_v7 = vpop.f32.mrf.mxu0  ;;  %14107 = vst [vmem:[#allocation111_spill] sm:$0xff] %v12223_v24  ;;  %v4930_v31 = vadd.f32 %v12163_v9, %v12223_v24  ;;  %6215 = vmatmul.f32.gmra.mxu3 %v11696_v44  ;;  %v4770_v49 = vmul.f32 %v4762_v16, %v14015_v57 }
 0x585   : > { %v4719_v56 = vsub.f32 1.5, %v4718_v52  ;;  %8462 = vrsqrt.f32 %v12218_v48  ;;  %v12227_v52 = vpop.f32.mrf.mxu1  ;;  %vm4731_vm1 = vweird.f32 %v12218_v48 }
 0x586   : > { %v4777_v61 = vadd.f32 %v4769_v63, %v14018_v40  ;;  %v14108_v63 = vld [vmem:[#allocation31_spill] sm:$0xff]  ;;  %v5027_v41 = vadd.f32 %v12169_v4, %v4930_v31  ;;  %6061 = vmatmul.f32.gmra.mxu1 %v11696_v44 }
 0x587   : > { %v4720_v36 = vmul.f32 %v8459_v25, %v4719_v56  ;;  %v12233_v51 = vpop.f32.mrf.mxu2  ;;  %v12238_v19 = vpop.f32.mrf.mxu3 }
 0x588   : > { %v4785_v14 = vmul.f32 0.5, %v4777_v61  ;;  %v5087_v3 = vadd.f32 %v12175_v28, %v5027_v41 }
 0x589   : > { %v4724_v39 = vsel %vm4723_vm13, %v8459_v25, %v4720_v36  ;;  %v8461_v56 = vpop.eup %8460  ;;  %6122 = vmatmul.f32.gmra.mxu2 %v11735_v12  ;;  %v14110_v25 = vld [vmem:[#allocation45_spill] sm:$0xff] }
 0x58a   : > { %8464 = vtanh.f32 %v4785_v14  ;;  %v4755_v35 = vmul.f32 %v4724_v39, %v14108_v63  ;;  %v4736_v14 = vmul.f32 %v8461_v56, %v12212_v47  ;;  %vm4742_vm14 = vweird.f32 %v8461_v56 }
 0x58b   : > { %v8463_v9 = vpop.eup %8462  ;;  %6020 = vmatmul.f32.gmra.mxu0 %v11715_v11  ;;  %vm4743_vm2 = vmor %vm4741_vm15, %vm4742_vm14  ;;  %v12273_v47 = vadd.f32 %v4770_v49, %v14018_v40  ;;  %v14116_v49 = vld [vmem:[#allocation41_spill] sm:$0xff] }
 0x58c   : > { %v4763_v0 = vmul.f32 %v4755_v35, %v14109_v30  ;;  %v4726_v63 = vmul.f32 %v8463_v9, %v12218_v48  ;;  %v5209_v4 = vpop.f32.mrf.mxu0  ;;  %v4737_v54 = vmul.f32 %v8461_v56, %v4736_v14  ;;  %v5139_v35 = vadd.f32 %v12181_v18, %v5087_v3  ;;  %6219 = vmatmul.f32.gmra.mxu3 %v11715_v11  ;;  %v5647_v3 = vld [vmem:[%s8543_s18 + $0x20] sm:$0xff] }
 0x58d   : > { %v5254_v41 = vpop.f32.mrf.mxu1  ;;  %vm4732_vm0 = vweird.f32 %v8463_v9 }
 0x58e   : > { %v12244_v36 = vadd.f32 %v4763_v0, %v14110_v25  ;;  %v4727_v28 = vmul.f32 %v8463_v9, %v4726_v63  ;;  %v4738_v46 = vmul.f32 0.5, %v4737_v54  ;;  %v5210_v0 = vadd.f32 %v5209_v4, %v5139_v35  ;;  %6065 = vmatmul.f32.gmra.mxu1 %v11715_v11  ;;  %v14112_v4 = vld [vmem:[#allocation12_spill] sm:$0xff]  ;;  %vm4733_vm3 = vmor %vm4731_vm1, %vm4732_vm0 }
 0x58f   : > { %v12252_v27 = vpop.f32.mrf.mxu2 }
 0x590   : > { %v8465_v31 = vpop.eup %8464  ;;  %v4779_v24 = vmul.f32 0.5, %v12244_v36  ;;  %v4728_v34 = vmul.f32 0.5, %v4727_v28  ;;  %v4739_v59 = vsub.f32 1.5, %v4738_v46  ;;  %v5255_v18 = vadd.f32 %v5254_v41, %v5210_v0  ;;  %v12258_v63 = vpop.permute.xlu0 %4852  ;;  %v14114_v28 = vld [vmem:[#allocation94_spill] sm:$0xff] }
 0x591   : > { %v4801_v5 = vadd.f32 1.0, %v8465_v31  ;;  %v4756_v31 = vmul.f32 %v4724_v39, %v14112_v4  ;;  %6130 = vmatmul.f32.gmra.mxu2 %v11763_v15  ;;  %v4914_v46 = vadd.f32 %v12114_v37, %v12258_v63  ;;  %v5296_v37 = vadd.f32 %v12207_v53, %v12258_v63 }
 0x592   : > { %v4729_v54 = vsub.f32 1.5, %v4728_v34  ;;  %v4740_v35 = vmul.f32 %v8461_v56, %v4739_v59  ;;  %8466 = vtanh.f32 %v4779_v24  ;;  %v5655_v34 = vadd.f32 %v5647_v3, %v5255_v18  ;;  %v14113_v24 = vld [vmem:[#allocation15_spill] sm:$0xff] }
 0x593   : > { %v4809_v12 = vmul.f32 0.5, %v4801_v5  ;;  %v12260_v5 = vpop.f32.mrf.mxu3  ;;  %v5019_v48 = vadd.f32 %v12120_v21, %v4914_v46  ;;  %6024 = vmatmul.f32.gmra.mxu0 %v11737_v6  ;;  %v4764_v18 = vmul.f32 %v4756_v31, %v14109_v30  ;;  %v14119_v31 = vld [vmem:[#allocation78_spill] sm:$0xff] }
 0x594   : > { %v4730_v57 = vmul.f32 %v8463_v9, %v4729_v54  ;;  %v12270_v16 = vpop.f32.mrf.mxu0  ;;  %5663 = vst [vmem:[%s12282_s21 + $0x20] sm:$0xff] %v5655_v34  ;;  %6223 = vmatmul.f32.gmra.mxu3 %v11737_v6 }
 0x595   : > { %v4817_v14 = vmul.f32 %v4809_v12, %v4777_v61  ;;  %v4744_v61 = vsel %vm4743_vm2, %v8461_v56, %v4740_v35  ;;  %v12291_v21 = vpop.f32.mrf.mxu1  ;;  %v14115_v56 = vld [vmem:[#allocation44_spill] sm:$0xff]  ;;  %v5077_v53 = vadd.f32 %v12126_v45, %v5019_v48 }
 0x596   : > { %v4759_v39 = vmul.f32 %v4744_v61, %v14113_v24  ;;  %v4760_v40 = vmul.f32 %v4744_v61, %v14114_v28  ;;  %v4734_v41 = vsel %vm4733_vm3, %v8463_v9, %v4730_v57  ;;  %v14117_v9 = vld [vmem:[#allocation89_spill] sm:$0xff]  ;;  %v14118_v57 = vld [vmem:[#allocation102_spill] sm:$0xff]  ;;  %6069 = vmatmul.f32.gmra.mxu1 %v11737_v6 }
 0x597   : > { %v12267_v12 = vand.u32 4294901760, %v4817_v14  ;;  %v4757_v0 = vmul.f32 %v4734_v41, %v14115_v56  ;;  %v4758_v59 = vmul.f32 %v4734_v41, %v14116_v49  ;;  %v12301_v4 = vpop.permute.xlu1 %4856  ;;  %v12306_v46 = vpop.f32.mrf.mxu2  ;;  %v5127_v30 = vadd.f32 %v12132_v13, %v5077_v53  ;;  %v14120_v41 = vld [vmem:[#allocation62_spill] sm:$0xff] }
 0x598   : > { %v4767_v3 = vmul.f32 %v4759_v39, %v14117_v9  ;;  %v4768_v54 = vmul.f32 %v4760_v40, %v14117_v9  ;;  %v8467_v45 = vpop.eup %8466  ;;  %v4922_v39 = vadd.f32 %v12138_v50, %v12301_v4  ;;  %v4786_v40 = vmul.f32 0.5, %v12273_v47 }
 0x599   : > { %6724 = vmatpush.msra.mxu3 %v12267_v12  ;;  %6509 = vmatpush.msra.mxu0 %v12267_v12  ;;  %v12304_v35 = vsub.f32 %v4817_v14, %v12267_v12  ;;  %v4765_v34 = vmul.f32 %v4757_v0, %v14118_v57  ;;  %v4766_v61 = vmul.f32 %v4758_v59, %v14118_v57  ;;  %v4795_v53 = vadd.f32 1.0, %v8467_v45 }
 0x59a   : > { %v12313_v48 = vadd.f32 %v4767_v3, %v14119_v31  ;;  %v12316_v24 = vadd.f32 %v4768_v54, %v14119_v31  ;;  %v5401_v14 = vadd.f32 %v12214_v22, %v5296_v37  ;;  %v5202_v0 = vadd.f32 %v12199_v2, %v5127_v30  ;;  %6394 = vmatmul.f32.vlgmr.msrb.gmra.mxu2 %v11520_v10  ;;  %v5643_v37 = vld [vmem:[%s8543_s18] sm:$0xff] }
 0x59b   : > { %6664 = vmatpush.msra.mxu2 %v12304_v35  ;;  %v12322_v28 = vpop.f32.mrf.mxu3  ;;  %v12326_v13 = vadd.f32 %v4765_v34, %v14120_v41  ;;  %v12329_v56 = vadd.f32 %v4766_v61, %v14120_v41  ;;  %v12334_v22 = vadd.f32 %v4764_v18, %v14110_v25  ;;  %v5023_v49 = vadd.f32 %v12144_v38, %v4922_v39 }
 0x59c   : > { %v4783_v50 = vmul.f32 0.5, %v12313_v48  ;;  %v5458_v59 = vpop.f32.mrf.mxu0  ;;  %v4784_v9 = vmul.f32 0.5, %v12316_v24  ;;  %v5247_v54 = vadd.f32 %v12202_v8, %v5202_v0  ;;  %6269 = vmatmul.f32.vlgmr.msrb.gmra.mxu0 %v11556_v32  ;;  %v12345_v25 = vand.u32 4294901760, %v12304_v35  ;;  %6439 = vmatmul.f32.vlgmr.msrb.gmra.mxu3 %v11520_v10 }
 0x59d   : > { %v4781_v3 = vmul.f32 0.5, %v12326_v13  ;;  %v5082_v2 = vadd.f32 %v12150_v62, %v5023_v49  ;;  %v5459_v18 = vadd.f32 %v5458_v59, %v5401_v14  ;;  %v5508_v57 = vpop.f32.mrf.mxu1  ;;  %v4782_v38 = vmul.f32 0.5, %v12329_v56  ;;  %v5644_v49 = vld [vmem:[%s8543_s18 + $0x8] sm:$0xff] }
 0x59e   : > { %8468 = vtanh.f32 %v4783_v50  ;;  %v5651_v34 = vadd.f32 %v5643_v37, %v5247_v54  ;;  %v6572_v61 = vsub.f32 %v12304_v35, %v12345_v25  ;;  %v4780_v31 = vmul.f32 0.5, %v12334_v22  ;;  %6319 = vmatmul.f32.vlgmr.msrb.gmra.mxu1 %v11586_v60  ;;  %v5645_v50 = vld [vmem:[%s8543_s18 + $0x10] sm:$0xff] }
 0x59f   : > { %8470 = vtanh.f32 %v4786_v40  ;;  %v5133_v8 = vadd.f32 %v12157_v43, %v5082_v2  ;;  %v12352_v62 = vpop.permute.xlu1 %4864  ;;  %v5509_v30 = vadd.f32 %v5508_v57, %v5459_v18  ;;  %v5583_v45 = vpop.f32.mrf.mxu2  ;;  %v4803_v14 = vmul.f32 0.5, %v4795_v53 }
 0x5a0   : > { %8472 = vtanh.f32 %v4781_v3  ;;  %5659 = vst [vmem:[%s12282_s21] sm:$0xff] %v5651_v34  ;;  %v4938_v39 = vadd.f32 %v12185_v29, %v12352_v62  ;;  %v12360_v40 = vand.u32 4294901760, %v6572_v61 }
 0x5a1   : > { %8474 = vtanh.f32 %v4784_v9  ;;  %v5206_v43 = vadd.f32 %v12221_v7, %v5133_v8  ;;  %v5584_v41 = vadd.f32 %v5583_v45, %v5509_v30  ;;  %v4811_v7 = vmul.f32 %v4803_v14, %v12244_v36  ;;  %v5649_v14 = vld [vmem:[%s8543_s18 + $0x30] sm:$0xff] }
 0x5a2   : > { %14121 = vst [vmem:[#allocation97_spill] sm:$0xff] %v12360_v40  ;;  %8476 = vtanh.f32 %v4782_v38  ;;  %6398 = vmatmul.f32.gmra.mxu2 %v11696_v44  ;;  %v5031_v37 = vadd.f32 %v12189_v20, %v4938_v39  ;;  %6574 = vmatpush.msra.mxu1 %v12360_v40  ;;  %v5304_v20 = vadd.f32 %v12233_v51, %v12301_v4  ;;  %v14158_v40 = vld [vmem:[#allocation9_spill] sm:$0xff] }
 0x5a3   : > { %v5628_v0 = vpop.f32.mrf.mxu3  ;;  %v5251_v53 = vadd.f32 %v12227_v52, %v5206_v43  ;;  %8478 = vtanh.f32 %v4780_v31  ;;  %v12376_v61 = vand.u32 4294901760, %v4811_v7 }
 0x5a4   : > { %v8469_v59 = vpop.eup %8468  ;;  %v5629_v9 = vadd.f32 %v5628_v0, %v5584_v41  ;;  %v5092_v54 = vadd.f32 %v12193_v17, %v5031_v37  ;;  %6274 = vmatmul.f32.gmra.mxu0 %v11699_v42  ;;  %6443 = vmatmul.f32.gmra.mxu3 %v11696_v44  ;;  %v5405_v31 = vadd.f32 %v12238_v19, %v5304_v20  ;;  %v5463_v0 = vpop.f32.mrf.mxu0 }
 0x5a5   : > { %v8471_v29 = vpop.eup %8470  ;;  %v4799_v3 = vadd.f32 1.0, %v8469_v59  ;;  %v5653_v18 = vadd.f32 %v5645_v50, %v5251_v53 }
 0x5a6   : > { %v8473_v2 = vpop.eup %8472  ;;  %v5652_v52 = vadd.f32 %v5644_v49, %v5629_v9  ;;  %v5145_v36 = vadd.f32 %v12196_v26, %v5092_v54  ;;  %v4802_v8 = vadd.f32 1.0, %v8471_v29  ;;  %6325 = vmatmul.f32.gmra.mxu1 %v11703_v33  ;;  %v5464_v59 = vadd.f32 %v5463_v0, %v5405_v31 }
 0x5a7   : > { %v8475_v57 = vpop.eup %8474  ;;  %v4807_v38 = vmul.f32 0.5, %v4799_v3  ;;  %v4797_v34 = vadd.f32 1.0, %v8473_v2  ;;  %5661 = vst [vmem:[%s12282_s21 + $0x10] sm:$0xff] %v5653_v18  ;;  %v5514_v3 = vpop.f32.mrf.mxu1 }
 0x5a8   : > { %v8477_v17 = vpop.eup %8476  ;;  %v5214_v51 = vadd.f32 %v12270_v16, %v5145_v36  ;;  %5660 = vst [vmem:[%s12282_s21 + $0x8] sm:$0xff] %v5652_v52  ;;  %v4800_v39 = vadd.f32 1.0, %v8475_v57  ;;  %v4810_v50 = vmul.f32 0.5, %v4802_v8  ;;  %v5587_v36 = vpop.f32.mrf.mxu2 }
 0x5a9   : > { %v4815_v30 = vmul.f32 %v4807_v38, %v12313_v48  ;;  %v4805_v45 = vmul.f32 0.5, %v4797_v34  ;;  %v8479_v43 = vpop.eup %8478  ;;  %v4798_v37 = vadd.f32 1.0, %v8477_v17 }
 0x5aa   : > { %6402 = vmatmul.f32.gmra.mxu2 %v11715_v11  ;;  %v5259_v48 = vadd.f32 %v12291_v21, %v5214_v51  ;;  %v4808_v21 = vmul.f32 0.5, %v4800_v39  ;;  %v4796_v53 = vadd.f32 1.0, %v8479_v43 }
 0x5ab   : > { %v12384_v41 = vand.u32 4294901760, %v4815_v30  ;;  %v4813_v26 = vmul.f32 %v4805_v45, %v12326_v13  ;;  %v12397_v13 = vsub.f32 %v4811_v7, %v12376_v61  ;;  %v4818_v7 = vmul.f32 %v4810_v50, %v12273_v47  ;;  %v14126_v45 = vld [vmem:[#allocation101_spill] sm:$0xff] }
 0x5ac   : > { %v5657_v19 = vadd.f32 %v5649_v14, %v5259_v48  ;;  %6279 = vmatmul.f32.gmra.mxu0 %v11720_v1  ;;  %6447 = vmatmul.f32.gmra.mxu3 %v11715_v11  ;;  %v4806_v54 = vmul.f32 0.5, %v4798_v37  ;;  %v5515_v47 = vadd.f32 %v5514_v3, %v5464_v59  ;;  %v4816_v52 = vmul.f32 %v4808_v21, %v12316_v24  ;;  %v14130_v48 = vld [vmem:[#allocation111_spill] sm:$0xff]  ;;  %v14131_v50 = vld [vmem:[#allocation17_spill] sm:$0xff] }
 0x5ad   : > { %v12389_v49 = vand.u32 4294901760, %v4813_v26  ;;  %6511 = vmatpush.msra.mxu0 %v12384_v41  ;;  %6726 = vmatpush.msra.mxu3 %v12384_v41  ;;  %v12394_v16 = vsub.f32 %v4815_v30, %v12384_v41  ;;  %14122 = vst [vmem:[#allocation10_spill] sm:$0xff] %v12397_v13  ;;  %v12420_v20 = vand.u32 4294901760, %v12397_v13  ;;  %v4804_v57 = vmul.f32 0.5, %v4796_v53  ;;  %v14125_v30 = vld [vmem:[#allocation28_spill] sm:$0xff]  ;;  %v14132_v37 = vld [vmem:[#allocation33_spill] sm:$0xff] }
 0x5ae   : > { %5665 = vst [vmem:[%s12282_s21 + $0x30] sm:$0xff] %v5657_v19  ;;  %6331 = vmatmul.f32.gmra.mxu1 %v11724_v55  ;;  %v12431_v8 = vand.u32 4294901760, %v4818_v7  ;;  %v4814_v17 = vmul.f32 %v4806_v54, %v12329_v56  ;;  %v5588_v31 = vadd.f32 %v5587_v36, %v5515_v47  ;;  %v12444_v14 = vand.u32 4294901760, %v4816_v52  ;;  %v14128_v56 = vld [vmem:[#allocation38_spill] sm:$0xff]  ;;  %v5632_v19 = vpop.f32.mrf.mxu3  ;;  %v5646_v59 = vld [vmem:[%s8543_s18 + $0x18] sm:$0xff]  ;;  %v14134_v21 = vld [vmem:[#allocation25_spill] sm:$0xff] }
 0x5af   : > { %6513 = vmatpush.msra.mxu0 %v12389_v49  ;;  %v12404_v9 = vsub.f32 %v4813_v26, %v12389_v49  ;;  %v12407_v29 = vand.u32 4294901760, %v12394_v16  ;;  %6667 = vmatpush.msra.mxu2 %v12394_v16  ;;  %14123 = vst [vmem:[#allocation29_spill] sm:$0xff] %v12420_v20  ;;  %v6590_v24 = vsub.f32 %v12397_v13, %v12420_v20  ;;  %v14137_v54 = vld [vmem:[#allocation70_spill] sm:$0xff]  ;;  %v14141_v36 = vld [vmem:[#allocation36_spill] sm:$0xff] }
 0x5b0   : > { %6728 = vmatpush.msra.mxu3 %v12389_v49  ;;  %v4812_v39 = vmul.f32 %v4804_v57, %v12334_v22  ;;  %v12452_v43 = vsub.f32 %v4818_v7, %v12431_v8  ;;  %v12454_v26 = vand.u32 4294901760, %v4814_v17  ;;  %v5312_v0 = vadd.f32 %v12252_v27, %v14130_v48  ;;  %v14136_v27 = vld [vmem:[#allocation37_spill] sm:$0xff] }
 0x5b1   : > { %6515 = vmatpush.msra.mxu0 %v12376_v61  ;;  %v6578_v2 = vsub.f32 %v12394_v16, %v12407_v29  ;;  %v12417_v18 = vand.u32 4294901760, %v12404_v9  ;;  %6670 = vmatpush.msra.mxu2 %v12404_v9  ;;  %v12460_v22 = vand.u32 4294901760, %v6590_v24  ;;  %v5633_v53 = vadd.f32 %v5632_v19, %v5588_v31  ;;  %v14142_v24 = vld [vmem:[#allocation7_spill] sm:$0xff] }
 0x5b2   : > { %6730 = vmatpush.msra.mxu3 %v12376_v61  ;;  %6406 = vmatmul.f32.gmra.mxu2 %v11737_v6  ;;  %14129 = vst [vmem:[#allocation67_spill] sm:$0xff] %v12452_v43  ;;  %v12466_v3 = vsub.f32 %v4816_v52, %v12444_v14  ;;  %v12468_v7 = vand.u32 4294901760, %v4812_v39  ;;  %v12478_v57 = vsub.f32 %v4814_v17, %v12454_v26  ;;  %v14145_v17 = vld [vmem:[#allocation34_spill] sm:$0xff] }
 0x5b3   : > { %6517 = vmatpush.msra.mxu0 %v11884_v23  ;;  %v12427_v38 = vand.u32 4294901760, %v6578_v2  ;;  %v6584_v34 = vsub.f32 %v12404_v9, %v12417_v18  ;;  %6673 = vmatpush.msra.mxu2 %v12397_v13  ;;  %14133 = vst [vmem:[#allocation99_spill] sm:$0xff] %v12460_v22  ;;  %v12475_v2 = vand.u32 4294901760, %v12452_v43  ;;  %v5654_v47 = vadd.f32 %v5646_v59, %v5633_v53  ;;  %v14146_v53 = vld [vmem:[#allocation95_spill] sm:$0xff] }
 0x5b4   : > { %6732 = vmatpush.msra.mxu3 %v11884_v23  ;;  %6284 = vmatmul.f32.gmra.mxu0 %v14125_v30  ;;  %14135 = vst [vmem:[#allocation72_spill] sm:$0xff] %v12466_v3  ;;  %v5409_v52 = vadd.f32 %v12260_v5, %v5312_v0  ;;  %v12487_v31 = vand.u32 4294901760, %v12466_v3  ;;  %v12490_v59 = vsub.f32 %v4812_v39, %v12468_v7  ;;  %v14147_v5 = vld [vmem:[#allocation48_spill] sm:$0xff] }
 0x5b5   : > { %14124 = vst [vmem:[#allocation68_spill] sm:$0xff] %v12427_v38  ;;  %6519 = vmatpush.msra.mxu0 %v11871_v58  ;;  %6580 = vmatpush.msra.mxu1 %v12427_v38  ;;  %v12442_v51 = vand.u32 4294901760, %v6584_v34  ;;  %v14140_v34 = vld [vmem:[#allocation105_spill] sm:$0xff]  ;;  %v6954_v0 = vsub.f32 %v12452_v43, %v12475_v2 }
 0x5b6   : > { %6676 = vmatpush.msra.mxu2 %v14126_v45  ;;  %6451 = vmatmul.f32.gmra.mxu3 %v11737_v6  ;;  %14138 = vst [vmem:[#allocation39_spill] sm:$0xff] %v12475_v2  ;;  %v5591_v45 = vpop.f32.mrf.mxu2 }
 0x5b7   : > { %14127 = vst [vmem:[#allocation30_spill] sm:$0xff] %v12442_v51  ;;  %6521 = vmatpush.msra.mxu0 %v14128_v56  ;;  %6734 = vmatpush.msra.mxu3 %v11871_v58 }
 0x5b8   : > { %6586 = vmatpush.msra.mxu1 %v12442_v51  ;;  %6679 = vmatpush.msra.mxu2 %v14132_v37  ;;  %14139 = vst [vmem:[#allocation83_spill] sm:$0xff] %v12478_v57  ;;  %v14153_v37 = vld [vmem:[#allocation52_spill] sm:$0xff]  ;;  %v14154_v51 = vld [vmem:[#allocation93_spill] sm:$0xff] }
 0x5b9   : > { %6337 = vmatmul.f32.gmra.mxu1 %v14131_v50  ;;  %6736 = vmatpush.msra.mxu3 %v14128_v56  ;;  %5662 = vst [vmem:[%s12282_s21 + $0x18] sm:$0xff] %v5654_v47  ;;  %v12499_v47 = vand.u32 4294901760, %v12478_v57 }
 0x5ba   : > { %6523 = vmatpush.msra.mxu0 %v14134_v21  ;;  %6592 = vmatpush.msra.mxu1 %v12460_v22  ;;  %14143 = vst [vmem:[#allocation64_spill] sm:$0xff] %v12487_v31  ;;  %v5468_v19 = vpop.f32.mrf.mxu0  ;;  %v5320_v22 = vadd.f32 %v12306_v46, %v12352_v62 }
 0x5bb   : > { %6682 = vmatpush.msra.mxu2 %v14136_v27  ;;  %6738 = vmatpush.msra.mxu3 %v14134_v21  ;;  %14144 = vst [vmem:[#allocation8_spill] sm:$0xff] %v12490_v59  ;;  %v5469_v39 = vadd.f32 %v5468_v19, %v5409_v52  ;;  %v12508_v27 = vand.u32 4294901760, %v12490_v59  ;;  %v14155_v52 = vld [vmem:[#allocation56_spill] sm:$0xff]  ;;  %v6966_v19 = vsub.f32 %v12478_v57, %v12499_v47 }
 0x5bc   : > { %6525 = vmatpush.msra.mxu0 %v14137_v54  ;;  %6598 = vmatpush.msra.mxu1 %v14140_v34  ;;  %14148 = vst [vmem:[#allocation60_spill] sm:$0xff] %v12499_v47  ;;  %v14150_v34 = vld [vmem:[#allocation69_spill] sm:$0xff]  ;;  %v5413_v13 = vadd.f32 %v12322_v28, %v5320_v22 }
 0x5bd   : > { %6685 = vmatpush.msra.mxu2 %v14141_v36  ;;  %6740 = vmatpush.msra.mxu3 %v14137_v54  ;;  %v14149_v36 = vld [vmem:[#allocation53_spill] sm:$0xff]  ;;  %14152 = vst [vmem:[#allocation115_spill] sm:$0xff] %v12508_v27 }
 0x5be   : > { %6527 = vmatpush.msra.mxu0 %v14142_v24  ;;  %6604 = vmatpush.msra.mxu1 %v14145_v17  ;;  %v14151_v17 = vld [vmem:[#allocation113_spill] sm:$0xff] }
 0x5bf   : > { %6688 = vmatpush.msra.mxu2 %v14146_v53  ;;  %6742 = vmatpush.msra.mxu3 %v14142_v24  ;;  %v6960_v53 = vsub.f32 %v12466_v3, %v12487_v31 }
 0x5c0   : > { %6529 = vmatpush.msra.mxu0 %v14147_v5  ;;  %6610 = vmatpush.msra.mxu1 %v14149_v36  ;;  %v5520_v36 = vpop.f32.mrf.mxu1 }
 0x5c1   : > { %6691 = vmatpush.msra.mxu2 %v14150_v34  ;;  %6744 = vmatpush.msra.mxu3 %v14147_v5  ;;  %v12516_v34 = vand.u32 4294901760, %v6954_v0  ;;  %v5521_v46 = vadd.f32 %v5520_v36, %v5469_v39  ;;  %v6972_v0 = vsub.f32 %v12490_v59, %v12508_v27  ;;  %v12533_v36 = vand.u32 4294901760, %v6966_v19  ;;  %v5648_v39 = vld [vmem:[%s8543_s18 + $0x28] sm:$0xff]  ;;  %v14162_v19 = vld [vmem:[#allocation4_spill] sm:$0xff] }
 0x5c2   : > { %6531 = vmatpush.msra.mxu0 %v14151_v17  ;;  %6616 = vmatpush.msra.mxu1 %v14153_v37  ;;  %v12524_v37 = vand.u32 4294901760, %v6960_v53  ;;  %v5636_v38 = vpop.f32.mrf.mxu3 }
 0x5c3   : > { %6694 = vmatpush.msra.mxu2 %v14154_v51  ;;  %6746 = vmatpush.msra.mxu3 %v14151_v17  ;;  %14156 = vst [vmem:[#allocation20_spill] sm:$0xff] %v12516_v34  ;;  %v14157_v51 = vld [vmem:[#allocation57_spill] sm:$0xff]  ;;  %v12540_v28 = vand.u32 4294901760, %v6972_v0 }
 0x5c4   : > { %6537 = vmatmul.f32.vlgmr.msra.gmra.mxu0 %v14155_v52  ;;  %6750 = vmatmul.f32.vlgmr.msra.gmra.mxu3 %v11586_v60  ;;  %v5592_v60 = vadd.f32 %v5591_v45, %v5521_v46  ;;  %v5473_v53 = vpop.f32.mrf.mxu0  ;;  %v14164_v46 = vld [vmem:[#allocation84_spill] sm:$0xff] }
 0x5c5   : > { %6779 = vmatpush.msrb.mxu0 %v12345_v25  ;;  %6956 = vmatpush.msrb.mxu3 %v12516_v34  ;;  %14160 = vst [vmem:[#allocation81_spill] sm:$0xff] %v12540_v28  ;;  %v5474_v22 = vadd.f32 %v5473_v53, %v5413_v13 }
 0x5c6   : > { %6622 = vmatpush.msra.mxu1 %v14157_v51  ;;  %6697 = vmatpush.msra.mxu2 %v14158_v40  ;;  %v14159_v51 = vld [vmem:[#allocation74_spill] sm:$0xff]  ;;  %v5637_v34 = vadd.f32 %v5636_v38, %v5592_v60  ;;  %v14163_v60 = vld [vmem:[#allocation11_spill] sm:$0xff] }
 0x5c7   : > { %6783 = vmatpush.msrb.mxu0 %v12407_v29  ;;  %6700 = vmatmul.f32.vlgmr.msra.gmra.mxu2 %v11556_v32  ;;  %v14161_v40 = vld [vmem:[#allocation26_spill] sm:$0xff] }
 0x5c8   : > { %6962 = vmatpush.msrb.mxu3 %v12524_v37  ;;  %6891 = vmatpush.msrb.mxu2 %v12431_v8  ;;  %v5656_v45 = vadd.f32 %v5648_v39, %v5637_v34  ;;  %v5595_v34 = vpop.f32.mrf.mxu2  ;;  %v14165_v39 = vld [vmem:[#allocation24_spill] sm:$0xff] }
 0x5c9   : > { %6628 = vmatpush.msra.mxu1 %v14159_v51  ;;  %6787 = vmatpush.msrb.mxu0 %v12417_v18  ;;  %v14166_v51 = vld [vmem:[#allocation66_spill] sm:$0xff] }
 0x5ca   : > { %6968 = vmatpush.msrb.mxu3 %v12533_v36  ;;  %6893 = vmatpush.msrb.mxu2 %v12444_v14  ;;  %5664 = vst [vmem:[%s12282_s21 + $0x28] sm:$0xff] %v5656_v45  ;;  %v14167_v45 = vld [vmem:[#allocation21_spill] sm:$0xff] }
 0x5cb   : > { %6634 = vmatpush.msra.mxu1 %v14161_v40  ;;  %6791 = vmatpush.msrb.mxu0 %v12420_v20  ;;  %v5526_v38 = vpop.f32.mrf.mxu1  ;;  %v5640_v0 = vpop.f32.mrf.mxu3  ;;  %v5650_v40 = vld [vmem:[%s8543_s18 + $0x38] sm:$0xff]  ;;  %v14184_v20 = vld [vmem:[#allocation110_spill] sm:$0xff] }
 0x5cc   : > { %6974 = vmatpush.msrb.mxu3 %v12540_v28  ;;  %6895 = vmatpush.msrb.mxu2 %v12454_v26  ;;  %v5527_v13 = vadd.f32 %v5526_v38, %v5474_v22  ;;  %v14168_v22 = vld [vmem:[#allocation106_spill] sm:$0xff]  ;;  %v14169_v38 = vld [vmem:[#allocation55_spill] sm:$0xff] }
 0x5cd   : > { %6640 = vmatpush.msra.mxu1 %v14162_v19  ;;  %6545 = vmatmul.f32.gmra.mxu0 %v14163_v60  ;;  %v14183_v28 = vld [vmem:[#allocation90_spill] sm:$0xff] }
 0x5ce   : > { %6642 = vmatmul.f32.vlgmr.msra.gmra.mxu1 %v11520_v10  ;;  %6756 = vmatmul.f32.gmra.mxu3 %v11703_v33  ;;  %v5596_v53 = vadd.f32 %v5595_v34, %v5527_v13  ;;  %v14170_v33 = vld [vmem:[#allocation61_spill] sm:$0xff]  ;;  %v14172_v34 = vld [vmem:[#allocation46_spill] sm:$0xff] }
 0x5cf   : > { %6795 = vmatpush.msrb.mxu0 %v14164_v46  ;;  %6846 = vmatpush.msrb.mxu1 %v12267_v12  ;;  %v14174_v46 = vld [vmem:[#allocation86_spill] sm:$0xff] }
 0x5d0   : > { %6897 = vmatpush.msrb.mxu2 %v12468_v7  ;;  %6980 = vmatpush.msrb.mxu3 %v14165_v39  ;;  %v5641_v19 = vadd.f32 %v5640_v0, %v5596_v53  ;;  %v14171_v39 = vld [vmem:[#allocation73_spill] sm:$0xff]  ;;  %v14175_v0 = vld [vmem:[#allocation16_spill] sm:$0xff]  ;;  %v14176_v53 = vld [vmem:[#allocation35_spill] sm:$0xff] }
 0x5d1   : > { %6705 = vmatmul.f32.gmra.mxu2 %v11699_v42  ;;  %6799 = vmatpush.msrb.mxu0 %v14166_v51  ;;  %v14173_v51 = vld [vmem:[#allocation82_spill] sm:$0xff] }
 0x5d2   : > { %6848 = vmatpush.msrb.mxu1 %v12384_v41  ;;  %6899 = vmatpush.msrb.mxu2 %v14167_v45  ;;  %v5658_v13 = vadd.f32 %v5650_v40, %v5641_v19  ;;  %v14177_v40 = vld [vmem:[#allocation96_spill] sm:$0xff] }
 0x5d3   : > { %6986 = vmatpush.msrb.mxu3 %v14168_v22  ;;  %6803 = vmatpush.msrb.mxu0 %v14169_v38  ;;  %v5725_v22 = vpop.f32.mrf.mxu0  ;;  %v14182_v38 = vld [vmem:[#allocation103_spill] sm:$0xff] }
 0x5d4   : > { %6850 = vmatpush.msrb.mxu1 %v12389_v49  ;;  %6901 = vmatpush.msrb.mxu2 %v14170_v33  ;;  %5666 = vst [vmem:[%s12282_s21 + $0x38] sm:$0xff] %v5658_v13  ;;  %v14179_v13 = vld [vmem:[#allocation71_spill] sm:$0xff] }
 0x5d5   : > { %6992 = vmatpush.msrb.mxu3 %v14171_v39  ;;  %6807 = vmatpush.msrb.mxu0 %v14172_v34  ;;  %v14178_v39 = vld [vmem:[#allocation87_spill] sm:$0xff] }
 0x5d6   : > { %6852 = vmatpush.msrb.mxu1 %v12376_v61  ;;  %6903 = vmatpush.msrb.mxu2 %v14173_v51 }
 0x5d7   : > { %6998 = vmatpush.msrb.mxu3 %v14174_v46  ;;  %6553 = vmatmul.f32.gmra.mxu0 %v14175_v0  ;;  %v5830_v19 = vpop.f32.mrf.mxu1  ;;  %v12577_v34 = vpop.f32.mrf.mxu2  ;;  %v14180_v46 = vld [vmem:[#allocation49_spill] sm:$0xff] }
 0x5d8   : > { %6646 = vmatmul.f32.gmra.mxu1 %v11696_v44  ;;  %6762 = vmatmul.f32.gmra.mxu3 %v11724_v55  ;;  %v14181_v55 = vld [vmem:[#allocation88_spill] sm:$0xff] }
 0x5d9   : > { %6811 = vmatpush.msrb.mxu0 %v14176_v53  ;;  %6854 = vmatpush.msrb.mxu1 %v11884_v23  ;;  %v12585_v53 = vpop.f32.mrf.mxu3 }
 0x5da   : > { %6905 = vmatpush.msrb.mxu2 %v14177_v40  ;;  %7004 = vmatpush.msrb.mxu3 %v14178_v39  ;;  %v14185_v39 = vld [vmem:[#allocation51_spill] sm:$0xff] }
 0x5db   : > { %6710 = vmatmul.f32.gmra.mxu2 %v11720_v1  ;;  %6815 = vmatpush.msrb.mxu0 %v14179_v13  ;;  %v14186_v13 = vld [vmem:[#allocation92_spill] sm:$0xff]  ;;  %v14187_v1 = vld [vmem:[#allocation22_spill] sm:$0xff] }
 0x5dc   : > { %6856 = vmatpush.msrb.mxu1 %v11871_v58  ;;  %6907 = vmatpush.msrb.mxu2 %v14180_v46 }
 0x5dd   : > { %7010 = vmatpush.msrb.mxu3 %v14181_v55  ;;  %6819 = vmatpush.msrb.mxu0 %v14182_v38  ;;  %v14188_v38 = vld [vmem:[#allocation32_spill] sm:$0xff] }
 0x5de   : > { %6858 = vmatpush.msrb.mxu1 %v14128_v56  ;;  %6909 = vmatpush.msrb.mxu2 %v14183_v28  ;;  %v5733_v42 = vpop.f32.mrf.mxu0 }
 0x5df   : > { %7016 = vmatpush.msrb.mxu3 %v14184_v20  ;;  %6823 = vmatpush.msrb.mxu0 %v14185_v39  ;;  %v14189_v39 = vld [vmem:[#allocation6_spill] sm:$0xff] }
 0x5e0   : > { %6860 = vmatpush.msrb.mxu1 %v14134_v21  ;;  %6911 = vmatpush.msrb.mxu2 %v14186_v13 }
 0x5e1   : > { %7022 = vmatpush.msrb.mxu3 %v14187_v1  ;;  %7046 = vmatpush.msra.mxu0 %v12452_v43  ;;  %v5834_v55 = vpop.f32.mrf.mxu1  ;;  %v12601_v20 = vpop.f32.mrf.mxu2 }
 0x5e2   : > { %6561 = vmatmul.f32.gmra.mxu0 %v11763_v15  ;;  %6650 = vmatmul.f32.gmra.mxu1 %v11715_v11 }
 0x5e3   : > { %7228 = vmatpush.msra.mxu3 %v12431_v8  ;;  %6862 = vmatpush.msrb.mxu1 %v14137_v54 }
 0x5e4   : > { %6768 = vmatmul.f32.gmra.mxu3 %v14131_v50  ;;  %6913 = vmatpush.msrb.mxu2 %v14188_v38 }
 0x5e5   : > { %7049 = vmatpush.msra.mxu0 %v12466_v3  ;;  %7230 = vmatpush.msra.mxu3 %v12444_v14  ;;  %v12609_v1 = vpop.f32.mrf.mxu3  ;;  %v14197_v3 = vld [vmem:[#allocation27_spill] sm:$0xff] }
 0x5e6   : > { %7161 = vmatpush.msra.mxu2 %v12475_v2  ;;  %6864 = vmatpush.msrb.mxu1 %v14142_v24  ;;  %v5726_v24 = vadd.f32 %v5725_v22, %v12258_v63 }
 0x5e7   : > { %6715 = vmatmul.f32.gmra.mxu2 %v14125_v30  ;;  %7052 = vmatpush.msra.mxu0 %v12478_v57  ;;  %v14195_v57 = vld [vmem:[#allocation50_spill] sm:$0xff] }
 0x5e8   : > { %7165 = vmatpush.msra.mxu2 %v12487_v31  ;;  %7232 = vmatpush.msra.mxu3 %v12454_v26  ;;  %v5741_v54 = vpop.f32.mrf.mxu0  ;;  %v5831_v22 = vadd.f32 %v5830_v19, %v5726_v24  ;;  %v14193_v31 = vld [vmem:[#allocation59_spill] sm:$0xff]  ;;  %v5734_v24 = vadd.f32 %v5733_v42, %v12301_v4 }
 0x5e9   : > { %6866 = vmatpush.msrb.mxu1 %v14147_v5  ;;  %7055 = vmatpush.msra.mxu0 %v12490_v59  ;;  %v14192_v59 = vld [vmem:[#allocation23_spill] sm:$0xff] }
 0x5ea   : > { %7169 = vmatpush.msra.mxu2 %v12499_v47  ;;  %7234 = vmatpush.msra.mxu3 %v12468_v7  ;;  %v5889_v19 = vadd.f32 %v12577_v34, %v5831_v22  ;;  %v5835_v34 = vadd.f32 %v5834_v55, %v5734_v24  ;;  %v14198_v22 = vld [vmem:[#allocation100_spill] sm:$0xff]  ;;  %v14200_v24 = vld [vmem:[#allocation58_spill] sm:$0xff] }
 0x5eb   : > { %6868 = vmatpush.msrb.mxu1 %v14151_v17  ;;  %7058 = vmatpush.msra.mxu0 %v14189_v39  ;;  %v5838_v5 = vpop.f32.mrf.mxu1  ;;  %v14190_v17 = vld [vmem:[#allocation108_spill] sm:$0xff]  ;;  %v14191_v39 = vld [vmem:[#allocation18_spill] sm:$0xff] }
 0x5ec   : > { %7173 = vmatpush.msra.mxu2 %v12508_v27  ;;  %7236 = vmatpush.msra.mxu3 %v14167_v45  ;;  %v12626_v47 = vpop.f32.mrf.mxu2  ;;  %v5939_v42 = vadd.f32 %v12585_v53, %v5889_v19  ;;  %v5894_v55 = vadd.f32 %v12601_v20, %v5835_v34  ;;  %v5742_v19 = vadd.f32 %v5741_v54, %v14130_v48  ;;  %v14203_v20 = vld [vmem:[#allocation63_spill] sm:$0xff] }
 0x5ed   : > { %7106 = vmatpush.msra.mxu1 %v12431_v8  ;;  %6825 = vmatmul.f32.vlgmr.msrb.gmra.mxu0 %v11520_v10 }
 0x5ee   : > { %6654 = vmatmul.f32.gmra.mxu1 %v11737_v6  ;;  %7024 = vmatmul.f32.vlgmr.msrb.gmra.mxu3 %v11520_v10  ;;  %v5839_v34 = vadd.f32 %v5838_v5, %v5742_v19 }
 0x5ef   : > { %7061 = vmatpush.msra.mxu0 %v14190_v17  ;;  %7108 = vmatpush.msra.mxu1 %v12444_v14  ;;  %v12634_v27 = vpop.f32.mrf.mxu3 }
 0x5f0   : > { %7177 = vmatpush.msra.mxu2 %v14191_v39  ;;  %7238 = vmatpush.msra.mxu3 %v14170_v33  ;;  %v5749_v17 = vpop.f32.mrf.mxu0  ;;  %v14194_v39 = vld [vmem:[#allocation5_spill] sm:$0xff] }
 0x5f1   : > { %6919 = vmatmul.f32.vlgmr.msrb.gmra.mxu2 %v14155_v52  ;;  %7064 = vmatpush.msra.mxu0 %v14192_v59  ;;  %v14196_v59 = vld [vmem:[#allocation47_spill] sm:$0xff] }
 0x5f2   : > { %7110 = vmatpush.msra.mxu1 %v12454_v26  ;;  %7181 = vmatpush.msra.mxu2 %v14193_v31 }
 0x5f3   : > { %7240 = vmatpush.msra.mxu3 %v14173_v51  ;;  %7067 = vmatpush.msra.mxu0 %v14194_v39  ;;  %v5842_v31 = vpop.f32.mrf.mxu1 }
 0x5f4   : > { %7112 = vmatpush.msra.mxu1 %v12468_v7  ;;  %7185 = vmatpush.msra.mxu2 %v14195_v57  ;;  %v12648_v2 = vpop.f32.mrf.mxu2 }
 0x5f5   : > { %7242 = vmatpush.msra.mxu3 %v14177_v40  ;;  %7070 = vmatpush.msra.mxu0 %v14196_v59  ;;  %v14199_v59 = vld [vmem:[#allocation43_spill] sm:$0xff] }
 0x5f6   : > { %7114 = vmatpush.msra.mxu1 %v14167_v45  ;;  %7189 = vmatpush.msra.mxu2 %v14197_v3  ;;  %v14201_v3 = vld [vmem:[#allocation75_spill] sm:$0xff] }
 0x5f7   : > { %7244 = vmatpush.msra.mxu3 %v14180_v46  ;;  %6829 = vmatmul.f32.gmra.mxu0 %v11696_v44  ;;  %v12659_v57 = vpop.f32.mrf.mxu3 }
 0x5f8   : > { %6870 = vmatmul.f32.vlgmr.msrb.gmra.mxu1 %v11520_v10  ;;  %7028 = vmatmul.f32.gmra.mxu3 %v11696_v44  ;;  %v6013_v53 = vpop.f32.mrf.mxu0 }
 0x5f9   : > { %7073 = vmatpush.msra.mxu0 %v14198_v22  ;;  %7116 = vmatpush.msra.mxu1 %v14170_v33  ;;  %v6014_v22 = vadd.f32 %v6013_v53, %v5939_v42  ;;  %v5945_v42 = vadd.f32 %v12609_v1, %v5894_v55  ;;  %v8205_v55 = vld [vmem:[%s8543_s18 + $0x50] sm:$0xff] }
 0x5fa   : > { %7193 = vmatpush.msra.mxu2 %v14199_v59  ;;  %7246 = vmatpush.msra.mxu3 %v14183_v28  ;;  %v14202_v59 = vld [vmem:[#allocation79_spill] sm:$0xff] }
 0x5fb   : > { %6927 = vmatmul.f32.gmra.mxu2 %v14163_v60  ;;  %7076 = vmatpush.msra.mxu0 %v14200_v24  ;;  %v6058_v39 = vpop.f32.mrf.mxu1  ;;  %v8203_v60 = vld [vmem:[%s8543_s18 + $0x40] sm:$0xff] }
 0x5fc   : > { %7118 = vmatpush.msra.mxu1 %v14173_v51  ;;  %7197 = vmatpush.msra.mxu2 %v14201_v3  ;;  %v12672_v43 = vpop.f32.mrf.mxu2  ;;  %v6059_v54 = vadd.f32 %v6058_v39, %v6014_v22  ;;  %v14204_v3 = vld [vmem:[#allocation85_spill] sm:$0xff]  ;;  %v5899_v39 = vadd.f32 %v12626_v47, %v5839_v34 }
 0x5fd   : > { %7248 = vmatpush.msra.mxu3 %v14186_v13  ;;  %7079 = vmatpush.msra.mxu0 %v14202_v59  ;;  %v14208_v59 = vld [vmem:[#allocation101_spill] sm:$0xff] }
 0x5fe   : > { %7120 = vmatpush.msra.mxu1 %v14177_v40  ;;  %7201 = vmatpush.msra.mxu2 %v14203_v20  ;;  %v6463_v53 = vadd.f32 %v8203_v60, %v6059_v54  ;;  %v5951_v47 = vadd.f32 %v12634_v27, %v5899_v39  ;;  %v8207_v54 = vld [vmem:[%s8543_s18 + $0x60] sm:$0xff]  ;;  %v14211_v39 = vld [vmem:[#allocation99_spill] sm:$0xff] }
 0x5ff   : > { %7250 = vmatpush.msra.mxu3 %v14188_v38  ;;  %7330 = vmatpush.msrb.mxu0 %v12267_v12  ;;  %v12683_v24 = vpop.f32.mrf.mxu3 }
 0x600   : > { %7122 = vmatpush.msra.mxu1 %v14180_v46  ;;  %7205 = vmatpush.msra.mxu2 %v14204_v3  ;;  %8211 = vst [vmem:[%s12282_s21 + $0x40] sm:$0xff] %v6463_v53  ;;  %v6017_v1 = vpop.f32.mrf.mxu0  ;;  %v5750_v46 = vadd.f32 %v5749_v17, %v12352_v62  ;;  %v14209_v3 = vld [vmem:[#allocation30_spill] sm:$0xff]  ;;  %v14210_v53 = vld [vmem:[#allocation33_spill] sm:$0xff] }
 0x601   : > { %7545 = vmatpush.msrb.mxu3 %v12267_v12  ;;  %6833 = vmatmul.f32.gmra.mxu0 %v11715_v11  ;;  %v6018_v60 = vadd.f32 %v6017_v1, %v5945_v42 }
 0x602   : > { %6874 = vmatmul.f32.gmra.mxu1 %v11696_v44  ;;  %7032 = vmatmul.f32.gmra.mxu3 %v11715_v11  ;;  %v5843_v17 = vadd.f32 %v5842_v31, %v5750_v46 }
 0x603   : > { %7332 = vmatpush.msrb.mxu0 %v12384_v41  ;;  %7489 = vmatpush.msrb.mxu2 %v12304_v35  ;;  %v6062_v5 = vpop.f32.mrf.mxu1 }
 0x604   : > { %7547 = vmatpush.msrb.mxu3 %v12384_v41  ;;  %7124 = vmatpush.msra.mxu1 %v14183_v28  ;;  %v12697_v19 = vpop.f32.mrf.mxu2  ;;  %v6063_v35 = vadd.f32 %v6062_v5, %v6018_v60  ;;  %v14205_v28 = vld [vmem:[#allocation97_spill] sm:$0xff]  ;;  %v6108_v5 = vadd.f32 %v12672_v43, %v12258_v63  ;;  %v14216_v43 = vld [vmem:[#allocation20_spill] sm:$0xff] }
 0x605   : > { %6935 = vmatmul.f32.gmra.mxu2 %v14175_v0  ;;  %7334 = vmatpush.msrb.mxu0 %v12389_v49  ;;  %v14212_v60 = vld [vmem:[#allocation37_spill] sm:$0xff] }
 0x606   : > { %7492 = vmatpush.msrb.mxu2 %v12394_v16  ;;  %7549 = vmatpush.msrb.mxu3 %v12389_v49  ;;  %v6465_v16 = vadd.f32 %v8205_v55, %v6063_v35  ;;  %v14213_v55 = vld [vmem:[#allocation105_spill] sm:$0xff] }
 0x607   : > { %7126 = vmatpush.msra.mxu1 %v14186_v13  ;;  %7336 = vmatpush.msrb.mxu0 %v12376_v61  ;;  %v12708_v22 = vpop.f32.mrf.mxu3  ;;  %v14206_v13 = vld [vmem:[#allocation10_spill] sm:$0xff] }
 0x608   : > { %7495 = vmatpush.msrb.mxu2 %v12404_v9  ;;  %7551 = vmatpush.msrb.mxu3 %v12376_v61  ;;  %8213 = vst [vmem:[%s12282_s21 + $0x50] sm:$0xff] %v6465_v16  ;;  %v6021_v27 = vpop.f32.mrf.mxu0  ;;  %v5904_v9 = vadd.f32 %v12648_v2, %v5843_v17  ;;  %v14215_v17 = vld [vmem:[#allocation34_spill] sm:$0xff] }
 0x609   : > { %7128 = vmatpush.msra.mxu1 %v14188_v38  ;;  %7338 = vmatpush.msrb.mxu0 %v11884_v23  ;;  %v6022_v31 = vadd.f32 %v6021_v27, %v5951_v47  ;;  %v14207_v38 = vld [vmem:[#allocation68_spill] sm:$0xff] }
 0x60a   : > { %7498 = vmatpush.msrb.mxu2 %v14206_v13  ;;  %7553 = vmatpush.msrb.mxu3 %v11884_v23  ;;  %v5957_v34 = vadd.f32 %v12659_v57, %v5904_v9  ;;  %v14214_v47 = vld [vmem:[#allocation36_spill] sm:$0xff]  ;;  %v6213_v9 = vadd.f32 %v12683_v24, %v6108_v5  ;;  %v6116_v24 = vadd.f32 %v12697_v19, %v12301_v4  ;;  %v8204_v5 = vld [vmem:[%s8543_s18 + $0x48] sm:$0xff] }
 0x60b   : > { %7411 = vmatpush.msrb.mxu1 %v14205_v28  ;;  %6837 = vmatmul.f32.gmra.mxu0 %v11737_v6  ;;  %v6066_v20 = vpop.f32.mrf.mxu1  ;;  %v8209_v28 = vld [vmem:[%s8543_s18 + $0x70] sm:$0xff] }
 0x60c   : > { %6878 = vmatmul.f32.gmra.mxu1 %v11715_v11  ;;  %7036 = vmatmul.f32.gmra.mxu3 %v11737_v6  ;;  %v12721_v42 = vpop.f32.mrf.mxu2  ;;  %v6067_v2 = vadd.f32 %v6066_v20, %v6022_v31  ;;  %v14217_v31 = vld [vmem:[#allocation53_spill] sm:$0xff] }
 0x60d   : > { %7340 = vmatpush.msrb.mxu0 %v11871_v58  ;;  %7417 = vmatpush.msrb.mxu1 %v14207_v38 }
 0x60e   : > { %7501 = vmatpush.msrb.mxu2 %v14208_v59  ;;  %7555 = vmatpush.msrb.mxu3 %v11871_v58  ;;  %v6467_v1 = vadd.f32 %v8207_v54, %v6067_v2  ;;  %v14218_v59 = vld [vmem:[#allocation52_spill] sm:$0xff]  ;;  %v14220_v2 = vld [vmem:[#allocation29_spill] sm:$0xff] }
 0x60f   : > { %6943 = vmatmul.f32.gmra.mxu2 %v11763_v15  ;;  %7342 = vmatpush.msrb.mxu0 %v14128_v56  ;;  %v12732_v46 = vpop.f32.mrf.mxu3 }
 0x610   : > { %7423 = vmatpush.msrb.mxu1 %v14209_v3  ;;  %7504 = vmatpush.msrb.mxu2 %v14210_v53  ;;  %8215 = vst [vmem:[%s12282_s21 + $0x60] sm:$0xff] %v6467_v1  ;;  %v6025_v57 = vpop.f32.mrf.mxu0  ;;  %v14223_v53 = vld [vmem:[#allocation84_spill] sm:$0xff] }
 0x611   : > { %7557 = vmatpush.msrb.mxu3 %v14128_v56  ;;  %7344 = vmatpush.msrb.mxu0 %v14134_v21  ;;  %v6026_v35 = vadd.f32 %v6025_v57, %v5957_v34  ;;  %v14222_v34 = vld [vmem:[#allocation80_spill] sm:$0xff] }
 0x612   : > { %7429 = vmatpush.msrb.mxu1 %v14211_v39  ;;  %7507 = vmatpush.msrb.mxu2 %v14212_v60  ;;  %v14224_v1 = vld [vmem:[#allocation24_spill] sm:$0xff]  ;;  %v14225_v60 = vld [vmem:[#allocation66_spill] sm:$0xff] }
 0x613   : > { %7559 = vmatpush.msrb.mxu3 %v14134_v21  ;;  %7082 = vmatmul.f32.vlgmr.msra.gmra.mxu0 %v11556_v32  ;;  %v6070_v16 = vpop.f32.mrf.mxu1 }
 0x614   : > { %7435 = vmatpush.msrb.mxu1 %v14213_v55  ;;  %7510 = vmatpush.msrb.mxu2 %v14214_v47  ;;  %v12746_v13 = vpop.f32.mrf.mxu2  ;;  %v6071_v27 = vadd.f32 %v6070_v16, %v6026_v35  ;;  %v14226_v55 = vld [vmem:[#allocation106_spill] sm:$0xff]  ;;  %v6124_v35 = vadd.f32 %v12721_v42, %v14130_v48  ;;  %v14227_v47 = vld [vmem:[#allocation55_spill] sm:$0xff] }
 0x615   : > { %6882 = vmatmul.f32.gmra.mxu1 %v11737_v6  ;;  %7252 = vmatmul.f32.vlgmr.msra.gmra.mxu3 %v11520_v10  ;;  %v14230_v42 = vld [vmem:[#allocation86_spill] sm:$0xff] }
 0x616   : > { %7441 = vmatpush.msrb.mxu1 %v14215_v17  ;;  %7608 = vmatpush.msra.mxu0 %v12345_v25  ;;  %v6469_v38 = vadd.f32 %v8209_v28, %v6071_v27  ;;  %v14229_v28 = vld [vmem:[#allocation46_spill] sm:$0xff] }
 0x617   : > { %7793 = vmatpush.msra.mxu3 %v14216_v43  ;;  %7207 = vmatmul.f32.vlgmr.msra.gmra.mxu2 %v11520_v10  ;;  %v12757_v20 = vpop.f32.mrf.mxu3 }
 0x618   : > { %7447 = vmatpush.msrb.mxu1 %v14217_v31  ;;  %7612 = vmatpush.msra.mxu0 %v12407_v29  ;;  %8217 = vst [vmem:[%s12282_s21 + $0x70] sm:$0xff] %v6469_v38  ;;  %v14219_v29 = vld [vmem:[#allocation54_spill] sm:$0xff] }
 0x619   : > { %7712 = vmatpush.msra.mxu2 %v12431_v8  ;;  %7799 = vmatpush.msra.mxu3 %v12524_v37  ;;  %v6270_v25 = vpop.f32.mrf.mxu0  ;;  %v14221_v37 = vld [vmem:[#allocation81_spill] sm:$0xff]  ;;  %v14231_v31 = vld [vmem:[#allocation14_spill] sm:$0xff] }
 0x61a   : > { %7453 = vmatpush.msrb.mxu1 %v14218_v59  ;;  %7616 = vmatpush.msra.mxu0 %v12417_v18  ;;  %v6271_v54 = vadd.f32 %v6270_v25, %v6213_v9  ;;  %v14232_v38 = vld [vmem:[#allocation98_spill] sm:$0xff]  ;;  %v8206_v25 = vld [vmem:[%s8543_s18 + $0x58] sm:$0xff] }
 0x61b   : > { %7714 = vmatpush.msra.mxu2 %v12444_v14  ;;  %7805 = vmatpush.msra.mxu3 %v12533_v36  ;;  %v6320_v18 = vpop.f32.mrf.mxu1  ;;  %v6217_v36 = vadd.f32 %v12708_v22, %v6116_v24 }
 0x61c   : > { %7087 = vmatmul.f32.gmra.mxu0 %v14219_v29  ;;  %v6321_v19 = vadd.f32 %v6320_v18, %v6271_v54  ;;  %v6132_v54 = vadd.f32 %v12746_v13, %v12352_v62 }
 0x61d   : > { %7620 = vmatpush.msra.mxu0 %v14220_v2  ;;  %7716 = vmatpush.msra.mxu2 %v12454_v26  ;;  %v6395_v3 = vpop.f32.mrf.mxu2 }
 0x61e   : > { %7811 = vmatpush.msra.mxu3 %v14221_v37  ;;  %7132 = vmatmul.f32.vlgmr.msra.gmra.mxu1 %v14222_v34  ;;  %v6396_v39 = vadd.f32 %v6395_v3, %v6321_v19 }
 0x61f   : > { %7256 = vmatmul.f32.gmra.mxu3 %v11696_v44  ;;  %7624 = vmatpush.msra.mxu0 %v14223_v53  ;;  %v6440_v57 = vpop.f32.mrf.mxu3  ;;  %v6225_v53 = vadd.f32 %v12757_v20, %v6132_v54 }
 0x620   : > { %7667 = vmatpush.msra.mxu1 %v12267_v12  ;;  %7718 = vmatpush.msra.mxu2 %v12468_v7  ;;  %v6441_v22 = vadd.f32 %v6440_v57, %v6396_v39 }
 0x621   : > { %7817 = vmatpush.msra.mxu3 %v14224_v1  ;;  %7211 = vmatmul.f32.gmra.mxu2 %v11696_v44  ;;  %v6275_v12 = vpop.f32.mrf.mxu0 }
 0x622   : > { %7628 = vmatpush.msra.mxu0 %v14225_v60  ;;  %7669 = vmatpush.msra.mxu1 %v12384_v41  ;;  %v6276_v17 = vadd.f32 %v6275_v12, %v6217_v36  ;;  %v14228_v41 = vld [vmem:[#allocation73_spill] sm:$0xff]  ;;  %v6464_v16 = vadd.f32 %v8204_v5, %v6441_v22  ;;  %v14234_v5 = vld [vmem:[#allocation67_spill] sm:$0xff] }
 0x623   : > { %7720 = vmatpush.msra.mxu2 %v14167_v45  ;;  %7823 = vmatpush.msra.mxu3 %v14226_v55  ;;  %v6326_v43 = vpop.f32.mrf.mxu1  ;;  %v8208_v36 = vld [vmem:[%s8543_s18 + $0x68] sm:$0xff]  ;;  %v8210_v12 = vld [vmem:[%s8543_s18 + $0x78] sm:$0xff] }
 0x624   : > { %7632 = vmatpush.msra.mxu0 %v14227_v47  ;;  %7671 = vmatpush.msra.mxu1 %v12389_v49  ;;  %8212 = vst [vmem:[%s12282_s21 + $0x48] sm:$0xff] %v6464_v16  ;;  %v6327_v9 = vadd.f32 %v6326_v43, %v6276_v17  ;;  %v6221_v49 = vadd.f32 %v12732_v46, %v6124_v35  ;;  %v14235_v35 = vld [vmem:[#allocation72_spill] sm:$0xff]  ;;  %v14236_v17 = vld [vmem:[#allocation39_spill] sm:$0xff] }
 0x625   : > { %7722 = vmatpush.msra.mxu2 %v14170_v33  ;;  %7829 = vmatpush.msra.mxu3 %v14228_v41  ;;  %v6399_v27 = vpop.f32.mrf.mxu2  ;;  %v14237_v41 = vld [vmem:[#allocation83_spill] sm:$0xff]  ;;  %v14239_v43 = vld [vmem:[#allocation8_spill] sm:$0xff] }
 0x626   : > { %7636 = vmatpush.msra.mxu0 %v14229_v28  ;;  %7673 = vmatpush.msra.mxu1 %v12376_v61  ;;  %v6400_v61 = vadd.f32 %v6399_v27, %v6327_v9  ;;  %v14238_v28 = vld [vmem:[#allocation64_spill] sm:$0xff]  ;;  %v14242_v9 = vld [vmem:[#allocation6_spill] sm:$0xff] }
 0x627   : > { %7724 = vmatpush.msra.mxu2 %v14173_v51  ;;  %7835 = vmatpush.msra.mxu3 %v14230_v42  ;;  %v6444_v59 = vpop.f32.mrf.mxu3  ;;  %v14240_v27 = vld [vmem:[#allocation60_spill] sm:$0xff]  ;;  %v14241_v42 = vld [vmem:[#allocation11_spill] sm:$0xff] }
 0x628   : > { %7092 = vmatmul.f32.gmra.mxu0 %v14231_v31  ;;  %7138 = vmatmul.f32.gmra.mxu1 %v14232_v38  ;;  %v6445_v24 = vadd.f32 %v6444_v59, %v6400_v61  ;;  %v14244_v59 = vld [vmem:[#allocation108_spill] sm:$0xff] }
 0x629   : > { %7260 = vmatmul.f32.gmra.mxu3 %v11715_v11  ;;  %7675 = vmatpush.msra.mxu1 %v11884_v23  ;;  %v6280_v46 = vpop.f32.mrf.mxu0 }
 0x62a   : > { %7726 = vmatpush.msra.mxu2 %v14177_v40  ;;  %v6281_v2 = vadd.f32 %v6280_v46, %v6221_v49  ;;  %v6466_v23 = vadd.f32 %v8206_v25, %v6445_v24  ;;  %v14243_v49 = vld [vmem:[#allocation115_spill] sm:$0xff]  ;;  %v14245_v25 = vld [vmem:[#allocation18_spill] sm:$0xff]  ;;  %v14248_v46 = vld [vmem:[#allocation5_spill] sm:$0xff] }
 0x62b   : > { %7215 = vmatmul.f32.gmra.mxu2 %v11715_v11  ;;  %7677 = vmatpush.msra.mxu1 %v11871_v58  ;;  %v6332_v37 = vpop.f32.mrf.mxu1  ;;  %v14233_v58 = vld [vmem:[#allocation13_spill] sm:$0xff]  ;;  %v14246_v24 = vld [vmem:[#allocation23_spill] sm:$0xff] }
 0x62c   : > { %8214 = vst [vmem:[%s12282_s21 + $0x58] sm:$0xff] %v6466_v23  ;;  %v6333_v3 = vadd.f32 %v6332_v37, %v6281_v2 }
 0x62d   : > { %7679 = vmatpush.msra.mxu1 %v14128_v56  ;;  %v6403_v18 = vpop.f32.mrf.mxu2 }
 0x62e   : > { %v6404_v13 = vadd.f32 %v6403_v18, %v6333_v3 }
 0x62f   : > { %7681 = vmatpush.msra.mxu1 %v14134_v21  ;;  %v6448_v19 = vpop.f32.mrf.mxu3 }
 0x630   : > { %7097 = vmatmul.f32.gmra.mxu0 %v14125_v30  ;;  %7144 = vmatmul.f32.gmra.mxu1 %v14233_v58  ;;  %v6449_v56 = vadd.f32 %v6448_v19, %v6404_v13 }
 0x631   : > { %7264 = vmatmul.f32.gmra.mxu3 %v11737_v6  ;;  %v6285_v1 = vpop.f32.mrf.mxu0 }
 0x632   : > { %v6286_v21 = vadd.f32 %v6285_v1, %v6225_v53  ;;  %v6468_v39 = vadd.f32 %v8208_v36, %v6449_v56 }
 0x633   : > { %7219 = vmatmul.f32.gmra.mxu2 %v11737_v6 }
 0x634   : > { %8216 = vst [vmem:[%s12282_s21 + $0x68] sm:$0xff] %v6468_v39 }
 0x635   : > { %v6407_v57 = vpop.f32.mrf.mxu2 }
 0x636   : > { %v6338_v60 = vpop.f32.mrf.mxu1 }
 0x637   : > { %v6339_v20 = vadd.f32 %v6338_v60, %v6286_v21 }
 0x638   : > { %7150 = vmatmul.f32.gmra.mxu1 %v14131_v50  ;;  %7350 = vmatmul.f32.vlgmr.msrb.gmra.mxu0 %v14155_v52 }
 0x639   : > { %7563 = vmatmul.f32.vlgmr.msrb.gmra.mxu3 %v14222_v34  ;;  %7871 = vmatpush.msrb.mxu0 %v14234_v5  ;;  %v6408_v55 = vadd.f32 %v6407_v57, %v6339_v20  ;;  %v6452_v22 = vpop.f32.mrf.mxu3 }
 0x63a   : > { %8049 = vmatpush.msrb.mxu3 %v12431_v8 }
 0x63b   : > { %7513 = vmatmul.f32.vlgmr.msrb.gmra.mxu2 %v11556_v32  ;;  %7874 = vmatpush.msrb.mxu0 %v14235_v35  ;;  %v6453_v47 = vadd.f32 %v6452_v22, %v6408_v55  ;;  %v8219_v35 = vld [vmem:[%s8543_s18 + $0x80] sm:$0xff] }
 0x63c   : > { %7990 = vmatpush.msrb.mxu2 %v14236_v17  ;;  %8051 = vmatpush.msrb.mxu3 %v12444_v14 }
 0x63d   : > { %7877 = vmatpush.msrb.mxu0 %v14237_v41  ;;  %v6470_v16 = vadd.f32 %v8210_v12, %v6453_v47 }
 0x63e   : > { %7994 = vmatpush.msrb.mxu2 %v14238_v28  ;;  %8053 = vmatpush.msrb.mxu3 %v12454_v26 }
 0x63f   : > { %7880 = vmatpush.msrb.mxu0 %v14239_v43  ;;  %8218 = vst [vmem:[%s12282_s21 + $0x78] sm:$0xff] %v6470_v16 }
 0x640   : > { %7998 = vmatpush.msrb.mxu2 %v14240_v27  ;;  %8055 = vmatpush.msrb.mxu3 %v12468_v7 }
 0x641   : > { %7358 = vmatmul.f32.gmra.mxu0 %v14241_v42  ;;  %7455 = vmatmul.f32.vlgmr.msrb.gmra.mxu1 %v11520_v10  ;;  %v6538_v61 = vpop.f32.mrf.mxu0 }
 0x642   : > { %7883 = vmatpush.msrb.mxu0 %v14242_v9  ;;  %7927 = vmatpush.msrb.mxu1 %v12431_v8  ;;  %v14247_v8 = vld [vmem:[#allocation59_spill] sm:$0xff]  ;;  %v6539_v13 = vadd.f32 %v6538_v61, %v12258_v63 }
 0x643   : > { %8002 = vmatpush.msrb.mxu2 %v14243_v49  ;;  %8057 = vmatpush.msrb.mxu3 %v14167_v45  ;;  %v8221_v49 = vld [vmem:[%s8543_s18 + $0x90] sm:$0xff] }
 0x644   : > { %7886 = vmatpush.msrb.mxu0 %v14244_v59  ;;  %7929 = vmatpush.msrb.mxu1 %v12444_v14  ;;  %v14249_v14 = vld [vmem:[#allocation50_spill] sm:$0xff] }
 0x645   : > { %8006 = vmatpush.msrb.mxu2 %v14245_v25  ;;  %8059 = vmatpush.msrb.mxu3 %v14170_v33 }
 0x646   : > { %7518 = vmatmul.f32.gmra.mxu2 %v14219_v29  ;;  %7889 = vmatpush.msrb.mxu0 %v14246_v24 }
 0x647   : > { %7931 = vmatpush.msrb.mxu1 %v12454_v26  ;;  %8010 = vmatpush.msrb.mxu2 %v14247_v8  ;;  %v6751_v54 = vpop.f32.mrf.mxu3  ;;  %v14250_v26 = vld [vmem:[#allocation27_spill] sm:$0xff] }
 0x648   : > { %8061 = vmatpush.msrb.mxu3 %v14173_v51  ;;  %7892 = vmatpush.msrb.mxu0 %v14248_v46 }
 0x649   : > { %7569 = vmatmul.f32.gmra.mxu3 %v14232_v38  ;;  %7933 = vmatpush.msrb.mxu1 %v12468_v7 }
 0x64a   : > { %8014 = vmatpush.msrb.mxu2 %v14249_v14  ;;  %8063 = vmatpush.msrb.mxu3 %v14177_v40  ;;  %v6701_v2 = vpop.f32.mrf.mxu2  ;;  %v6546_v23 = vpop.f32.mrf.mxu0 }
 0x64b   : > { %7366 = vmatmul.f32.gmra.mxu0 %v14175_v0  ;;  %7459 = vmatmul.f32.gmra.mxu1 %v11696_v44  ;;  %v6643_v37 = vpop.f32.mrf.mxu1  ;;  %v6547_v39 = vadd.f32 %v6546_v23, %v12301_v4 }
 0x64c   : > { %7935 = vmatpush.msrb.mxu1 %v14167_v45  ;;  %8018 = vmatpush.msrb.mxu2 %v14250_v26  ;;  %v6644_v36 = vadd.f32 %v6643_v37, %v6539_v13 }
 0x64e   : > { %7937 = vmatpush.msrb.mxu1 %v14170_v33  ;;  %7523 = vmatmul.f32.gmra.mxu2 %v14231_v31  ;;  %v6702_v21 = vadd.f32 %v6701_v2, %v6644_v36  ;;  %v8223_v2 = vld [vmem:[%s8543_s18 + $0xa0] sm:$0xff] }
 0x650   : > { %7939 = vmatpush.msrb.mxu1 %v14173_v51  ;;  %v6752_v60 = vadd.f32 %v6751_v54, %v6702_v21 }
 0x651   : > { %7575 = vmatmul.f32.gmra.mxu3 %v14233_v58  ;;  %v6757_v7 = vpop.f32.mrf.mxu3 }
 0x652   : > { %7941 = vmatpush.msrb.mxu1 %v14177_v40 }
 0x653   : > { %7374 = vmatmul.f32.gmra.mxu0 %v11763_v15  ;;  %7463 = vmatmul.f32.gmra.mxu1 %v11715_v11 }
 0x654   : > { %v6706_v45 = vpop.f32.mrf.mxu2  ;;  %v6554_v18 = vpop.f32.mrf.mxu0 }
 0x655   : > { %v6647_v3 = vpop.f32.mrf.mxu1  ;;  %v6555_v41 = vadd.f32 %v6554_v18, %v14130_v48 }
 0x656   : > { %7528 = vmatmul.f32.gmra.mxu2 %v14125_v30  ;;  %v6648_v20 = vadd.f32 %v6647_v3, %v6547_v39  ;;  %v8225_v3 = vld [vmem:[%s8543_s18 + $0xb0] sm:$0xff] }
 0x658   : > { %v6707_v47 = vadd.f32 %v6706_v45, %v6648_v20 }
 0x659   : > { %7581 = vmatmul.f32.gmra.mxu3 %v14131_v50 }
 0x65a   : > { %v6758_v16 = vadd.f32 %v6757_v7, %v6707_v47 }
 0x65b   : > { %7467 = vmatmul.f32.gmra.mxu1 %v11737_v6  ;;  %7638 = vmatmul.f32.vlgmr.msra.gmra.mxu0 %v11520_v10  ;;  %v6763_v33 = vpop.f32.mrf.mxu3 }
 0x65e   : > { %7732 = vmatmul.f32.vlgmr.msra.gmra.mxu2 %v14155_v52  ;;  %v6711_v51 = vpop.f32.mrf.mxu2 }
 0x65f   : > { %v6562_v40 = vpop.f32.mrf.mxu0  ;;  %v6651_v53 = vpop.f32.mrf.mxu1 }
 0x660   : > { %v6652_v43 = vadd.f32 %v6651_v53, %v6555_v41  ;;  %v6563_v24 = vadd.f32 %v6562_v40, %v12352_v62 }
 0x661   : > { %7837 = vmatmul.f32.vlgmr.msra.gmra.mxu3 %v11520_v10 }
 0x662   : > { %v6712_v59 = vadd.f32 %v6711_v51, %v6652_v43 }
 0x663   : > { %7642 = vmatmul.f32.gmra.mxu0 %v11696_v44  ;;  %7683 = vmatmul.f32.vlgmr.msra.gmra.mxu1 %v11520_v10 }
 0x666   : > { %7740 = vmatmul.f32.gmra.mxu2 %v14241_v42 }
 0x667   : > { %v12872_v19 = vpop.f32.mrf.mxu3 }
 0x669   : > { %7841 = vmatmul.f32.gmra.mxu3 %v11696_v44 }
 0x66a   : > { %v6716_v52 = vpop.f32.mrf.mxu2  ;;  %v6826_v1 = vpop.f32.mrf.mxu0 }
 0x66b   : > { %7646 = vmatmul.f32.gmra.mxu0 %v11715_v11  ;;  %7687 = vmatmul.f32.gmra.mxu1 %v11696_v44  ;;  %v6655_v56 = vpop.f32.mrf.mxu1  ;;  %v6827_v5 = vadd.f32 %v6826_v1, %v6752_v60 }
 0x66c   : > { %v6656_v46 = vadd.f32 %v6655_v56, %v6563_v24  ;;  %v8220_v56 = vld [vmem:[%s8543_s18 + $0x88] sm:$0xff] }
 0x66e   : > { %7748 = vmatmul.f32.gmra.mxu2 %v14175_v0  ;;  %v6717_v37 = vadd.f32 %v6716_v52, %v6656_v46 }
 0x671   : > { %7845 = vmatmul.f32.gmra.mxu3 %v11715_v11  ;;  %v12880_v57 = vpop.f32.mrf.mxu3 }
 0x673   : > { %7650 = vmatmul.f32.gmra.mxu0 %v11737_v6  ;;  %7691 = vmatmul.f32.gmra.mxu1 %v11715_v11 }
 0x674   : > { %v6920_v55 = vpop.f32.mrf.mxu2  ;;  %v6830_v22 = vpop.f32.mrf.mxu0 }
 0x675   : > { %v6871_v12 = vpop.f32.mrf.mxu1 }
 0x676   : > { %7756 = vmatmul.f32.gmra.mxu2 %v11763_v15  ;;  %v6872_v0 = vadd.f32 %v6871_v12, %v6827_v5  ;;  %v6831_v15 = vadd.f32 %v6830_v22, %v6758_v16  ;;  %v8222_v12 = vld [vmem:[%s8543_s18 + $0x98] sm:$0xff] }
 0x678   : > { %v7276_v17 = vadd.f32 %v8219_v35, %v6872_v0 }
 0x679   : > { %7849 = vmatmul.f32.gmra.mxu3 %v11737_v6 }
 0x67a   : > { %8227 = vst [vmem:[%s12282_s21 + $0x80] sm:$0xff] %v7276_v17 }
 0x67b   : > { %7695 = vmatmul.f32.gmra.mxu1 %v11737_v6  ;;  %7895 = vmatmul.f32.vlgmr.msrb.gmra.mxu0 %v11556_v32  ;;  %v7029_v28 = vpop.f32.mrf.mxu3  ;;  %v6764_v32 = vadd.f32 %v6763_v33, %v6712_v59 }
 0x67e   : > { %8020 = vmatmul.f32.vlgmr.msrb.gmra.mxu2 %v11520_v10  ;;  %v6928_v27 = vpop.f32.mrf.mxu2  ;;  %v6834_v42 = vpop.f32.mrf.mxu0 }
 0x67f   : > { %v6875_v9 = vpop.f32.mrf.mxu1  ;;  %v6835_v14 = vadd.f32 %v6834_v42, %v6764_v32  ;;  %v6929_v36 = vadd.f32 %v6928_v27, %v12301_v4 }
 0x680   : > { %v6876_v61 = vadd.f32 %v6875_v9, %v6831_v15  ;;  %v8224_v9 = vld [vmem:[%s8543_s18 + $0xa8] sm:$0xff] }
 0x681   : > { %8065 = vmatmul.f32.vlgmr.msrb.gmra.mxu3 %v11520_v10  ;;  %v7030_v21 = vadd.f32 %v7029_v28, %v6929_v36 }
 0x682   : > { %v7278_v25 = vadd.f32 %v8221_v49, %v6876_v61 }
 0x683   : > { %7900 = vmatmul.f32.gmra.mxu0 %v14219_v29  ;;  %7945 = vmatmul.f32.vlgmr.msrb.gmra.mxu1 %v14222_v34  ;;  %v6770_v34 = vadd.f32 %v12872_v19, %v6717_v37 }
 0x684   : > { %8229 = vst [vmem:[%s12282_s21 + $0x90] sm:$0xff] %v7278_v25 }
 0x685   : > { %v7033_v8 = vpop.f32.mrf.mxu3 }
 0x686   : > { %8024 = vmatmul.f32.gmra.mxu2 %v11696_v44 }
 0x688   : > { %v6936_v54 = vpop.f32.mrf.mxu2  ;;  %v6838_v10 = vpop.f32.mrf.mxu0 }
 0x689   : > { %8069 = vmatmul.f32.gmra.mxu3 %v11696_v44  ;;  %v6879_v26 = vpop.f32.mrf.mxu1  ;;  %v6839_v45 = vadd.f32 %v6838_v10, %v6770_v34  ;;  %v8226_v10 = vld [vmem:[%s8543_s18 + $0xb8] sm:$0xff] }
 0x68a   : > { %v6880_v23 = vadd.f32 %v6879_v26, %v6835_v14 }
 0x68b   : > { %7905 = vmatmul.f32.gmra.mxu0 %v14231_v31  ;;  %7951 = vmatmul.f32.gmra.mxu1 %v14232_v38  ;;  %v6921_v38 = vadd.f32 %v6920_v55, %v12258_v63 }
 0x68c   : > { %v7280_v29 = vadd.f32 %v8223_v2, %v6880_v23 }
 0x68d   : > { %v7026_v40 = vadd.f32 %v12880_v57, %v6921_v38 }
 0x68e   : > { %8028 = vmatmul.f32.gmra.mxu2 %v11715_v11  ;;  %8231 = vst [vmem:[%s12282_s21 + $0xa0] sm:$0xff] %v7280_v29 }
 0x68f   : > { %v7037_v7 = vpop.f32.mrf.mxu3 }
 0x690   : > { %v7083_v44 = vpop.f32.mrf.mxu0 }
 0x691   : > { %8073 = vmatmul.f32.gmra.mxu3 %v11715_v11  ;;  %v7084_v53 = vadd.f32 %v7083_v44, %v7026_v40 }
 0x692   : > { %v6883_v18 = vpop.f32.mrf.mxu1  ;;  %v6944_v33 = vpop.f32.mrf.mxu2 }
 0x693   : > { %7910 = vmatmul.f32.gmra.mxu0 %v14125_v30  ;;  %7957 = vmatmul.f32.gmra.mxu1 %v14233_v58  ;;  %v6884_v31 = vadd.f32 %v6883_v18, %v6839_v45  ;;  %v6945_v43 = vadd.f32 %v6944_v33, %v12352_v62 }
 0x695   : > { %v7282_v51 = vadd.f32 %v8225_v3, %v6884_v31  ;;  %v7038_v49 = vadd.f32 %v7037_v7, %v6945_v43 }
 0x696   : > { %8032 = vmatmul.f32.gmra.mxu2 %v11737_v6 }
 0x697   : > { %8233 = vst [vmem:[%s12282_s21 + $0xb0] sm:$0xff] %v7282_v51 }
 0x698   : > { %v7253_v11 = vpop.f32.mrf.mxu3 }
 0x699   : > { %8077 = vmatmul.f32.gmra.mxu3 %v11737_v6  ;;  %v7088_v13 = vpop.f32.mrf.mxu0 }
 0x69a   : > { %v7208_v58 = vpop.f32.mrf.mxu2  ;;  %v7089_v57 = vadd.f32 %v7088_v13, %v7030_v21 }
 0x69b   : > { %7963 = vmatmul.f32.gmra.mxu1 %v14131_v50  ;;  %v7133_v30 = vpop.f32.mrf.mxu1  ;;  %v6937_v50 = vadd.f32 %v6936_v54, %v14130_v48 }
 0x69c   : > { %v7134_v19 = vadd.f32 %v7133_v30, %v7084_v53 }
 0x69d   : > { %v7034_v35 = vadd.f32 %v7033_v8, %v6937_v50 }
 0x69e   : > { %v7209_v52 = vadd.f32 %v7208_v58, %v7134_v19 }
 0x6a0   : > { %v7254_v1 = vadd.f32 %v7253_v11, %v7209_v52 }
 0x6a2   : > { %v7277_v39 = vadd.f32 %v8220_v56, %v7254_v1  ;;  %v7257_v60 = vpop.f32.mrf.mxu3 }
 0x6a4   : > { %8228 = vst [vmem:[%s12282_s21 + $0x88] sm:$0xff] %v7277_v39  ;;  %v7212_v6 = vpop.f32.mrf.mxu2  ;;  %v8235_v39 = vld [vmem:[%s8543_s18 + $0xc0] sm:$0xff] }
 0x6a5   : > { %v7093_v20 = vpop.f32.mrf.mxu0  ;;  %v7139_v5 = vpop.f32.mrf.mxu1 }
 0x6a6   : > { %v7140_v55 = vadd.f32 %v7139_v5, %v7089_v57  ;;  %v7094_v47 = vadd.f32 %v7093_v20, %v7034_v35 }
 0x6a8   : > { %v7213_v22 = vadd.f32 %v7212_v6, %v7140_v55 }
 0x6aa   : > { %v7258_v0 = vadd.f32 %v7257_v60, %v7213_v22 }
 0x6ac   : > { %v7279_v17 = vadd.f32 %v8222_v12, %v7258_v0  ;;  %v7261_v41 = vpop.f32.mrf.mxu3 }
 0x6ad   : > { %v7098_v16 = vpop.f32.mrf.mxu0  ;;  %v7145_v28 = vpop.f32.mrf.mxu1 }
 0x6ae   : > { %8230 = vst [vmem:[%s12282_s21 + $0x98] sm:$0xff] %v7279_v17  ;;  %v7146_v15 = vadd.f32 %v7145_v28, %v7094_v47  ;;  %v7216_v27 = vpop.f32.mrf.mxu2  ;;  %v7099_v59 = vadd.f32 %v7098_v16, %v7038_v49  ;;  %v8237_v47 = vld [vmem:[%s8543_s18 + $0xd0] sm:$0xff] }
 0x6b0   : > { %v7217_v42 = vadd.f32 %v7216_v27, %v7146_v15 }
 0x6b2   : > { %v7262_v61 = vadd.f32 %v7261_v41, %v7217_v42 }
 0x6b4   : > { %v7281_v25 = vadd.f32 %v8224_v9, %v7262_v61  ;;  %v7265_v14 = vpop.f32.mrf.mxu3 }
 0x6b5   : > { %v7151_v24 = vpop.f32.mrf.mxu1  ;;  %v7351_v32 = vpop.f32.mrf.mxu0 }
 0x6b6   : > { %8232 = vst [vmem:[%s12282_s21 + $0xa8] sm:$0xff] %v7281_v25  ;;  %v7152_v8 = vadd.f32 %v7151_v24, %v7099_v59  ;;  %v7220_v46 = vpop.f32.mrf.mxu2  ;;  %v7352_v31 = vadd.f32 %v7351_v32, %v12258_v63  ;;  %v8239_v59 = vld [vmem:[%s8543_s18 + $0xe0] sm:$0xff] }
 0x6b8   : > { %v7221_v54 = vadd.f32 %v7220_v46, %v7152_v8 }
 0x6ba   : > { %v7266_v26 = vadd.f32 %v7265_v14, %v7221_v54 }
 0x6bc   : > { %v7283_v2 = vadd.f32 %v8226_v10, %v7266_v26  ;;  %v7564_v34 = vpop.f32.mrf.mxu3  ;;  %v8241_v26 = vld [vmem:[%s8543_s18 + $0xf0] sm:$0xff] }
 0x6be   : > { %8234 = vst [vmem:[%s12282_s21 + $0xb8] sm:$0xff] %v7283_v2  ;;  %v7359_v23 = vpop.f32.mrf.mxu0  ;;  %v7456_v37 = vpop.f32.mrf.mxu1 }
 0x6bf   : > { %v7514_v29 = vpop.f32.mrf.mxu2  ;;  %v7457_v40 = vadd.f32 %v7456_v37, %v7352_v31  ;;  %v7360_v13 = vadd.f32 %v7359_v23, %v12301_v4 }
 0x6c1   : > { %v7515_v30 = vadd.f32 %v7514_v29, %v7457_v40 }
 0x6c3   : > { %v7565_v36 = vadd.f32 %v7564_v34, %v7515_v30 }
 0x6c8   : > { %v7367_v45 = vpop.f32.mrf.mxu0  ;;  %v7460_v7 = vpop.f32.mrf.mxu1 }
 0x6c9   : > { %v7519_v44 = vpop.f32.mrf.mxu2  ;;  %v7461_v52 = vadd.f32 %v7460_v7, %v7360_v13  ;;  %v7368_v60 = vadd.f32 %v7367_v45, %v14130_v48 }
 0x6cb   : > { %v7520_v57 = vadd.f32 %v7519_v44, %v7461_v52 }
 0x6cc   : > { %v7570_v18 = vpop.f32.mrf.mxu3 }
 0x6cd   : > { %v7571_v55 = vadd.f32 %v7570_v18, %v7520_v57 }
 0x6d0   : > { %v7375_v3 = vpop.f32.mrf.mxu0  ;;  %v7464_v33 = vpop.f32.mrf.mxu1 }
 0x6d1   : > { %v7524_v38 = vpop.f32.mrf.mxu2  ;;  %v7465_v22 = vadd.f32 %v7464_v33, %v7368_v60  ;;  %v7376_v17 = vadd.f32 %v7375_v3, %v12352_v62 }
 0x6d3   : > { %v7525_v41 = vadd.f32 %v7524_v38, %v7465_v22 }
 0x6d4   : > { %v7576_v51 = vpop.f32.mrf.mxu3 }
 0x6d5   : > { %v7577_v27 = vadd.f32 %v7576_v51, %v7525_v41 }
 0x6d8   : > { %v7468_v11 = vpop.f32.mrf.mxu1  ;;  %v7639_v53 = vpop.f32.mrf.mxu0 }
 0x6d9   : > { %v7529_v58 = vpop.f32.mrf.mxu2  ;;  %v7640_v56 = vadd.f32 %v7639_v53, %v7565_v36  ;;  %v7469_v42 = vadd.f32 %v7468_v11, %v7376_v17  ;;  %v8236_v11 = vld [vmem:[%s8543_s18 + $0xc8] sm:$0xff] }
 0x6db   : > { %v7530_v25 = vadd.f32 %v7529_v58, %v7469_v42 }
 0x6dc   : > { %v7582_v19 = vpop.f32.mrf.mxu3 }
 0x6dd   : > { %v7583_v14 = vadd.f32 %v7582_v19, %v7530_v25 }
 0x6e0   : > { %v7643_v1 = vpop.f32.mrf.mxu0  ;;  %v7684_v21 = vpop.f32.mrf.mxu1 }
 0x6e1   : > { %v7685_v6 = vadd.f32 %v7684_v21, %v7640_v56  ;;  %v7733_v20 = vpop.f32.mrf.mxu2  ;;  %v7644_v12 = vadd.f32 %v7643_v1, %v7571_v55  ;;  %v8238_v21 = vld [vmem:[%s8543_s18 + $0xd8] sm:$0xff] }
 0x6e2   : > { %v7734_v23 = vadd.f32 %v7733_v20, %v12258_v63 }
 0x6e3   : > { %v8089_v5 = vadd.f32 %v8235_v39, %v7685_v6 }
 0x6e4   : > { %v7838_v50 = vpop.f32.mrf.mxu3 }
 0x6e5   : > { %8243 = vst [vmem:[%s12282_s21 + $0xc0] sm:$0xff] %v8089_v5  ;;  %v7839_v7 = vadd.f32 %v7838_v50, %v7734_v23 }
 0x6e8   : > { %v7647_v35 = vpop.f32.mrf.mxu0  ;;  %v7688_v0 = vpop.f32.mrf.mxu1 }
 0x6e9   : > { %v7689_v16 = vadd.f32 %v7688_v0, %v7644_v12  ;;  %v7741_v28 = vpop.f32.mrf.mxu2  ;;  %v7648_v9 = vadd.f32 %v7647_v35, %v7577_v27  ;;  %v8240_v35 = vld [vmem:[%s8543_s18 + $0xe8] sm:$0xff] }
 0x6ea   : > { %v7742_v33 = vadd.f32 %v7741_v28, %v12301_v4 }
 0x6eb   : > { %v8091_v43 = vadd.f32 %v8237_v47, %v7689_v16 }
 0x6ec   : > { %v7842_v15 = vpop.f32.mrf.mxu3 }
 0x6ed   : > { %8245 = vst [vmem:[%s12282_s21 + $0xd0] sm:$0xff] %v8091_v43  ;;  %v7843_v53 = vadd.f32 %v7842_v15, %v7742_v33 }
 0x6f0   : > { %v7651_v49 = vpop.f32.mrf.mxu0  ;;  %v7692_v61 = vpop.f32.mrf.mxu1 }
 0x6f1   : > { %v7693_v24 = vadd.f32 %v7692_v61, %v7648_v9  ;;  %v7749_v32 = vpop.f32.mrf.mxu2  ;;  %v7652_v54 = vadd.f32 %v7651_v49, %v7583_v14 }
 0x6f2   : > { %v7750_v19 = vadd.f32 %v7749_v32, %v14130_v48 }
 0x6f3   : > { %v8093_v8 = vadd.f32 %v8239_v59, %v7693_v24 }
 0x6f4   : > { %v7846_v46 = vpop.f32.mrf.mxu3 }
 0x6f5   : > { %8247 = vst [vmem:[%s12282_s21 + $0xe0] sm:$0xff] %v8093_v8  ;;  %v7847_v39 = vadd.f32 %v7846_v46, %v7750_v19 }
 0x6f8   : > { %v7696_v10 = vpop.f32.mrf.mxu1  ;;  %v7896_v2 = vpop.f32.mrf.mxu0 }
 0x6f9   : > { %v7697_v37 = vadd.f32 %v7696_v10, %v7652_v54  ;;  %v7757_v29 = vpop.f32.mrf.mxu2  ;;  %v7897_v44 = vadd.f32 %v7896_v2, %v7839_v7 }
 0x6fa   : > { %v7758_v5 = vadd.f32 %v7757_v29, %v12352_v62  ;;  %v8242_v62 = vld [vmem:[%s8543_s18 + $0xf8] sm:$0xff] }
 0x6fb   : > { %v8095_v34 = vadd.f32 %v8241_v26, %v7697_v37 }
 0x6fc   : > { %v7850_v45 = vpop.f32.mrf.mxu3 }
 0x6fd   : > { %8249 = vst [vmem:[%s12282_s21 + $0xf0] sm:$0xff] %v8095_v34  ;;  %v7851_v0 = vadd.f32 %v7850_v45, %v7758_v5 }
 0x700   : > { %v7901_v18 = vpop.f32.mrf.mxu0  ;;  %v7946_v3 = vpop.f32.mrf.mxu1 }
 0x701   : > { %v7947_v31 = vadd.f32 %v7946_v3, %v7897_v44  ;;  %v8021_v38 = vpop.f32.mrf.mxu2  ;;  %v7902_v13 = vadd.f32 %v7901_v18, %v7843_v53 }
 0x703   : > { %v8022_v51 = vadd.f32 %v8021_v38, %v7947_v31 }
 0x704   : > { %v8066_v40 = vpop.f32.mrf.mxu3 }
 0x705   : > { %v8067_v63 = vadd.f32 %v8066_v40, %v8022_v51 }
 0x707   : > { %v8090_v30 = vadd.f32 %v8236_v11, %v8067_v63 }
 0x708   : > { %v7952_v58 = vpop.f32.mrf.mxu1  ;;  %v7906_v56 = vpop.f32.mrf.mxu0 }
 0x709   : > { %8244 = vst [vmem:[%s12282_s21 + $0xc8] sm:$0xff] %v8090_v30  ;;  %v7953_v36 = vadd.f32 %v7952_v58, %v7902_v13  ;;  %v8025_v52 = vpop.f32.mrf.mxu2  ;;  %v7907_v57 = vadd.f32 %v7906_v56, %v7847_v39 }
 0x70b   : > { %v8026_v4 = vadd.f32 %v8025_v52, %v7953_v36 }
 0x70c   : > { %v8070_v1 = vpop.f32.mrf.mxu3 }
 0x70d   : > { %v8071_v60 = vadd.f32 %v8070_v1, %v8026_v4 }
 0x70f   : > { %v8092_v6 = vadd.f32 %v8238_v21, %v8071_v60 }
 0x710   : > { %v7958_v20 = vpop.f32.mrf.mxu1  ;;  %v7911_v22 = vpop.f32.mrf.mxu0 }
 0x711   : > { %8246 = vst [vmem:[%s12282_s21 + $0xd8] sm:$0xff] %v8092_v6  ;;  %v7959_v50 = vadd.f32 %v7958_v20, %v7907_v57  ;;  %v8029_v48 = vpop.f32.mrf.mxu2  ;;  %v7912_v17 = vadd.f32 %v7911_v22, %v7851_v0 }
 0x713   : > { %v8030_v55 = vadd.f32 %v8029_v48, %v7959_v50 }
 0x714   : > { %v8074_v12 = vpop.f32.mrf.mxu3 }
 0x715   : > { %v8075_v47 = vadd.f32 %v8074_v12, %v8030_v55 }
 0x717   : > { %v8094_v41 = vadd.f32 %v8240_v35, %v8075_v47 }
 0x718   : > { %v7964_v16 = vpop.f32.mrf.mxu1 }
 0x719   : > { %8248 = vst [vmem:[%s12282_s21 + $0xe8] sm:$0xff] %v8094_v41  ;;  %v7965_v28 = vadd.f32 %v7964_v16, %v7912_v17  ;;  %v8033_v43 = vpop.f32.mrf.mxu2 }
 0x71b   : > { %v8034_v15 = vadd.f32 %v8033_v43, %v7965_v28 }
 0x71c   : > { %v8078_v27 = vpop.f32.mrf.mxu3 }
 0x71d   : > { %v8079_v42 = vadd.f32 %v8078_v27, %v8034_v15 }
 0x71f   : > { %v8096_v9 = vadd.f32 %v8242_v62, %v8079_v42 }
 0x721   : > { %8250 = vst [vmem:[%s12282_s21 + $0xf8] sm:$0xff] %v8096_v9 }
 0x722 PF: > { %s13_s12 = sadd.s32 1, %s8497_s12  }
 0x723   : > { %p10_p4 = scmp.ge.s32.totalorder %s13_s12, 4  }
 0x725   :  { %12 = sbr.rel (!%p10_p4) target bundleno = 1 (0x1), region = 69 }

</bundles_post_ra>
